<compile_context>
chip_gen: v5e
topology: v5e:2x2
jax: 0.10.0
libtpu: 0.0.40
codegen_flags: <defaults>
</compile_context>

<pallas_src>
import numpy as np
import jax
import jax.numpy as jnp
from jax import lax
from jax.experimental import pallas as pl
from jax.experimental.pallas import tpu as pltpu

_BN_EPS = 1e-5

# (cin, cout, kernel, dilation, pool, residual_concat)
LAYER_CFG = [
    (4, 32, 12, 1, 4, False),   # PooledConvLayer(4, 32, 12, pool=4)
    (32, 32, 5, 1, 2, False),   # PooledConvLayer(32, 32, 5, pool=2)
    (32, 32, 5, 1, 2, False),   # PooledConvLayer(32, 32, 5, pool=2)
    (32, 16, 5, 2, 1, False),   # DilatedConvLayer(32, 16, 5, dilation=2)
    (16, 16, 5, 4, 1, True),    # ResidualConcat(Dilated(16, 16, 5, d=4))
    (32, 16, 5, 8, 1, True),    # ResidualConcat(Dilated(32, 16, 5, d=8))
    (48, 16, 5, 16, 1, True),   # ResidualConcat(Dilated(48, 16, 5, d=16))
]

L_IN = 512          # sequence length this fused kernel is specialized for
C_MAX = 64          # max channel count anywhere (48 + 16)
HALO = 32           # >= max 'same' padding on either side (layer 6: 32/32)
BAND = HALO + L_IN + HALO   # per-sample lane band in the VMEM scratch (576)
PARAM_W = 256       # packed weight row width (max K*Cin_pad = 240)
CROP = 8
HEAD_CIN = 64
CHUNK = 256         # target matmul N (output positions per MXU call)


def _same_pad(k, d):
    # PyTorch Conv1d(padding='same'): left = total // 2, right gets the extra.
    total = d * (k - 1)
    return total // 2, total - total // 2


def _round8(n):
    return ((n + 7) // 8) * 8


def _layer_plan(l_in=L_IN):
    """Static per-layer geometry + row offsets into the packed parameter slabs."""
    plan, length, row = [], l_in, 0
    for (cin, cout, k, d, pool, res) in LAYER_CFG:
        left, right = _same_pad(k, d)
        plan.append(dict(cin=cin, cout=cout, k=k, d=d, pool=pool, res=res,
                         left=left, right=right, cin_pad=_round8(cin),
                         lin=length, lout=length // pool, row=row))
        row += cout
        length //= pool
    return plan, row, length            # head_row (=160), final length (=32)


def pack_params(blocks, head_w, head_b):
    """Pack conv weights (bf16 im2col rows) and bias/BN affine (f32).

    blocks[i]['w'] is in native PyTorch Conv1d layout (Cout, Cin, K).
    Returns (w_bf16 [rows, 256], aff_f32 [rows, 128]) where per-layer rows
    [row, row+Cout) hold: w_bf16 cols [t*Cin_pad + c] = w[o, c, t];
    aff cols 0/1/2 = conv bias / BN scale / BN shift.  Head rows: w cols [0,64)
    = (n_tracks, 64) weight, aff col 0 = head bias.
    """
    plan, head_row, _ = _layer_plan()
    n_tracks = int(head_w.shape[0])
    rows = head_row + n_tracks
    wp = np.zeros((rows, PARAM_W), np.float32)
    af = np.zeros((rows, 128), np.float32)
    for cfg, blk in zip(plan, blocks):
        k, cin, cip, co, r = cfg["k"], cfg["cin"], cfg["cin_pad"], cfg["cout"], cfg["row"]
        w = np.asarray(blk["w"], np.float32)                  # (cout, cin, k)
        for t in range(k):
            wp[r:r + co, t * cip:t * cip + cin] = w[:, :, t]  # (cout, cin)
        af[r:r + co, 0] = np.asarray(blk["b"], np.float32).reshape(-1)
        af[r:r + co, 1] = np.asarray(blk["scale"], np.float32).reshape(-1)
        af[r:r + co, 2] = np.asarray(blk["shift"], np.float32).reshape(-1)
    wp[head_row:rows, :HEAD_CIN] = np.asarray(head_w, np.float32).reshape(n_tracks, HEAD_CIN)
    af[head_row:rows, 0] = np.asarray(head_b, np.float32).reshape(-1)
    return jnp.asarray(wp, jnp.bfloat16), jnp.asarray(af, jnp.float32)


def _fused_kernel(x_ref, w_ref, aff_ref, o_ref, buf0, buf1):
    """Whole network for B_TILE samples.  Activations are (C, lanes) f32 in a
    VMEM ping-pong; each sample owns a BAND-wide lane band with 32-lane halos."""
    f32, bf16 = jnp.float32, jnp.bfloat16
    bt = x_ref.shape[0]
    L = x_ref.shape[2]
    n_tracks = o_ref.shape[1]
    plan, head_row, l_final = _layer_plan(L)

    def band(s):
        return s * BAND

    # ---- stage input: zero layer-0's read rows once, then write (4, L)/sample
    cip0, cin0 = plan[0]["cin_pad"], plan[0]["cin"]
    buf0[0:cip0, :] = jnp.zeros((cip0, buf0.shape[1]), f32)
    for s in range(bt):
        buf0[0:cin0, band(s) + HALO:band(s) + HALO + L] = x_ref[s].astype(f32)

    bufs = (buf0, buf1)
    cur = 0
    for cfg in plan:
        cin, cip, co = cfg["cin"], cfg["cin_pad"], cfg["cout"]
        k, d, pool, res = cfg["k"], cfg["d"], cfg["pool"], cfg["res"]
        lin, lout, left = cfg["lin"], cfg["lout"], cfg["left"]
        kc = k * cip
        inplace = (pool == 1)           # dilated / residual layers: lin == lout
        src = bufs[cur]
        dst = src if inplace else bufs[1 - cur]
        if not inplace:
            cur = 1 - cur
        rowoff = cin if res else 0      # residual concat: out lands after x

        # this layer's parameters (bf16 weights; f32 bias / BN scale / shift)
        wl = w_ref[cfg["row"]:cfg["row"] + co, 0:kc]        # (co, k*cip) bf16
        bcol = aff_ref[cfg["row"]:cfg["row"] + co, 0:1]     # (co, 1) f32
        sccol = aff_ref[cfg["row"]:cfg["row"] + co, 1:2]
        shcol = aff_ref[cfg["row"]:cfg["row"] + co, 2:3]

        # zero ONLY the halo lanes of the rows this layer writes (next layer's
        # 'same' padding); the interior is fully overwritten below.
        zer = jnp.zeros((co, HALO), f32)
        for s in range(bt):
            dst[rowoff:rowoff + co, band(s):band(s) + HALO] = zer
            dst[rowoff:rowoff + co,
                band(s) + HALO + lout:band(s) + HALO + lout + HALO] = zer

        # chunk descriptors: list of segments (sample, pos0, plen); samples are
        # concatenated along lanes when lin is small so N stays ~CHUNK.
        chunks = []
        if lin >= CHUNK:
            for s in range(bt):
                for p0 in range(0, lin, CHUNK):
                    chunks.append([(s, p0, min(CHUNK, lin - p0))])
        else:
            spc = max(1, CHUNK // lin)
            for s0 in range(0, bt, spc):
                chunks.append([(s, 0, lin) for s in range(s0, min(bt, s0 + spc))])

        for segs in chunks:
            n = sum(p[2] for p in segs)

            # ---- Conv1d('same', dilation) as ONE full-K im2col matmul -------
            seg_vals = []
            for (s, p0, plen) in segs:
                a0 = band(s) + HALO - left + p0
                seg_vals.append(src[0:cip, a0:a0 + plen + (k - 1) * d])
            tap_blocks = []
            for t in range(k):
                pieces = [sv[:, t * d:t * d + seg[2]]
                          for sv, seg in zip(seg_vals, segs)]
                tap_blocks.append(pieces[0] if len(pieces) == 1
                                  else jnp.concatenate(pieces, axis=1))
            slab = (tap_blocks[0] if k == 1
                    else jnp.concatenate(tap_blocks, axis=0)).astype(bf16)

            y = jnp.dot(wl, slab, preferred_element_type=f32)   # (co, n)
            y = jnp.maximum(y + bcol, 0.0)                      # bias + ReLU

            # ---- MaxPool1d(pool): shift+max (VPU/XLU) + one compaction matmul
            if pool > 1:
                m = y
                sft = 1
                while sft < pool:
                    rot = jnp.concatenate([m[:, sft:], m[:, :sft]], axis=1)
                    m = jnp.maximum(m, rot)       # m[i] = max(y[i..i+sft*2-1])
                    sft *= 2
                nout = n // pool
                rowi = lax.broadcasted_iota(jnp.int32, (n, nout), 0)
                coli = lax.broadcasted_iota(jnp.int32, (n, nout), 1)
                cmat = jnp.where(rowi == pool * coli, 1.0, 0.0).astype(bf16)
                out = jnp.dot(m.astype(bf16), cmat, preferred_element_type=f32)
            else:
                out = y

            out = out * sccol + shcol   # BatchNorm1d (eval); Dropout = identity

            # ---- scatter the pooled chunk back to each sample's band --------
            cum = 0
            for (s, p0, plen) in segs:
                piece = out[:, cum // pool:(cum + plen) // pool]
                c0 = band(s) + HALO + p0 // pool
                dst[rowoff:rowoff + co, c0:c0 + plen // pool] = piece
                cum += plen

    # ---- Crop1d(8, 8) + Conv1d(64, n_tracks, 1) + ReLU (head) --------------
    final = bufs[cur]
    l_out = l_final - 2 * CROP
    hw = w_ref[head_row:head_row + n_tracks, 0:HEAD_CIN]       # (nt, 64) bf16
    hb = aff_ref[head_row:head_row + n_tracks, 0:1]            # (nt, 1) f32
    hx = [final[0:HEAD_CIN,
                band(s) + HALO + CROP:band(s) + HALO + l_final - CROP]
          for s in range(bt)]
    hcat = (hx[0] if bt == 1 else jnp.concatenate(hx, axis=1)).astype(bf16)
    hy = jnp.maximum(jnp.dot(hw, hcat, preferred_element_type=f32) + hb, 0.0)
    for s in range(bt):
        o_ref[s] = hy[:, s * l_out:(s + 1) * l_out].astype(o_ref.dtype)


def init_params(key, n_tracks=2):
    """Synthetic parameters: PyTorch-layout raw weights (for the reference)
    plus the packed bf16/f32 slabs consumed by the fused kernel."""
    blocks = []
    for (cin, cout, k, d, pool, res) in LAYER_CFG:
        key, kw, kb, kg, kbe, km, kv = jax.random.split(key, 7)
        w = 0.1 * jax.random.normal(kw, (cout, cin, k), jnp.float32)   # torch layout
        b = 0.1 * jax.random.normal(kb, (cout,), jnp.float32)
        gamma = 1.0 + 0.1 * jax.random.normal(kg, (cout,), jnp.float32)
        beta = 0.1 * jax.random.normal(kbe, (cout,), jnp.float32)
        rmean = 0.1 * jax.random.normal(km, (cout,), jnp.float32)
        rvar = 1.0 + 0.1 * jnp.abs(jax.random.normal(kv, (cout,), jnp.float32))
        scale = gamma / jnp.sqrt(rvar + _BN_EPS)
        shift = beta - rmean * scale
        blocks.append(dict(w=w, b=b, scale=scale, shift=shift))
    key, kw, kb = jax.random.split(key, 3)
    head_w = 0.1 * jax.random.normal(kw, (n_tracks, HEAD_CIN), jnp.float32)
    head_b = 0.1 * jax.random.normal(kb, (n_tracks,), jnp.float32)

    wp, af = pack_params(
        [{kk: np.asarray(vv) for kk, vv in blk.items()} for blk in blocks],
        np.asarray(head_w), np.asarray(head_b))
    packed = {"w": wp, "aff": af}
    raw = {"blocks": blocks, "head_w": head_w, "head_b": head_b}
    return packed, raw


def bassenji_forward(params, x, *, b_tile=None):
    """x: (B, L, 4) -> (B, L // 16 - 16, n_tracks).  One fused Pallas kernel."""
    B, L, cin = x.shape
    assert L == L_IN and cin == LAYER_CFG[0][0], (L, cin)
    plan, head_row, l_final = _layer_plan(L)
    wp, af = params["w"], params["aff"]
    n_tracks = wp.shape[0] - head_row
    l_out = l_final - 2 * CROP

    if b_tile is None:       # biggest tile that still leaves >= 2 grid steps
        b_tile = 1
        for cand in (8, 4, 2):
            if B % cand == 0 and B // cand >= 2:
                b_tile = cand
                break
    assert B % b_tile == 0, (B, b_tile)

    x_cl = jnp.transpose(x, (0, 2, 1))               # (B, 4, L) channels-major

    out_cl = pl.pallas_call(
        _fused_kernel,
        out_shape=jax.ShapeDtypeStruct((B, n_tracks, l_out), x.dtype),
        grid=(B // b_tile,),
        in_specs=[
            pl.BlockSpec((b_tile, cin, L), lambda b: (b, 0, 0)),
            pl.BlockSpec(wp.shape, lambda b: (0, 0)),
            pl.BlockSpec(af.shape, lambda b: (0, 0)),
        ],
        out_specs=pl.BlockSpec((b_tile, n_tracks, l_out), lambda b: (b, 0, 0)),
        scratch_shapes=[pltpu.VMEM((C_MAX, b_tile * BAND), jnp.float32),
                        pltpu.VMEM((C_MAX, b_tile * BAND), jnp.float32)],
        compiler_params=pltpu.CompilerParams(
            dimension_semantics=("parallel",)),      # batch tiles across cores
    )(x_cl, wp, af)
    return jnp.transpose(out_cl, (0, 2, 1))          # (B, l_out, n_tracks)


def bassenji_reference(raw, x):
    """Pure-JAX eval-mode reference of the PyTorch module (f32, HIGHEST prec)."""
    h = jnp.transpose(x, (0, 2, 1))                  # (B, 4, L)
    for (cin, cout, k, d, pool, res), blk in zip(LAYER_CFG, raw["blocks"]):
        left, right = _same_pad(k, d)
        y = lax.conv_general_dilated(
            h, blk["w"], window_strides=(1,), padding=[(left, right)],
            rhs_dilation=(d,), dimension_numbers=("NCH", "OIH", "NCH"),
            precision=lax.Precision.HIGHEST)
        y = jnp.maximum(y + blk["b"][None, :, None], 0.0)
        if pool > 1:
            y = lax.reduce_window(y, -jnp.inf, lax.max,
                                  (1, 1, pool), (1, 1, pool), "VALID")
        y = y * blk["scale"][None, :, None] + blk["shift"][None, :, None]
        h = jnp.concatenate([h, y], axis=1) if res else y
    h = h[:, :, CROP:-CROP]
    y = jnp.einsum("oc,bcl->bol", raw["head_w"], h) + raw["head_b"][None, :, None]
    y = jnp.maximum(y, 0.0)
    return jnp.transpose(y, (0, 2, 1))


if __name__ == "__main__":
    key = jax.random.PRNGKey(0)
    pkey, xkey = jax.random.split(key)
    n_tracks = 2
    packed, raw = init_params(pkey, n_tracks=n_tracks)

    B, L = 4, L_IN          # pools /4/2/2 -> 32 positions, crop 8+8 -> 16 outputs
    x = jax.random.normal(xkey, (B, L, 4), dtype=jnp.float32)

    out = jax.jit(bassenji_forward)(packed, x)       # b_tile=2, grid=(2,)
    out = jax.block_until_ready(out)
    assert out.shape == (B, L // 16 - 2 * CROP, n_tracks), out.shape
    assert bool(jnp.all(jnp.isfinite(out)))

    ref = jax.block_until_ready(jax.jit(bassenji_reference)(raw, x))
    np.testing.assert_allclose(np.asarray(out), np.asarray(ref),
                               atol=7e-2, rtol=7e-2)   # bf16-MXU tolerance
    print("KERNEL_OK")
</pallas_src>

<mosaic_0001>
module attributes {stable_mosaic.version = 11 : i64} {
  func.func @_fused_kernel(%arg0: i32, %arg1: memref<2x4x512xf32, #tpu.memory_space<vmem>>, %arg2: memref<162x256xbf16, #tpu.memory_space<vmem>>, %arg3: memref<162x128xf32, #tpu.memory_space<vmem>>, %arg4: memref<2x2x16xf32, #tpu.memory_space<vmem>>, %arg5: memref<64x1152xf32, #tpu.memory_space<vmem>>, %arg6: memref<64x1152xf32, #tpu.memory_space<vmem>>) attributes {dimension_semantics = [#tpu.dimension_semantics<parallel>], iteration_bounds = array<i64: 2>, scalar_prefetch = 0 : i64, scratch_operands = 2 : i64, tpu.core_type = #tpu.core_type<tc>, window_params = [{transform_indices = @transform_0, window_bounds = array<i64: 2, 4, 512>}, {pipeline_mode = #tpu.pipeline_mode<synchronous>, transform_indices = @transform_1, window_bounds = array<i64: 162, 256>}, {pipeline_mode = #tpu.pipeline_mode<synchronous>, transform_indices = @transform_2, window_bounds = array<i64: 162, 128>}, {transform_indices = @transform_3, window_bounds = array<i64: 2, 2, 16>}]} {
    %cst = arith.constant 0.000000e+00 : f32
    %0 = vector.broadcast %cst : f32 to vector<8x1152xf32>
    %c0 = arith.constant 0 : index
    %c0_0 = arith.constant 0 : index
    %1 = vector.load %arg5[%c0, %c0_0] : memref<64x1152xf32, #tpu.memory_space<vmem>>, vector<8x1152xf32>
    tpu.vector_store %arg5[%c0, %c0_0], %0 {strides = array<i32>} : memref<64x1152xf32, #tpu.memory_space<vmem>>, vector<8x1152xf32>,
    %c0_1 = arith.constant 0 : index
    %c0_2 = arith.constant 0 : index
    %c0_3 = arith.constant 0 : index
    %2 = vector.load %arg1[%c0_1, %c0_2, %c0_3] : memref<2x4x512xf32, #tpu.memory_space<vmem>>, vector<1x4x512xf32>
    %3 = vector.shape_cast %2 : vector<1x4x512xf32> to vector<4x512xf32>
    %c0_4 = arith.constant 0 : index
    %c32 = arith.constant 32 : index
    %4 = vector.load %arg5[%c0_4, %c32] : memref<64x1152xf32, #tpu.memory_space<vmem>>, vector<4x512xf32>
    tpu.vector_store %arg5[%c0_4, %c32], %3 {strides = array<i32>} : memref<64x1152xf32, #tpu.memory_space<vmem>>, vector<4x512xf32>,
    %c1 = arith.constant 1 : index
    %c0_5 = arith.constant 0 : index
    %c0_6 = arith.constant 0 : index
    %5 = vector.load %arg1[%c1, %c0_5, %c0_6] : memref<2x4x512xf32, #tpu.memory_space<vmem>>, vector<1x4x512xf32>
    %6 = vector.shape_cast %5 : vector<1x4x512xf32> to vector<4x512xf32>
    %c0_7 = arith.constant 0 : index
    %c608 = arith.constant 608 : index
    %7 = vector.load %arg5[%c0_7, %c608] : memref<64x1152xf32, #tpu.memory_space<vmem>>, vector<4x512xf32>
    tpu.vector_store %arg5[%c0_7, %c608], %6 {strides = array<i32>} : memref<64x1152xf32, #tpu.memory_space<vmem>>, vector<4x512xf32>,
    %c0_8 = arith.constant 0 : index
    %c0_9 = arith.constant 0 : index
    %8 = vector.load %arg2[%c0_8, %c0_9] : memref<162x256xbf16, #tpu.memory_space<vmem>>, vector<32x96xbf16>
    %c0_10 = arith.constant 0 : index
    %c0_11 = arith.constant 0 : index
    %9 = vector.load %arg3[%c0_10, %c0_11] : memref<162x128xf32, #tpu.memory_space<vmem>>, vector<32x1xf32>
    %c0_12 = arith.constant 0 : index
    %c1_13 = arith.constant 1 : index
    %10 = vector.load %arg3[%c0_12, %c1_13] : memref<162x128xf32, #tpu.memory_space<vmem>>, vector<32x1xf32>
    %c0_14 = arith.constant 0 : index
    %c2 = arith.constant 2 : index
    %11 = vector.load %arg3[%c0_14, %c2] : memref<162x128xf32, #tpu.memory_space<vmem>>, vector<32x1xf32>
    %cst_15 = arith.constant 0.000000e+00 : f32
    %12 = vector.broadcast %cst_15 : f32 to vector<32x32xf32>
    %c0_16 = arith.constant 0 : index
    %c0_17 = arith.constant 0 : index
    %13 = vector.load %arg6[%c0_16, %c0_17] : memref<64x1152xf32, #tpu.memory_space<vmem>>, vector<32x32xf32>
    tpu.vector_store %arg6[%c0_16, %c0_17], %12 {strides = array<i32>} : memref<64x1152xf32, #tpu.memory_space<vmem>>, vector<32x32xf32>,
    %c0_18 = arith.constant 0 : index
    %c160 = arith.constant 160 : index
    %14 = vector.load %arg6[%c0_18, %c160] : memref<64x1152xf32, #tpu.memory_space<vmem>>, vector<32x32xf32>
    tpu.vector_store %arg6[%c0_18, %c160], %12 {strides = array<i32>} : memref<64x1152xf32, #tpu.memory_space<vmem>>, vector<32x32xf32>,
    %c0_19 = arith.constant 0 : index
    %c576 = arith.constant 576 : index
    %15 = vector.load %arg6[%c0_19, %c576] : memref<64x1152xf32, #tpu.memory_space<vmem>>, vector<32x32xf32>
    tpu.vector_store %arg6[%c0_19, %c576], %12 {strides = array<i32>} : memref<64x1152xf32, #tpu.memory_space<vmem>>, vector<32x32xf32>,
    %c0_20 = arith.constant 0 : index
    %c736 = arith.constant 736 : index
    %16 = vector.load %arg6[%c0_20, %c736] : memref<64x1152xf32, #tpu.memory_space<vmem>>, vector<32x32xf32>
    tpu.vector_store %arg6[%c0_20, %c736], %12 {strides = array<i32>} : memref<64x1152xf32, #tpu.memory_space<vmem>>, vector<32x32xf32>,
    %c0_21 = arith.constant 0 : index
    %c27 = arith.constant 27 : index
    %17 = vector.load %arg5[%c0_21, %c27] : memref<64x1152xf32, #tpu.memory_space<vmem>>, vector<8x267xf32>
    %18 = vector.extract_strided_slice %17 {offsets = [0, 0], sizes = [8, 256], strides = [1, 1]} : vector<8x267xf32> to vector<8x256xf32>
    %19 = vector.extract_strided_slice %17 {offsets = [0, 1], sizes = [8, 256], strides = [1, 1]} : vector<8x267xf32> to vector<8x256xf32>
    %20 = vector.extract_strided_slice %17 {offsets = [0, 2], sizes = [8, 256], strides = [1, 1]} : vector<8x267xf32> to vector<8x256xf32>
    %21 = vector.extract_strided_slice %17 {offsets = [0, 3], sizes = [8, 256], strides = [1, 1]} : vector<8x267xf32> to vector<8x256xf32>
    %22 = vector.extract_strided_slice %17 {offsets = [0, 4], sizes = [8, 256], strides = [1, 1]} : vector<8x267xf32> to vector<8x256xf32>
    %23 = vector.extract_strided_slice %17 {offsets = [0, 5], sizes = [8, 256], strides = [1, 1]} : vector<8x267xf32> to vector<8x256xf32>
    %24 = vector.extract_strided_slice %17 {offsets = [0, 6], sizes = [8, 256], strides = [1, 1]} : vector<8x267xf32> to vector<8x256xf32>
    %25 = vector.extract_strided_slice %17 {offsets = [0, 7], sizes = [8, 256], strides = [1, 1]} : vector<8x267xf32> to vector<8x256xf32>
    %26 = vector.extract_strided_slice %17 {offsets = [0, 8], sizes = [8, 256], strides = [1, 1]} : vector<8x267xf32> to vector<8x256xf32>
    %27 = vector.extract_strided_slice %17 {offsets = [0, 9], sizes = [8, 256], strides = [1, 1]} : vector<8x267xf32> to vector<8x256xf32>
    %28 = vector.extract_strided_slice %17 {offsets = [0, 10], sizes = [8, 256], strides = [1, 1]} : vector<8x267xf32> to vector<8x256xf32>
    %29 = vector.extract_strided_slice %17 {offsets = [0, 11], sizes = [8, 256], strides = [1, 1]} : vector<8x267xf32> to vector<8x256xf32>
    %30 = tpu.concatenate %18, %19, %20, %21, %22, %23, %24, %25, %26, %27, %28, %29 in 0 : vector<8x256xf32>, vector<8x256xf32>, vector<8x256xf32>, vector<8x256xf32>, vector<8x256xf32>, vector<8x256xf32>, vector<8x256xf32>, vector<8x256xf32>, vector<8x256xf32>, vector<8x256xf32>, vector<8x256xf32>, vector<8x256xf32> -> vector<96x256xf32>
    %31 = arith.truncf %30 : vector<96x256xf32> to vector<96x256xbf16>
    %cst_22 = arith.constant dense<0.000000e+00> : vector<32x256xf32>
    %32 = tpu.matmul %8, %31, %cst_22 {dimension_numbers = #tpu.dot_dimension_numbers<[1], [0], [0], [1], [0, 0, 1, 1], [], []>} : vector<32x96xbf16>, vector<96x256xbf16>, vector<32x256xf32> -> vector<32x256xf32>
    %33 = vector.broadcast %9 : vector<32x1xf32> to vector<32x256xf32>
    %34 = arith.addf %32, %33 : vector<32x256xf32>
    %cst_23 = arith.constant 0.000000e+00 : f32
    %35 = vector.broadcast %cst_23 : f32 to vector<32x256xf32>
    %36 = arith.maximumf %34, %35 : vector<32x256xf32>
    %37 = vector.extract_strided_slice %36 {offsets = [0, 1], sizes = [32, 255], strides = [1, 1]} : vector<32x256xf32> to vector<32x255xf32>
    %38 = vector.extract_strided_slice %36 {offsets = [0, 0], sizes = [32, 1], strides = [1, 1]} : vector<32x256xf32> to vector<32x1xf32>
    %39 = tpu.concatenate %37, %38 in 1 : vector<32x255xf32>, vector<32x1xf32> -> vector<32x256xf32>
    %40 = arith.maximumf %36, %39 : vector<32x256xf32>
    %41 = vector.extract_strided_slice %40 {offsets = [0, 2], sizes = [32, 254], strides = [1, 1]} : vector<32x256xf32> to vector<32x254xf32>
    %42 = vector.extract_strided_slice %40 {offsets = [0, 0], sizes = [32, 2], strides = [1, 1]} : vector<32x256xf32> to vector<32x2xf32>
    %43 = tpu.concatenate %41, %42 in 1 : vector<32x254xf32>, vector<32x2xf32> -> vector<32x256xf32>
    %44 = arith.maximumf %40, %43 : vector<32x256xf32>
    %45 = tpu.iota {dimensions = array<i32: 0>} : vector<256x64xi32>
    %46 = tpu.iota {dimensions = array<i32: 1>} : vector<256x64xi32>
    %c4_i32 = arith.constant 4 : i32
    %47 = vector.broadcast %c4_i32 : i32 to vector<256x64xi32>
    %48 = arith.muli %47, %46 : vector<256x64xi32>
    %49 = arith.cmpi eq, %45, %48 : vector<256x64xi32>
    %cst_24 = arith.constant 1.000000e+00 : f32
    %cst_25 = arith.constant 0.000000e+00 : f32
    %50 = vector.broadcast %cst_24 : f32 to vector<256x64xf32>
    %51 = vector.broadcast %cst_25 : f32 to vector<256x64xf32>
    %52 = arith.select %49, %50, %51 : vector<256x64xi1>, vector<256x64xf32>
    %53 = arith.truncf %52 : vector<256x64xf32> to vector<256x64xbf16>
    %54 = arith.truncf %44 : vector<32x256xf32> to vector<32x256xbf16>
    %cst_26 = arith.constant dense<0.000000e+00> : vector<32x64xf32>
    %55 = tpu.matmul %54, %53, %cst_26 {dimension_numbers = #tpu.dot_dimension_numbers<[1], [0], [0], [1], [0, 0, 1, 1], [], []>} : vector<32x256xbf16>, vector<256x64xbf16>, vector<32x64xf32> -> vector<32x64xf32>
    %56 = vector.broadcast %10 : vector<32x1xf32> to vector<32x64xf32>
    %57 = arith.mulf %55, %56 : vector<32x64xf32>
    %58 = vector.broadcast %11 : vector<32x1xf32> to vector<32x64xf32>
    %59 = arith.addf %57, %58 : vector<32x64xf32>
    %c0_27 = arith.constant 0 : index
    %c32_28 = arith.constant 32 : index
    %60 = vector.load %arg6[%c0_27, %c32_28] : memref<64x1152xf32, #tpu.memory_space<vmem>>, vector<32x64xf32>
    tpu.vector_store %arg6[%c0_27, %c32_28], %59 {strides = array<i32>} : memref<64x1152xf32, #tpu.memory_space<vmem>>, vector<32x64xf32>,
    %c0_29 = arith.constant 0 : index
    %c283 = arith.constant 283 : index
    %61 = vector.load %arg5[%c0_29, %c283] : memref<64x1152xf32, #tpu.memory_space<vmem>>, vector<8x267xf32>
    %62 = vector.extract_strided_slice %61 {offsets = [0, 0], sizes = [8, 256], strides = [1, 1]} : vector<8x267xf32> to vector<8x256xf32>
    %63 = vector.extract_strided_slice %61 {offsets = [0, 1], sizes = [8, 256], strides = [1, 1]} : vector<8x267xf32> to vector<8x256xf32>
    %64 = vector.extract_strided_slice %61 {offsets = [0, 2], sizes = [8, 256], strides = [1, 1]} : vector<8x267xf32> to vector<8x256xf32>
    %65 = vector.extract_strided_slice %61 {offsets = [0, 3], sizes = [8, 256], strides = [1, 1]} : vector<8x267xf32> to vector<8x256xf32>
    %66 = vector.extract_strided_slice %61 {offsets = [0, 4], sizes = [8, 256], strides = [1, 1]} : vector<8x267xf32> to vector<8x256xf32>
    %67 = vector.extract_strided_slice %61 {offsets = [0, 5], sizes = [8, 256], strides = [1, 1]} : vector<8x267xf32> to vector<8x256xf32>
    %68 = vector.extract_strided_slice %61 {offsets = [0, 6], sizes = [8, 256], strides = [1, 1]} : vector<8x267xf32> to vector<8x256xf32>
    %69 = vector.extract_strided_slice %61 {offsets = [0, 7], sizes = [8, 256], strides = [1, 1]} : vector<8x267xf32> to vector<8x256xf32>
    %70 = vector.extract_strided_slice %61 {offsets = [0, 8], sizes = [8, 256], strides = [1, 1]} : vector<8x267xf32> to vector<8x256xf32>
    %71 = vector.extract_strided_slice %61 {offsets = [0, 9], sizes = [8, 256], strides = [1, 1]} : vector<8x267xf32> to vector<8x256xf32>
    %72 = vector.extract_strided_slice %61 {offsets = [0, 10], sizes = [8, 256], strides = [1, 1]} : vector<8x267xf32> to vector<8x256xf32>
    %73 = vector.extract_strided_slice %61 {offsets = [0, 11], sizes = [8, 256], strides = [1, 1]} : vector<8x267xf32> to vector<8x256xf32>
    %74 = tpu.concatenate %62, %63, %64, %65, %66, %67, %68, %69, %70, %71, %72, %73 in 0 : vector<8x256xf32>, vector<8x256xf32>, vector<8x256xf32>, vector<8x256xf32>, vector<8x256xf32>, vector<8x256xf32>, vector<8x256xf32>, vector<8x256xf32>, vector<8x256xf32>, vector<8x256xf32>, vector<8x256xf32>, vector<8x256xf32> -> vector<96x256xf32>
    %75 = arith.truncf %74 : vector<96x256xf32> to vector<96x256xbf16>
    %cst_30 = arith.constant dense<0.000000e+00> : vector<32x256xf32>
    %76 = tpu.matmul %8, %75, %cst_30 {dimension_numbers = #tpu.dot_dimension_numbers<[1], [0], [0], [1], [0, 0, 1, 1], [], []>} : vector<32x96xbf16>, vector<96x256xbf16>, vector<32x256xf32> -> vector<32x256xf32>
    %77 = vector.broadcast %9 : vector<32x1xf32> to vector<32x256xf32>
    %78 = arith.addf %76, %77 : vector<32x256xf32>
    %cst_31 = arith.constant 0.000000e+00 : f32
    %79 = vector.broadcast %cst_31 : f32 to vector<32x256xf32>
    %80 = arith.maximumf %78, %79 : vector<32x256xf32>
    %81 = vector.extract_strided_slice %80 {offsets = [0, 1], sizes = [32, 255], strides = [1, 1]} : vector<32x256xf32> to vector<32x255xf32>
    %82 = vector.extract_strided_slice %80 {offsets = [0, 0], sizes = [32, 1], strides = [1, 1]} : vector<32x256xf32> to vector<32x1xf32>
    %83 = tpu.concatenate %81, %82 in 1 : vector<32x255xf32>, vector<32x1xf32> -> vector<32x256xf32>
    %84 = arith.maximumf %80, %83 : vector<32x256xf32>
    %85 = vector.extract_strided_slice %84 {offsets = [0, 2], sizes = [32, 254], strides = [1, 1]} : vector<32x256xf32> to vector<32x254xf32>
    %86 = vector.extract_strided_slice %84 {offsets = [0, 0], sizes = [32, 2], strides = [1, 1]} : vector<32x256xf32> to vector<32x2xf32>
    %87 = tpu.concatenate %85, %86 in 1 : vector<32x254xf32>, vector<32x2xf32> -> vector<32x256xf32>
    %88 = arith.maximumf %84, %87 : vector<32x256xf32>
    %89 = tpu.iota {dimensions = array<i32: 0>} : vector<256x64xi32>
    %90 = tpu.iota {dimensions = array<i32: 1>} : vector<256x64xi32>
    %c4_i32_32 = arith.constant 4 : i32
    %91 = vector.broadcast %c4_i32_32 : i32 to vector<256x64xi32>
    %92 = arith.muli %91, %90 : vector<256x64xi32>
    %93 = arith.cmpi eq, %89, %92 : vector<256x64xi32>
    %cst_33 = arith.constant 1.000000e+00 : f32
    %cst_34 = arith.constant 0.000000e+00 : f32
    %94 = vector.broadcast %cst_33 : f32 to vector<256x64xf32>
    %95 = vector.broadcast %cst_34 : f32 to vector<256x64xf32>
    %96 = arith.select %93, %94, %95 : vector<256x64xi1>, vector<256x64xf32>
    %97 = arith.truncf %96 : vector<256x64xf32> to vector<256x64xbf16>
    %98 = arith.truncf %88 : vector<32x256xf32> to vector<32x256xbf16>
    %cst_35 = arith.constant dense<0.000000e+00> : vector<32x64xf32>
    %99 = tpu.matmul %98, %97, %cst_35 {dimension_numbers = #tpu.dot_dimension_numbers<[1], [0], [0], [1], [0, 0, 1, 1], [], []>} : vector<32x256xbf16>, vector<256x64xbf16>, vector<32x64xf32> -> vector<32x64xf32>
    %100 = vector.broadcast %10 : vector<32x1xf32> to vector<32x64xf32>
    %101 = arith.mulf %99, %100 : vector<32x64xf32>
    %102 = vector.broadcast %11 : vector<32x1xf32> to vector<32x64xf32>
    %103 = arith.addf %101, %102 : vector<32x64xf32>
    %c0_36 = arith.constant 0 : index
    %c96 = arith.constant 96 : index
    %104 = vector.load %arg6[%c0_36, %c96] : memref<64x1152xf32, #tpu.memory_space<vmem>>, vector<32x64xf32>
    tpu.vector_store %arg6[%c0_36, %c96], %103 {strides = array<i32>} : memref<64x1152xf32, #tpu.memory_space<vmem>>, vector<32x64xf32>,
    %c0_37 = arith.constant 0 : index
    %c603 = arith.constant 603 : index
    %105 = vector.load %arg5[%c0_37, %c603] : memref<64x1152xf32, #tpu.memory_space<vmem>>, vector<8x267xf32>
    %106 = vector.extract_strided_slice %105 {offsets = [0, 0], sizes = [8, 256], strides = [1, 1]} : vector<8x267xf32> to vector<8x256xf32>
    %107 = vector.extract_strided_slice %105 {offsets = [0, 1], sizes = [8, 256], strides = [1, 1]} : vector<8x267xf32> to vector<8x256xf32>
    %108 = vector.extract_strided_slice %105 {offsets = [0, 2], sizes = [8, 256], strides = [1, 1]} : vector<8x267xf32> to vector<8x256xf32>
    %109 = vector.extract_strided_slice %105 {offsets = [0, 3], sizes = [8, 256], strides = [1, 1]} : vector<8x267xf32> to vector<8x256xf32>
    %110 = vector.extract_strided_slice %105 {offsets = [0, 4], sizes = [8, 256], strides = [1, 1]} : vector<8x267xf32> to vector<8x256xf32>
    %111 = vector.extract_strided_slice %105 {offsets = [0, 5], sizes = [8, 256], strides = [1, 1]} : vector<8x267xf32> to vector<8x256xf32>
    %112 = vector.extract_strided_slice %105 {offsets = [0, 6], sizes = [8, 256], strides = [1, 1]} : vector<8x267xf32> to vector<8x256xf32>
    %113 = vector.extract_strided_slice %105 {offsets = [0, 7], sizes = [8, 256], strides = [1, 1]} : vector<8x267xf32> to vector<8x256xf32>
    %114 = vector.extract_strided_slice %105 {offsets = [0, 8], sizes = [8, 256], strides = [1, 1]} : vector<8x267xf32> to vector<8x256xf32>
    %115 = vector.extract_strided_slice %105 {offsets = [0, 9], sizes = [8, 256], strides = [1, 1]} : vector<8x267xf32> to vector<8x256xf32>
    %116 = vector.extract_strided_slice %105 {offsets = [0, 10], sizes = [8, 256], strides = [1, 1]} : vector<8x267xf32> to vector<8x256xf32>
    %117 = vector.extract_strided_slice %105 {offsets = [0, 11], sizes = [8, 256], strides = [1, 1]} : vector<8x267xf32> to vector<8x256xf32>
    %118 = tpu.concatenate %106, %107, %108, %109, %110, %111, %112, %113, %114, %115, %116, %117 in 0 : vector<8x256xf32>, vector<8x256xf32>, vector<8x256xf32>, vector<8x256xf32>, vector<8x256xf32>, vector<8x256xf32>, vector<8x256xf32>, vector<8x256xf32>, vector<8x256xf32>, vector<8x256xf32>, vector<8x256xf32>, vector<8x256xf32> -> vector<96x256xf32>
    %119 = arith.truncf %118 : vector<96x256xf32> to vector<96x256xbf16>
    %cst_38 = arith.constant dense<0.000000e+00> : vector<32x256xf32>
    %120 = tpu.matmul %8, %119, %cst_38 {dimension_numbers = #tpu.dot_dimension_numbers<[1], [0], [0], [1], [0, 0, 1, 1], [], []>} : vector<32x96xbf16>, vector<96x256xbf16>, vector<32x256xf32> -> vector<32x256xf32>
    %121 = vector.broadcast %9 : vector<32x1xf32> to vector<32x256xf32>
    %122 = arith.addf %120, %121 : vector<32x256xf32>
    %cst_39 = arith.constant 0.000000e+00 : f32
    %123 = vector.broadcast %cst_39 : f32 to vector<32x256xf32>
    %124 = arith.maximumf %122, %123 : vector<32x256xf32>
    %125 = vector.extract_strided_slice %124 {offsets = [0, 1], sizes = [32, 255], strides = [1, 1]} : vector<32x256xf32> to vector<32x255xf32>
    %126 = vector.extract_strided_slice %124 {offsets = [0, 0], sizes = [32, 1], strides = [1, 1]} : vector<32x256xf32> to vector<32x1xf32>
    %127 = tpu.concatenate %125, %126 in 1 : vector<32x255xf32>, vector<32x1xf32> -> vector<32x256xf32>
    %128 = arith.maximumf %124, %127 : vector<32x256xf32>
    %129 = vector.extract_strided_slice %128 {offsets = [0, 2], sizes = [32, 254], strides = [1, 1]} : vector<32x256xf32> to vector<32x254xf32>
    %130 = vector.extract_strided_slice %128 {offsets = [0, 0], sizes = [32, 2], strides = [1, 1]} : vector<32x256xf32> to vector<32x2xf32>
    %131 = tpu.concatenate %129, %130 in 1 : vector<32x254xf32>, vector<32x2xf32> -> vector<32x256xf32>
    %132 = arith.maximumf %128, %131 : vector<32x256xf32>
    %133 = tpu.iota {dimensions = array<i32: 0>} : vector<256x64xi32>
    %134 = tpu.iota {dimensions = array<i32: 1>} : vector<256x64xi32>
    %c4_i32_40 = arith.constant 4 : i32
    %135 = vector.broadcast %c4_i32_40 : i32 to vector<256x64xi32>
    %136 = arith.muli %135, %134 : vector<256x64xi32>
    %137 = arith.cmpi eq, %133, %136 : vector<256x64xi32>
    %cst_41 = arith.constant 1.000000e+00 : f32
    %cst_42 = arith.constant 0.000000e+00 : f32
    %138 = vector.broadcast %cst_41 : f32 to vector<256x64xf32>
    %139 = vector.broadcast %cst_42 : f32 to vector<256x64xf32>
    %140 = arith.select %137, %138, %139 : vector<256x64xi1>, vector<256x64xf32>
    %141 = arith.truncf %140 : vector<256x64xf32> to vector<256x64xbf16>
    %142 = arith.truncf %132 : vector<32x256xf32> to vector<32x256xbf16>
    %cst_43 = arith.constant dense<0.000000e+00> : vector<32x64xf32>
    %143 = tpu.matmul %142, %141, %cst_43 {dimension_numbers = #tpu.dot_dimension_numbers<[1], [0], [0], [1], [0, 0, 1, 1], [], []>} : vector<32x256xbf16>, vector<256x64xbf16>, vector<32x64xf32> -> vector<32x64xf32>
    %144 = vector.broadcast %10 : vector<32x1xf32> to vector<32x64xf32>
    %145 = arith.mulf %143, %144 : vector<32x64xf32>
    %146 = vector.broadcast %11 : vector<32x1xf32> to vector<32x64xf32>
    %147 = arith.addf %145, %146 : vector<32x64xf32>
    %c0_44 = arith.constant 0 : index
    %c608_45 = arith.constant 608 : index
    %148 = vector.load %arg6[%c0_44, %c608_45] : memref<64x1152xf32, #tpu.memory_space<vmem>>, vector<32x64xf32>
    tpu.vector_store %arg6[%c0_44, %c608_45], %147 {strides = array<i32>} : memref<64x1152xf32, #tpu.memory_space<vmem>>, vector<32x64xf32>,
    %c0_46 = arith.constant 0 : index
    %c859 = arith.constant 859 : index
    %149 = vector.load %arg5[%c0_46, %c859] : memref<64x1152xf32, #tpu.memory_space<vmem>>, vector<8x267xf32>
    %150 = vector.extract_strided_slice %149 {offsets = [0, 0], sizes = [8, 256], strides = [1, 1]} : vector<8x267xf32> to vector<8x256xf32>
    %151 = vector.extract_strided_slice %149 {offsets = [0, 1], sizes = [8, 256], strides = [1, 1]} : vector<8x267xf32> to vector<8x256xf32>
    %152 = vector.extract_strided_slice %149 {offsets = [0, 2], sizes = [8, 256], strides = [1, 1]} : vector<8x267xf32> to vector<8x256xf32>
    %153 = vector.extract_strided_slice %149 {offsets = [0, 3], sizes = [8, 256], strides = [1, 1]} : vector<8x267xf32> to vector<8x256xf32>
    %154 = vector.extract_strided_slice %149 {offsets = [0, 4], sizes = [8, 256], strides = [1, 1]} : vector<8x267xf32> to vector<8x256xf32>
    %155 = vector.extract_strided_slice %149 {offsets = [0, 5], sizes = [8, 256], strides = [1, 1]} : vector<8x267xf32> to vector<8x256xf32>
    %156 = vector.extract_strided_slice %149 {offsets = [0, 6], sizes = [8, 256], strides = [1, 1]} : vector<8x267xf32> to vector<8x256xf32>
    %157 = vector.extract_strided_slice %149 {offsets = [0, 7], sizes = [8, 256], strides = [1, 1]} : vector<8x267xf32> to vector<8x256xf32>
    %158 = vector.extract_strided_slice %149 {offsets = [0, 8], sizes = [8, 256], strides = [1, 1]} : vector<8x267xf32> to vector<8x256xf32>
    %159 = vector.extract_strided_slice %149 {offsets = [0, 9], sizes = [8, 256], strides = [1, 1]} : vector<8x267xf32> to vector<8x256xf32>
    %160 = vector.extract_strided_slice %149 {offsets = [0, 10], sizes = [8, 256], strides = [1, 1]} : vector<8x267xf32> to vector<8x256xf32>
    %161 = vector.extract_strided_slice %149 {offsets = [0, 11], sizes = [8, 256], strides = [1, 1]} : vector<8x267xf32> to vector<8x256xf32>
    %162 = tpu.concatenate %150, %151, %152, %153, %154, %155, %156, %157, %158, %159, %160, %161 in 0 : vector<8x256xf32>, vector<8x256xf32>, vector<8x256xf32>, vector<8x256xf32>, vector<8x256xf32>, vector<8x256xf32>, vector<8x256xf32>, vector<8x256xf32>, vector<8x256xf32>, vector<8x256xf32>, vector<8x256xf32>, vector<8x256xf32> -> vector<96x256xf32>
    %163 = arith.truncf %162 : vector<96x256xf32> to vector<96x256xbf16>
    %cst_47 = arith.constant dense<0.000000e+00> : vector<32x256xf32>
    %164 = tpu.matmul %8, %163, %cst_47 {dimension_numbers = #tpu.dot_dimension_numbers<[1], [0], [0], [1], [0, 0, 1, 1], [], []>} : vector<32x96xbf16>, vector<96x256xbf16>, vector<32x256xf32> -> vector<32x256xf32>
    %165 = vector.broadcast %9 : vector<32x1xf32> to vector<32x256xf32>
    %166 = arith.addf %164, %165 : vector<32x256xf32>
    %cst_48 = arith.constant 0.000000e+00 : f32
    %167 = vector.broadcast %cst_48 : f32 to vector<32x256xf32>
    %168 = arith.maximumf %166, %167 : vector<32x256xf32>
    %169 = vector.extract_strided_slice %168 {offsets = [0, 1], sizes = [32, 255], strides = [1, 1]} : vector<32x256xf32> to vector<32x255xf32>
    %170 = vector.extract_strided_slice %168 {offsets = [0, 0], sizes = [32, 1], strides = [1, 1]} : vector<32x256xf32> to vector<32x1xf32>
    %171 = tpu.concatenate %169, %170 in 1 : vector<32x255xf32>, vector<32x1xf32> -> vector<32x256xf32>
    %172 = arith.maximumf %168, %171 : vector<32x256xf32>
    %173 = vector.extract_strided_slice %172 {offsets = [0, 2], sizes = [32, 254], strides = [1, 1]} : vector<32x256xf32> to vector<32x254xf32>
    %174 = vector.extract_strided_slice %172 {offsets = [0, 0], sizes = [32, 2], strides = [1, 1]} : vector<32x256xf32> to vector<32x2xf32>
    %175 = tpu.concatenate %173, %174 in 1 : vector<32x254xf32>, vector<32x2xf32> -> vector<32x256xf32>
    %176 = arith.maximumf %172, %175 : vector<32x256xf32>
    %177 = tpu.iota {dimensions = array<i32: 0>} : vector<256x64xi32>
    %178 = tpu.iota {dimensions = array<i32: 1>} : vector<256x64xi32>
    %c4_i32_49 = arith.constant 4 : i32
    %179 = vector.broadcast %c4_i32_49 : i32 to vector<256x64xi32>
    %180 = arith.muli %179, %178 : vector<256x64xi32>
    %181 = arith.cmpi eq, %177, %180 : vector<256x64xi32>
    %cst_50 = arith.constant 1.000000e+00 : f32
    %cst_51 = arith.constant 0.000000e+00 : f32
    %182 = vector.broadcast %cst_50 : f32 to vector<256x64xf32>
    %183 = vector.broadcast %cst_51 : f32 to vector<256x64xf32>
    %184 = arith.select %181, %182, %183 : vector<256x64xi1>, vector<256x64xf32>
    %185 = arith.truncf %184 : vector<256x64xf32> to vector<256x64xbf16>
    %186 = arith.truncf %176 : vector<32x256xf32> to vector<32x256xbf16>
    %cst_52 = arith.constant dense<0.000000e+00> : vector<32x64xf32>
    %187 = tpu.matmul %186, %185, %cst_52 {dimension_numbers = #tpu.dot_dimension_numbers<[1], [0], [0], [1], [0, 0, 1, 1], [], []>} : vector<32x256xbf16>, vector<256x64xbf16>, vector<32x64xf32> -> vector<32x64xf32>
    %188 = vector.broadcast %10 : vector<32x1xf32> to vector<32x64xf32>
    %189 = arith.mulf %187, %188 : vector<32x64xf32>
    %190 = vector.broadcast %11 : vector<32x1xf32> to vector<32x64xf32>
    %191 = arith.addf %189, %190 : vector<32x64xf32>
    %c0_53 = arith.constant 0 : index
    %c672 = arith.constant 672 : index
    %192 = vector.load %arg6[%c0_53, %c672] : memref<64x1152xf32, #tpu.memory_space<vmem>>, vector<32x64xf32>
    tpu.vector_store %arg6[%c0_53, %c672], %191 {strides = array<i32>} : memref<64x1152xf32, #tpu.memory_space<vmem>>, vector<32x64xf32>,
    %c32_54 = arith.constant 32 : index
    %c0_55 = arith.constant 0 : index
    %193 = vector.load %arg2[%c32_54, %c0_55] : memref<162x256xbf16, #tpu.memory_space<vmem>>, vector<32x160xbf16>
    %c32_56 = arith.constant 32 : index
    %c0_57 = arith.constant 0 : index
    %194 = vector.load %arg3[%c32_56, %c0_57] : memref<162x128xf32, #tpu.memory_space<vmem>>, vector<32x1xf32>
    %c32_58 = arith.constant 32 : index
    %c1_59 = arith.constant 1 : index
    %195 = vector.load %arg3[%c32_58, %c1_59] : memref<162x128xf32, #tpu.memory_space<vmem>>, vector<32x1xf32>
    %c32_60 = arith.constant 32 : index
    %c2_61 = arith.constant 2 : index
    %196 = vector.load %arg3[%c32_60, %c2_61] : memref<162x128xf32, #tpu.memory_space<vmem>>, vector<32x1xf32>
    %cst_62 = arith.constant 0.000000e+00 : f32
    %197 = vector.broadcast %cst_62 : f32 to vector<32x32xf32>
    %c0_63 = arith.constant 0 : index
    %c0_64 = arith.constant 0 : index
    %198 = vector.load %arg5[%c0_63, %c0_64] : memref<64x1152xf32, #tpu.memory_space<vmem>>, vector<32x32xf32>
    tpu.vector_store %arg5[%c0_63, %c0_64], %197 {strides = array<i32>} : memref<64x1152xf32, #tpu.memory_space<vmem>>, vector<32x32xf32>,
    %c0_65 = arith.constant 0 : index
    %c96_66 = arith.constant 96 : index
    %199 = vector.load %arg5[%c0_65, %c96_66] : memref<64x1152xf32, #tpu.memory_space<vmem>>, vector<32x32xf32>
    tpu.vector_store %arg5[%c0_65, %c96_66], %197 {strides = array<i32>} : memref<64x1152xf32, #tpu.memory_space<vmem>>, vector<32x32xf32>,
    %c0_67 = arith.constant 0 : index
    %c576_68 = arith.constant 576 : index
    %200 = vector.load %arg5[%c0_67, %c576_68] : memref<64x1152xf32, #tpu.memory_space<vmem>>, vector<32x32xf32>
    tpu.vector_store %arg5[%c0_67, %c576_68], %197 {strides = array<i32>} : memref<64x1152xf32, #tpu.memory_space<vmem>>, vector<32x32xf32>,
    %c0_69 = arith.constant 0 : index
    %c672_70 = arith.constant 672 : index
    %201 = vector.load %arg5[%c0_69, %c672_70] : memref<64x1152xf32, #tpu.memory_space<vmem>>, vector<32x32xf32>
    tpu.vector_store %arg5[%c0_69, %c672_70], %197 {strides = array<i32>} : memref<64x1152xf32, #tpu.memory_space<vmem>>, vector<32x32xf32>,
    %c0_71 = arith.constant 0 : index
    %c30 = arith.constant 30 : index
    %202 = vector.load %arg6[%c0_71, %c30] : memref<64x1152xf32, #tpu.memory_space<vmem>>, vector<32x132xf32>
    %c0_72 = arith.constant 0 : index
    %c606 = arith.constant 606 : index
    %203 = vector.load %arg6[%c0_72, %c606] : memref<64x1152xf32, #tpu.memory_space<vmem>>, vector<32x132xf32>
    %204 = vector.extract_strided_slice %202 {offsets = [0, 0], sizes = [32, 128], strides = [1, 1]} : vector<32x132xf32> to vector<32x128xf32>
    %205 = vector.extract_strided_slice %203 {offsets = [0, 0], sizes = [32, 128], strides = [1, 1]} : vector<32x132xf32> to vector<32x128xf32>
    %206 = tpu.concatenate %204, %205 in 1 : vector<32x128xf32>, vector<32x128xf32> -> vector<32x256xf32>
    %207 = vector.extract_strided_slice %202 {offsets = [0, 1], sizes = [32, 128], strides = [1, 1]} : vector<32x132xf32> to vector<32x128xf32>
    %208 = vector.extract_strided_slice %203 {offsets = [0, 1], sizes = [32, 128], strides = [1, 1]} : vector<32x132xf32> to vector<32x128xf32>
    %209 = tpu.concatenate %207, %208 in 1 : vector<32x128xf32>, vector<32x128xf32> -> vector<32x256xf32>
    %210 = vector.extract_strided_slice %202 {offsets = [0, 2], sizes = [32, 128], strides = [1, 1]} : vector<32x132xf32> to vector<32x128xf32>
    %211 = vector.extract_strided_slice %203 {offsets = [0, 2], sizes = [32, 128], strides = [1, 1]} : vector<32x132xf32> to vector<32x128xf32>
    %212 = tpu.concatenate %210, %211 in 1 : vector<32x128xf32>, vector<32x128xf32> -> vector<32x256xf32>
    %213 = vector.extract_strided_slice %202 {offsets = [0, 3], sizes = [32, 128], strides = [1, 1]} : vector<32x132xf32> to vector<32x128xf32>
    %214 = vector.extract_strided_slice %203 {offsets = [0, 3], sizes = [32, 128], strides = [1, 1]} : vector<32x132xf32> to vector<32x128xf32>
    %215 = tpu.concatenate %213, %214 in 1 : vector<32x128xf32>, vector<32x128xf32> -> vector<32x256xf32>
    %216 = vector.extract_strided_slice %202 {offsets = [0, 4], sizes = [32, 128], strides = [1, 1]} : vector<32x132xf32> to vector<32x128xf32>
    %217 = vector.extract_strided_slice %203 {offsets = [0, 4], sizes = [32, 128], strides = [1, 1]} : vector<32x132xf32> to vector<32x128xf32>
    %218 = tpu.concatenate %216, %217 in 1 : vector<32x128xf32>, vector<32x128xf32> -> vector<32x256xf32>
    %219 = tpu.concatenate %206, %209, %212, %215, %218 in 0 : vector<32x256xf32>, vector<32x256xf32>, vector<32x256xf32>, vector<32x256xf32>, vector<32x256xf32> -> vector<160x256xf32>
    %220 = arith.truncf %219 : vector<160x256xf32> to vector<160x256xbf16>
    %cst_73 = arith.constant dense<0.000000e+00> : vector<32x256xf32>
    %221 = tpu.matmul %193, %220, %cst_73 {dimension_numbers = #tpu.dot_dimension_numbers<[1], [0], [0], [1], [0, 0, 1, 1], [], []>} : vector<32x160xbf16>, vector<160x256xbf16>, vector<32x256xf32> -> vector<32x256xf32>
    %222 = vector.broadcast %194 : vector<32x1xf32> to vector<32x256xf32>
    %223 = arith.addf %221, %222 : vector<32x256xf32>
    %cst_74 = arith.constant 0.000000e+00 : f32
    %224 = vector.broadcast %cst_74 : f32 to vector<32x256xf32>
    %225 = arith.maximumf %223, %224 : vector<32x256xf32>
    %226 = vector.extract_strided_slice %225 {offsets = [0, 1], sizes = [32, 255], strides = [1, 1]} : vector<32x256xf32> to vector<32x255xf32>
    %227 = vector.extract_strided_slice %225 {offsets = [0, 0], sizes = [32, 1], strides = [1, 1]} : vector<32x256xf32> to vector<32x1xf32>
    %228 = tpu.concatenate %226, %227 in 1 : vector<32x255xf32>, vector<32x1xf32> -> vector<32x256xf32>
    %229 = arith.maximumf %225, %228 : vector<32x256xf32>
    %230 = tpu.iota {dimensions = array<i32: 0>} : vector<256x128xi32>
    %231 = tpu.iota {dimensions = array<i32: 1>} : vector<256x128xi32>
    %c2_i32 = arith.constant 2 : i32
    %232 = vector.broadcast %c2_i32 : i32 to vector<256x128xi32>
    %233 = arith.muli %232, %231 : vector<256x128xi32>
    %234 = arith.cmpi eq, %230, %233 : vector<256x128xi32>
    %cst_75 = arith.constant 1.000000e+00 : f32
    %cst_76 = arith.constant 0.000000e+00 : f32
    %235 = vector.broadcast %cst_75 : f32 to vector<256x128xf32>
    %236 = vector.broadcast %cst_76 : f32 to vector<256x128xf32>
    %237 = arith.select %234, %235, %236 : vector<256x128xi1>, vector<256x128xf32>
    %238 = arith.truncf %237 : vector<256x128xf32> to vector<256x128xbf16>
    %239 = arith.truncf %229 : vector<32x256xf32> to vector<32x256xbf16>
    %cst_77 = arith.constant dense<0.000000e+00> : vector<32x128xf32>
    %240 = tpu.matmul %239, %238, %cst_77 {dimension_numbers = #tpu.dot_dimension_numbers<[1], [0], [0], [1], [0, 0, 1, 1], [], []>} : vector<32x256xbf16>, vector<256x128xbf16>, vector<32x128xf32> -> vector<32x128xf32>
    %241 = vector.broadcast %195 : vector<32x1xf32> to vector<32x128xf32>
    %242 = arith.mulf %240, %241 : vector<32x128xf32>
    %243 = vector.broadcast %196 : vector<32x1xf32> to vector<32x128xf32>
    %244 = arith.addf %242, %243 : vector<32x128xf32>
    %245 = vector.extract_strided_slice %244 {offsets = [0, 0], sizes = [32, 64], strides = [1, 1]} : vector<32x128xf32> to vector<32x64xf32>
    %c0_78 = arith.constant 0 : index
    %c32_79 = arith.constant 32 : index
    %246 = vector.load %arg5[%c0_78, %c32_79] : memref<64x1152xf32, #tpu.memory_space<vmem>>, vector<32x64xf32>
    tpu.vector_store %arg5[%c0_78, %c32_79], %245 {strides = array<i32>} : memref<64x1152xf32, #tpu.memory_space<vmem>>, vector<32x64xf32>,
    %247 = vector.extract_strided_slice %244 {offsets = [0, 64], sizes = [32, 64], strides = [1, 1]} : vector<32x128xf32> to vector<32x64xf32>
    %c0_80 = arith.constant 0 : index
    %c608_81 = arith.constant 608 : index
    %248 = vector.load %arg5[%c0_80, %c608_81] : memref<64x1152xf32, #tpu.memory_space<vmem>>, vector<32x64xf32>
    tpu.vector_store %arg5[%c0_80, %c608_81], %247 {strides = array<i32>} : memref<64x1152xf32, #tpu.memory_space<vmem>>, vector<32x64xf32>,
    %c64 = arith.constant 64 : index
    %c0_82 = arith.constant 0 : index
    %249 = vector.load %arg2[%c64, %c0_82] : memref<162x256xbf16, #tpu.memory_space<vmem>>, vector<32x160xbf16>
    %c64_83 = arith.constant 64 : index
    %c0_84 = arith.constant 0 : index
    %250 = vector.load %arg3[%c64_83, %c0_84] : memref<162x128xf32, #tpu.memory_space<vmem>>, vector<32x1xf32>
    %c64_85 = arith.constant 64 : index
    %c1_86 = arith.constant 1 : index
    %251 = vector.load %arg3[%c64_85, %c1_86] : memref<162x128xf32, #tpu.memory_space<vmem>>, vector<32x1xf32>
    %c64_87 = arith.constant 64 : index
    %c2_88 = arith.constant 2 : index
    %252 = vector.load %arg3[%c64_87, %c2_88] : memref<162x128xf32, #tpu.memory_space<vmem>>, vector<32x1xf32>
    %cst_89 = arith.constant 0.000000e+00 : f32
    %253 = vector.broadcast %cst_89 : f32 to vector<32x32xf32>
    %c0_90 = arith.constant 0 : index
    %c0_91 = arith.constant 0 : index
    %254 = vector.load %arg6[%c0_90, %c0_91] : memref<64x1152xf32, #tpu.memory_space<vmem>>, vector<32x32xf32>
    tpu.vector_store %arg6[%c0_90, %c0_91], %253 {strides = array<i32>} : memref<64x1152xf32, #tpu.memory_space<vmem>>, vector<32x32xf32>,
    %c0_92 = arith.constant 0 : index
    %c64_93 = arith.constant 64 : index
    %255 = vector.load %arg6[%c0_92, %c64_93] : memref<64x1152xf32, #tpu.memory_space<vmem>>, vector<32x32xf32>
    tpu.vector_store %arg6[%c0_92, %c64_93], %253 {strides = array<i32>} : memref<64x1152xf32, #tpu.memory_space<vmem>>, vector<32x32xf32>,
    %c0_94 = arith.constant 0 : index
    %c576_95 = arith.constant 576 : index
    %256 = vector.load %arg6[%c0_94, %c576_95] : memref<64x1152xf32, #tpu.memory_space<vmem>>, vector<32x32xf32>
    tpu.vector_store %arg6[%c0_94, %c576_95], %253 {strides = array<i32>} : memref<64x1152xf32, #tpu.memory_space<vmem>>, vector<32x32xf32>,
    %c0_96 = arith.constant 0 : index
    %c640 = arith.constant 640 : index
    %257 = vector.load %arg6[%c0_96, %c640] : memref<64x1152xf32, #tpu.memory_space<vmem>>, vector<32x32xf32>
    tpu.vector_store %arg6[%c0_96, %c640], %253 {strides = array<i32>} : memref<64x1152xf32, #tpu.memory_space<vmem>>, vector<32x32xf32>,
    %c0_97 = arith.constant 0 : index
    %c30_98 = arith.constant 30 : index
    %258 = vector.load %arg5[%c0_97, %c30_98] : memref<64x1152xf32, #tpu.memory_space<vmem>>, vector<32x68xf32>
    %c0_99 = arith.constant 0 : index
    %c606_100 = arith.constant 606 : index
    %259 = vector.load %arg5[%c0_99, %c606_100] : memref<64x1152xf32, #tpu.memory_space<vmem>>, vector<32x68xf32>
    %260 = vector.extract_strided_slice %258 {offsets = [0, 0], sizes = [32, 64], strides = [1, 1]} : vector<32x68xf32> to vector<32x64xf32>
    %261 = vector.extract_strided_slice %259 {offsets = [0, 0], sizes = [32, 64], strides = [1, 1]} : vector<32x68xf32> to vector<32x64xf32>
    %262 = tpu.concatenate %260, %261 in 1 : vector<32x64xf32>, vector<32x64xf32> -> vector<32x128xf32>
    %263 = vector.extract_strided_slice %258 {offsets = [0, 1], sizes = [32, 64], strides = [1, 1]} : vector<32x68xf32> to vector<32x64xf32>
    %264 = vector.extract_strided_slice %259 {offsets = [0, 1], sizes = [32, 64], strides = [1, 1]} : vector<32x68xf32> to vector<32x64xf32>
    %265 = tpu.concatenate %263, %264 in 1 : vector<32x64xf32>, vector<32x64xf32> -> vector<32x128xf32>
    %266 = vector.extract_strided_slice %258 {offsets = [0, 2], sizes = [32, 64], strides = [1, 1]} : vector<32x68xf32> to vector<32x64xf32>
    %267 = vector.extract_strided_slice %259 {offsets = [0, 2], sizes = [32, 64], strides = [1, 1]} : vector<32x68xf32> to vector<32x64xf32>
    %268 = tpu.concatenate %266, %267 in 1 : vector<32x64xf32>, vector<32x64xf32> -> vector<32x128xf32>
    %269 = vector.extract_strided_slice %258 {offsets = [0, 3], sizes = [32, 64], strides = [1, 1]} : vector<32x68xf32> to vector<32x64xf32>
    %270 = vector.extract_strided_slice %259 {offsets = [0, 3], sizes = [32, 64], strides = [1, 1]} : vector<32x68xf32> to vector<32x64xf32>
    %271 = tpu.concatenate %269, %270 in 1 : vector<32x64xf32>, vector<32x64xf32> -> vector<32x128xf32>
    %272 = vector.extract_strided_slice %258 {offsets = [0, 4], sizes = [32, 64], strides = [1, 1]} : vector<32x68xf32> to vector<32x64xf32>
    %273 = vector.extract_strided_slice %259 {offsets = [0, 4], sizes = [32, 64], strides = [1, 1]} : vector<32x68xf32> to vector<32x64xf32>
    %274 = tpu.concatenate %272, %273 in 1 : vector<32x64xf32>, vector<32x64xf32> -> vector<32x128xf32>
    %275 = tpu.concatenate %262, %265, %268, %271, %274 in 0 : vector<32x128xf32>, vector<32x128xf32>, vector<32x128xf32>, vector<32x128xf32>, vector<32x128xf32> -> vector<160x128xf32>
    %276 = arith.truncf %275 : vector<160x128xf32> to vector<160x128xbf16>
    %cst_101 = arith.constant dense<0.000000e+00> : vector<32x128xf32>
    %277 = tpu.matmul %249, %276, %cst_101 {dimension_numbers = #tpu.dot_dimension_numbers<[1], [0], [0], [1], [0, 0, 1, 1], [], []>} : vector<32x160xbf16>, vector<160x128xbf16>, vector<32x128xf32> -> vector<32x128xf32>
    %278 = vector.broadcast %250 : vector<32x1xf32> to vector<32x128xf32>
    %279 = arith.addf %277, %278 : vector<32x128xf32>
    %cst_102 = arith.constant 0.000000e+00 : f32
    %280 = vector.broadcast %cst_102 : f32 to vector<32x128xf32>
    %281 = arith.maximumf %279, %280 : vector<32x128xf32>
    %282 = vector.extract_strided_slice %281 {offsets = [0, 1], sizes = [32, 127], strides = [1, 1]} : vector<32x128xf32> to vector<32x127xf32>
    %283 = vector.extract_strided_slice %281 {offsets = [0, 0], sizes = [32, 1], strides = [1, 1]} : vector<32x128xf32> to vector<32x1xf32>
    %284 = tpu.concatenate %282, %283 in 1 : vector<32x127xf32>, vector<32x1xf32> -> vector<32x128xf32>
    %285 = arith.maximumf %281, %284 : vector<32x128xf32>
    %286 = tpu.iota {dimensions = array<i32: 0>} : vector<128x64xi32>
    %287 = tpu.iota {dimensions = array<i32: 1>} : vector<128x64xi32>
    %c2_i32_103 = arith.constant 2 : i32
    %288 = vector.broadcast %c2_i32_103 : i32 to vector<128x64xi32>
    %289 = arith.muli %288, %287 : vector<128x64xi32>
    %290 = arith.cmpi eq, %286, %289 : vector<128x64xi32>
    %cst_104 = arith.constant 1.000000e+00 : f32
    %cst_105 = arith.constant 0.000000e+00 : f32
    %291 = vector.broadcast %cst_104 : f32 to vector<128x64xf32>
    %292 = vector.broadcast %cst_105 : f32 to vector<128x64xf32>
    %293 = arith.select %290, %291, %292 : vector<128x64xi1>, vector<128x64xf32>
    %294 = arith.truncf %293 : vector<128x64xf32> to vector<128x64xbf16>
    %295 = arith.truncf %285 : vector<32x128xf32> to vector<32x128xbf16>
    %cst_106 = arith.constant dense<0.000000e+00> : vector<32x64xf32>
    %296 = tpu.matmul %295, %294, %cst_106 {dimension_numbers = #tpu.dot_dimension_numbers<[1], [0], [0], [1], [0, 0, 1, 1], [], []>} : vector<32x128xbf16>, vector<128x64xbf16>, vector<32x64xf32> -> vector<32x64xf32>
    %297 = vector.broadcast %251 : vector<32x1xf32> to vector<32x64xf32>
    %298 = arith.mulf %296, %297 : vector<32x64xf32>
    %299 = vector.broadcast %252 : vector<32x1xf32> to vector<32x64xf32>
    %300 = arith.addf %298, %299 : vector<32x64xf32>
    %301 = vector.extract_strided_slice %300 {offsets = [0, 0], sizes = [32, 32], strides = [1, 1]} : vector<32x64xf32> to vector<32x32xf32>
    %c0_107 = arith.constant 0 : index
    %c32_108 = arith.constant 32 : index
    %302 = vector.load %arg6[%c0_107, %c32_108] : memref<64x1152xf32, #tpu.memory_space<vmem>>, vector<32x32xf32>
    tpu.vector_store %arg6[%c0_107, %c32_108], %301 {strides = array<i32>} : memref<64x1152xf32, #tpu.memory_space<vmem>>, vector<32x32xf32>,
    %303 = vector.extract_strided_slice %300 {offsets = [0, 32], sizes = [32, 32], strides = [1, 1]} : vector<32x64xf32> to vector<32x32xf32>
    %c0_109 = arith.constant 0 : index
    %c608_110 = arith.constant 608 : index
    %304 = vector.load %arg6[%c0_109, %c608_110] : memref<64x1152xf32, #tpu.memory_space<vmem>>, vector<32x32xf32>
    tpu.vector_store %arg6[%c0_109, %c608_110], %303 {strides = array<i32>} : memref<64x1152xf32, #tpu.memory_space<vmem>>, vector<32x32xf32>,
    %c96_111 = arith.constant 96 : index
    %c0_112 = arith.constant 0 : index
    %305 = vector.load %arg2[%c96_111, %c0_112] : memref<162x256xbf16, #tpu.memory_space<vmem>>, vector<16x160xbf16>
    %c96_113 = arith.constant 96 : index
    %c0_114 = arith.constant 0 : index
    %306 = vector.load %arg3[%c96_113, %c0_114] : memref<162x128xf32, #tpu.memory_space<vmem>>, vector<16x1xf32>
    %c96_115 = arith.constant 96 : index
    %c1_116 = arith.constant 1 : index
    %307 = vector.load %arg3[%c96_115, %c1_116] : memref<162x128xf32, #tpu.memory_space<vmem>>, vector<16x1xf32>
    %c96_117 = arith.constant 96 : index
    %c2_118 = arith.constant 2 : index
    %308 = vector.load %arg3[%c96_117, %c2_118] : memref<162x128xf32, #tpu.memory_space<vmem>>, vector<16x1xf32>
    %cst_119 = arith.constant 0.000000e+00 : f32
    %309 = vector.broadcast %cst_119 : f32 to vector<16x32xf32>
    %c0_120 = arith.constant 0 : index
    %c0_121 = arith.constant 0 : index
    %310 = vector.load %arg6[%c0_120, %c0_121] : memref<64x1152xf32, #tpu.memory_space<vmem>>, vector<16x32xf32>
    tpu.vector_store %arg6[%c0_120, %c0_121], %309 {strides = array<i32>} : memref<64x1152xf32, #tpu.memory_space<vmem>>, vector<16x32xf32>,
    %c0_122 = arith.constant 0 : index
    %c64_123 = arith.constant 64 : index
    %311 = vector.load %arg6[%c0_122, %c64_123] : memref<64x1152xf32, #tpu.memory_space<vmem>>, vector<16x32xf32>
    tpu.vector_store %arg6[%c0_122, %c64_123], %309 {strides = array<i32>} : memref<64x1152xf32, #tpu.memory_space<vmem>>, vector<16x32xf32>,
    %c0_124 = arith.constant 0 : index
    %c576_125 = arith.constant 576 : index
    %312 = vector.load %arg6[%c0_124, %c576_125] : memref<64x1152xf32, #tpu.memory_space<vmem>>, vector<16x32xf32>
    tpu.vector_store %arg6[%c0_124, %c576_125], %309 {strides = array<i32>} : memref<64x1152xf32, #tpu.memory_space<vmem>>, vector<16x32xf32>,
    %c0_126 = arith.constant 0 : index
    %c640_127 = arith.constant 640 : index
    %313 = vector.load %arg6[%c0_126, %c640_127] : memref<64x1152xf32, #tpu.memory_space<vmem>>, vector<16x32xf32>
    tpu.vector_store %arg6[%c0_126, %c640_127], %309 {strides = array<i32>} : memref<64x1152xf32, #tpu.memory_space<vmem>>, vector<16x32xf32>,
    %c0_128 = arith.constant 0 : index
    %c28 = arith.constant 28 : index
    %314 = vector.load %arg6[%c0_128, %c28] : memref<64x1152xf32, #tpu.memory_space<vmem>>, vector<32x40xf32>
    %c0_129 = arith.constant 0 : index
    %c604 = arith.constant 604 : index
    %315 = vector.load %arg6[%c0_129, %c604] : memref<64x1152xf32, #tpu.memory_space<vmem>>, vector<32x40xf32>
    %316 = vector.extract_strided_slice %314 {offsets = [0, 0], sizes = [32, 32], strides = [1, 1]} : vector<32x40xf32> to vector<32x32xf32>
    %317 = vector.extract_strided_slice %315 {offsets = [0, 0], sizes = [32, 32], strides = [1, 1]} : vector<32x40xf32> to vector<32x32xf32>
    %318 = tpu.concatenate %316, %317 in 1 : vector<32x32xf32>, vector<32x32xf32> -> vector<32x64xf32>
    %319 = vector.extract_strided_slice %314 {offsets = [0, 2], sizes = [32, 32], strides = [1, 1]} : vector<32x40xf32> to vector<32x32xf32>
    %320 = vector.extract_strided_slice %315 {offsets = [0, 2], sizes = [32, 32], strides = [1, 1]} : vector<32x40xf32> to vector<32x32xf32>
    %321 = tpu.concatenate %319, %320 in 1 : vector<32x32xf32>, vector<32x32xf32> -> vector<32x64xf32>
    %322 = vector.extract_strided_slice %314 {offsets = [0, 4], sizes = [32, 32], strides = [1, 1]} : vector<32x40xf32> to vector<32x32xf32>
    %323 = vector.extract_strided_slice %315 {offsets = [0, 4], sizes = [32, 32], strides = [1, 1]} : vector<32x40xf32> to vector<32x32xf32>
    %324 = tpu.concatenate %322, %323 in 1 : vector<32x32xf32>, vector<32x32xf32> -> vector<32x64xf32>
    %325 = vector.extract_strided_slice %314 {offsets = [0, 6], sizes = [32, 32], strides = [1, 1]} : vector<32x40xf32> to vector<32x32xf32>
    %326 = vector.extract_strided_slice %315 {offsets = [0, 6], sizes = [32, 32], strides = [1, 1]} : vector<32x40xf32> to vector<32x32xf32>
    %327 = tpu.concatenate %325, %326 in 1 : vector<32x32xf32>, vector<32x32xf32> -> vector<32x64xf32>
    %328 = vector.extract_strided_slice %314 {offsets = [0, 8], sizes = [32, 32], strides = [1, 1]} : vector<32x40xf32> to vector<32x32xf32>
    %329 = vector.extract_strided_slice %315 {offsets = [0, 8], sizes = [32, 32], strides = [1, 1]} : vector<32x40xf32> to vector<32x32xf32>
    %330 = tpu.concatenate %328, %329 in 1 : vector<32x32xf32>, vector<32x32xf32> -> vector<32x64xf32>
    %331 = tpu.concatenate %318, %321, %324, %327, %330 in 0 : vector<32x64xf32>, vector<32x64xf32>, vector<32x64xf32>, vector<32x64xf32>, vector<32x64xf32> -> vector<160x64xf32>
    %332 = arith.truncf %331 : vector<160x64xf32> to vector<160x64xbf16>
    %cst_130 = arith.constant dense<0.000000e+00> : vector<16x64xf32>
    %333 = tpu.matmul %305, %332, %cst_130 {dimension_numbers = #tpu.dot_dimension_numbers<[1], [0], [0], [1], [0, 0, 1, 1], [], []>} : vector<16x160xbf16>, vector<160x64xbf16>, vector<16x64xf32> -> vector<16x64xf32>
    %334 = vector.broadcast %306 : vector<16x1xf32> to vector<16x64xf32>
    %335 = arith.addf %333, %334 : vector<16x64xf32>
    %cst_131 = arith.constant 0.000000e+00 : f32
    %336 = vector.broadcast %cst_131 : f32 to vector<16x64xf32>
    %337 = arith.maximumf %335, %336 : vector<16x64xf32>
    %338 = vector.broadcast %307 : vector<16x1xf32> to vector<16x64xf32>
    %339 = arith.mulf %337, %338 : vector<16x64xf32>
    %340 = vector.broadcast %308 : vector<16x1xf32> to vector<16x64xf32>
    %341 = arith.addf %339, %340 : vector<16x64xf32>
    %342 = vector.extract_strided_slice %341 {offsets = [0, 0], sizes = [16, 32], strides = [1, 1]} : vector<16x64xf32> to vector<16x32xf32>
    %c0_132 = arith.constant 0 : index
    %c32_133 = arith.constant 32 : index
    %343 = vector.load %arg6[%c0_132, %c32_133] : memref<64x1152xf32, #tpu.memory_space<vmem>>, vector<16x32xf32>
    tpu.vector_store %arg6[%c0_132, %c32_133], %342 {strides = array<i32>} : memref<64x1152xf32, #tpu.memory_space<vmem>>, vector<16x32xf32>,
    %344 = vector.extract_strided_slice %341 {offsets = [0, 32], sizes = [16, 32], strides = [1, 1]} : vector<16x64xf32> to vector<16x32xf32>
    %c0_134 = arith.constant 0 : index
    %c608_135 = arith.constant 608 : index
    %345 = vector.load %arg6[%c0_134, %c608_135] : memref<64x1152xf32, #tpu.memory_space<vmem>>, vector<16x32xf32>
    tpu.vector_store %arg6[%c0_134, %c608_135], %344 {strides = array<i32>} : memref<64x1152xf32, #tpu.memory_space<vmem>>, vector<16x32xf32>,
    %c112 = arith.constant 112 : index
    %c0_136 = arith.constant 0 : index
    %346 = vector.load %arg2[%c112, %c0_136] : memref<162x256xbf16, #tpu.memory_space<vmem>>, vector<16x80xbf16>
    %c112_137 = arith.constant 112 : index
    %c0_138 = arith.constant 0 : index
    %347 = vector.load %arg3[%c112_137, %c0_138] : memref<162x128xf32, #tpu.memory_space<vmem>>, vector<16x1xf32>
    %c112_139 = arith.constant 112 : index
    %c1_140 = arith.constant 1 : index
    %348 = vector.load %arg3[%c112_139, %c1_140] : memref<162x128xf32, #tpu.memory_space<vmem>>, vector<16x1xf32>
    %c112_141 = arith.constant 112 : index
    %c2_142 = arith.constant 2 : index
    %349 = vector.load %arg3[%c112_141, %c2_142] : memref<162x128xf32, #tpu.memory_space<vmem>>, vector<16x1xf32>
    %cst_143 = arith.constant 0.000000e+00 : f32
    %350 = vector.broadcast %cst_143 : f32 to vector<16x32xf32>
    %c16 = arith.constant 16 : index
    %c0_144 = arith.constant 0 : index
    %351 = vector.load %arg6[%c16, %c0_144] : memref<64x1152xf32, #tpu.memory_space<vmem>>, vector<16x32xf32>
    tpu.vector_store %arg6[%c16, %c0_144], %350 {strides = array<i32>} : memref<64x1152xf32, #tpu.memory_space<vmem>>, vector<16x32xf32>,
    %c16_145 = arith.constant 16 : index
    %c64_146 = arith.constant 64 : index
    %352 = vector.load %arg6[%c16_145, %c64_146] : memref<64x1152xf32, #tpu.memory_space<vmem>>, vector<16x32xf32>
    tpu.vector_store %arg6[%c16_145, %c64_146], %350 {strides = array<i32>} : memref<64x1152xf32, #tpu.memory_space<vmem>>, vector<16x32xf32>,
    %c16_147 = arith.constant 16 : index
    %c576_148 = arith.constant 576 : index
    %353 = vector.load %arg6[%c16_147, %c576_148] : memref<64x1152xf32, #tpu.memory_space<vmem>>, vector<16x32xf32>
    tpu.vector_store %arg6[%c16_147, %c576_148], %350 {strides = array<i32>} : memref<64x1152xf32, #tpu.memory_space<vmem>>, vector<16x32xf32>,
    %c16_149 = arith.constant 16 : index
    %c640_150 = arith.constant 640 : index
    %354 = vector.load %arg6[%c16_149, %c640_150] : memref<64x1152xf32, #tpu.memory_space<vmem>>, vector<16x32xf32>
    tpu.vector_store %arg6[%c16_149, %c640_150], %350 {strides = array<i32>} : memref<64x1152xf32, #tpu.memory_space<vmem>>, vector<16x32xf32>,
    %c0_151 = arith.constant 0 : index
    %c24 = arith.constant 24 : index
    %355 = vector.load %arg6[%c0_151, %c24] : memref<64x1152xf32, #tpu.memory_space<vmem>>, vector<16x48xf32>
    %c0_152 = arith.constant 0 : index
    %c600 = arith.constant 600 : index
    %356 = vector.load %arg6[%c0_152, %c600] : memref<64x1152xf32, #tpu.memory_space<vmem>>, vector<16x48xf32>
    %357 = vector.extract_strided_slice %355 {offsets = [0, 0], sizes = [16, 32], strides = [1, 1]} : vector<16x48xf32> to vector<16x32xf32>
    %358 = vector.extract_strided_slice %356 {offsets = [0, 0], sizes = [16, 32], strides = [1, 1]} : vector<16x48xf32> to vector<16x32xf32>
    %359 = tpu.concatenate %357, %358 in 1 : vector<16x32xf32>, vector<16x32xf32> -> vector<16x64xf32>
    %360 = vector.extract_strided_slice %355 {offsets = [0, 4], sizes = [16, 32], strides = [1, 1]} : vector<16x48xf32> to vector<16x32xf32>
    %361 = vector.extract_strided_slice %356 {offsets = [0, 4], sizes = [16, 32], strides = [1, 1]} : vector<16x48xf32> to vector<16x32xf32>
    %362 = tpu.concatenate %360, %361 in 1 : vector<16x32xf32>, vector<16x32xf32> -> vector<16x64xf32>
    %363 = vector.extract_strided_slice %355 {offsets = [0, 8], sizes = [16, 32], strides = [1, 1]} : vector<16x48xf32> to vector<16x32xf32>
    %364 = vector.extract_strided_slice %356 {offsets = [0, 8], sizes = [16, 32], strides = [1, 1]} : vector<16x48xf32> to vector<16x32xf32>
    %365 = tpu.concatenate %363, %364 in 1 : vector<16x32xf32>, vector<16x32xf32> -> vector<16x64xf32>
    %366 = vector.extract_strided_slice %355 {offsets = [0, 12], sizes = [16, 32], strides = [1, 1]} : vector<16x48xf32> to vector<16x32xf32>
    %367 = vector.extract_strided_slice %356 {offsets = [0, 12], sizes = [16, 32], strides = [1, 1]} : vector<16x48xf32> to vector<16x32xf32>
    %368 = tpu.concatenate %366, %367 in 1 : vector<16x32xf32>, vector<16x32xf32> -> vector<16x64xf32>
    %369 = vector.extract_strided_slice %355 {offsets = [0, 16], sizes = [16, 32], strides = [1, 1]} : vector<16x48xf32> to vector<16x32xf32>
    %370 = vector.extract_strided_slice %356 {offsets = [0, 16], sizes = [16, 32], strides = [1, 1]} : vector<16x48xf32> to vector<16x32xf32>
    %371 = tpu.concatenate %369, %370 in 1 : vector<16x32xf32>, vector<16x32xf32> -> vector<16x64xf32>
    %372 = tpu.concatenate %359, %362, %365, %368, %371 in 0 : vector<16x64xf32>, vector<16x64xf32>, vector<16x64xf32>, vector<16x64xf32>, vector<16x64xf32> -> vector<80x64xf32>
    %373 = arith.truncf %372 : vector<80x64xf32> to vector<80x64xbf16>
    %cst_153 = arith.constant dense<0.000000e+00> : vector<16x64xf32>
    %374 = tpu.matmul %346, %373, %cst_153 {dimension_numbers = #tpu.dot_dimension_numbers<[1], [0], [0], [1], [0, 0, 1, 1], [], []>} : vector<16x80xbf16>, vector<80x64xbf16>, vector<16x64xf32> -> vector<16x64xf32>
    %375 = vector.broadcast %347 : vector<16x1xf32> to vector<16x64xf32>
    %376 = arith.addf %374, %375 : vector<16x64xf32>
    %cst_154 = arith.constant 0.000000e+00 : f32
    %377 = vector.broadcast %cst_154 : f32 to vector<16x64xf32>
    %378 = arith.maximumf %376, %377 : vector<16x64xf32>
    %379 = vector.broadcast %348 : vector<16x1xf32> to vector<16x64xf32>
    %380 = arith.mulf %378, %379 : vector<16x64xf32>
    %381 = vector.broadcast %349 : vector<16x1xf32> to vector<16x64xf32>
    %382 = arith.addf %380, %381 : vector<16x64xf32>
    %383 = vector.extract_strided_slice %382 {offsets = [0, 0], sizes = [16, 32], strides = [1, 1]} : vector<16x64xf32> to vector<16x32xf32>
    %c16_155 = arith.constant 16 : index
    %c32_156 = arith.constant 32 : index
    %384 = vector.load %arg6[%c16_155, %c32_156] : memref<64x1152xf32, #tpu.memory_space<vmem>>, vector<16x32xf32>
    tpu.vector_store %arg6[%c16_155, %c32_156], %383 {strides = array<i32>} : memref<64x1152xf32, #tpu.memory_space<vmem>>, vector<16x32xf32>,
    %385 = vector.extract_strided_slice %382 {offsets = [0, 32], sizes = [16, 32], strides = [1, 1]} : vector<16x64xf32> to vector<16x32xf32>
    %c16_157 = arith.constant 16 : index
    %c608_158 = arith.constant 608 : index
    %386 = vector.load %arg6[%c16_157, %c608_158] : memref<64x1152xf32, #tpu.memory_space<vmem>>, vector<16x32xf32>
    tpu.vector_store %arg6[%c16_157, %c608_158], %385 {strides = array<i32>} : memref<64x1152xf32, #tpu.memory_space<vmem>>, vector<16x32xf32>,
    %c128 = arith.constant 128 : index
    %c0_159 = arith.constant 0 : index
    %387 = vector.load %arg2[%c128, %c0_159] : memref<162x256xbf16, #tpu.memory_space<vmem>>, vector<16x160xbf16>
    %c128_160 = arith.constant 128 : index
    %c0_161 = arith.constant 0 : index
    %388 = vector.load %arg3[%c128_160, %c0_161] : memref<162x128xf32, #tpu.memory_space<vmem>>, vector<16x1xf32>
    %c128_162 = arith.constant 128 : index
    %c1_163 = arith.constant 1 : index
    %389 = vector.load %arg3[%c128_162, %c1_163] : memref<162x128xf32, #tpu.memory_space<vmem>>, vector<16x1xf32>
    %c128_164 = arith.constant 128 : index
    %c2_165 = arith.constant 2 : index
    %390 = vector.load %arg3[%c128_164, %c2_165] : memref<162x128xf32, #tpu.memory_space<vmem>>, vector<16x1xf32>
    %cst_166 = arith.constant 0.000000e+00 : f32
    %391 = vector.broadcast %cst_166 : f32 to vector<16x32xf32>
    %c32_167 = arith.constant 32 : index
    %c0_168 = arith.constant 0 : index
    %392 = vector.load %arg6[%c32_167, %c0_168] : memref<64x1152xf32, #tpu.memory_space<vmem>>, vector<16x32xf32>
    tpu.vector_store %arg6[%c32_167, %c0_168], %391 {strides = array<i32>} : memref<64x1152xf32, #tpu.memory_space<vmem>>, vector<16x32xf32>,
    %c32_169 = arith.constant 32 : index
    %c64_170 = arith.constant 64 : index
    %393 = vector.load %arg6[%c32_169, %c64_170] : memref<64x1152xf32, #tpu.memory_space<vmem>>, vector<16x32xf32>
    tpu.vector_store %arg6[%c32_169, %c64_170], %391 {strides = array<i32>} : memref<64x1152xf32, #tpu.memory_space<vmem>>, vector<16x32xf32>,
    %c32_171 = arith.constant 32 : index
    %c576_172 = arith.constant 576 : index
    %394 = vector.load %arg6[%c32_171, %c576_172] : memref<64x1152xf32, #tpu.memory_space<vmem>>, vector<16x32xf32>
    tpu.vector_store %arg6[%c32_171, %c576_172], %391 {strides = array<i32>} : memref<64x1152xf32, #tpu.memory_space<vmem>>, vector<16x32xf32>,
    %c32_173 = arith.constant 32 : index
    %c640_174 = arith.constant 640 : index
    %395 = vector.load %arg6[%c32_173, %c640_174] : memref<64x1152xf32, #tpu.memory_space<vmem>>, vector<16x32xf32>
    tpu.vector_store %arg6[%c32_173, %c640_174], %391 {strides = array<i32>} : memref<64x1152xf32, #tpu.memory_space<vmem>>, vector<16x32xf32>,
    %c0_175 = arith.constant 0 : index
    %c16_176 = arith.constant 16 : index
    %396 = vector.load %arg6[%c0_175, %c16_176] : memref<64x1152xf32, #tpu.memory_space<vmem>>, vector<32x64xf32>
    %c0_177 = arith.constant 0 : index
    %c592 = arith.constant 592 : index
    %397 = vector.load %arg6[%c0_177, %c592] : memref<64x1152xf32, #tpu.memory_space<vmem>>, vector<32x64xf32>
    %398 = vector.extract_strided_slice %396 {offsets = [0, 0], sizes = [32, 32], strides = [1, 1]} : vector<32x64xf32> to vector<32x32xf32>
    %399 = vector.extract_strided_slice %397 {offsets = [0, 0], sizes = [32, 32], strides = [1, 1]} : vector<32x64xf32> to vector<32x32xf32>
    %400 = tpu.concatenate %398, %399 in 1 : vector<32x32xf32>, vector<32x32xf32> -> vector<32x64xf32>
    %401 = vector.extract_strided_slice %396 {offsets = [0, 8], sizes = [32, 32], strides = [1, 1]} : vector<32x64xf32> to vector<32x32xf32>
    %402 = vector.extract_strided_slice %397 {offsets = [0, 8], sizes = [32, 32], strides = [1, 1]} : vector<32x64xf32> to vector<32x32xf32>
    %403 = tpu.concatenate %401, %402 in 1 : vector<32x32xf32>, vector<32x32xf32> -> vector<32x64xf32>
    %404 = vector.extract_strided_slice %396 {offsets = [0, 16], sizes = [32, 32], strides = [1, 1]} : vector<32x64xf32> to vector<32x32xf32>
    %405 = vector.extract_strided_slice %397 {offsets = [0, 16], sizes = [32, 32], strides = [1, 1]} : vector<32x64xf32> to vector<32x32xf32>
    %406 = tpu.concatenate %404, %405 in 1 : vector<32x32xf32>, vector<32x32xf32> -> vector<32x64xf32>
    %407 = vector.extract_strided_slice %396 {offsets = [0, 24], sizes = [32, 32], strides = [1, 1]} : vector<32x64xf32> to vector<32x32xf32>
    %408 = vector.extract_strided_slice %397 {offsets = [0, 24], sizes = [32, 32], strides = [1, 1]} : vector<32x64xf32> to vector<32x32xf32>
    %409 = tpu.concatenate %407, %408 in 1 : vector<32x32xf32>, vector<32x32xf32> -> vector<32x64xf32>
    %410 = vector.extract_strided_slice %396 {offsets = [0, 32], sizes = [32, 32], strides = [1, 1]} : vector<32x64xf32> to vector<32x32xf32>
    %411 = vector.extract_strided_slice %397 {offsets = [0, 32], sizes = [32, 32], strides = [1, 1]} : vector<32x64xf32> to vector<32x32xf32>
    %412 = tpu.concatenate %410, %411 in 1 : vector<32x32xf32>, vector<32x32xf32> -> vector<32x64xf32>
    %413 = tpu.concatenate %400, %403, %406, %409, %412 in 0 : vector<32x64xf32>, vector<32x64xf32>, vector<32x64xf32>, vector<32x64xf32>, vector<32x64xf32> -> vector<160x64xf32>
    %414 = arith.truncf %413 : vector<160x64xf32> to vector<160x64xbf16>
    %cst_178 = arith.constant dense<0.000000e+00> : vector<16x64xf32>
    %415 = tpu.matmul %387, %414, %cst_178 {dimension_numbers = #tpu.dot_dimension_numbers<[1], [0], [0], [1], [0, 0, 1, 1], [], []>} : vector<16x160xbf16>, vector<160x64xbf16>, vector<16x64xf32> -> vector<16x64xf32>
    %416 = vector.broadcast %388 : vector<16x1xf32> to vector<16x64xf32>
    %417 = arith.addf %415, %416 : vector<16x64xf32>
    %cst_179 = arith.constant 0.000000e+00 : f32
    %418 = vector.broadcast %cst_179 : f32 to vector<16x64xf32>
    %419 = arith.maximumf %417, %418 : vector<16x64xf32>
    %420 = vector.broadcast %389 : vector<16x1xf32> to vector<16x64xf32>
    %421 = arith.mulf %419, %420 : vector<16x64xf32>
    %422 = vector.broadcast %390 : vector<16x1xf32> to vector<16x64xf32>
    %423 = arith.addf %421, %422 : vector<16x64xf32>
    %424 = vector.extract_strided_slice %423 {offsets = [0, 0], sizes = [16, 32], strides = [1, 1]} : vector<16x64xf32> to vector<16x32xf32>
    %c32_180 = arith.constant 32 : index
    %c32_181 = arith.constant 32 : index
    %425 = vector.load %arg6[%c32_180, %c32_181] : memref<64x1152xf32, #tpu.memory_space<vmem>>, vector<16x32xf32>
    tpu.vector_store %arg6[%c32_180, %c32_181], %424 {strides = array<i32>} : memref<64x1152xf32, #tpu.memory_space<vmem>>, vector<16x32xf32>,
    %426 = vector.extract_strided_slice %423 {offsets = [0, 32], sizes = [16, 32], strides = [1, 1]} : vector<16x64xf32> to vector<16x32xf32>
    %c32_182 = arith.constant 32 : index
    %c608_183 = arith.constant 608 : index
    %427 = vector.load %arg6[%c32_182, %c608_183] : memref<64x1152xf32, #tpu.memory_space<vmem>>, vector<16x32xf32>
    tpu.vector_store %arg6[%c32_182, %c608_183], %426 {strides = array<i32>} : memref<64x1152xf32, #tpu.memory_space<vmem>>, vector<16x32xf32>,
    %c144 = arith.constant 144 : index
    %c0_184 = arith.constant 0 : index
    %428 = vector.load %arg2[%c144, %c0_184] : memref<162x256xbf16, #tpu.memory_space<vmem>>, vector<16x240xbf16>
    %c144_185 = arith.constant 144 : index
    %c0_186 = arith.constant 0 : index
    %429 = vector.load %arg3[%c144_185, %c0_186] : memref<162x128xf32, #tpu.memory_space<vmem>>, vector<16x1xf32>
    %c144_187 = arith.constant 144 : index
    %c1_188 = arith.constant 1 : index
    %430 = vector.load %arg3[%c144_187, %c1_188] : memref<162x128xf32, #tpu.memory_space<vmem>>, vector<16x1xf32>
    %c144_189 = arith.constant 144 : index
    %c2_190 = arith.constant 2 : index
    %431 = vector.load %arg3[%c144_189, %c2_190] : memref<162x128xf32, #tpu.memory_space<vmem>>, vector<16x1xf32>
    %cst_191 = arith.constant 0.000000e+00 : f32
    %432 = vector.broadcast %cst_191 : f32 to vector<16x32xf32>
    %c48 = arith.constant 48 : index
    %c0_192 = arith.constant 0 : index
    %433 = vector.load %arg6[%c48, %c0_192] : memref<64x1152xf32, #tpu.memory_space<vmem>>, vector<16x32xf32>
    tpu.vector_store %arg6[%c48, %c0_192], %432 {strides = array<i32>} : memref<64x1152xf32, #tpu.memory_space<vmem>>, vector<16x32xf32>,
    %c48_193 = arith.constant 48 : index
    %c64_194 = arith.constant 64 : index
    %434 = vector.load %arg6[%c48_193, %c64_194] : memref<64x1152xf32, #tpu.memory_space<vmem>>, vector<16x32xf32>
    tpu.vector_store %arg6[%c48_193, %c64_194], %432 {strides = array<i32>} : memref<64x1152xf32, #tpu.memory_space<vmem>>, vector<16x32xf32>,
    %c48_195 = arith.constant 48 : index
    %c576_196 = arith.constant 576 : index
    %435 = vector.load %arg6[%c48_195, %c576_196] : memref<64x1152xf32, #tpu.memory_space<vmem>>, vector<16x32xf32>
    tpu.vector_store %arg6[%c48_195, %c576_196], %432 {strides = array<i32>} : memref<64x1152xf32, #tpu.memory_space<vmem>>, vector<16x32xf32>,
    %c48_197 = arith.constant 48 : index
    %c640_198 = arith.constant 640 : index
    %436 = vector.load %arg6[%c48_197, %c640_198] : memref<64x1152xf32, #tpu.memory_space<vmem>>, vector<16x32xf32>
    tpu.vector_store %arg6[%c48_197, %c640_198], %432 {strides = array<i32>} : memref<64x1152xf32, #tpu.memory_space<vmem>>, vector<16x32xf32>,
    %c0_199 = arith.constant 0 : index
    %c0_200 = arith.constant 0 : index
    %437 = vector.load %arg6[%c0_199, %c0_200] : memref<64x1152xf32, #tpu.memory_space<vmem>>, vector<48x96xf32>
    %c0_201 = arith.constant 0 : index
    %c576_202 = arith.constant 576 : index
    %438 = vector.load %arg6[%c0_201, %c576_202] : memref<64x1152xf32, #tpu.memory_space<vmem>>, vector<48x96xf32>
    %439 = vector.extract_strided_slice %437 {offsets = [0, 0], sizes = [48, 32], strides = [1, 1]} : vector<48x96xf32> to vector<48x32xf32>
    %440 = vector.extract_strided_slice %438 {offsets = [0, 0], sizes = [48, 32], strides = [1, 1]} : vector<48x96xf32> to vector<48x32xf32>
    %441 = tpu.concatenate %439, %440 in 1 : vector<48x32xf32>, vector<48x32xf32> -> vector<48x64xf32>
    %442 = vector.extract_strided_slice %437 {offsets = [0, 16], sizes = [48, 32], strides = [1, 1]} : vector<48x96xf32> to vector<48x32xf32>
    %443 = vector.extract_strided_slice %438 {offsets = [0, 16], sizes = [48, 32], strides = [1, 1]} : vector<48x96xf32> to vector<48x32xf32>
    %444 = tpu.concatenate %442, %443 in 1 : vector<48x32xf32>, vector<48x32xf32> -> vector<48x64xf32>
    %445 = vector.extract_strided_slice %437 {offsets = [0, 32], sizes = [48, 32], strides = [1, 1]} : vector<48x96xf32> to vector<48x32xf32>
    %446 = vector.extract_strided_slice %438 {offsets = [0, 32], sizes = [48, 32], strides = [1, 1]} : vector<48x96xf32> to vector<48x32xf32>
    %447 = tpu.concatenate %445, %446 in 1 : vector<48x32xf32>, vector<48x32xf32> -> vector<48x64xf32>
    %448 = vector.extract_strided_slice %437 {offsets = [0, 48], sizes = [48, 32], strides = [1, 1]} : vector<48x96xf32> to vector<48x32xf32>
    %449 = vector.extract_strided_slice %438 {offsets = [0, 48], sizes = [48, 32], strides = [1, 1]} : vector<48x96xf32> to vector<48x32xf32>
    %450 = tpu.concatenate %448, %449 in 1 : vector<48x32xf32>, vector<48x32xf32> -> vector<48x64xf32>
    %451 = vector.extract_strided_slice %437 {offsets = [0, 64], sizes = [48, 32], strides = [1, 1]} : vector<48x96xf32> to vector<48x32xf32>
    %452 = vector.extract_strided_slice %438 {offsets = [0, 64], sizes = [48, 32], strides = [1, 1]} : vector<48x96xf32> to vector<48x32xf32>
    %453 = tpu.concatenate %451, %452 in 1 : vector<48x32xf32>, vector<48x32xf32> -> vector<48x64xf32>
    %454 = tpu.concatenate %441, %444, %447, %450, %453 in 0 : vector<48x64xf32>, vector<48x64xf32>, vector<48x64xf32>, vector<48x64xf32>, vector<48x64xf32> -> vector<240x64xf32>
    %455 = arith.truncf %454 : vector<240x64xf32> to vector<240x64xbf16>
    %cst_203 = arith.constant dense<0.000000e+00> : vector<16x64xf32>
    %456 = tpu.matmul %428, %455, %cst_203 {dimension_numbers = #tpu.dot_dimension_numbers<[1], [0], [0], [1], [0, 0, 1, 1], [], []>} : vector<16x240xbf16>, vector<240x64xbf16>, vector<16x64xf32> -> vector<16x64xf32>
    %457 = vector.broadcast %429 : vector<16x1xf32> to vector<16x64xf32>
    %458 = arith.addf %456, %457 : vector<16x64xf32>
    %cst_204 = arith.constant 0.000000e+00 : f32
    %459 = vector.broadcast %cst_204 : f32 to vector<16x64xf32>
    %460 = arith.maximumf %458, %459 : vector<16x64xf32>
    %461 = vector.broadcast %430 : vector<16x1xf32> to vector<16x64xf32>
    %462 = arith.mulf %460, %461 : vector<16x64xf32>
    %463 = vector.broadcast %431 : vector<16x1xf32> to vector<16x64xf32>
    %464 = arith.addf %462, %463 : vector<16x64xf32>
    %465 = vector.extract_strided_slice %464 {offsets = [0, 0], sizes = [16, 32], strides = [1, 1]} : vector<16x64xf32> to vector<16x32xf32>
    %c48_205 = arith.constant 48 : index
    %c32_206 = arith.constant 32 : index
    %466 = vector.load %arg6[%c48_205, %c32_206] : memref<64x1152xf32, #tpu.memory_space<vmem>>, vector<16x32xf32>
    tpu.vector_store %arg6[%c48_205, %c32_206], %465 {strides = array<i32>} : memref<64x1152xf32, #tpu.memory_space<vmem>>, vector<16x32xf32>,
    %467 = vector.extract_strided_slice %464 {offsets = [0, 32], sizes = [16, 32], strides = [1, 1]} : vector<16x64xf32> to vector<16x32xf32>
    %c48_207 = arith.constant 48 : index
    %c608_208 = arith.constant 608 : index
    %468 = vector.load %arg6[%c48_207, %c608_208] : memref<64x1152xf32, #tpu.memory_space<vmem>>, vector<16x32xf32>
    tpu.vector_store %arg6[%c48_207, %c608_208], %467 {strides = array<i32>} : memref<64x1152xf32, #tpu.memory_space<vmem>>, vector<16x32xf32>,
    %c160_209 = arith.constant 160 : index
    %c0_210 = arith.constant 0 : index
    %469 = vector.load %arg2[%c160_209, %c0_210] : memref<162x256xbf16, #tpu.memory_space<vmem>>, vector<2x64xbf16>
    %c160_211 = arith.constant 160 : index
    %c0_212 = arith.constant 0 : index
    %470 = vector.load %arg3[%c160_211, %c0_212] : memref<162x128xf32, #tpu.memory_space<vmem>>, vector<2x1xf32>
    %c0_213 = arith.constant 0 : index
    %c40 = arith.constant 40 : index
    %471 = vector.load %arg6[%c0_213, %c40] : memref<64x1152xf32, #tpu.memory_space<vmem>>, vector<64x16xf32>
    %c0_214 = arith.constant 0 : index
    %c616 = arith.constant 616 : index
    %472 = vector.load %arg6[%c0_214, %c616] : memref<64x1152xf32, #tpu.memory_space<vmem>>, vector<64x16xf32>
    %473 = tpu.concatenate %471, %472 in 1 : vector<64x16xf32>, vector<64x16xf32> -> vector<64x32xf32>
    %474 = arith.truncf %473 : vector<64x32xf32> to vector<64x32xbf16>
    %cst_215 = arith.constant dense<0.000000e+00> : vector<2x32xf32>
    %475 = tpu.matmul %469, %474, %cst_215 {dimension_numbers = #tpu.dot_dimension_numbers<[1], [0], [0], [1], [0, 0, 1, 1], [], []>} : vector<2x64xbf16>, vector<64x32xbf16>, vector<2x32xf32> -> vector<2x32xf32>
    %476 = vector.broadcast %470 : vector<2x1xf32> to vector<2x32xf32>
    %477 = arith.addf %475, %476 : vector<2x32xf32>
    %cst_216 = arith.constant 0.000000e+00 : f32
    %478 = vector.broadcast %cst_216 : f32 to vector<2x32xf32>
    %479 = arith.maximumf %477, %478 : vector<2x32xf32>
    %480 = vector.extract_strided_slice %479 {offsets = [0, 0], sizes = [2, 16], strides = [1, 1]} : vector<2x32xf32> to vector<2x16xf32>
    %c0_217 = arith.constant 0 : index
    %c0_218 = arith.constant 0 : index
    %c0_219 = arith.constant 0 : index
    %481 = vector.load %arg4[%c0_217, %c0_218, %c0_219] : memref<2x2x16xf32, #tpu.memory_space<vmem>>, vector<1x2x16xf32>
    %482 = vector.shape_cast %481 : vector<1x2x16xf32> to vector<2x16xf32>
    %483 = vector.shape_cast %480 : vector<2x16xf32> to vector<1x2x16xf32>
    tpu.vector_store %arg4[%c0_217, %c0_218, %c0_219], %483 {strides = array<i32>} : memref<2x2x16xf32, #tpu.memory_space<vmem>>, vector<1x2x16xf32>,
    %484 = vector.extract_strided_slice %479 {offsets = [0, 16], sizes = [2, 16], strides = [1, 1]} : vector<2x32xf32> to vector<2x16xf32>
    %c1_220 = arith.constant 1 : index
    %c0_221 = arith.constant 0 : index
    %c0_222 = arith.constant 0 : index
    %485 = vector.load %arg4[%c1_220, %c0_221, %c0_222] : memref<2x2x16xf32, #tpu.memory_space<vmem>>, vector<1x2x16xf32>
    %486 = vector.shape_cast %485 : vector<1x2x16xf32> to vector<2x16xf32>
    %487 = vector.shape_cast %484 : vector<2x16xf32> to vector<1x2x16xf32>
    tpu.vector_store %arg4[%c1_220, %c0_221, %c0_222], %487 {strides = array<i32>} : memref<2x2x16xf32, #tpu.memory_space<vmem>>, vector<1x2x16xf32>,
    return
  }
  func.func @transform_0(%arg0: i32) -> (i32, i32, i32) {
    %c0_i32 = arith.constant 0 : i32
    %c0_i32_0 = arith.constant 0 : i32
    %c0_i32_1 = arith.constant 0 : i32
    return %arg0, %c0_i32, %c0_i32_0 : i32, i32, i32
  }
  func.func @transform_1(%arg0: i32) -> (i32, i32) {
    %c0_i32 = arith.constant 0 : i32
    %c0_i32_0 = arith.constant 0 : i32
    %c0_i32_1 = arith.constant 0 : i32
    return %c0_i32, %c0_i32_0 : i32, i32
  }
  func.func @transform_2(%arg0: i32) -> (i32, i32) {
    %c0_i32 = arith.constant 0 : i32
    %c0_i32_0 = arith.constant 0 : i32
    %c0_i32_1 = arith.constant 0 : i32
    return %c0_i32, %c0_i32_0 : i32, i32
  }
  func.func @transform_3(%arg0: i32) -> (i32, i32, i32) {
    %c0_i32 = arith.constant 0 : i32
    %c0_i32_0 = arith.constant 0 : i32
    %c0_i32_1 = arith.constant 0 : i32
    return %arg0, %c0_i32, %c0_i32_0 : i32, i32, i32
  }
}

</mosaic_0001>

<bundles_post_ra>
// kernel: bassenji_forward.1
= control target key start
LH: loop header
LB: loop body
LE: loop exit
PB: predicated region body
PF: predicated region fallthrough
CT: control target
= control target key end

     0   :  { %8 = vsyncpa [#allocation5], 0  ;;  %s9962_s0 = inlined_call_operand.hbm [shape: f32[4,4,512], index: 0, kind: input, shape index: {}]   ;;  %s9963_s1 = inlined_call_operand.hbm [shape: bf16[162,256], index: 1, kind: input, shape index: {}]   ;;  %s9964_s2 = inlined_call_operand.hbm [shape: f32[162,128], index: 2, kind: input, shape index: {}]   ;;  %s9965_s3 = inlined_call_operand.hbm [shape: f32[4,2,16], index: 3, kind: output, shape index: {}]  }
   0x1   :  { %10 = vsyncpa [#allocation5 + $0x1], 0 }
   0x2   :  { %11 = vsyncpa [#allocation8], 0 }
   0x3   :  { %12 = vsyncpa [#allocation6], 0 }
   0x4   :  { %14 = vsyncpa [#allocation6 + $0x1], 0  ;;  %s6941_s12 = smov 0   ;;  %s6943_s13 = smov 0  }
   0x5   :  { %s6945_s14 = smov 0   ;;  %s6947_s15 = smov 0  }
   0x6 LB: > { %s6962_s16 = sadd.s32 4294967295, %s6869_s15   ;;  %s4855_s17 = sadd.s32 4294967294, %s6869_s15   ;;  %s6869_s15 = sphi %s6947_s15, %s10440_s15   ;;  %s6865_s14 = sphi %s6945_s14, %s10439_s14   ;;  %s6861_s13 = sphi %s6943_s13, %s10438_s13   ;;  %s6857_s12 = sphi %s6941_s12, %s10437_s12  }
   0x7   : > { %p40_p0 = scmp.ne.s32.totalorder %s6861_s13, %s6857_s12  ;;  %p41_p1 = scmp.eq.s32.totalorder %s6962_s16, 0 }
   0x8   : > { %p106_p2 = scmp.eq.s32.totalorder %s6962_s16, 1  ;;  %p112_p3 = scmp.eq.s32.totalorder %s4855_s17, 1 }
   0x9   : > { %p6971_p4 = por %p41_p1, %p40_p0  ;;  %p4856_p5 = scmp.ge.s32.totalorder %s6869_s15, 1 }
   0xa   : > { %p6976_p6 = por %p112_p3, %p40_p0  ;;  %p119_p7 = scmp.lt.s32.totalorder %s6869_s15, 3 }
   0xb   : > { %s130_s22 = sshll.u32 %s9963_s1, 4  ;;  %s6871_s24 = smov [#allocation7]   ;;  %s131_s22 = int_to_ptr.hbm [resolvable:$true] %s130_s22 }
   0xc   : > { %p6984_p8 = pnand %p4856_p5, %p119_p7  ;;  %s132_s25 = sshll.u32 %s6871_s24, 4  ;;  %s133_s25 = int_to_ptr.vmem [resolvable:$true] %s132_s25 }
   0xd   : > { %s144_s28 = sshll.u32 %s9964_s2, 4  ;;  %s6872_s29 = smov 128   ;;  %s145_s28 = int_to_ptr.hbm [resolvable:$true] %s144_s28 }
   0xe   : > { %p5180_p9 = pneg %p6984_p8  ;;  %s6873_s30 = smov 8  }
   0xf   : > { %s6874_s4 = smov [#allocation9]   ;;  %s6997_s6 = sadd.s32 1, %s6869_s15  }
  0x10   : > { %p5181_p10 = pnand %p5180_p9, %p41_p1  ;;  %s146_s5 = sshll.u32 %s6874_s4, 4  ;;  %s147_s5 = int_to_ptr.vmem [resolvable:$true] %s146_s5 }
  0x11   : > { %s27_s7 = sadd.s32 1, %s6865_s14  ;;  %s24_s8 = ssub.s32 %s6869_s15, %s6997_s6 }
  0x12   : > { %5183 = dma.hbm_to_vmem [thread:$0]  (!%p5181_p10), %s131_s22, 2688, %s133_s25, [#allocation8], %s6872_s29, %s6872_s29, %s6873_s30  }
  0x13   : > { %5186 = dma.hbm_to_vmem [thread:$0]  (!%p5181_p10), %s145_s28, 2688, %s147_s5, [#allocation8], %s6872_s29, %s6872_s29, %s6873_s30  }
  0x14   : > { %p34_p12 = scmp.ne.s32.totalorder %s6865_s14, %s6861_s13  ;;  %p25_p13 = scmp.eq.s32.totalorder %s24_s8, 0 }
  0x15   : > { %p35_p0 = scmp.eq.s32.totalorder %s6869_s15, 0  ;;  %p5197_p5 = scmp.lt.s32.totalorder %s6869_s15, 2 }
  0x16   : > { %p7007_p3 = por %p106_p2, %p34_p12  ;;  %s160_s11 = sand.u32 1, %s6865_s14  }
  0x17   : > { %s7013_s10 = scalar_select %p25_p13, %s6865_s14, %s27_s7  }
  0x18   : > { %p36_p7 = por %p35_p0, %p34_p12  ;;  %s4860_s17 = sshll.u32 %s160_s11, 5 }
  0x19   : > { %s5149_s20 = sshll.u32 %s6869_s15, 5  ;;  %s164_s25 = scalar_lea.vmem [#allocation4], %s4860_s17 }
  0x1a   : > { %s170_s24 = scalar_lea.hbm %s9962_s0, %s5149_s20  ;;  %s173_s26 = sshll.u32 %s164_s25, 4  ;;  %s174_s26 = int_to_ptr.vmem [resolvable:$true] %s173_s26 }
  0x1b   : > { %s171_s27 = sshll.u32 %s170_s24, 4  ;;  %p7020_p2 = pnand %p5197_p5, %p36_p7  ;;  %s172_s27 = int_to_ptr.hbm [resolvable:$true] %s171_s27 }
  0x1c   : > { %s161_s29 = scalar_lea.sflag [#allocation5], %s160_s11  ;;  %s6769_s30 = sshra.s32 %s172_s27, 4  ;;  %s6770_s30 = int_to_ptr.hbm [resolvable:$true] %s6769_s30 }
  0x1d   : > { %s6771_s4 = scalar_lea.hbm %s6770_s30, 32  ;;  %p6773_p10 = pneg %p7020_p2 }
  0x1e   : > { %p6772_p9 = scmp.ne.s32.totalorder %s6770_s30, %s6771_s4  ;;  %s6776_s8 = scalar_lea.hbm %s9962_s0, 64 }
  0x1f   : > { %p6777_p0 = scmp.lt.s32.totalorder %s6770_s30, %s9962_s0  ;;  %p6778_p5 = scmp.lt.s32.totalorder %s6776_s8, %s6771_s4 }
  0x20   : > { %p6774_p12 = pnand %p6773_p10, %p6772_p9 }
  0x21   : > { %p6779_p7 = por %p6778_p5, %p6777_p0 }
  0x22   : > { %p6775_p13 = pneg %p6774_p12 }
  0x24   : > { %p6780_p11 = pnand %p6779_p7, %p6775_p13 }
  0x26   : > { %6783 = shalt.err (!%p6780_p11)
}
  0x27   : > { %s6875_s11 = smov 256   ;;  %s6876_s21 = smov 16  }
  0x28   : > { %5190 = dma.hbm_to_vmem [thread:$0]  (!%p7020_p2), %s172_s27, 512, %s174_s26, %s161_s29, %s6875_s11, %s6875_s11, %s6876_s21  }
  0x29   : > { %185 = sbr.rel (%p6984_p8) target bundleno = 5005 (0x138d), region = 32 }
  0x2e   : > { %s7037_s22 = sand.u32 1, %s6861_s13  }
  0x2f   : > { %s4865_s24 = sshll.u32 %s7037_s22, 5  ;;  %s188_s25 = scalar_lea.sflag [#allocation5], %s7037_s22 }
  0x30   : > { %s7041_s30 = scalar_lea.vmem [#allocation4], %s4865_s24 }
  0x31   : > { %6844 = dma.done.wait (%p6971_p4), %s188_s25, 512  }
  0x32   : > { %6846 = vsyncadd (%p6971_p4), %s188_s25, 4294966784 }
  0x33   : > { %6848 = dma.done.wait (%p41_p1), [#allocation8], 5376  }
  0x34   : > { %6850 = vsyncadd (%p41_p1), [#allocation8], 4294961920  ;;  %vm9986_vm0 = vcmask 261120   ;;  %v9966_v0 = vmov 0.0   ;;  %v238_v1 = vld [vmem:[%s7041_s30 + $0x8] sm:$0xff]  ;;  %v237_v2 = vld [vmem:[%s7041_s30] sm:$0xff] }
  0x35   : > { %228 = vst [vmem:[#allocation2] sm:$0xff] %v9966_v0  ;;  %v4870_v3 = vld [vmem:[%s7041_s30 + $0x18] sm:$0xff]  ;;  %v4869_v4 = vld [vmem:[%s7041_s30 + $0x10] sm:$0xff]  ;;  %s6878_s18 = smov 32   ;;  %s6879_s23 = smov 96   ;;  %vm265_vm1 = vcmask 1043712  }
  0x36   : > { %229 = vst [vmem:[#allocation2 + $0x8] sm:$0xff] %v9966_v0  ;;  %vm270_vm2 = vcmask 257024   ;;  %vm301_vm3 = vcmask 1044224   ;;  %s6880_s26 = smov 117   ;;  %s6881_s27 = smov 118   ;;  %vm9985_vm4 = vcmask 785408  }
  0x37   : > { %230 = vst [vmem:[#allocation2 + $0x10] sm:$0xff] %v9966_v0  ;;  %s6882_s28 = smov 120   ;;  %s6883_s29 = smov 122   ;;  %vm306_vm5 = vcmask 781312   ;;  %vm467_vm6 = vcmask 957440   ;;  %vm455_vm7 = vcmask 965632  }
  0x38   : > { %231 = vst [vmem:[#allocation2 + $0x18] sm:$0xff] %v9966_v0  ;;  %s6884_s4 = smov 119   ;;  %s6885_s5 = smov 121   ;;  %vm431_vm8 = vcmask 982016   ;;  %vm395_vm9 = vcmask 1006592   ;;  %vm443_vm10 = vcmask 973824  }
  0x39   : > { %232 = vst [vmem:[#allocation2 + $0x20] sm:$0xff] %v9966_v0  ;;  %s6886_s7 = smov 123   ;;  %s6887_s8 = smov 124   ;;  %vm383_vm11 = vcmask 1014784   ;;  %vm419_vm12 = vcmask 990208   ;;  %vm371_vm13 = vcmask 1022976  }
  0x3a   : > { %233 = vst [vmem:[#allocation2 + $0x28] sm:$0xff] %v9966_v0  ;;  %s6888_s17 = smov 125   ;;  %s6889_s20 = smov 126   ;;  %vm407_vm14 = vcmask 998400   ;;  %vm9996_vm15 = vcmask 1031168  }
  0x3b   : > { %234 = vst [vmem:[#allocation2 + $0x30] sm:$0xff] %v9966_v0  ;;  %s6890_s11 = smov 127   ;;  %s6891_s21 = smov 101  }
  0x3c   : > { %235 = vst [vmem:[#allocation2 + $0x38] sm:$0xff] %v9966_v0  ;;  %s6892_s24 = smov 37   ;;  %s6897_s25 = smov 97  }
  0x3d   : > { %236 = vst [vmem:[#allocation2 + $0x40] sm:$0xff] %v9966_v0  ;;  %s6898_s30 = smov 95  }
  0x3e   : > { %316 = vst.msk [vmem:[#allocation3] sm:$0xff] %vm9986_vm0, %v9966_v0 }
  0x3f   : > { %317 = vst.msk [vmem:[#allocation3 + $0x48] sm:$0xff] %vm9986_vm0, %v9966_v0 }
  0x40   : > { %318 = vst.msk [vmem:[#allocation3 + $0x90] sm:$0xff] %vm9986_vm0, %v9966_v0 }
  0x41   : > { %319 = vst.msk [vmem:[#allocation3 + $0xd8] sm:$0xff] %vm9986_vm0, %v9966_v0 }
  0x42   : > { %2322 = vst.msk [vmem:[#allocation2 + $0x48] sm:$0xff] %vm9986_vm0, %v9966_v0 }
  0x43   : > { %2323 = vst.msk [vmem:[#allocation2 + $0x90] sm:$0xff] %vm9986_vm0, %v9966_v0 }
  0x44   : > { %2324 = vst.msk [vmem:[#allocation2 + $0xd8] sm:$0xff] %vm9986_vm0, %v9966_v0 }
  0x45   : > { %3961 = vst.msk [vmem:[#allocation3 + $0x120] sm:$0xff] %vm9986_vm0, %v9966_v0 }
  0x46   : > { %3962 = vst.msk [vmem:[#allocation3 + $0x168] sm:$0xff] %vm9986_vm0, %v9966_v0 }
  0x47   : > { %3967 = vst.msk [vmem:[#allocation3 + $0x148] sm:$0xff] %vm9986_vm0, %v9966_v0 }
  0x48   : > { %3968 = vst.msk [vmem:[#allocation3 + $0x190] sm:$0xff] %vm9986_vm0, %v9966_v0 }
  0x49   : > { %4262 = vst.msk [vmem:[#allocation3 + $0x1b0] sm:$0xff] %vm9986_vm0, %v9966_v0 }
  0x4a   : > { %4263 = vst.msk [vmem:[#allocation3 + $0x1f8] sm:$0xff] %vm9986_vm0, %v9966_v0 }
  0x4b   : > { %243 = vst [vmem:[#allocation1 + $0x10] ss:$2 sm:$0xff] %v238_v1 }
  0x4c   : > { %241 = vst [vmem:[#allocation1] ss:$2 sm:$0xff] %v237_v2 }
  0x52   : > { %v246_v5 = vld.sshfl [vmem:[#allocation1 + $0x10] sm:$0xff pattern:$0x75316420]  ;;  %v247_v6 = vld.sshfl [vmem:[#allocation1 + $0x18] sm:$0xff pattern:$0x75316420] }
  0x53   : > { %252 = vrot.lane.b32.xlu1 %v246_v5, %s6878_s18  ;;  %v244_v7 = vld.sshfl [vmem:[#allocation1] sm:$0xff pattern:$0x75316420]  ;;  %279 = vst [vmem:[#allocation1 + $0x10] ss:$2 sm:$0xff] %v4870_v3 }
  0x54   : > { %248 = vrot.lane.b32.xlu0 %v244_v7, %s6878_s18  ;;  %v245_v8 = vld.sshfl [vmem:[#allocation1 + $0x8] sm:$0xff pattern:$0x75316420] }
  0x55   : > { %277 = vst [vmem:[#allocation1] ss:$2 sm:$0xff] %v4869_v4 }
  0x5a   : > { %v282_v10 = vld.sshfl [vmem:[#allocation1 + $0x10] sm:$0xff pattern:$0x75316420]  ;;  %v283_v12 = vld.sshfl [vmem:[#allocation1 + $0x18] sm:$0xff pattern:$0x75316420] }
  0x5b   : > { %254 = vrot.lane.b32.xlu1 %v247_v6, %s6878_s18 }
  0x5c   : > { %250 = vrot.lane.b32.xlu0 %v245_v8, %s6878_s18  ;;  %v280_v9 = vld.sshfl [vmem:[#allocation1] sm:$0xff pattern:$0x75316420]  ;;  %v281_v11 = vld.sshfl [vmem:[#allocation1 + $0x8] sm:$0xff pattern:$0x75316420] }
  0x5d   : > { %284 = vrot.lane.b32.xlu2 %v280_v9, %s6879_s23 }
  0x63   : > { %288 = vrot.lane.b32.xlu1 %v282_v10, %s6879_s23 }
  0x64   : > { %286 = vrot.lane.b32.xlu0 %v281_v11, %s6879_s23 }
  0x6b   : > { %290 = vrot.lane.b32.xlu1 %v283_v12, %s6879_s23 }
  0xb7   : > { %v285_v21 = vpop.permute.xlu2 %284 }
  0xc5   : > { %v253_v13 = vpop.permute.xlu1 %252 }
  0xc6   : > { %v249_v14 = vpop.permute.xlu0 %248 }
  0xc7   : > { %266 = vst.msk [vmem:[#allocation2] sm:$0xf] %vm265_vm1, %v249_v14  ;;  %vm9995_vm1 = vcmask 1039360  }
  0xcd   : > { %v255_v15 = vpop.permute.xlu1 %254 }
  0xce   : > { %v7098_v16 = vld [vmem:[#allocation2] sm:$0xff]  ;;  %v259_v17 = vsel %vm9986_vm0, %v253_v13, %v255_v15  ;;  %271 = vst.msk [vmem:[#allocation2 + $0x20] sm:$0xf] %vm270_vm2, %v255_v15  ;;  %v251_v18 = vpop.permute.xlu0 %250  ;;  %vm575_vm2 = vcmask 826368  }
  0xcf   : > { %2321 = vst.msk [vmem:[#allocation2] sm:$0xff] %vm9986_vm0, %v9966_v0  ;;  %v257_v19 = vsel %vm9986_vm0, %v249_v14, %v251_v18  ;;  %v258_v20 = vsel %vm9986_vm0, %v251_v18, %v253_v13 }
  0xd0   : > { %269 = vst [vmem:[#allocation2 + $0x18] sm:$0xf] %v259_v17 }
  0xd1   : > { %267 = vst [vmem:[#allocation2 + $0x8] sm:$0xf] %v257_v19 }
  0xd2   : > { %268 = vst [vmem:[#allocation2 + $0x10] sm:$0xf] %v258_v20 }
  0xd3   : > { %302 = vst.msk [vmem:[#allocation2 + $0x20] sm:$0xf] %vm301_vm3, %v285_v21  ;;  %vm1621_vm3 = vcmask 302080  }
  0xd5   : > { %v289_v28 = vpop.permute.xlu1 %288 }
  0xd6   : > { %v287_v26 = vpop.permute.xlu0 %286 }
  0xd7   : > { %v293_v27 = vsel %vm9985_vm4, %v285_v21, %v287_v26  ;;  %v294_v29 = vsel %vm9985_vm4, %v287_v26, %v289_v28  ;;  %v7137_v32 = vld [vmem:[#allocation2 + $0x18] sm:$0xff] }
  0xd8   : > { %v7105_v22 = vld [vmem:[#allocation2 + $0x8] sm:$0xff]  ;;  %303 = vst [vmem:[#allocation2 + $0x28] sm:$0xf] %v293_v27 }
  0xd9   : > { %v7107_v23 = vld [vmem:[#allocation2 + $0x10] sm:$0xff]  ;;  %v5293_v24 = vpack.i.bf16 %v7105_v22, %v7098_v16  ;;  %304 = vst [vmem:[#allocation2 + $0x30] sm:$0xf] %v294_v29 }
  0xda   : > { %v5288_v25 = vpack.i.bf16 %v7107_v23, %v7107_v23  ;;  %v7139_v33 = vld [vmem:[#allocation2 + $0x20] sm:$0xff] }
  0xdb   : > { %5294 = vrot.lane.b32.xlu1 %v5293_v24, %s6880_s26  ;;  %5284 = vrot.lane.b32.xlu2 %v5293_v24, %s6881_s27  ;;  %v5398_v34 = vpack.i.bf16 %v7139_v33, %v7137_v32 }
  0xdc   : > { %5289 = vrot.lane.b32.xlu0 %v5288_v25, %s6881_s27 }
  0xdd   : > { %v291_v30 = vpop.permute.xlu1 %290 }
  0xde   : > { %v295_v31 = vsel %vm9985_vm4, %v289_v28, %v291_v30  ;;  %307 = vst.msk [vmem:[#allocation2 + $0x40] sm:$0xf] %vm306_vm5, %v291_v30 }
  0xdf   : > { %305 = vst [vmem:[#allocation2 + $0x38] sm:$0xf] %v295_v31  ;;  %v7152_v35 = vld [vmem:[#allocation2 + $0x28] sm:$0xff] }
  0xe0   : > { %v5458_v36 = vpack.i.bf16 %v7152_v35, %v7139_v33  ;;  %v7158_v37 = vld [vmem:[#allocation2 + $0x30] sm:$0xff] }
  0xe1   : > { %v5453_v38 = vpack.i.bf16 %v7158_v37, %v7158_v37 }
  0xe3   : > { %5309 = vrot.lane.b32.xlu1 %v5288_v25, %s6882_s28  ;;  %5299 = vrot.lane.b32.xlu2 %v5288_v25, %s6880_s26 }
  0xe4   : > { %5304 = vrot.lane.b32.xlu0 %v5293_v24, %s6882_s28 }
  0xe5   : > { %v1872_v51 = vld [vmem:[#allocation2 + $0x40] sm:$0xff] }
  0xe6   : > { %v1871_v50 = vld [vmem:[#allocation2 + $0x38] sm:$0xff] }
  0xe7   : > { %v7205_v53 = vpack.i.bf16 %v1872_v51, %v1871_v50 }
  0xeb   : > { %5324 = vrot.lane.b32.xlu1 %v5293_v24, %s6883_s29  ;;  %5314 = vrot.lane.b32.xlu2 %v5293_v24, %s6884_s4 }
  0xec   : > { %5319 = vrot.lane.b32.xlu0 %v5288_v25, %s6884_s4 }
  0xf3   : > { %5339 = vrot.lane.b32.xlu1 %v5288_v25, %s6885_s5  ;;  %5329 = vrot.lane.b32.xlu2 %v5288_v25, %s6883_s29 }
  0xf4   : > { %5334 = vrot.lane.b32.xlu0 %v5293_v24, %s6885_s5 }
  0xfb   : > { %5354 = vrot.lane.b32.xlu1 %v5293_v24, %s6886_s7  ;;  %5344 = vrot.lane.b32.xlu2 %v5293_v24, %s6887_s8 }
  0xfc   : > { %5349 = vrot.lane.b32.xlu0 %v5288_v25, %s6887_s8 }
 0x103   : > { %5374 = vrot.lane.b32.xlu1 %v5293_v24, %s6888_s17  ;;  %5359 = vrot.lane.b32.xlu2 %v5288_v25, %s6886_s7 }
 0x104   : > { %5369 = vrot.lane.b32.xlu0 %v5288_v25, %s6889_s20 }
 0x10b   : > { %5389 = vrot.lane.b32.xlu1 %v5288_v25, %s6890_s11  ;;  %5364 = vrot.lane.b32.xlu2 %v5293_v24, %s6889_s20 }
 0x10c   : > { %5384 = vrot.lane.b32.xlu0 %v5293_v24, %s6890_s11 }
 0x113   : > { %5404 = vrot.lane.b32.xlu1 %v5398_v34, %s6882_s28  ;;  %5379 = vrot.lane.b32.xlu2 %v5288_v25, %s6888_s17 }
 0x114   : > { %5399 = vrot.lane.b32.xlu0 %v5398_v34, %s6880_s26 }
 0x11b   : > { %5419 = vrot.lane.b32.xlu1 %v5398_v34, %s6885_s5  ;;  %5394 = vrot.lane.b32.xlu2 %v5398_v34, %s6881_s27 }
 0x11c   : > { %5414 = vrot.lane.b32.xlu0 %v5398_v34, %s6883_s29 }
 0x123   : > { %5444 = vrot.lane.b32.xlu1 %v5398_v34, %s6890_s11  ;;  %5409 = vrot.lane.b32.xlu2 %v5398_v34, %s6884_s4 }
 0x124   : > { %5429 = vrot.lane.b32.xlu0 %v5398_v34, %s6886_s7 }
 0x12b   : > { %5459 = vrot.lane.b32.xlu1 %v5458_v36, %s6880_s26  ;;  %5424 = vrot.lane.b32.xlu2 %v5398_v34, %s6887_s8 }
 0x12c   : > { %5439 = vrot.lane.b32.xlu0 %v5398_v34, %s6888_s17 }
 0x133   : > { %5474 = vrot.lane.b32.xlu1 %v5453_v38, %s6882_s28  ;;  %5434 = vrot.lane.b32.xlu2 %v5398_v34, %s6889_s20 }
 0x134   : > { %5454 = vrot.lane.b32.xlu0 %v5453_v38, %s6881_s27 }
 0x135   : > { %v7166_v39 = vpop.permute.xlu2 %5284 }
 0x136   : > { %v5287_v18 = vunpack.i.h.bf16 %v7166_v39  ;;  %v5286_v19 = vunpack.i.l.bf16 %v7166_v39 }
 0x138   : > { %v456_v30 = vsel %vm455_vm7, %v5286_v19, %v5287_v18 }
 0x13b   : > { %5489 = vrot.lane.b32.xlu1 %v5458_v36, %s6883_s29  ;;  %5449 = vrot.lane.b32.xlu2 %v5458_v36, %s6881_s27 }
 0x13c   : > { %5469 = vrot.lane.b32.xlu0 %v5458_v36, %s6882_s28 }
 0x13d   : > { %v7171_v40 = vpop.permute.xlu2 %5299 }
 0x13e   : > { %v5301_v58 = vunpack.i.l.bf16 %v7171_v40 }
 0x143   : > { %5504 = vrot.lane.b32.xlu1 %v5453_v38, %s6885_s5  ;;  %5464 = vrot.lane.b32.xlu2 %v5453_v38, %s6880_s26 }
 0x144   : > { %5484 = vrot.lane.b32.xlu0 %v5453_v38, %s6884_s4 }
 0x145   : > { %v7176_v41 = vpop.permute.xlu2 %5314 }
 0x146   : > { %v5316_v50 = vunpack.i.l.bf16 %v7176_v41 }
 0x14b   : > { %5519 = vrot.lane.b32.xlu1 %v5458_v36, %s6886_s7  ;;  %5479 = vrot.lane.b32.xlu2 %v5458_v36, %s6884_s4 }
 0x14c   : > { %5499 = vrot.lane.b32.xlu0 %v5458_v36, %s6885_s5 }
 0x14d   : > { %v7181_v42 = vpop.permute.xlu1 %5294  ;;  %v7183_v43 = vpop.permute.xlu2 %5329 }
 0x14e   : > { %v7185_v44 = vpop.permute.xlu0 %5289  ;;  %v5331_v12 = vunpack.i.l.bf16 %v7183_v43  ;;  %v5297_v14 = vunpack.i.h.bf16 %v7181_v42  ;;  %v5296_v15 = vunpack.i.l.bf16 %v7181_v42  ;;  %v5317_v42 = vunpack.i.h.bf16 %v7176_v41 }
 0x14f   : > { %v5291_v54 = vunpack.i.l.bf16 %v7185_v44 }
 0x150   : > { %v468_v26 = vsel %vm467_vm6, %v5296_v15, %v5297_v14  ;;  %v469_v28 = vsel %vm467_vm6, %v5297_v14, %v5301_v58 }
 0x151   : > { %v490_v59 = vpack.c.bf16 %v5301_v58, %v5291_v54  ;;  %v457_v27 = vsel %vm455_vm7, %v5287_v18, %v5291_v54  ;;  %v488_v31 = vpack.c.bf16 %v468_v26, %v456_v30 }
 0x153   : > { %5534 = vrot.lane.b32.xlu1 %v5453_v38, %s6889_s20  ;;  %5494 = vrot.lane.b32.xlu2 %v5453_v38, %s6883_s29 }
 0x154   : > { %5514 = vrot.lane.b32.xlu0 %v5453_v38, %s6887_s8 }
 0x155   : > { %v7190_v45 = vpop.permute.xlu1 %5309  ;;  %v7192_v46 = vpop.permute.xlu2 %5344 }
 0x156   : > { %v7194_v47 = vpop.permute.xlu0 %5304  ;;  %v5311_v3 = vunpack.i.l.bf16 %v7190_v45  ;;  %v5347_v51 = vunpack.i.h.bf16 %v7192_v46 }
 0x157   : > { %v5307_v34 = vunpack.i.h.bf16 %v7194_v47 }
 0x159   : > { %v433_v14 = vsel %vm431_vm8, %v5307_v34, %v5311_v3 }
 0x15b   : > { %5549 = vrot.lane.b32.xlu1 %v5458_v36, %s6890_s11  ;;  %5509 = vrot.lane.b32.xlu2 %v5458_v36, %s6887_s8 }
 0x15c   : > { %5529 = vrot.lane.b32.xlu0 %v5458_v36, %s6889_s20 }
 0x15d   : > { %v7199_v48 = vpop.permute.xlu1 %5324  ;;  %v7201_v49 = vpop.permute.xlu2 %5359 }
 0x15e   : > { %v7203_v52 = vpop.permute.xlu0 %5319  ;;  %v5361_v1 = vunpack.i.l.bf16 %v7201_v49 }
 0x15f   : > { %v5321_v62 = vunpack.i.l.bf16 %v7203_v52 }
 0x161   : > { %v487_v5 = vpack.c.bf16 %v5321_v62, %v5311_v3 }
 0x163   : > { %5564 = vrot.lane.b32.xlu1 %v7205_v53, %s6880_s26  ;;  %5524 = vrot.lane.b32.xlu2 %v5453_v38, %s6886_s7  ;;  %s6899_s26 = smov 33  }
 0x164   : > { %5544 = vrot.lane.b32.xlu0 %v5453_v38, %s6888_s17 }
 0x165   : > { %v7212_v55 = vpop.permute.xlu1 %5339  ;;  %v7214_v56 = vpop.permute.xlu2 %5364 }
 0x166   : > { %v7216_v57 = vpop.permute.xlu0 %5334  ;;  %v5341_v8 = vunpack.i.l.bf16 %v7212_v55  ;;  %v5367_v3 = vunpack.i.h.bf16 %v7214_v56 }
 0x167   : > { %v5337_v18 = vunpack.i.h.bf16 %v7216_v57  ;;  %v5336_v19 = vunpack.i.l.bf16 %v7216_v57 }
 0x168   : > { %v484_v17 = vpack.c.bf16 %v5341_v8, %v5331_v12 }
 0x16b   : > { %5539 = vrot.lane.b32.xlu2 %v5458_v36, %s6888_s17  ;;  %573 = vrot.lane.b32.xlu1 %v490_v59, %s6891_s21  ;;  %v5306_v36 = vunpack.i.l.bf16 %v7194_v47 }
 0x16c   : > { %5559 = vrot.lane.b32.xlu0 %v7205_v53, %s6881_s27  ;;  %s6900_s27 = smov 31  }
 0x16d   : > { %v7223_v60 = vpop.permute.xlu1 %5354  ;;  %v7225_v61 = vpop.permute.xlu2 %5379  ;;  %v432_v59 = vsel %vm431_vm8, %v5306_v36, %v5307_v34 }
 0x16e   : > { %v7228_v63 = vpop.permute.xlu0 %5349  ;;  %v5381_v10 = vunpack.i.l.bf16 %v7225_v61  ;;  %v5357_v39 = vunpack.i.h.bf16 %v7223_v60 }
 0x16f   : > { %v5351_v2 = vunpack.i.l.bf16 %v7228_v63 }
 0x171   : > { %v481_v4 = vpack.c.bf16 %v5361_v1, %v5351_v2  ;;  %v385_v41 = vsel %vm383_vm11, %v5347_v51, %v5351_v2  ;;  %v5326_v2 = vunpack.i.l.bf16 %v7199_v48 }
 0x173   : > { %5554 = vrot.lane.b32.xlu2 %v5453_v38, %s6890_s11  ;;  %555 = vrot.lane.b32.xlu1 %v481_v4, %s6891_s21  ;;  %v489_v38 = vpack.c.bf16 %v469_v28, %v457_v27  ;;  %v445_v4 = vsel %vm443_vm10, %v5317_v42, %v5321_v62 }
 0x174   : > { %567 = vrot.lane.b32.xlu0 %v487_v5, %s6891_s21  ;;  %v397_v5 = vsel %vm395_vm9, %v5357_v39, %v5361_v1  ;;  %v5327_v1 = vunpack.i.h.bf16 %v7199_v48  ;;  %v421_v48 = vsel %vm419_vm12, %v5337_v18, %v5341_v8 }
 0x175   : > { %v7236_v6 = vpop.permute.xlu1 %5374  ;;  %v7238_v7 = vpop.permute.xlu2 %5394  ;;  %v480_v26 = vpack.c.bf16 %v397_v5, %v385_v41 }
 0x176   : > { %v7241_v9 = vpop.permute.xlu0 %5369  ;;  %v5377_v62 = vunpack.i.h.bf16 %v7236_v6  ;;  %v409_v8 = vsel %vm407_vm14, %v5327_v1, %v5331_v12 }
 0x177   : > { %v5371_v11 = vunpack.i.l.bf16 %v7241_v9  ;;  %v483_v41 = vpack.c.bf16 %v421_v48, %v409_v8 }
 0x179   : > { %v478_v13 = vpack.c.bf16 %v5381_v10, %v5371_v11 }
 0x17b   : > { %5569 = vrot.lane.b32.xlu2 %v7205_v53, %s6882_s28  ;;  %549 = vrot.lane.b32.xlu1 %v478_v13, %s6891_s21  ;;  %v444_v13 = vsel %vm443_vm10, %v5316_v50, %v5317_v42  ;;  %v373_v42 = vsel %vm371_vm13, %v5377_v62, %v5381_v10  ;;  %v408_v50 = vsel %vm407_vm14, %v5326_v2, %v5327_v1  ;;  %v5356_v10 = vunpack.i.l.bf16 %v7223_v60  ;;  %s6901_s28 = smov 34  }
 0x17c   : > { %561 = vrot.lane.b32.xlu0 %v484_v17, %s6891_s21  ;;  %v485_v15 = vpack.c.bf16 %v444_v13, %v432_v59  ;;  %v486_v17 = vpack.c.bf16 %v445_v4, %v433_v14  ;;  %v5332_v14 = vunpack.i.h.bf16 %v7183_v43  ;;  %v5366_v60 = vunpack.i.l.bf16 %v7214_v56 }
 0x17d   : > { %v7262_v20 = vpop.permute.xlu1 %5389  ;;  %v7264_v21 = vpop.permute.xlu2 %5409  ;;  %v396_v43 = vsel %vm395_vm9, %v5356_v10, %v5357_v39  ;;  %v5322_v56 = vunpack.i.h.bf16 %v7203_v52 }
 0x17e   : > { %v7266_v24 = vpop.permute.xlu0 %5384  ;;  %v5391_v25 = vunpack.i.l.bf16 %v7262_v20 }
 0x17f   : > { %v5387_v12 = vunpack.i.h.bf16 %v7266_v24 }
 0x180   : > { %v475_v29 = vpack.c.bf16 %v5391_v25, %v7107_v23 }
 0x183   : > { %543 = vrot.lane.b32.xlu1 %v475_v29, %s6891_s21  ;;  %569 = vrot.lane.b32.xlu2 %v488_v31, %s6891_s21  ;;  %v420_v31 = vsel %vm419_vm12, %v5336_v19, %v5337_v18 }
 0x184   : > { %571 = vrot.lane.b32.xlu0 %v489_v38, %s6891_s21  ;;  %v361_v38 = vsel %vm9996_vm15, %v5367_v3, %v5371_v11  ;;  %v482_v4 = vpack.c.bf16 %v420_v31, %v408_v50 }
 0x185   : > { %v7285_v54 = vpop.permute.xlu1 %5404  ;;  %v7287_v47 = vpop.permute.xlu2 %5424  ;;  %v477_v5 = vpack.c.bf16 %v373_v42, %v361_v38  ;;  %v5376_v42 = vunpack.i.l.bf16 %v7236_v6  ;;  %v5386_v6 = vunpack.i.l.bf16 %v7266_v24 }
 0x186   : > { %v7289_v58 = vpop.permute.xlu0 %5399 }
 0x187   : > { %v5402_v39 = vunpack.i.h.bf16 %v7289_v58  ;;  %v372_v8 = vsel %vm371_vm13, %v5376_v42, %v5377_v62  ;;  %v5407_v62 = vunpack.i.h.bf16 %v7285_v54 }
 0x18b   : > { %563 = vrot.lane.b32.xlu1 %v485_v15, %s6891_s21  ;;  %565 = vrot.lane.b32.xlu2 %v486_v17, %s6891_s21  ;;  %v5346_v15 = vunpack.i.l.bf16 %v7192_v46  ;;  %v5342_v17 = vunpack.i.h.bf16 %v7212_v55  ;;  %v349_v55 = vsel %vm9995_vm1, %v5387_v12, %v5391_v25  ;;  %v5312_v46 = vunpack.i.h.bf16 %v7190_v45 }
 0x18c   : > { %553 = vrot.lane.b32.xlu0 %v480_v26, %s6891_s21  ;;  %v5411_v25 = vunpack.i.l.bf16 %v7264_v21 }
 0x18d   : > { %v7310_v27 = vpop.permute.xlu1 %5419  ;;  %v7312_v57 = vpop.permute.xlu2 %5434  ;;  %v384_v31 = vsel %vm383_vm11, %v5346_v15, %v5347_v51 }
 0x18e   : > { %v7314_v28 = vpop.permute.xlu0 %5414  ;;  %v5422_v29 = vunpack.i.h.bf16 %v7310_v27  ;;  %v5421_v30 = vunpack.i.l.bf16 %v7310_v27  ;;  %v479_v38 = vpack.c.bf16 %v396_v43, %v384_v31  ;;  %v5352_v31 = vunpack.i.h.bf16 %v7228_v63 }
 0x18f   : > { %v5417_v34 = vunpack.i.h.bf16 %v7314_v28  ;;  %v5416_v36 = vunpack.i.l.bf16 %v7314_v28  ;;  %v5302_v63 = vunpack.i.h.bf16 %v7171_v40 }
 0x190   : > { %v7339_v59 = vsel %vm419_vm12, %v5421_v30, %v5422_v29  ;;  %v1053_v2 = vsel %vm419_vm12, %v5342_v17, %v5421_v30  ;;  %v5406_v30 = vunpack.i.l.bf16 %v7285_v54  ;;  %v5362_v17 = vunpack.i.h.bf16 %v7201_v49 }
 0x191   : > { %v7344_v11 = vsel %vm407_vm14, %v5416_v36, %v5417_v34  ;;  %v1042_v1 = vsel %vm407_vm14, %v5332_v14, %v5416_v36  ;;  %v474_v36 = vpack.c.bf16 %v349_v55, %v7105_v22  ;;  %v348_v55 = vsel %vm9995_vm1, %v5386_v6, %v5387_v12 }
 0x192   : > { %v1112_v13 = vpack.c.bf16 %v7339_v59, %v7344_v11  ;;  %v1111_v48 = vpack.c.bf16 %v1053_v2, %v1042_v1  ;;  %v1064_v45 = vsel %vm431_vm8, %v5312_v46, %v5406_v30  ;;  %v5426_v1 = vunpack.i.l.bf16 %v7287_v47 }
 0x193   : > { %557 = vrot.lane.b32.xlu1 %v482_v4, %s6891_s21  ;;  %559 = vrot.lane.b32.xlu2 %v483_v41, %s6891_s21  ;;  %v5397_v4 = vunpack.i.h.bf16 %v7238_v7  ;;  %v360_v41 = vsel %vm9996_vm15, %v5366_v60, %v5367_v3  ;;  %v5412_v3 = vunpack.i.h.bf16 %v7264_v21  ;;  %v1065_v43 = vsel %vm431_vm8, %v5406_v30, %v5407_v62 }
 0x194   : > { %547 = vrot.lane.b32.xlu0 %v477_v5, %s6891_s21  ;;  %v1075_v5 = vsel %vm443_vm10, %v5322_v56, %v5411_v25  ;;  %v476_v14 = vpack.c.bf16 %v372_v8, %v360_v41  ;;  %v1020_v49 = vsel %vm383_vm11, %v5352_v31, %v5426_v1  ;;  %v473_v42 = vpack.c.bf16 %v348_v55, %v7098_v16 }
 0x195   : > { %v7356_v18 = vpop.permute.xlu1 %5444  ;;  %v7358_v19 = vpop.permute.xlu2 %5449  ;;  %v1119_v10 = vpack.c.bf16 %v5402_v39, %v5397_v4  ;;  %v1114_v15 = vpack.c.bf16 %v1075_v5, %v1064_v45  ;;  %v5396_v12 = vunpack.i.l.bf16 %v7238_v7  ;;  %v5382_v16 = vunpack.i.h.bf16 %v7225_v61 }
 0x196   : > { %v7360_v26 = vpop.permute.xlu0 %5429  ;;  %v5436_v8 = vunpack.i.l.bf16 %v7312_v57  ;;  %v5292_v45 = vunpack.i.h.bf16 %v7185_v44  ;;  %v5446_v55 = vunpack.i.l.bf16 %v7356_v18 }
 0x197   : > { %v5431_v52 = vunpack.i.l.bf16 %v7360_v26  ;;  %v5432_v60 = vunpack.i.h.bf16 %v7360_v26  ;;  %v1087_v27 = vsel %vm455_vm7, %v5396_v12, %v5397_v4 }
 0x199   : > { %v1031_v21 = vsel %vm395_vm9, %v5362_v17, %v5431_v52  ;;  %v1032_v40 = vsel %vm395_vm9, %v5431_v52, %v5432_v60  ;;  %v5392_v52 = vunpack.i.h.bf16 %v7262_v20 }
 0x19a   : > { %v1108_v46 = vpack.c.bf16 %v1031_v21, %v1020_v49 }
 0x19b   : > { %1156 = vrot.lane.b32.xlu1 %v1111_v48, %s6891_s21  ;;  %551 = vrot.lane.b32.xlu2 %v479_v38, %s6891_s21  ;;  %v1076_v48 = vsel %vm443_vm10, %v5411_v25, %v5412_v3  ;;  %v5427_v25 = vunpack.i.h.bf16 %v7287_v47  ;;  %v5372_v47 = vunpack.i.h.bf16 %v7241_v9  ;;  %v5437_v9 = vunpack.i.h.bf16 %v7312_v57 }
 0x19c   : > { %541 = vrot.lane.b32.xlu0 %v474_v36, %s6891_s21  ;;  %v1115_v38 = vpack.c.bf16 %v1076_v48, %v1065_v43  ;;  %v5401_v36 = vunpack.i.l.bf16 %v7289_v58  ;;  %v987_v48 = vsel %vm9995_vm1, %v5392_v52, %v5446_v55  ;;  %v5447_v57 = vunpack.i.h.bf16 %v7356_v18 }
 0x19d   : > { %v7383_v51 = vpop.permute.xlu1 %5459  ;;  %v7385_v50 = vpop.permute.xlu2 %5464  ;;  %v1021_v61 = vsel %vm383_vm11, %v5426_v1, %v5427_v25 }
 0x19e   : > { %v7387_v22 = vpop.permute.xlu0 %5439  ;;  %v1109_v6 = vpack.c.bf16 %v1032_v40, %v1021_v61  ;;  %v5466_v58 = vunpack.i.l.bf16 %v7385_v50 }
 0x19f   : > { %v5441_v30 = vunpack.i.l.bf16 %v7387_v22  ;;  %v5442_v44 = vunpack.i.h.bf16 %v7387_v22 }
 0x1a1   : > { %v1009_v5 = vsel %vm371_vm13, %v5382_v16, %v5441_v30  ;;  %v1010_v22 = vsel %vm371_vm13, %v5441_v30, %v5442_v44  ;;  %v988_v16 = vsel %vm9995_vm1, %v5446_v55, %v5447_v57  ;;  %v1107_v28 = vpack.c.bf16 %v5442_v44, %v5437_v9 }
 0x1a3   : > { %1172 = vrot.lane.b32.xlu1 %v1119_v10, %s6891_s21  ;;  %545 = vrot.lane.b32.xlu2 %v476_v14, %s6891_s21  ;;  %v1097_v10 = vsel %vm467_vm6, %v5302_v63, %v5401_v36  ;;  %v1086_v14 = vsel %vm455_vm7, %v5292_v45, %v5396_v12 }
 0x1a4   : > { %1162 = vrot.lane.b32.xlu0 %v1114_v15, %s6891_s21  ;;  %v998_v15 = vsel %vm9996_vm15, %v5372_v47, %v5436_v8  ;;  %v1117_v17 = vpack.c.bf16 %v1097_v10, %v1086_v14  ;;  %v1104_v10 = vpack.c.bf16 %v5447_v57, %v7139_v33  ;;  %v5461_v47 = vunpack.i.l.bf16 %v7383_v51 }
 0x1a5   : > { %v7410_v2 = vpop.permute.xlu1 %5474  ;;  %v7412_v24 = vpop.permute.xlu2 %5479  ;;  %v1105_v43 = vpack.c.bf16 %v1009_v5, %v998_v15  ;;  %v5451_v5 = vunpack.i.l.bf16 %v7358_v19 }
 0x1a6   : > { %v7414_v54 = vpop.permute.xlu0 %5454 }
 0x1ab   : > { %1164 = vrot.lane.b32.xlu1 %v1115_v38, %s6891_s21  ;;  %539 = vrot.lane.b32.xlu2 %v473_v42, %s6891_s21  ;;  %v999_v38 = vsel %vm9996_vm15, %v5436_v8, %v5437_v9  ;;  %v1116_v42 = vpack.c.bf16 %v5412_v3, %v5407_v62  ;;  %v1103_v62 = vpack.c.bf16 %v988_v16, %v7137_v32  ;;  %v5476_v9 = vunpack.i.l.bf16 %v7410_v2 }
 0x1ac   : > { %1150 = vrot.lane.b32.xlu0 %v1108_v46, %s6891_s21  ;;  %v1106_v49 = vpack.c.bf16 %v1010_v22, %v999_v38  ;;  %v1102_v46 = vpack.c.bf16 %v987_v48, %v7107_v23  ;;  %v1110_v3 = vpack.c.bf16 %v5432_v60, %v5427_v25  ;;  %v1113_v23 = vpack.c.bf16 %v5422_v29, %v5417_v34 }
 0x1ad   : > { %v7434_v26 = vpop.permute.xlu1 %5489  ;;  %v7436_v56 = vpop.permute.xlu2 %5494  ;;  %v1098_v32 = vsel %vm467_vm6, %v5401_v36, %v5402_v39  ;;  %v5456_v29 = vunpack.i.l.bf16 %v7414_v54  ;;  %v5452_v60 = vunpack.i.h.bf16 %v7358_v19  ;;  %v5462_v25 = vunpack.i.h.bf16 %v7383_v51 }
 0x1ae   : > { %v7439_v41 = vpop.permute.xlu0 %5469  ;;  %v1118_v34 = vpack.c.bf16 %v1098_v32, %v1087_v27  ;;  %v5492_v59 = vunpack.i.h.bf16 %v7434_v26  ;;  %v5491_v11 = vunpack.i.l.bf16 %v7434_v26  ;;  %v5481_v27 = vunpack.i.l.bf16 %v7412_v24 }
 0x1af   : > { %v1534_v36 = vsel %vm455_vm7, %v5452_v60, %v5456_v29  ;;  %v1545_v12 = vsel %vm467_vm6, %v5462_v25, %v5466_v58  ;;  %v1544_v15 = vsel %vm467_vm6, %v5461_v47, %v5462_v25  ;;  %v1533_v51 = vsel %vm455_vm7, %v5451_v5, %v5452_v60 }
 0x1b0   : > { %v1565_v40 = vpack.c.bf16 %v1545_v12, %v1534_v36  ;;  %v5472_v38 = vunpack.i.h.bf16 %v7439_v41  ;;  %v1489_v16 = vsel %vm407_vm14, %v5491_v11, %v5492_v59 }
 0x1b2   : > { %v1512_v26 = vsel %vm431_vm8, %v5472_v38, %v5476_v9 }
 0x1b3   : > { %1152 = vrot.lane.b32.xlu1 %v1109_v6, %s6891_s21  ;;  %1168 = vrot.lane.b32.xlu2 %v1117_v17, %s6891_s21  ;;  %v1564_v17 = vpack.c.bf16 %v1544_v15, %v1533_v51  ;;  %v5496_v15 = vunpack.i.l.bf16 %v7436_v56 }
 0x1b4   : > { %1144 = vrot.lane.b32.xlu0 %v1105_v43, %s6891_s21 }
 0x1b5   : > { %v7455_v1 = vpop.permute.xlu1 %5504  ;;  %v7457_v31 = vpop.permute.xlu2 %5509 }
 0x1b6   : > { %v7459_v21 = vpop.permute.xlu0 %5484  ;;  %v5506_v12 = vunpack.i.l.bf16 %v7455_v1 }
 0x1b7   : > { %v5486_v19 = vunpack.i.l.bf16 %v7459_v21 }
 0x1b9   : > { %v1563_v52 = vpack.c.bf16 %v5486_v19, %v5476_v9 }
 0x1bb   : > { %1146 = vrot.lane.b32.xlu1 %v1106_v49, %s6891_s21  ;;  %1166 = vrot.lane.b32.xlu2 %v1116_v42, %s6891_s21 }
 0x1bc   : > { %1138 = vrot.lane.b32.xlu0 %v1102_v46, %s6891_s21 }
 0x1bd   : > { %v7469_v20 = vpop.permute.xlu1 %5519  ;;  %v7471_v63 = vpop.permute.xlu2 %5524 }
 0x1be   : > { %v7473_v30 = vpop.permute.xlu0 %5499 }
 0x1bf   : > { %v5502_v22 = vunpack.i.h.bf16 %v7473_v30  ;;  %v5501_v48 = vunpack.i.l.bf16 %v7473_v30 }
 0x1c1   : > { %v1500_v46 = vsel %vm419_vm12, %v5501_v48, %v5502_v22 }
 0x1c3   : > { %1140 = vrot.lane.b32.xlu1 %v1103_v62, %s6891_s21  ;;  %1154 = vrot.lane.b32.xlu2 %v1110_v3, %s6891_s21  ;;  %v1558_v62 = vpack.c.bf16 %v1500_v46, %v1489_v16  ;;  %v1566_v3 = vpack.c.bf16 %v5466_v58, %v5456_v29 }
 0x1c4   : > { %1160 = vrot.lane.b32.xlu0 %v1113_v23, %s6891_s21  ;;  %v5471_v23 = vunpack.i.l.bf16 %v7439_v41 }
 0x1c5   : > { %v7484_v18 = vpop.permute.xlu1 %5534  ;;  %v7486_v8 = vpop.permute.xlu2 %5539 }
 0x1c6   : > { %v7488_v45 = vpop.permute.xlu0 %5514  ;;  %v1511_v25 = vsel %vm431_vm8, %v5471_v23, %v5472_v38  ;;  %v1501_v38 = vsel %vm419_vm12, %v5502_v22, %v5506_v12 }
 0x1cb   : > { %5579 = vrot.lane.b32.xlu1 %v7205_v53, %s6883_s29  ;;  %1148 = vrot.lane.b32.xlu2 %v1107_v28, %s6891_s21  ;;  %s6902_s29 = smov 30  }
 0x1cc   : > { %1170 = vrot.lane.b32.xlu0 %v1118_v34, %s6891_s21 }
 0x1cd   : > { %v7504_v7 = vpop.permute.xlu1 %5549  ;;  %v7506_v39 = vpop.permute.xlu2 %5554 }
 0x1ce   : > { %v7508_v4 = vpop.permute.xlu0 %5529 }
 0x1d3   : > { %1617 = vrot.lane.b32.xlu1 %v1565_v40, %s6892_s24  ;;  %1142 = vrot.lane.b32.xlu2 %v1104_v10, %s6891_s21  ;;  %v5526_v10 = vunpack.i.l.bf16 %v7471_v63 }
 0x1d4   : > { %5574 = vrot.lane.b32.xlu0 %v7205_v53, %s6884_s4  ;;  %s6903_s4 = smov 98  }
 0x1d5   : > { %v7519_v61 = vpop.permute.xlu1 %5564  ;;  %v7521_v14 = vpop.permute.xlu2 %5569 }
 0x1d6   : > { %v7523_v6 = vpop.permute.xlu0 %5544 }
 0x1d7   : > { %v5546_v9 = vunpack.i.l.bf16 %v7523_v6 }
 0x1db   : > { %5594 = vrot.lane.b32.xlu1 %v7205_v53, %s6886_s7  ;;  %1158 = vrot.lane.b32.xlu2 %v1112_v13, %s6891_s21  ;;  %v5482_v13 = vunpack.i.h.bf16 %v7412_v24  ;;  %v5516_v24 = vunpack.i.l.bf16 %v7488_v45  ;;  %s6905_s7 = smov 64   ;;  %s6910_s21 = smov 92  }
 0x1dc   : > { %1615 = vrot.lane.b32.xlu0 %v1564_v17, %s6892_s24  ;;  %v1560_v17 = vpack.c.bf16 %v5506_v12, %v5496_v15 }
 0x1dd   : > { %v574_v44 = vpop.permute.xlu1 %573  ;;  %v570_v43 = vpop.permute.xlu2 %569  ;;  %v1523_v30 = vsel %vm443_vm10, %v5482_v13, %v5486_v19  ;;  %v1522_v36 = vsel %vm443_vm10, %v5481_v27, %v5482_v13  ;;  %v1557_v51 = vpack.c.bf16 %v5526_v10, %v5516_v24  ;;  %v5556_v27 = vunpack.i.l.bf16 %v7506_v39 }
 0x1de   : > { %v7535_v55 = vpop.permute.xlu0 %5559  ;;  %v1562_v32 = vpack.c.bf16 %v1523_v30, %v1512_v26  ;;  %v1561_v29 = vpack.c.bf16 %v1522_v36, %v1511_v25  ;;  %v1490_v30 = vsel %vm407_vm14, %v5492_v59, %v5496_v15  ;;  %v5542_v59 = vunpack.i.h.bf16 %v7486_v8 }
 0x1df   : > { %v1559_v26 = vpack.c.bf16 %v1501_v38, %v1490_v30  ;;  %v1551_v12 = vpack.c.bf16 %v5556_v27, %v7158_v37  ;;  %v5541_v15 = vunpack.i.l.bf16 %v7486_v8  ;;  %v5562_v37 = vunpack.i.h.bf16 %v7535_v55 }
 0x1e3   : > { %1613 = vrot.lane.b32.xlu1 %v1563_v52, %s6892_s24  ;;  %5584 = vrot.lane.b32.xlu2 %v7205_v53, %s6885_s5  ;;  %s6904_s5 = smov 94  }
 0x1e4   : > { %5589 = vrot.lane.b32.xlu0 %v7205_v53, %s6887_s8  ;;  %s6906_s8 = smov 62  }
 0x1e5   : > { %v7549_v49 = vpop.permute.xlu1 %555  ;;  %v566_v42 = vpop.permute.xlu2 %565 }
 0x1e6   : > { %v568_v57 = vpop.permute.xlu0 %567 }
 0x1e7   : > { %v585_v19 = vsel %vm575_vm2, %v566_v42, %v568_v57 }
 0x1eb   : > { %1603 = vrot.lane.b32.xlu1 %v1558_v62, %s6892_s24  ;;  %1619 = vrot.lane.b32.xlu2 %v1566_v3, %s6892_s24  ;;  %v5521_v3 = vunpack.i.l.bf16 %v7469_v20 }
 0x1ec   : > { %1611 = vrot.lane.b32.xlu0 %v1562_v32, %s6892_s24  ;;  %v5532_v32 = vunpack.i.h.bf16 %v7508_v4 }
 0x1ed   : > { %v7560_v28 = vpop.permute.xlu1 %549  ;;  %v560_v34 = vpop.permute.xlu2 %559 }
 0x1ee   : > { %v562_v60 = vpop.permute.xlu0 %561 }
 0x1ef   : > { %v583_v57 = vsel %vm575_vm2, %v560_v34, %v562_v60 }
 0x1f3   : > { %5609 = vrot.lane.b32.xlu1 %v7205_v53, %s6890_s11  ;;  %1609 = vrot.lane.b32.xlu2 %v1561_v29, %s6892_s24 }
 0x1f4   : > { %5604 = vrot.lane.b32.xlu0 %v7205_v53, %s6888_s17  ;;  %s6907_s17 = smov 60  }
 0x1f5   : > { %v7570_v41 = vpop.permute.xlu1 %543  ;;  %v7572_v58 = vpop.permute.xlu2 %551 }
 0x1f6   : > { %v572_v40 = vpop.permute.xlu0 %571 }
 0x1f7   : > { %v586_v47 = vsel %vm575_vm2, %v570_v43, %v572_v40  ;;  %v587_v5 = vsel %vm575_vm2, %v572_v40, %v574_v44  ;;  %v5512_v43 = vunpack.i.h.bf16 %v7457_v31  ;;  %v5522_v44 = vunpack.i.h.bf16 %v7469_v20 }
 0x1f8   : > { %608 = vmatpush.bf16.msra.mxu0 %v586_v47  ;;  %627 = vmatpush.bf16.msra.mxu1 %v587_v5  ;;  %v5531_v47 = vunpack.i.l.bf16 %v7508_v4 }
 0x1f9   : > { %v1468_v46 = vsel %vm383_vm11, %v5512_v43, %v5516_v24  ;;  %v1479_v62 = vsel %vm395_vm9, %v5522_v44, %v5526_v10  ;;  %v1478_v29 = vsel %vm395_vm9, %v5521_v3, %v5522_v44 }
 0x1fa   : > { %v1556_v23 = vpack.c.bf16 %v1479_v62, %v1468_v46 }
 0x1fb   : > { %1601 = vrot.lane.b32.xlu1 %v1557_v51, %s6892_s24  ;;  %5599 = vrot.lane.b32.xlu2 %v7205_v53, %s6889_s20  ;;  %v5536_v53 = vunpack.i.l.bf16 %v7484_v18 }
 0x1fc   : > { %1607 = vrot.lane.b32.xlu0 %v1560_v17, %s6892_s24  ;;  %628 = vmatpush.bf16.msra.mxu1 %v585_v19  ;;  %v1445_v19 = vsel %vm9996_vm15, %v5531_v47, %v5532_v32 }
 0x1fd   : > { %v564_v52 = vpop.permute.xlu1 %563  ;;  %v546_v48 = vpop.permute.xlu2 %545  ;;  %v1554_v16 = vpack.c.bf16 %v5546_v9, %v5536_v53  ;;  %v1446_v40 = vsel %vm9996_vm15, %v5532_v32, %v5536_v53  ;;  %v5561_v53 = vunpack.i.l.bf16 %v7535_v55 }
 0x1fe   : > { %v554_v11 = vpop.permute.xlu0 %553  ;;  %v584_v13 = vsel %vm575_vm2, %v564_v52, %v566_v42  ;;  %v5511_v42 = vunpack.i.l.bf16 %v7457_v31 }
 0x1ff   : > { %609 = vmatpush.bf16.msra.mxu0 %v584_v13  ;;  %v581_v22 = vsel %vm575_vm2, %v554_v11, %v7549_v49  ;;  %v1457_v49 = vsel %vm371_vm13, %v5542_v59, %v5546_v9  ;;  %v1456_v9 = vsel %vm371_vm13, %v5541_v15, %v5542_v59  ;;  %v5551_v13 = vunpack.i.l.bf16 %v7504_v7 }
 0x200   : > { %629 = vmatpush.bf16.msra.mxu1 %v583_v57  ;;  %v1467_v24 = vsel %vm383_vm11, %v5511_v42, %v5512_v43  ;;  %v1553_v5 = vpack.c.bf16 %v1457_v49, %v1446_v40  ;;  %v5567_v43 = vunpack.i.h.bf16 %v7519_v61  ;;  %v1982_v55 = vsel %vm455_vm7, %v5561_v53, %v5562_v37 }
 0x201   : > { %v1555_v10 = vpack.c.bf16 %v1478_v29, %v1467_v24  ;;  %v5467_v59 = vunpack.i.h.bf16 %v7385_v50  ;;  %v5151_v29 = vld [vmem:[#allocation7 + $0x14] sm:$0xf0] }
 0x202   : > { %v2014_v52 = vpack.c.bf16 %v5567_v43, %v5562_v37 }
 0x203   : > { %1595 = vrot.lane.b32.xlu1 %v1554_v16, %s6892_s24  ;;  %1605 = vrot.lane.b32.xlu2 %v1559_v26, %s6892_s24  ;;  %v4873_v16 = vld [vmem:[#allocation7] sm:$0xf] }
 0x204   : > { %1599 = vrot.lane.b32.xlu0 %v1556_v23, %s6892_s24  ;;  %630 = vmatpush.bf16.msra.mxu1 %v581_v22  ;;  %v5457_v23 = vunpack.i.h.bf16 %v7414_v54  ;;  %v4877_v54 = vld [vmem:[#allocation7 + $0x10] sm:$0xf] }
 0x205   : > { %v558_v20 = vpop.permute.xlu1 %557  ;;  %v540_v60 = vpop.permute.xlu2 %539 }
 0x206   : > { %v548_v25 = vpop.permute.xlu0 %547  ;;  %v582_v36 = vsel %vm575_vm2, %v558_v20, %v560_v34  ;;  %v5552_v34 = vunpack.i.h.bf16 %v7504_v7 }
 0x207   : > { %610 = vmatpush.bf16.msra.mxu0 %v582_v36  ;;  %v579_v31 = vsel %vm575_vm2, %v548_v25, %v7560_v28  ;;  %v580_v28 = vsel %vm575_vm2, %v7572_v58, %v554_v11  ;;  %v578_v44 = vsel %vm575_vm2, %v546_v48, %v548_v25  ;;  %v1552_v11 = vpack.c.bf16 %v1456_v9, %v1445_v19 }
 0x208   : > { %631 = vmatpush.bf16.msra.mxu1 %v579_v31  ;;  %v1435_v8 = vsel %vm9995_vm1, %v5552_v34, %v5556_v27  ;;  %v5566_v48 = vunpack.i.l.bf16 %v7519_v61  ;;  %v1434_v7 = vsel %vm9995_vm1, %v5551_v13, %v5552_v34  ;;  %v7661_v31 = vor.u32 %v5151_v29, %v4877_v54 }
 0x209   : > { %v1550_v38 = vpack.c.bf16 %v1435_v8, %v7152_v35  ;;  %v5150_v35 = vld [vmem:[#allocation7 + $0x4] sm:$0xf0]  ;;  %v1549_v3 = vpack.c.bf16 %v1434_v7, %v7139_v33  ;;  %v1981_v33 = vsel %vm455_vm7, %v5457_v23, %v5561_v53  ;;  %v5572_v19 = vunpack.i.h.bf16 %v7521_v14 }
 0x20a   : > { %v7642_v62 = vor.u32 %v5150_v35, %v4873_v16  ;;  %v1993_v26 = vsel %vm467_vm6, %v5566_v48, %v5567_v43  ;;  %v1992_v27 = vsel %vm467_vm6, %v5467_v59, %v5566_v48  ;;  %v5571_v43 = vunpack.i.l.bf16 %v7521_v14 }
 0x20b   : > { %1589 = vrot.lane.b32.xlu1 %v1551_v12, %s6892_s24  ;;  %1597 = vrot.lane.b32.xlu2 %v1555_v10, %s6892_s24  ;;  %v2013_v61 = vpack.c.bf16 %v1993_v26, %v1982_v55  ;;  %v2012_v20 = vpack.c.bf16 %v1992_v27, %v1981_v33  ;;  %v5477_v8 = vunpack.i.h.bf16 %v7410_v2  ;;  %v5497_v55 = vunpack.i.h.bf16 %v7436_v56 }
 0x20c   : > { %1593 = vrot.lane.b32.xlu0 %v1553_v5, %s6892_s24  ;;  %611 = vmatpush.bf16.msra.mxu0 %v580_v28  ;;  %v1960_v14 = vsel %vm431_vm8, %v5571_v43, %v5572_v19  ;;  %v5507_v26 = vunpack.i.h.bf16 %v7455_v1 }
 0x20d   : > { %v7621_v51 = vpop.permute.xlu1 %1156  ;;  %v7623_v4 = vpop.permute.xlu2 %1168  ;;  %v1959_v48 = vsel %vm431_vm8, %v5477_v8, %v5571_v43 }
 0x20e   : > { %v542_v17 = vpop.permute.xlu0 %541 }
 0x20f   : > { %v577_v58 = vsel %vm575_vm2, %v542_v17, %v7570_v41  ;;  %v576_v41 = vsel %vm575_vm2, %v540_v60, %v542_v17 }
 0x210   : > { %612 = vmatpush.bf16.msra.mxu0 %v578_v44  ;;  %632 = vmatpush.bf16.msra.mxu1 %v577_v58 }
 0x213   : > { %2067 = vrot.lane.b32.xlu1 %v2014_v52, %s6892_s24  ;;  %1591 = vrot.lane.b32.xlu2 %v1552_v11, %s6892_s24 }
 0x214   : > { %1587 = vrot.lane.b32.xlu0 %v1550_v38, %s6892_s24  ;;  %613 = vmatpush.bf16.msra.mxu0 %v576_v41 }
 0x215   : > { %v1173_v57 = vpop.permute.xlu1 %1172  ;;  %v1167_v46 = vpop.permute.xlu2 %1166  ;;  %4881 = vmatmul.msk.bf16.vlgmr.msra.gmra.mxu1 %vm9985_vm4, %v7642_v62 }
 0x216   : > { %v1163_v30 = vpop.permute.xlu0 %1162 }
 0x217   : > { %4879 = vmatmul.msk.bf16.vlgmr.msra.gmra.mxu0 %vm9985_vm4, %v7642_v62 }
 0x21b   : > { %1585 = vrot.lane.b32.xlu2 %v1549_v3, %s6892_s24 }
 0x21c   : > { %2065 = vrot.lane.b32.xlu0 %v2013_v61, %s6892_s24 }
 0x21d   : > { %v1165_v22 = vpop.permute.xlu1 %1164  ;;  %v1155_v42 = vpop.permute.xlu2 %1154 }
 0x21e   : > { %v1151_v32 = vpop.permute.xlu0 %1150  ;;  %v1182_v37 = vsel %vm575_vm2, %v1163_v30, %v1165_v22  ;;  %v1183_v17 = vsel %vm575_vm2, %v1165_v22, %v1167_v46 }
 0x223   : > { %2063 = vrot.lane.b32.xlu2 %v2012_v20, %s6892_s24 }
 0x225   : > { %v1153_v60 = vpop.permute.xlu1 %1152  ;;  %v7657_v25 = vpop.permute.xlu2 %1148  ;;  %4882 = vmatmul.msk.bf16.gmra.mxu1 %vm9985_vm4, %v7661_v31 }
 0x226   : > { %v7659_v36 = vpop.permute.xlu0 %1144  ;;  %v1179_v35 = vsel %vm575_vm2, %v1153_v60, %v1155_v42 }
 0x227   : > { %4880 = vmatmul.msk.bf16.gmra.mxu0 %vm9985_vm4, %v7661_v31 }
 0x22d   : > { %v1147_v50 = vpop.permute.xlu1 %1146  ;;  %v7667_v49 = vpop.permute.xlu2 %1142 }
 0x22e   : > { %v7669_v24 = vpop.permute.xlu0 %1138  ;;  %v1176_v42 = vsel %vm575_vm2, %v7659_v36, %v1147_v50  ;;  %v1177_v56 = vsel %vm575_vm2, %v1147_v50, %v7657_v25 }
 0x235   : > { %v7671_v12 = vpop.permute.xlu1 %1140  ;;  %v1159_v40 = vpop.permute.xlu2 %1158 }
 0x236   : > { %v1161_v10 = vpop.permute.xlu0 %1160  ;;  %v1180_v13 = vsel %vm575_vm2, %v7621_v51, %v1159_v40  ;;  %v1178_v51 = vsel %vm575_vm2, %v1151_v32, %v1153_v60  ;;  %v1174_v29 = vsel %vm575_vm2, %v7669_v24, %v7671_v12  ;;  %v1175_v36 = vsel %vm575_vm2, %v7671_v12, %v7667_v49 }
 0x237   : > { %v1181_v38 = vsel %vm575_vm2, %v1159_v40, %v1161_v10  ;;  %v5527_v10 = vunpack.i.h.bf16 %v7471_v63 }
 0x23d   : > { %v5580_v47 = vpop.permute.xlu1 %5579  ;;  %v5585_v5 = vpop.permute.xlu2 %5584 }
 0x23e   : > { %v1171_v34 = vpop.permute.xlu0 %1170  ;;  %v5582_v46 = vunpack.i.h.bf16 %v5580_v47  ;;  %v5581_v30 = vunpack.i.l.bf16 %v5580_v47  ;;  %v5587_v7 = vunpack.i.h.bf16 %v5585_v5  ;;  %v5586_v16 = vunpack.i.l.bf16 %v5585_v5 }
 0x23f   : > { %v1184_v28 = vsel %vm575_vm2, %v7623_v4, %v1171_v34  ;;  %v1185_v15 = vsel %vm575_vm2, %v1171_v34, %v1173_v57  ;;  %v5487_v4 = vunpack.i.h.bf16 %v7459_v21  ;;  %v5517_v5 = vunpack.i.h.bf16 %v7488_v45 }
 0x240   : > { %1200 = vmatpush.bf16.msrb.mxu0 %v1184_v28  ;;  %1219 = vmatpush.bf16.msrb.mxu1 %v1185_v15  ;;  %v1938_v22 = vsel %vm407_vm14, %v5581_v30, %v5582_v46  ;;  %v1949_v59 = vsel %vm419_vm12, %v5586_v16, %v5587_v7  ;;  %v1937_v33 = vsel %vm407_vm14, %v5497_v55, %v5581_v30 }
 0x241   : > { %v1948_v27 = vsel %vm419_vm12, %v5507_v26, %v5586_v16  ;;  %v2008_v1 = vpack.c.bf16 %v5587_v7, %v5582_v46  ;;  %v2007_v32 = vpack.c.bf16 %v1949_v59, %v1938_v22  ;;  %v6700_v22 = vld [vmem:[#allocation2 + $0x40] sm:$0xff] }
 0x242   : > { %v2006_v20 = vpack.c.bf16 %v1948_v27, %v1937_v33  ;;  %v6701_v33 = vld [vmem:[#allocation2 + $0x38] sm:$0xff] }
 0x244   : > { %1201 = vmatpush.bf16.msrb.mxu0 %v1182_v37  ;;  %1220 = vmatpush.bf16.msrb.mxu1 %v1183_v17  ;;  %v9968_v17 = vmov 0  }
 0x245   : > { %v1618_v44 = vpop.permute.xlu1 %1617  ;;  %v1620_v58 = vpop.permute.xlu2 %1619  ;;  %5615 = vset.pattern.permute.xlu1 %v9968_v17  ;;  %5614 = vset.pattern.permute.xlu0 %v9968_v17 }
 0x246   : > { %v5575_v9 = vpop.permute.xlu0 %5574  ;;  %v1633_v25 = vsel %vm1621_vm3, %v1618_v44, %v1620_v58  ;;  %5613 = vset.pattern.permute.xlu2 %v9968_v17 }
 0x247   : > { %v5577_v52 = vunpack.i.h.bf16 %v5575_v9  ;;  %v5576_v11 = vunpack.i.l.bf16 %v5575_v9 }
 0x248   : > { %1202 = vmatpush.bf16.msrb.mxu0 %v1180_v13  ;;  %1221 = vmatpush.bf16.msrb.mxu1 %v1181_v38 }
 0x249   : > { %v2011_v53 = vpack.c.bf16 %v5577_v52, %v5572_v19  ;;  %v1971_v41 = vsel %vm443_vm10, %v5576_v11, %v5577_v52  ;;  %v1970_v2 = vsel %vm443_vm10, %v5487_v4, %v5576_v11 }
 0x24a   : > { %v2010_v21 = vpack.c.bf16 %v1971_v41, %v1960_v14  ;;  %v2009_v57 = vpack.c.bf16 %v1970_v2, %v1959_v48  ;;  %v5537_v14 = vunpack.i.h.bf16 %v7484_v18 }
 0x24b   : > { %2061 = vrot.lane.b32.xlu1 %v2011_v53, %s6892_s24  ;;  %v5547_v53 = vunpack.i.h.bf16 %v7523_v6 }
 0x24c   : > { %2059 = vrot.lane.b32.xlu0 %v2010_v21, %s6892_s24  ;;  %2057 = vrot.lane.b32.xlu2 %v2009_v57, %s6892_s24 }
 0x24d   : > { %1203 = vmatpush.bf16.msrb.mxu0 %v1178_v51  ;;  %1222 = vmatpush.bf16.msrb.mxu1 %v1179_v35  ;;  %v5595_v3 = vpop.permute.xlu1 %5594  ;;  %v1610_v61 = vpop.permute.xlu2 %1609  ;;  %v5557_v51 = vunpack.i.h.bf16 %v7506_v39 }
 0x24e   : > { %v1616_v23 = vpop.permute.xlu0 %1615  ;;  %v5597_v60 = vunpack.i.h.bf16 %v5595_v3  ;;  %v5596_v54 = vunpack.i.l.bf16 %v5595_v3 }
 0x24f   : > { %v1632_v50 = vsel %vm1621_vm3, %v1616_v23, %v1618_v44 }
 0x250   : > { %v1927_v34 = vsel %vm395_vm9, %v5596_v54, %v5597_v60  ;;  %v1926_v28 = vsel %vm395_vm9, %v5527_v10, %v5596_v54  ;;  %v313_v54 = vld [vmem:[#allocation9 + $0x8] sm:$0xff]  ;;  %v315_v10 = vld [vmem:[#allocation9 + $0x18] sm:$0xff] }
 0x251   : > { %1204 = vmatpush.bf16.msrb.mxu0 %v1176_v42  ;;  %1223 = vmatpush.bf16.msrb.mxu1 %v1177_v56  ;;  %v6702_v42 = vld [vmem:[#allocation2 + $0x30] sm:$0xff] }
 0x253   : > { %2055 = vrot.lane.b32.xlu1 %v2008_v1, %s6892_s24 }
 0x254   : > { %2053 = vrot.lane.b32.xlu0 %v2007_v32, %s6892_s24  ;;  %2051 = vrot.lane.b32.xlu2 %v2006_v20, %s6892_s24  ;;  %v314_v20 = vld [vmem:[#allocation9 + $0x10] sm:$0xff] }
 0x255   : > { %1205 = vmatpush.bf16.msrb.mxu0 %v1174_v29  ;;  %1224 = vmatpush.bf16.msrb.mxu1 %v1175_v36  ;;  %v1614_v40 = vpop.permute.xlu1 %1613  ;;  %v5600_v47 = vpop.permute.xlu2 %5599  ;;  %v312_v29 = vld [vmem:[#allocation9] sm:$0xff] }
 0x256   : > { %v5590_v24 = vpop.permute.xlu0 %5589  ;;  %v5602_v52 = vunpack.i.h.bf16 %v5600_v47  ;;  %v5601_v11 = vunpack.i.l.bf16 %v5600_v47 }
 0x257   : > { %v5592_v49 = vunpack.i.h.bf16 %v5590_v24  ;;  %v5591_v12 = vunpack.i.l.bf16 %v5590_v24 }
 0x258   : > { %4915 = vmatmul.msk.bf16.vlgmr.msrb.gmra.mxu0 %vm9985_vm4, %v7642_v62  ;;  %4917 = vmatmul.msk.bf16.vlgmr.msrb.gmra.mxu1 %vm9985_vm4, %v7642_v62  ;;  %v1894_v2 = vsel %vm9996_vm15, %v5601_v11, %v5602_v52  ;;  %v1893_v46 = vsel %vm9996_vm15, %v5537_v14, %v5601_v11 }
 0x259   : > { %1648 = vmatpush.bf16.msra.mxu0 %v1632_v50  ;;  %1667 = vmatpush.bf16.msra.mxu1 %v1633_v25  ;;  %v2005_v15 = vpack.c.bf16 %v5597_v60, %v5592_v49  ;;  %v1916_v63 = vsel %vm383_vm11, %v5591_v12, %v5592_v49  ;;  %v1915_v37 = vsel %vm383_vm11, %v5517_v5, %v5591_v12 }
 0x25a   : > { %v2004_v45 = vpack.c.bf16 %v1927_v34, %v1916_v63  ;;  %v2003_v19 = vpack.c.bf16 %v1926_v28, %v1915_v37 }
 0x25b   : > { %2049 = vrot.lane.b32.xlu1 %v2005_v15, %s6892_s24 }
 0x25c   : > { %2047 = vrot.lane.b32.xlu0 %v2004_v45, %s6892_s24  ;;  %2045 = vrot.lane.b32.xlu2 %v2003_v19, %s6892_s24 }
 0x25d   : > { %v1604_v43 = vpop.permute.xlu1 %1603  ;;  %v1606_v4 = vpop.permute.xlu2 %1605 }
 0x25e   : > { %v1612_v44 = vpop.permute.xlu0 %1611  ;;  %v1628_v9 = vsel %vm1621_vm3, %v1604_v43, %v1606_v4 }
 0x25f   : > { %v1630_v58 = vsel %vm1621_vm3, %v1610_v61, %v1612_v44  ;;  %v1631_v8 = vsel %vm1621_vm3, %v1612_v44, %v1614_v40 }
 0x260   : > { %1649 = vmatpush.bf16.msra.mxu0 %v1630_v58  ;;  %1668 = vmatpush.bf16.msra.mxu1 %v1631_v8 }
 0x264   : > { %1650 = vmatpush.bf16.msra.mxu0 %v1628_v9 }
 0x265   : > { %v5610_v13 = vpop.permute.xlu1 %5609  ;;  %v1598_v55 = vpop.permute.xlu2 %1597 }
 0x266   : > { %v5605_v38 = vpop.permute.xlu0 %5604  ;;  %v5612_v6 = vunpack.i.h.bf16 %v5610_v13  ;;  %v5611_v16 = vunpack.i.l.bf16 %v5610_v13 }
 0x267   : > { %v5607_v41 = vunpack.i.h.bf16 %v5605_v38  ;;  %v5606_v48 = vunpack.i.l.bf16 %v5605_v38 }
 0x268   : > { %4916 = vmatmul.msk.bf16.gmra.mxu0 %vm9985_vm4, %v7661_v31  ;;  %4918 = vmatmul.msk.bf16.gmra.mxu1 %vm9985_vm4, %v7661_v31  ;;  %v1883_v3 = vsel %vm9995_vm1, %v5611_v16, %v5612_v6  ;;  %v1882_v61 = vsel %vm9995_vm1, %v5557_v51, %v5611_v16  ;;  %v1999_v59 = vpack.c.bf16 %v5612_v6, %v6700_v22 }
 0x269   : > { %v2002_v21 = vpack.c.bf16 %v5607_v41, %v5602_v52  ;;  %v1905_v57 = vsel %vm371_vm13, %v5606_v48, %v5607_v41  ;;  %v1904_v30 = vsel %vm371_vm13, %v5547_v53, %v5606_v48  ;;  %v1998_v27 = vpack.c.bf16 %v1883_v3, %v6701_v33 }
 0x26a   : > { %v2001_v18 = vpack.c.bf16 %v1905_v57, %v1894_v2  ;;  %v2000_v7 = vpack.c.bf16 %v1904_v30, %v1893_v46  ;;  %v1997_v56 = vpack.c.bf16 %v1882_v61, %v6702_v42 }
 0x26b   : > { %2043 = vrot.lane.b32.xlu1 %v2002_v21, %s6892_s24 }
 0x26c   : > { %2041 = vrot.lane.b32.xlu0 %v2001_v18, %s6892_s24  ;;  %2039 = vrot.lane.b32.xlu2 %v2000_v7, %s6892_s24 }
 0x26d   : > { %v1602_v23 = vpop.permute.xlu1 %1601  ;;  %v1592_v60 = vpop.permute.xlu2 %1591 }
 0x26e   : > { %v1608_v35 = vpop.permute.xlu0 %1607 }
 0x26f   : > { %v1629_v26 = vsel %vm1621_vm3, %v1606_v4, %v1608_v35 }
 0x270   : > { %1669 = vmatpush.bf16.msra.mxu1 %v1629_v26 }
 0x273   : > { %2037 = vrot.lane.b32.xlu1 %v1999_v59, %s6892_s24 }
 0x274   : > { %2035 = vrot.lane.b32.xlu0 %v1998_v27, %s6892_s24  ;;  %2033 = vrot.lane.b32.xlu2 %v1997_v56, %s6892_s24  ;;  %s6911_s24 = smov 100  }
 0x275   : > { %v1596_v36 = vpop.permute.xlu1 %1595  ;;  %v1586_v24 = vpop.permute.xlu2 %1585 }
 0x276   : > { %v1600_v39 = vpop.permute.xlu0 %1599 }
 0x277   : > { %v1626_v1 = vsel %vm1621_vm3, %v1598_v55, %v1600_v39  ;;  %v1627_v32 = vsel %vm1621_vm3, %v1600_v39, %v1602_v23 }
 0x278   : > { %1651 = vmatpush.bf16.msra.mxu0 %v1626_v1  ;;  %1670 = vmatpush.bf16.msra.mxu1 %v1627_v32 }
 0x27b   : > { %503 = vperm.xlu1 %5615, %v314_v20  }
 0x27c   : > { %498 = vperm.xlu0 %5614, %v313_v54   ;;  %493 = vperm.xlu2 %5613, %v312_v29  }
 0x27d   : > { %v1590_v47 = vpop.permute.xlu1 %1589  ;;  %v2064_v34 = vpop.permute.xlu2 %2063 }
 0x27e   : > { %v1594_v25 = vpop.permute.xlu0 %1593 }
 0x27f   : > { %v1624_v50 = vsel %vm1621_vm3, %v1592_v60, %v1594_v25  ;;  %v1625_v40 = vsel %vm1621_vm3, %v1594_v25, %v1596_v36 }
 0x280   : > { %1652 = vmatpush.bf16.msra.mxu0 %v1624_v50  ;;  %1671 = vmatpush.bf16.msra.mxu1 %v1625_v40 }
 0x284   : > { %508 = vperm.xlu2 %5613, %v315_v10  }
 0x285   : > { %v2068_v28 = vpop.permute.xlu1 %2067 }
 0x286   : > { %v1588_v5 = vpop.permute.xlu0 %1587 }
 0x287   : > { %v1622_v49 = vsel %vm1621_vm3, %v1586_v24, %v1588_v5  ;;  %v1623_v12 = vsel %vm1621_vm3, %v1588_v5, %v1590_v47 }
 0x288   : > { %1653 = vmatpush.bf16.msra.mxu0 %v1622_v49  ;;  %1672 = vmatpush.bf16.msra.mxu1 %v1623_v12 }
 0x28b   : > { %4951 = vmatmul.msk.bf16.vlgmr.msra.gmra.mxu0 %vm9985_vm4, %v7642_v62  ;;  %4953 = vmatmul.msk.bf16.vlgmr.msra.gmra.mxu1 %vm9985_vm4, %v7642_v62 }
 0x28e   : > { %v2066_v15 = vpop.permute.xlu0 %2065 }
 0x28f   : > { %v2079_v63 = vsel %vm1621_vm3, %v2064_v34, %v2066_v15  ;;  %v2080_v37 = vsel %vm1621_vm3, %v2066_v15, %v2068_v28 }
 0x290   : > { %2095 = vmatpush.bf16.msrb.mxu0 %v2079_v63  ;;  %2114 = vmatpush.bf16.msrb.mxu1 %v2080_v37 }
 0x292   : > { %v634_v44 = vpop.f32.mrf.mxu1 }
 0x294   : > { %v615_v43 = vpop.f32.mrf.mxu0 }
 0x29a   : > { %v636_v53 = vpop.f32.mrf.mxu1 }
 0x29b   : > { %4952 = vmatmul.msk.bf16.gmra.mxu0 %vm9985_vm4, %v7661_v31  ;;  %4954 = vmatmul.msk.bf16.gmra.mxu1 %vm9985_vm4, %v7661_v31 }
 0x29c   : > { %v617_v14 = vpop.f32.mrf.mxu0 }
 0x2a2   : > { %v639_v7 = vpop.f32.mrf.mxu1 }
 0x2a4   : > { %v620_v18 = vpop.f32.mrf.mxu0 }
 0x2a6   : > { %v2058_v45 = vpop.permute.xlu2 %2057 }
 0x2aa   : > { %v641_v3 = vpop.f32.mrf.mxu1 }
 0x2ac   : > { %v622_v26 = vpop.f32.mrf.mxu0 }
 0x2ae   : > { %v2052_v19 = vpop.permute.xlu2 %2051 }
 0x2b6   : > { %v2046_v8 = vpop.permute.xlu2 %2045 }
 0x2bd   : > { %v2062_v58 = vpop.permute.xlu1 %2061 }
 0x2be   : > { %v2060_v4 = vpop.permute.xlu0 %2059 }
 0x2bf   : > { %v2077_v9 = vsel %vm1621_vm3, %v2058_v45, %v2060_v4  ;;  %v2078_v52 = vsel %vm1621_vm3, %v2060_v4, %v2062_v58 }
 0x2c0   : > { %2096 = vmatpush.bf16.msrb.mxu0 %v2077_v9  ;;  %2115 = vmatpush.bf16.msrb.mxu1 %v2078_v52 }
 0x2c5   : > { %v2056_v11 = vpop.permute.xlu1 %2055 }
 0x2c6   : > { %v2054_v13 = vpop.permute.xlu0 %2053  ;;  %v2040_v38 = vpop.permute.xlu2 %2039 }
 0x2c7   : > { %v2075_v41 = vsel %vm1621_vm3, %v2052_v19, %v2054_v13  ;;  %v2076_v48 = vsel %vm1621_vm3, %v2054_v13, %v2056_v11 }
 0x2c8   : > { %2097 = vmatpush.bf16.msrb.mxu0 %v2075_v41  ;;  %2116 = vmatpush.bf16.msrb.mxu1 %v2076_v48 }
 0x2cd   : > { %v2050_v2 = vpop.permute.xlu1 %2049 }
 0x2ce   : > { %v2048_v21 = vpop.permute.xlu0 %2047  ;;  %v2034_v57 = vpop.permute.xlu2 %2033 }
 0x2cf   : > { %v2073_v46 = vsel %vm1621_vm3, %v2046_v8, %v2048_v21  ;;  %v2074_v30 = vsel %vm1621_vm3, %v2048_v21, %v2050_v2 }
 0x2d0   : > { %2098 = vmatpush.bf16.msrb.mxu0 %v2073_v46  ;;  %2117 = vmatpush.bf16.msrb.mxu1 %v2074_v30 }
 0x2d5   : > { %v1207_v20 = vpop.f32.mrf.mxu0  ;;  %v1226_v60 = vpop.f32.mrf.mxu1 }
 0x2d6   : > { %v7776_v6 = vpop.permute.xlu2 %493 }
 0x2d7   : > { %v7779_v16 = vadd.f32 %v615_v43, %v7776_v6  ;;  %v7782_v51 = vadd.f32 %v634_v44, %v7776_v6  ;;  %v7839_v43 = vadd.f32 %v1207_v20, %v7776_v6  ;;  %v7842_v44 = vadd.f32 %v1226_v60, %v7776_v6 }
 0x2d9   : > { %v644_v35 = vmax.f32 %v7779_v16, 0.0  ;;  %v645_v55 = vmax.f32 %v7782_v51, 0.0  ;;  %v1236_v4 = vmax.f32 %v7839_v43, 0.0  ;;  %v1237_v9 = vmax.f32 %v7842_v44, 0.0 }
 0x2db   : > { %v5616_v61 = vpack.i.bf16 %v645_v55, %v644_v35 }
 0x2dd   : > { %5617 = vrot.lane.b32.xlu1 %v5616_v61, %s6890_s11  ;;  %v2044_v23 = vpop.permute.xlu1 %2043  ;;  %v1209_v10 = vpop.f32.mrf.mxu0 }
 0x2de   : > { %v2042_v22 = vpop.permute.xlu0 %2041  ;;  %v7791_v59 = vpop.permute.xlu2 %508 }
 0x2df   : > { %v2071_v33 = vsel %vm1621_vm3, %v2040_v38, %v2042_v22  ;;  %v2072_v27 = vsel %vm1621_vm3, %v2042_v22, %v2044_v23  ;;  %v7796_v42 = vadd.f32 %v622_v26, %v7791_v59  ;;  %v7799_v56 = vadd.f32 %v641_v3, %v7791_v59  ;;  %v1228_v24 = vpop.f32.mrf.mxu1 }
 0x2e0   : > { %2099 = vmatpush.bf16.msrb.mxu0 %v2071_v33  ;;  %2118 = vmatpush.bf16.msrb.mxu1 %v2072_v27  ;;  %v5636_v38 = vpack.i.bf16 %v1237_v9, %v1236_v4 }
 0x2e1   : > { %v650_v39 = vmax.f32 %v7796_v42, 0.0  ;;  %v651_v1 = vmax.f32 %v7799_v56, 0.0 }
 0x2e3   : > { %v5631_v32 = vpack.i.bf16 %v651_v1, %v650_v39 }
 0x2e5   : > { %v2038_v54 = vpop.permute.xlu1 %2037  ;;  %5632 = vrot.lane.b32.xlu1 %v5631_v32, %s6890_s11  ;;  %v1212_v11 = vpop.f32.mrf.mxu0 }
 0x2e6   : > { %v2036_v29 = vpop.permute.xlu0 %2035 }
 0x2e7   : > { %v2069_v36 = vsel %vm1621_vm3, %v2034_v57, %v2036_v29  ;;  %v2070_v25 = vsel %vm1621_vm3, %v2036_v29, %v2038_v54  ;;  %v1231_v13 = vpop.f32.mrf.mxu1 }
 0x2e8   : > { %2100 = vmatpush.bf16.msrb.mxu0 %v2069_v36  ;;  %2119 = vmatpush.bf16.msrb.mxu1 %v2070_v25 }
 0x2eb   : > { %4987 = vmatmul.msk.bf16.vlgmr.msrb.gmra.mxu0 %vm9985_vm4, %v7642_v62  ;;  %4989 = vmatmul.msk.bf16.vlgmr.msrb.gmra.mxu1 %vm9985_vm4, %v7642_v62 }
 0x2ed   : > { %v7814_v50 = vpop.permute.xlu1 %503  ;;  %v1214_v2 = vpop.f32.mrf.mxu0 }
 0x2ee   : > { %v7816_v40 = vpop.permute.xlu0 %498  ;;  %v7819_v47 = vadd.f32 %v620_v18, %v7814_v50  ;;  %v7822_v5 = vadd.f32 %v639_v7, %v7814_v50  ;;  %v7898_v25 = vadd.f32 %v1214_v2, %v7791_v59 }
 0x2ef   : > { %v618_v49 = vadd.f32 %v617_v14, %v7816_v40  ;;  %v637_v12 = vadd.f32 %v636_v53, %v7816_v40  ;;  %v7827_v34 = vadd.f32 %v1209_v10, %v7816_v40  ;;  %v7830_v62 = vadd.f32 %v1228_v24, %v7816_v40  ;;  %v1233_v21 = vpop.f32.mrf.mxu1 }
 0x2f0   : > { %v648_v28 = vmax.f32 %v7819_v47, 0.0  ;;  %v649_v15 = vmax.f32 %v7822_v5, 0.0  ;;  %v7863_v14 = vadd.f32 %v1212_v11, %v7814_v50  ;;  %v7866_v53 = vadd.f32 %v1231_v13, %v7814_v50 }
 0x2f1   : > { %v646_v63 = vmax.f32 %v618_v49, 0.0  ;;  %v647_v37 = vmax.f32 %v637_v12, 0.0  ;;  %v1238_v58 = vmax.f32 %v7827_v34, 0.0  ;;  %v1239_v8 = vmax.f32 %v7830_v62, 0.0 }
 0x2f2   : > { %v5626_v45 = vpack.i.bf16 %v649_v15, %v648_v28  ;;  %v1240_v41 = vmax.f32 %v7863_v14, 0.0  ;;  %v1241_v48 = vmax.f32 %v7866_v53, 0.0  ;;  %v7901_v10 = vadd.f32 %v1233_v21, %v7791_v59 }
 0x2f3   : > { %v5621_v19 = vpack.i.bf16 %v647_v37, %v646_v63  ;;  %v5641_v52 = vpack.i.bf16 %v1239_v8, %v1238_v58 }
 0x2f4   : > { %5627 = vrot.lane.b32.xlu0 %v5626_v45, %s6890_s11  ;;  %v9982_v49 = vmax.f32 %v7901_v10, 0.0 }
 0x2f5   : > { %5622 = vrot.lane.b32.xlu2 %v5621_v19, %s6890_s11 }
 0x2fb   : > { %4988 = vmatmul.msk.bf16.gmra.mxu0 %vm9985_vm4, %v7661_v31  ;;  %4990 = vmatmul.msk.bf16.gmra.mxu1 %vm9985_vm4, %v7661_v31  ;;  %v5656_v31 = vpack.i.bf16 %v1241_v48, %v1240_v41 }
 0x2fc   : > { %5642 = vrot.lane.b32.xlu0 %v5641_v52, %s6890_s11 }
 0x2fd   : > { %5637 = vrot.lane.b32.xlu2 %v5636_v38, %s6890_s11 }
 0x304   : > { %5657 = vrot.lane.b32.xlu0 %v5656_v31, %s6890_s11 }
 0x308   : > { %v1655_v57 = vpop.f32.mrf.mxu0  ;;  %v1674_v46 = vpop.f32.mrf.mxu1 }
 0x309   : > { %v7926_v21 = vadd.f32 %v1655_v57, %v7776_v6 }
 0x310   : > { %v7877_v30 = vpop.f32.mrf.mxu0  ;;  %v7879_v18 = vpop.f32.mrf.mxu1 }
 0x318   : > { %v1660_v12 = vpop.f32.mrf.mxu0 }
 0x34f   : > { %v5618_v7 = vpop.permute.xlu1 %5617  ;;  %v5623_v26 = vpop.permute.xlu2 %5622 }
 0x350   : > { %v5620_v3 = vunpack.i.h.bf16 %v5618_v7  ;;  %v5619_v61 = vunpack.i.l.bf16 %v5618_v7  ;;  %v5625_v23 = vunpack.i.h.bf16 %v5623_v26  ;;  %v5624_v22 = vunpack.i.l.bf16 %v5623_v26 }
 0x351   : > { %v7929_v7 = vadd.f32 %v1674_v46, %v7776_v6 }
 0x352   : > { %v676_v33 = vsel %vm9995_vm1, %v5619_v61, %v5620_v3  ;;  %v692_v27 = vsel %vm9995_vm1, %v5620_v3, %v5619_v61  ;;  %v677_v32 = vsel %vm9995_vm1, %v5624_v22, %v5625_v23  ;;  %v693_v20 = vsel %vm9995_vm1, %v5625_v23, %v5624_v22  ;;  %v1662_v3 = vpop.f32.mrf.mxu0 }
 0x353   : > { %v7887_v60 = vmax.f32 %v644_v35, %v676_v33  ;;  %v7891_v54 = vmax.f32 %v645_v55, %v692_v27  ;;  %v7893_v29 = vmax.f32 %v646_v63, %v677_v32  ;;  %v7895_v36 = vmax.f32 %v647_v37, %v693_v20  ;;  %v1679_v63 = vpop.f32.mrf.mxu1 }
 0x354   : > { %v9983_v55 = vmax.f32 %v7898_v25, 0.0  ;;  %v9978_v26 = vmax.f32 %v7929_v7, 0.0  ;;  %v7952_v22 = vadd.f32 %v1662_v3, %v7791_v59 }
 0x355   : > { %v5646_v24 = vpack.i.bf16 %v7891_v54, %v7887_v60  ;;  %v5651_v16 = vpack.i.bf16 %v7895_v36, %v7893_v29 }
 0x356   : > { %v5661_v2 = vpack.i.bf16 %v9982_v49, %v9983_v55  ;;  %v9977_v27 = vmax.f32 %v7952_v22, 0.0  ;;  %v10088_v55 = vmov 0 }
 0x357   : > { %5647 = vrot.lane.b32.xlu1 %v5646_v24, %s6889_s20  ;;  %5652 = vrot.lane.b32.xlu2 %v5651_v16, %s6889_s20  ;;  %v5633_v51 = vpop.permute.xlu1 %5632  ;;  %v5638_v35 = vpop.permute.xlu2 %5637 }
 0x358   : > { %v5635_v37 = vunpack.i.h.bf16 %v5633_v51  ;;  %v5634_v45 = vunpack.i.l.bf16 %v5633_v51  ;;  %v5640_v11 = vunpack.i.h.bf16 %v5638_v35  ;;  %v5639_v13 = vunpack.i.l.bf16 %v5638_v35 }
 0x35a   : > { %v679_v19 = vsel %vm9995_vm1, %v5634_v45, %v5635_v37  ;;  %v695_v52 = vsel %vm9995_vm1, %v5635_v37, %v5634_v45  ;;  %v1284_v56 = vsel %vm9995_vm1, %v5640_v11, %v5639_v13  ;;  %v7975_v45 = vadd.f32 %v7877_v30, %v7816_v40 }
 0x35b   : > { %v7915_v38 = vmax.f32 %v650_v39, %v679_v19  ;;  %v7919_v31 = vmax.f32 %v651_v1, %v695_v52  ;;  %v1268_v39 = vsel %vm9995_vm1, %v5639_v13, %v5640_v11  ;;  %v9979_v1 = vmax.f32 %v7926_v21, 0.0  ;;  %v1681_v61 = vpop.f32.mrf.mxu1 }
 0x35c   : > { %v7941_v57 = vmax.f32 %v1236_v4, %v1268_v39  ;;  %v7945_v46 = vmax.f32 %v1237_v9, %v1284_v56  ;;  %v7955_v33 = vadd.f32 %v1681_v61, %v7791_v59  ;;  %v7979_v19 = vadd.f32 %v7879_v18, %v7816_v40 }
 0x35d   : > { %v5671_v42 = vpack.i.bf16 %v7919_v31, %v7915_v38  ;;  %v5676_v23 = vpack.i.bf16 %v9978_v26, %v9979_v1  ;;  %v9987_v11 = vmax.f32 %v7975_v45, 0.0 }
 0x35e   : > { %v5686_v43 = vpack.i.bf16 %v7945_v46, %v7941_v57  ;;  %v9976_v32 = vmax.f32 %v7955_v33, 0.0  ;;  %v9984_v13 = vmax.f32 %v7979_v19, 0.0 }
 0x35f   : > { %5662 = vrot.lane.b32.xlu1 %v5661_v2, %s6890_s11  ;;  %5672 = vrot.lane.b32.xlu0 %v5671_v42, %s6889_s20 }
 0x360   : > { %v5701_v47 = vpack.i.bf16 %v9976_v32, %v9977_v27  ;;  %v5681_v61 = vpack.i.bf16 %v9984_v13, %v9987_v11  ;;  %v10080_v27 = vmov 0  ;;  %v10090_v13 = vmov 0 }
 0x366   : > { %v5628_v4 = vpop.permute.xlu0 %5627 }
 0x367   : > { %5677 = vrot.lane.b32.xlu1 %v5676_v23, %s6890_s11  ;;  %v5630_v44 = vunpack.i.h.bf16 %v5628_v4  ;;  %v5629_v9 = vunpack.i.l.bf16 %v5628_v4  ;;  %5687 = vrot.lane.b32.xlu0 %v5686_v43, %s6889_s20  ;;  %v8014_v23 = vadd.f32 %v1660_v12, %v7814_v50  ;;  %v8017_v43 = vadd.f32 %v1679_v63, %v7814_v50 }
 0x368   : > { %v2102_v35 = vpop.f32.mrf.mxu0  ;;  %v2121_v37 = vpop.f32.mrf.mxu1 }
 0x369   : > { %v678_v20 = vsel %vm9995_vm1, %v5629_v9, %v5630_v44  ;;  %v694_v24 = vsel %vm9995_vm1, %v5630_v44, %v5629_v9  ;;  %v7988_v5 = vadd.f32 %v2102_v35, %v7776_v6  ;;  %v9981_v63 = vmax.f32 %v8014_v23, 0.0 }
 0x36a   : > { %v7967_v16 = vmax.f32 %v648_v28, %v678_v20  ;;  %v7971_v51 = vmax.f32 %v649_v15, %v694_v24  ;;  %v7991_v28 = vadd.f32 %v2121_v37, %v7776_v6  ;;  %v9980_v9 = vmax.f32 %v8017_v43, 0.0 }
 0x36b   : > { %v9975_v2 = vmax.f32 %v7988_v5, 0.0 }
 0x36c   : > { %v5666_v52 = vpack.i.bf16 %v7971_v51, %v7967_v16  ;;  %v9974_v42 = vmax.f32 %v7991_v28, 0.0 }
 0x36e   : > { %v5643_v15 = vpop.permute.xlu0 %5642  ;;  %5667 = vrot.lane.b32.xlu2 %v5666_v52, %s6889_s20  ;;  %v5716_v62 = vpack.i.bf16 %v9974_v42, %v9975_v2  ;;  %v5696_v52 = vpack.i.bf16 %v9980_v9, %v9981_v63 }
 0x36f   : > { %v5645_v30 = vunpack.i.h.bf16 %v5643_v15  ;;  %v5644_v18 = vunpack.i.l.bf16 %v5643_v15  ;;  %5702 = vrot.lane.b32.xlu0 %v5701_v47, %s6890_s11 }
 0x370   : > { %v2123_v4 = vpop.f32.mrf.mxu1 }
 0x371   : > { %v1269_v39 = vsel %vm9995_vm1, %v5644_v18, %v5645_v30  ;;  %v1285_v6 = vsel %vm9995_vm1, %v5645_v30, %v5644_v18  ;;  %v8048_v15 = vadd.f32 %v2123_v4, %v7816_v40 }
 0x372   : > { %v8003_v56 = vmax.f32 %v1238_v58, %v1269_v39  ;;  %v8007_v3 = vmax.f32 %v1239_v8, %v1285_v6  ;;  %v2104_v8 = vpop.f32.mrf.mxu0 }
 0x373   : > { %v8045_v47 = vadd.f32 %v2104_v8, %v7816_v40 }
 0x374   : > { %v5691_v34 = vpack.i.bf16 %v8007_v3, %v8003_v56 }
 0x375   : > { %v9973_v53 = vmax.f32 %v8045_v47, 0.0 }
 0x376   : > { %v5658_v58 = vpop.permute.xlu0 %5657  ;;  %5692 = vrot.lane.b32.xlu1 %v5691_v34, %s6889_s20  ;;  %5682 = vrot.lane.b32.xlu2 %v5681_v61, %s6890_s11  ;;  %v756_v34 = vlaneseq }
 0x377   : > { %v5660_v12 = vunpack.i.h.bf16 %v5658_v58  ;;  %v5659_v44 = vunpack.i.l.bf16 %v5658_v58  ;;  %5717 = vrot.lane.b32.xlu0 %v5716_v62, %s6890_s11 }
 0x378   : > { %v2126_v30 = vpop.f32.mrf.mxu1  ;;  %v8073_v58 = vshrl.u32 %v756_v34, 7  ;;  %v8075_v8 = vand.u32 127, %v756_v34 }
 0x379   : > { %v1270_v20 = vsel %vm9995_vm1, %v5659_v44, %v5660_v12  ;;  %v1286_v24 = vsel %vm9995_vm1, %v5660_v12, %v5659_v44  ;;  %v8064_v39 = vadd.f32 %v2126_v30, %v7814_v50  ;;  %v9989_v30 = vmov 1.0|1.0  }
 0x37a   : > { %v8034_v35 = vmax.f32 %v1240_v41, %v1270_v20  ;;  %v8038_v37 = vmax.f32 %v1241_v48, %v1286_v24  ;;  %v9972_v41 = vmax.f32 %v8048_v15, 0.0  ;;  %v2107_v48 = vpop.f32.mrf.mxu0  ;;  %10054 = vst [vmem:[#allocation14_spill] sm:$0xff] %v8073_v58  ;;  %v8082_v4 = vadd.s32 120, %v8073_v58 }
 0x37b   : > { %v8061_v40 = vadd.f32 %v2107_v48, %v7814_v50  ;;  %v9970_v61 = vmax.f32 %v8064_v39, 0.0  ;;  %10055 = vst [vmem:[#allocation15_spill] sm:$0xff] %v8075_v8  ;;  %v8079_v50 = vadd.s32 112, %v8073_v58  ;;  %v8085_v12 = vmul.u32 4, %v8075_v8 }
 0x37c   : > { %v5706_v14 = vpack.i.bf16 %v8038_v37, %v8034_v35  ;;  %v5721_v18 = vpack.i.bf16 %v9972_v41, %v9973_v53  ;;  %10057 = vst [vmem:[#allocation17_spill] sm:$0xff] %v8082_v4  ;;  %v8088_v44 = vadd.s32 240, %v8073_v58  ;;  %v8091_v20 = vadd.s32 248, %v8073_v58 }
 0x37d   : > { %v9971_v6 = vmax.f32 %v8061_v40, 0.0  ;;  %10056 = vst [vmem:[#allocation16_spill] sm:$0xff] %v8079_v50  ;;  %vm806_vm5 = vcmp.eq.s32.totalorder %v8079_v50, %v8085_v12  ;;  %vm807_vm6 = vcmp.eq.s32.totalorder %v8082_v4, %v8085_v12  ;;  %v8112_v48 = vadd.s32 224, %v8073_v58 }
 0x37e   : > { %5707 = vrot.lane.b32.xlu1 %v5706_v14, %s6889_s20  ;;  %5697 = vrot.lane.b32.xlu2 %v5696_v52, %s6890_s11  ;;  %10058 = vst [vmem:[#allocation18_spill] sm:$0xff] %v8088_v44  ;;  %vm822_vm7 = vcmp.eq.s32.totalorder %v8088_v44, %v8085_v12  ;;  %vm8099_vm8 = vmpackc.low %vm807_vm6, %vm806_vm5  ;;  %vm823_vm9 = vcmp.eq.s32.totalorder %v8091_v20, %v8085_v12  ;;  %v8106_v52 = vadd.s32 96, %v8073_v58  ;;  %v8109_v14 = vadd.s32 104, %v8073_v58 }
 0x37f   : > { %v5736_v62 = vpack.i.bf16 %v9970_v61, %v9971_v6  ;;  %10059 = vst [vmem:[#allocation19_spill] sm:$0xff] %v8091_v20  ;;  %4884 = vmatpush.bf16.msk.msra.mxu2 %vm8099_vm8, %v9989_v30  ;;  %vm8117_vm10 = vmpackc.low %vm823_vm9, %vm822_vm7  ;;  %v8122_v34 = vadd.s32 232, %v8073_v58  ;;  %v8128_v0 = vadd.s32 88, %v8073_v58  ;;  %v8131_v17 = vadd.s32 208, %v8073_v58 }
 0x380   : > { %10062 = vst [vmem:[#allocation20_spill] sm:$0xff] %v8106_v52  ;;  %4900 = vmatpush.bf16.msk.msra.mxu3 %vm8117_vm10, %v9989_v30  ;;  %vm804_vm11 = vcmp.eq.s32.totalorder %v8106_v52, %v8085_v12  ;;  %vm805_vm12 = vcmp.eq.s32.totalorder %v8109_v14, %v8085_v12  ;;  %vm820_vm13 = vcmp.eq.s32.totalorder %v8112_v48, %v8085_v12  ;;  %v8143_v61 = vadd.s32 216, %v8073_v58 }
 0x381   : > { %10063 = vst [vmem:[#allocation21_spill] sm:$0xff] %v8109_v14  ;;  %vm8145_vm14 = vmpackc.low %vm805_vm12, %vm804_vm11  ;;  %vm821_vm2 = vcmp.eq.s32.totalorder %v8122_v34, %v8085_v12  ;;  %vm803_vm5 = vcmp.eq.s32.totalorder %v8128_v0, %v8085_v12  ;;  %vm818_vm6 = vcmp.eq.s32.totalorder %v8131_v17, %v8085_v12  ;;  %v10074_v41 = vmov 0 }
 0x382   : > { %10064 = vst [vmem:[#allocation22_spill] sm:$0xff] %v8112_v48  ;;  %vm8157_vm7 = vmpackc.low %vm821_vm2, %vm820_vm13  ;;  %vm819_vm9 = vcmp.eq.s32.totalorder %v8143_v61, %v8085_v12  ;;  %v8164_v53 = vadd.s32 64, %v8073_v58  ;;  %v8167_v42 = vadd.s32 72, %v8073_v58  ;;  %v8170_v2 = vadd.s32 192, %v8073_v58 }
 0x383   : > { %10067 = vst [vmem:[#allocation23_spill] sm:$0xff] %v8122_v34  ;;  %v10075_v41 = vsel %vm8157_vm7, 4294967295, %v10074_v41  ;;  %4886 = vmatpush.bf16.msk.msra.mxu2 %vm8145_vm14, %v9989_v30  ;;  %v8176_v32 = vadd.s32 200, %v8073_v58  ;;  %vm8185_vm12 = vmpackc.low %vm819_vm9, %vm818_vm6  ;;  %v8194_v1 = vadd.s32 48, %v8073_v58  ;;  %v8197_v9 = vadd.s32 56, %v8073_v58 }
 0x384   : > { %10069 = vst [vmem:[#allocation25_spill] sm:$0xff] %v8128_v0  ;;  %4902 = vmatpush.bf16.msk.msra.mxu3 %vm8157_vm7, %v9989_v30  ;;  %vm800_vm13 = vcmp.eq.s32.totalorder %v8164_v53, %v8085_v12  ;;  %vm801_vm2 = vcmp.eq.s32.totalorder %v8167_v42, %v8085_v12  ;;  %v8204_v63 = vadd.s32 176, %v8073_v58  ;;  %v8207_v49 = vadd.s32 184, %v8073_v58 }
 0x385   : > { %10070 = vst [vmem:[#allocation26_spill] sm:$0xff] %v8131_v17  ;;  %vm8215_vm6 = vmpackc.low %vm801_vm2, %vm800_vm13  ;;  %vm798_vm4 = vcmp.eq.s32.totalorder %v8194_v1, %v8085_v12  ;;  %vm799_vm0 = vcmp.eq.s32.totalorder %v8197_v9, %v8085_v12  ;;  %v8228_v11 = vadd.s32 32, %v8073_v58  ;;  %v10146_v8 = vmax.f32 %v8014_v23, 0.0 }
 0x386   : > { %5722 = vrot.lane.b32.xlu1 %v5721_v18, %s6890_s11  ;;  %10071 = vst [vmem:[#allocation27_spill] sm:$0xff] %v8143_v61  ;;  %v10089_v55 = vsel %vm8215_vm6, 4294967295, %v10088_v55  ;;  %vm814_vm13 = vcmp.eq.s32.totalorder %v8204_v63, %v8085_v12  ;;  %vm815_vm2 = vcmp.eq.s32.totalorder %v8207_v49, %v8085_v12  ;;  %v8310_v61 = vadd.s32 8, %v8073_v58 }
 0x387   : > { %10076 = vst [vmem:[#allocation28_spill] sm:$0xff] %v8164_v53  ;;  %vm796_vm1 = vcmp.eq.s32.totalorder %v8228_v11, %v8085_v12  ;;  %v10170_v6 = vmax.f32 %v8045_v47, 0.0 }
 0x388   : > { %10077 = vst [vmem:[#allocation29_spill] sm:$0xff] %v8167_v42  ;;  %4904 = vmatpush.bf16.msk.msra.mxu3 %vm8185_vm12, %v9989_v30  ;;  %v8292_v42 = vadd.s32 152, %v8073_v58 }
 0x389   : > { %10078 = vst [vmem:[#allocation30_spill] sm:$0xff] %v8170_v2 }
 0x38a   : > { %10079 = vst [vmem:[#allocation31_spill] sm:$0xff] %v8176_v32 }
 0x38b   : > { %10084 = vst [vmem:[#allocation32_spill] sm:$0xff] %v8194_v1  ;;  %v8241_v1 = vadd.s32 168, %v8073_v58 }
 0x38c   : > { %10085 = vst [vmem:[#allocation33_spill] sm:$0xff] %v8197_v9  ;;  %v10097_v9 = vmov 0 }
 0x38d   : > { %10086 = vst [vmem:[#allocation34_spill] sm:$0xff] %v8204_v63  ;;  %v10101_v63 = vmov 0 }
 0x38e   : > { %5737 = vrot.lane.b32.xlu1 %v5736_v62, %s6890_s11  ;;  %v8125_v62 = vadd.s32 80, %v8073_v58  ;;  %10087 = vst [vmem:[#allocation35_spill] sm:$0xff] %v8207_v49  ;;  %v10099_v49 = vmov 0 }
 0x38f   : > { %10092 = vst [vmem:[#allocation36_spill] sm:$0xff] %v8228_v11  ;;  %v8289_v11 = vadd.s32 144, %v8073_v58 }
 0x390   : > { %10068 = vst [vmem:[#allocation24_spill] sm:$0xff] %v8125_v62  ;;  %vm802_vm3 = vcmp.eq.s32.totalorder %v8125_v62, %v8085_v12 }
 0x391   : > { %vm8181_vm11 = vmpackc.low %vm803_vm5, %vm802_vm3  ;;  %vm816_vm3 = vcmp.eq.s32.totalorder %v8170_v2, %v8085_v12  ;;  %vm817_vm5 = vcmp.eq.s32.totalorder %v8176_v32, %v8085_v12  ;;  %v8231_v32 = vadd.s32 40, %v8073_v58  ;;  %10095 = vst [vmem:[#allocation39_spill] sm:$0xff] %v8241_v1  ;;  %v10096_v2 = vmov 1.0|1.0  }
 0x392   : > { %v10081_v27 = vsel %vm8181_vm11, 4294967295, %v10080_v27  ;;  %4888 = vmatpush.bf16.msk.msra.mxu2 %vm8181_vm11, %v9989_v30  ;;  %vm8219_vm9 = vmpackc.low %vm817_vm5, %vm816_vm3  ;;  %v8238_v30 = vadd.s32 160, %v8073_v58  ;;  %10107 = vst [vmem:[#allocation42_spill] sm:$0xff] %v8289_v11 }
 0x393   : > { %v10091_v13 = vsel %vm8219_vm9, 4294967295, %v10090_v13  ;;  %10093 = vst [vmem:[#allocation37_spill] sm:$0xff] %v8231_v32  ;;  %4906 = vmatpush.bf16.msk.msra.mxu3 %vm8219_vm9, %v10096_v2  ;;  %vm8249_vm3 = vmpackc.low %vm799_vm0, %vm798_vm4  ;;  %vm797_vm15 = vcmp.eq.s32.totalorder %v8231_v32, %v8085_v12  ;;  %vm813_vm9 = vcmp.eq.s32.totalorder %v8241_v1, %v8085_v12  ;;  %v10103_v32 = vmov 0 }
 0x394   : > { %10094 = vst [vmem:[#allocation38_spill] sm:$0xff] %v8238_v30  ;;  %v10098_v9 = vsel %vm8249_vm3, 4294967295, %v10097_v9  ;;  %vm8253_vm5 = vmpackc.low %vm815_vm2, %vm814_vm13  ;;  %v8283_v1 = vadd.s32 16, %v8073_v58  ;;  %vm792_vm2 = vcmp.eq.s32.totalorder %v8073_v58, %v8085_v12 }
 0x395   : > { %v10100_v49 = vsel %vm8253_vm5, 4294967295, %v10099_v49  ;;  %vm8271_vm0 = vmpackc.low %vm797_vm15, %vm796_vm1  ;;  %10108 = vst [vmem:[#allocation43_spill] sm:$0xff] %v8292_v42 }
 0x396   : > { %4890 = vmatpush.bf16.msk.msra.mxu2 %vm8215_vm6, %v10096_v2  ;;  %vm812_vm6 = vcmp.eq.s32.totalorder %v8238_v30, %v8085_v12  ;;  %v10102_v63 = vsel %vm8271_vm0, 4294967295, %v10101_v63  ;;  %10105 = vst [vmem:[#allocation40_spill] sm:$0xff] %v8283_v1  ;;  %v8286_v30 = vadd.s32 24, %v8073_v58  ;;  %vm794_vm15 = vcmp.eq.s32.totalorder %v8283_v1, %v8085_v12 }
 0x397   : > { %4908 = vmatpush.bf16.msk.msra.mxu3 %vm8253_vm5, %v10096_v2  ;;  %vm8275_vm4 = vmpackc.low %vm813_vm9, %vm812_vm6  ;;  %vm810_vm6 = vcmp.eq.s32.totalorder %v8289_v11, %v8085_v12  ;;  %vm811_vm9 = vcmp.eq.s32.totalorder %v8292_v42, %v8085_v12  ;;  %10111 = vst [vmem:[#allocation44_spill] sm:$0xff] %v8310_v61  ;;  %v8315_v1 = vadd.s32 128, %v8073_v58  ;;  %v6706_v42 = vld [vmem:[#allocation9] sm:$0xff] }
 0x398   : > { %v10104_v32 = vsel %vm8275_vm4, 4294967295, %v10103_v32  ;;  %10106 = vst [vmem:[#allocation41_spill] sm:$0xff] %v8286_v30  ;;  %vm795_vm1 = vcmp.eq.s32.totalorder %v8286_v30, %v8085_v12  ;;  %v8318_v30 = vadd.s32 136, %v8073_v58 }
 0x399   : > { %vm8305_vm13 = vmpackc.low %vm795_vm1, %vm794_vm15  ;;  %10112 = vst [vmem:[#allocation45_spill] sm:$0xff] %v8315_v1  ;;  %vm793_vm1 = vcmp.eq.s32.totalorder %v8310_v61, %v8085_v12 }
 0x39a   : > { %4892 = vmatpush.bf16.msk.msra.mxu2 %vm8249_vm3, %v10096_v2  ;;  %10113 = vst [vmem:[#allocation46_spill] sm:$0xff] %v8318_v30  ;;  %vm8323_vm15 = vmpackc.low %vm811_vm9, %vm810_vm6  ;;  %vm10122_vm9 = vnez %v10100_v49 }
 0x39b   : > { %4910 = vmatpush.bf16.msk.msra.mxu3 %vm8275_vm4, %v10096_v2  ;;  %vm808_vm4 = vcmp.eq.s32.totalorder %v8315_v1, %v8085_v12  ;;  %vm8336_vm5 = vmpackc.low %vm793_vm1, %vm792_vm2  ;;  %vm10123_vm2 = vnez %v10102_v63  ;;  %vm10124_vm1 = vnez %v10104_v32 }
 0x39e   : > { %4894 = vmatpush.bf16.msk.msra.mxu2 %vm8271_vm0, %v10096_v2  ;;  %vm809_vm0 = vcmp.eq.s32.totalorder %v8318_v30, %v8085_v12 }
 0x39f   : > { %4912 = vmatpush.bf16.msk.msra.mxu3 %vm8323_vm15, %v10096_v2  ;;  %vm8340_vm6 = vmpackc.low %vm809_vm0, %vm808_vm4  ;;  %vm10120_vm0 = vnez %v10089_v55  ;;  %vm10121_vm4 = vnez %v10091_v13  ;;  %v10174_v55 = vmax.f32 %v8061_v40, 0.0 }
 0x3a2   : > { %4896 = vmatpush.bf16.msk.msra.mxu2 %vm8305_vm13, %v10096_v2 }
 0x3a3   : > { %4914 = vmatpush.bf16.msk.msra.mxu3 %vm8340_vm6, %v10096_v2 }
 0x3a6   : > { %4898 = vmatpush.bf16.msk.msra.mxu2 %vm8336_vm5, %v10096_v2 }
 0x3a7   : > { %4936 = vmatpush.bf16.msk.msrb.mxu3 %vm8117_vm10, %v10096_v2 }
 0x3aa   : > { %4920 = vmatpush.bf16.msk.msrb.mxu2 %vm8099_vm8, %v10096_v2 }
 0x3ab   : > { %4938 = vmatpush.bf16.msk.msrb.mxu3 %vm8157_vm7, %v10096_v2 }
 0x3ae   : > { %4922 = vmatpush.bf16.msk.msrb.mxu2 %vm8145_vm14, %v10096_v2 }
 0x3af   : > { %4940 = vmatpush.bf16.msk.msrb.mxu3 %vm8185_vm12, %v10096_v2 }
 0x3b1   : > { %v5653_v12 = vpop.permute.xlu2 %5652 }
 0x3b2   : > { %4924 = vmatpush.bf16.msk.msrb.mxu2 %vm8181_vm11, %v10096_v2  ;;  %v5655_v30 = vunpack.i.h.bf16 %v5653_v12  ;;  %v5654_v1 = vunpack.i.l.bf16 %v5653_v12 }
 0x3b3   : > { %4942 = vmatpush.bf16.msk.msrb.mxu3 %vm10121_vm4, %v10096_v2 }
 0x3b6   : > { %4926 = vmatpush.bf16.msk.msrb.mxu2 %vm10120_vm0, %v10096_v2 }
 0x3b7   : > { %4944 = vmatpush.bf16.msk.msrb.mxu3 %vm10122_vm9, %v10096_v2 }
 0x3ba   : > { %4928 = vmatpush.bf16.msk.msrb.mxu2 %vm8249_vm3, %v10096_v2  ;;  %vm10125_vm3 = vcmask 1031168  }
 0x3bb   : > { %4946 = vmatpush.bf16.msk.msrb.mxu3 %vm10124_vm1, %v10096_v2  ;;  %v729_v34 = vsel %vm10125_vm3, %v5654_v1, %v5655_v30  ;;  %vm10126_vm9 = vmmov %vm10125_vm3 }
 0x3bc   : > { %v745_v48 = vsel %vm10126_vm9, %v5655_v30, %v5654_v1  ;;  %v750_v20 = vmax.f32 %v7893_v29, %v729_v34 }
 0x3be   : > { %4930 = vmatpush.bf16.msk.msrb.mxu2 %vm10123_vm2, %v10096_v2  ;;  %vm10127_vm2 = vmmov %vm10125_vm3  ;;  %vm10129_vm3 = vcmask 1039360  }
 0x3bf   : > { %4948 = vmatpush.bf16.msk.msrb.mxu3 %vm8323_vm15, %v10096_v2  ;;  %vm10128_vm4 = vmmov %vm10127_vm2 }
 0x3c0   : > { %vm10131_vm9 = vmmov %vm10129_vm3 }
 0x3c2   : > { %4932 = vmatpush.bf16.msk.msrb.mxu2 %vm8305_vm13, %v10096_v2 }
 0x3c3   : > { %4950 = vmatpush.bf16.msk.msrb.mxu3 %vm8340_vm6, %v10096_v2 }
 0x3c6   : > { %4934 = vmatpush.bf16.msk.msrb.mxu2 %vm8336_vm5, %v10096_v2 }
 0x3c8   : > { %v5668_v61 = vpop.permute.xlu2 %5667 }
 0x3c9   : > { %v5648_v17 = vpop.permute.xlu1 %5647 }
 0x3ca   : > { %v5650_v0 = vunpack.i.h.bf16 %v5648_v17  ;;  %v5649_v62 = vunpack.i.l.bf16 %v5648_v17  ;;  %v751_v17 = vmax.f32 %v7895_v36, %v745_v48 }
 0x3cc   : > { %v728_v12 = vsel %vm10127_vm2, %v5649_v62, %v5650_v0  ;;  %v744_v14 = vsel %vm10128_vm4, %v5650_v0, %v5649_v62  ;;  %vm10130_vm4 = vmmov %vm10129_vm3  ;;  %v10133_v62 = vmax.f32 %v7975_v45, 0.0  ;;  %v5670_v45 = vunpack.i.h.bf16 %v5668_v61 }
 0x3cd   : > { %v748_v52 = vmax.f32 %v7887_v60, %v728_v12  ;;  %v749_v44 = vmax.f32 %v7891_v54, %v744_v14  ;;  %vm10132_vm2 = vmmov %vm10129_vm3 }
 0x3cf   : > { %v872_v1 = vpack.c.bf16 %v750_v20, %v748_v52  ;;  %v873_v30 = vpack.c.bf16 %v751_v17, %v749_v44  ;;  %v10134_v17 = vmax.f32 %v7979_v19, 0.0  ;;  %v5669_v19 = vunpack.i.l.bf16 %v5668_v61 }
 0x3d0   : > { %v5683_v4 = vpop.permute.xlu2 %5682 }
 0x3d1   : > { %v5663_v0 = vpop.permute.xlu1 %5662  ;;  %884 = vmatmul.bf16.vlgmr.msra.gmra.mxu2 %v872_v1  ;;  %903 = vmatmul.bf16.vlgmr.msra.gmra.mxu3 %v873_v30  ;;  %v5685_v60 = vunpack.i.h.bf16 %v5683_v4  ;;  %v5684_v29 = vunpack.i.l.bf16 %v5683_v4  ;;  %v5673_v14 = vpop.permute.xlu0 %5672  ;;  %v10136_v30 = vmax.f32 %v7898_v25, 0.0 }
 0x3d2   : > { %v5665_v34 = vunpack.i.h.bf16 %v5663_v0  ;;  %v5664_v54 = vunpack.i.l.bf16 %v5663_v0  ;;  %4956 = vmatpush.bf16.msk.msra.mxu2 %vm8099_vm8, %v10096_v2  ;;  %4972 = vmatpush.bf16.msk.msra.mxu3 %vm8117_vm10, %v10096_v2  ;;  %v5675_v36 = vunpack.i.h.bf16 %v5673_v14  ;;  %v5674_v20 = vunpack.i.l.bf16 %v5673_v14 }
 0x3d3   : > { %v1717_v44 = vsel %vm10129_vm3, %v5684_v29, %v5685_v60  ;;  %v1733_v52 = vsel %vm10130_vm4, %v5685_v60, %v5684_v29  ;;  %v10137_v14 = vmax.f32 %v7901_v10, 0.0  ;;  %vm10138_vm3 = vcmask 1031168  }
 0x3d4   : > { %v1271_v48 = vsel %vm10131_vm9, %v5664_v54, %v5665_v34  ;;  %v1287_v4 = vsel %vm10132_vm2, %v5665_v34, %v5664_v54  ;;  %v8418_v12 = vmax.f32 %v10133_v62, %v1717_v44  ;;  %v8422_v1 = vmax.f32 %v10134_v17, %v1733_v52  ;;  %vm10139_vm4 = vmmov %vm10138_vm3 }
 0x3d5   : > { %v8426_v0 = vmax.f32 %v10136_v30, %v1271_v48  ;;  %v8430_v50 = vmax.f32 %v10137_v14, %v1287_v4  ;;  %v731_v10 = vsel %vm10138_vm3, %v5674_v20, %v5675_v36  ;;  %v747_v29 = vsel %vm10139_vm4, %v5675_v36, %v5674_v20  ;;  %vm10140_vm9 = vmmov %vm10138_vm3  ;;  %v2109_v30 = vpop.f32.mrf.mxu0  ;;  %v2128_v14 = vpop.f32.mrf.mxu1 }
 0x3d6   : > { %10135 = vst [vmem:[#allocation47_spill] sm:$0xff] %v8422_v1  ;;  %4958 = vmatpush.bf16.msk.msra.mxu2 %vm8145_vm14, %v10096_v2  ;;  %4974 = vmatpush.bf16.msk.msra.mxu3 %vm8157_vm7, %v10096_v2  ;;  %v5731_v60 = vpack.i.bf16 %v8422_v1, %v8418_v12  ;;  %v730_v36 = vsel %vm10140_vm9, %v5669_v19, %v5670_v45  ;;  %vm10141_vm2 = vmmov %vm10138_vm3  ;;  %vm10142_vm3 = vcmask 1039360   ;;  %vm10152_vm9 = vnez %v10100_v49  ;;  %v6703_v49 = vld [vmem:[#allocation9 + $0x10] sm:$0xff] }
 0x3d7   : > { %v5711_v25 = vpack.i.bf16 %v8430_v50, %v8426_v0  ;;  %v754_v20 = vmax.f32 %v7915_v38, %v731_v10  ;;  %v746_v62 = vsel %vm10141_vm2, %v5670_v45, %v5669_v19  ;;  %v755_v17 = vmax.f32 %v7919_v31, %v747_v29  ;;  %vm10143_vm4 = vmmov %vm10142_vm3 }
 0x3d8   : > { %v5698_v34 = vpop.permute.xlu2 %5697  ;;  %5732 = vrot.lane.b32.xlu0 %v5731_v60, %s6889_s20  ;;  %vm10144_vm7 = vmmov %vm10142_vm3  ;;  %v10147_v38 = vmax.f32 %v8017_v43, 0.0  ;;  %v10148_v31 = vmax.f32 %v7926_v21, 0.0  ;;  %v10149_v19 = vmax.f32 %v7929_v7, 0.0  ;;  %v8485_v21 = vadd.f32 %v2109_v30, %v7791_v59 }
 0x3d9   : > { %v5678_v54 = vpop.permute.xlu1 %5677  ;;  %5712 = vrot.lane.b32.xlu2 %v5711_v25, %s6889_s20  ;;  %v5700_v44 = vunpack.i.h.bf16 %v5698_v34  ;;  %v5699_v52 = vunpack.i.l.bf16 %v5698_v34  ;;  %v5688_v4 = vpop.permute.xlu0 %5687  ;;  %v8488_v23 = vadd.f32 %v2128_v14, %v7791_v59  ;;  %vm10153_vm2 = vmmov %vm10142_vm3  ;;  %v10155_v14 = vmax.f32 %v7952_v22, 0.0 }
 0x3da   : > { %v5680_v48 = vunpack.i.h.bf16 %v5678_v54  ;;  %v5679_v61 = vunpack.i.l.bf16 %v5678_v54  ;;  %4960 = vmatpush.bf16.msk.msra.mxu2 %vm8181_vm11, %v10096_v2  ;;  %4976 = vmatpush.bf16.msk.msra.mxu3 %vm8185_vm12, %v10096_v2  ;;  %vm10145_vm11 = vmmov %vm10142_vm3 }
 0x3db   : > { %v1718_v60 = vsel %vm10142_vm3, %v5699_v52, %v5700_v44  ;;  %v1734_v25 = vsel %vm10143_vm4, %v5700_v44, %v5699_v52  ;;  %v752_v44 = vmax.f32 %v7967_v16, %v730_v36  ;;  %v753_v52 = vmax.f32 %v7971_v51, %v746_v62  ;;  %vm10154_vm3 = vmmov %vm10153_vm2 }
 0x3dc   : > { %v1716_v34 = vsel %vm10144_vm7, %v5679_v61, %v5680_v48  ;;  %v1732_v54 = vsel %vm10145_vm11, %v5680_v48, %v5679_v61  ;;  %v8462_v1 = vmax.f32 %v10146_v8, %v1718_v60  ;;  %v8466_v10 = vmax.f32 %v10147_v38, %v1734_v25 }
 0x3dd   : > { %v8470_v45 = vmax.f32 %v10148_v31, %v1716_v34  ;;  %v8474_v29 = vmax.f32 %v10149_v19, %v1732_v54  ;;  %vm10150_vm7 = vnez %v10091_v13  ;;  %v874_v51 = vpack.c.bf16 %v754_v20, %v752_v44 }
 0x3de   : > { %4962 = vmatpush.bf16.msk.msra.mxu2 %vm10120_vm0, %v10096_v2  ;;  %4978 = vmatpush.bf16.msk.msra.mxu3 %vm10150_vm7, %v10096_v2  ;;  %v5746_v7 = vpack.i.bf16 %v8466_v10, %v8462_v1  ;;  %v875_v43 = vpack.c.bf16 %v755_v17, %v753_v52  ;;  %v2137_v48 = vmax.f32 %v8485_v21, 0.0  ;;  %v2138_v59 = vmax.f32 %v8488_v23, 0.0 }
 0x3df   : > { %v5726_v16 = vpack.i.bf16 %v8474_v29, %v8470_v45  ;;  %vm10151_vm11 = vnez %v10098_v9  ;;  %v5690_v20 = vunpack.i.h.bf16 %v5688_v4  ;;  %v5689_v62 = vunpack.i.l.bf16 %v5688_v4 }
 0x3e0   : > { %5747 = vrot.lane.b32.xlu0 %v5746_v7, %s6889_s20  ;;  %v10156_v25 = vmax.f32 %v7955_v33, 0.0  ;;  %v6895_v54 = vmov 1   ;;  %v5741_v4 = vpack.i.bf16 %v2138_v59, %v2137_v48  ;;  %vm10157_vm4 = vnez %v10102_v63 }
 0x3e1   : > { %5727 = vrot.lane.b32.xlu2 %v5726_v16, %s6889_s20  ;;  %v5703_v8 = vpop.permute.xlu0 %5702  ;;  %889 = vmatmul.bf16.gmra.mxu2 %v874_v51  ;;  %v10178_v9 = vmov 0  }
 0x3e2   : > { %908 = vmatmul.bf16.gmra.mxu3 %v875_v43  ;;  %v5705_v61 = vunpack.i.h.bf16 %v5703_v8  ;;  %v5704_v36 = vunpack.i.l.bf16 %v5703_v8  ;;  %4964 = vmatpush.bf16.msk.msra.mxu2 %vm10151_vm11, %v10096_v2 }
 0x3e3   : > { %4980 = vmatpush.bf16.msk.msra.mxu3 %vm10152_vm9, %v10096_v2  ;;  %5776 = vset.pattern.permute.xlu0 %v6895_v54 }
 0x3e4   : > { %v1719_v17 = vsel %vm10153_vm2, %v5704_v36, %v5705_v61  ;;  %v1735_v30 = vsel %vm10154_vm3, %v5705_v61, %v5704_v36  ;;  %5777 = vset.pattern.permute.xlu1 %v6895_v54  ;;  %vm10158_vm2 = vcmask 1031168  }
 0x3e5   : > { %v8508_v60 = vmax.f32 %v10155_v14, %v1719_v17  ;;  %v8512_v34 = vmax.f32 %v10156_v25, %v1735_v30  ;;  %v1320_v38 = vsel %vm10158_vm2, %v5689_v62, %v5690_v20  ;;  %vm10159_vm3 = vmmov %vm10158_vm2  ;;  %v10164_v30 = vmax.f32 %v7988_v5, 0.0 }
 0x3e6   : > { %4966 = vmatpush.bf16.msk.msra.mxu2 %vm10157_vm4, %v10096_v2  ;;  %v1336_v31 = vsel %vm10159_vm3, %v5690_v20, %v5689_v62  ;;  %v1340_v43 = vmax.f32 %v7941_v57, %v1320_v38  ;;  %vm10162_vm3 = vcmask 1039360   ;;  %v10165_v25 = vmax.f32 %v7991_v28, 0.0 }
 0x3e7   : > { %4982 = vmatpush.bf16.msk.msra.mxu3 %vm10124_vm1, %v10096_v2  ;;  %v5751_v22 = vpack.i.bf16 %v8512_v34, %v8508_v60  ;;  %vm10160_vm1 = vmmov %vm10158_vm2  ;;  %v1341_v61 = vmax.f32 %v7945_v46, %v1336_v31  ;;  %v6896_v28 = vmov 2  }
 0x3e8   : > { %v5693_v33 = vpop.permute.xlu1 %5692  ;;  %vm10161_vm2 = vmmov %vm10160_vm1  ;;  %5778 = vset.pattern.permute.xlu2 %v6896_v28 }
 0x3e9   : > { %5742 = vrot.lane.b32.xlu2 %v5741_v4, %s6890_s11  ;;  %v5695_v19 = vunpack.i.h.bf16 %v5693_v33  ;;  %v5694_v44 = vunpack.i.l.bf16 %v5693_v33  ;;  %v5718_v52 = vpop.permute.xlu0 %5717  ;;  %5752 = vrot.lane.b32.xlu1 %v5751_v22, %s6889_s20  ;;  %vm10163_vm4 = vmmov %vm10162_vm3 }
 0x3ea   : > { %v5720_v7 = vunpack.i.h.bf16 %v5718_v52  ;;  %v5719_v16 = vunpack.i.l.bf16 %v5718_v52  ;;  %4968 = vmatpush.bf16.msk.msra.mxu2 %vm8305_vm13, %v10096_v2  ;;  %v10175_v52 = vmax.f32 %v8064_v39, 0.0 }
 0x3eb   : > { %4984 = vmatpush.bf16.msk.msra.mxu3 %vm8323_vm15, %v10096_v2  ;;  %v1321_v51 = vsel %vm10160_vm1, %v5694_v44, %v5695_v19  ;;  %v1337_v8 = vsel %vm10161_vm2, %v5695_v19, %v5694_v44  ;;  %vm10166_vm1 = vnez %v10075_v41  ;;  %vm10168_vm2 = vmmov %vm10162_vm3  ;;  %v10171_v41 = vmax.f32 %v8048_v15, 0.0 }
 0x3ec   : > { %v2163_v36 = vsel %vm10162_vm3, %v5719_v16, %v5720_v7  ;;  %v2179_v20 = vsel %vm10163_vm4, %v5720_v7, %v5719_v16  ;;  %v1342_v62 = vmax.f32 %v8003_v56, %v1321_v51  ;;  %v1343_v17 = vmax.f32 %v8007_v3, %v1337_v8  ;;  %vm10167_vm4 = vmmov %vm10162_vm3 }
 0x3ed   : > { %v8548_v14 = vmax.f32 %v10164_v30, %v2163_v36  ;;  %v8552_v4 = vmax.f32 %v10165_v25, %v2179_v20 }
 0x3ee   : > { %v1348_v57 = vpack.c.bf16 %v1342_v62, %v1340_v43  ;;  %v1349_v22 = vpack.c.bf16 %v1343_v17, %v1341_v61  ;;  %4970 = vmatpush.bf16.msk.msra.mxu2 %vm8336_vm5, %v10096_v2 }
 0x3ef   : > { %4986 = vmatpush.bf16.msk.msra.mxu3 %vm8340_vm6, %v10096_v2  ;;  %v5756_v46 = vpack.i.bf16 %v8552_v4, %v8548_v14 }
 0x3f0   : > { %v5708_v5 = vpop.permute.xlu1 %5707 }
 0x3f1   : > { %5757 = vrot.lane.b32.xlu2 %v5756_v46, %s6889_s20  ;;  %1360 = vmatmul.bf16.vlgmr.msrb.gmra.mxu2 %v1348_v57  ;;  %v5710_v53 = vunpack.i.h.bf16 %v5708_v5  ;;  %v5709_v40 = vunpack.i.l.bf16 %v5708_v5 }
 0x3f2   : > { %1379 = vmatmul.bf16.vlgmr.msrb.gmra.mxu3 %v1349_v22  ;;  %4992 = vmatpush.bf16.msk.msrb.mxu2 %vm8099_vm8, %v10096_v2  ;;  %vm10169_vm8 = vnez %v10081_v27 }
 0x3f3   : > { %5008 = vmatpush.bf16.msk.msrb.mxu3 %vm8117_vm10, %v10096_v2  ;;  %vm10172_vm10 = vmmov %vm10168_vm2 }
 0x3f6   : > { %4994 = vmatpush.bf16.msk.msrb.mxu2 %vm8145_vm14, %v10096_v2  ;;  %vm10173_vm14 = vmmov %vm10168_vm2 }
 0x3f7   : > { %5010 = vmatpush.bf16.msk.msrb.mxu3 %vm10166_vm1, %v10096_v2 }
 0x3f8   : > { %v5723_v56 = vpop.permute.xlu1 %5722 }
 0x3f9   : > { %v5725_v3 = vunpack.i.h.bf16 %v5723_v56  ;;  %v5724_v33 = vunpack.i.l.bf16 %v5723_v56 }
 0x3fa   : > { %4996 = vmatpush.bf16.msk.msrb.mxu2 %vm10169_vm8, %v10096_v2 }
 0x3fb   : > { %v2164_v38 = vsel %vm10167_vm4, %v5724_v33, %v5725_v3  ;;  %v2180_v24 = vsel %vm10168_vm2, %v5725_v3, %v5724_v33  ;;  %5012 = vmatpush.bf16.msk.msrb.mxu3 %vm8185_vm12, %v10096_v2  ;;  %vm10176_vm12 = vnez %v10102_v63  ;;  %v8638_v63 = vld [vmem:[#allocation9 + $0x8] sm:$0xff] }
 0x3fc   : > { %v8586_v18 = vmax.f32 %v10170_v6, %v2164_v38  ;;  %v8590_v31 = vmax.f32 %v10171_v41, %v2180_v24 }
 0x3fe   : > { %v5761_v19 = vpack.i.bf16 %v8590_v31, %v8586_v18  ;;  %4998 = vmatpush.bf16.msk.msrb.mxu2 %vm10120_vm0, %v10096_v2  ;;  %vm10177_vm0 = vnez %v10104_v32  ;;  %v6704_v32 = vld [vmem:[#allocation9 + $0x18] sm:$0xff] }
 0x3ff   : > { %5014 = vmatpush.bf16.msk.msrb.mxu3 %vm10150_vm7, %v10096_v2  ;;  %vm10183_vm7 = vmmov %vm10168_vm2 }
 0x400   : > { %v5738_v26 = vpop.permute.xlu1 %5737  ;;  %5762 = vrot.lane.b32.xlu0 %v5761_v19, %s6889_s20 }
 0x401   : > { %v5740_v27 = vunpack.i.h.bf16 %v5738_v26  ;;  %v5739_v47 = vunpack.i.l.bf16 %v5738_v26 }
 0x402   : > { %5000 = vmatpush.bf16.msk.msrb.mxu2 %vm10151_vm11, %v10096_v2  ;;  %vm10184_vm11 = vmmov %vm10168_vm2 }
 0x403   : > { %v2165_v15 = vsel %vm10172_vm10, %v5739_v47, %v5740_v27  ;;  %v2181_v44 = vsel %vm10173_vm14, %v5740_v27, %v5739_v47  ;;  %5016 = vmatpush.bf16.msk.msrb.mxu3 %vm10152_vm9, %v10096_v2  ;;  %v10189_v27 = vld [vmem:[#allocation47_spill] sm:$0xff] }
 0x404   : > { %v8611_v13 = vmax.f32 %v10174_v55, %v2165_v15  ;;  %v8615_v7 = vmax.f32 %v10175_v52, %v2181_v44 }
 0x406   : > { %v5766_v16 = vpack.i.bf16 %v8615_v7, %v8611_v13  ;;  %5002 = vmatpush.bf16.msk.msrb.mxu2 %vm10176_vm12, %v10096_v2 }
 0x407   : > { %5018 = vmatpush.bf16.msk.msrb.mxu3 %vm10177_vm0, %v10096_v2 }
 0x408   : > { %5767 = vrot.lane.b32.xlu1 %v5766_v16, %s6889_s20  ;;  %923 = vperm.xlu0 %5776, %v6703_v49  }
 0x40a   : > { %5004 = vmatpush.bf16.msk.msrb.mxu2 %vm8305_vm13, %v10096_v2 }
 0x40b   : > { %5020 = vmatpush.bf16.msk.msrb.mxu3 %vm8323_vm15, %v10096_v2 }
 0x40e   : > { %5006 = vmatpush.bf16.msk.msrb.mxu2 %vm8336_vm5, %v10096_v2  ;;  %vm10179_vm5 = vcmask 1031168  }
 0x40f   : > { %5022 = vmatpush.bf16.msk.msrb.mxu3 %vm8340_vm6, %v10096_v2  ;;  %v1322_v51 = vsel %vm10179_vm5, %v5709_v40, %v5710_v53  ;;  %vm10180_vm13 = vmmov %vm10179_vm5 }
 0x410   : > { %927 = vperm.xlu1 %5777, %v6704_v32   ;;  %919 = vperm.xlu0 %5776, %v8638_v63   ;;  %v1338_v43 = vsel %vm10180_vm13, %v5710_v53, %v5709_v40  ;;  %vm10181_vm15 = vmmov %vm10179_vm5  ;;  %v1344_v36 = vmax.f32 %v8034_v35, %v1322_v51 }
 0x411   : > { %vm10182_vm6 = vmmov %vm10179_vm5  ;;  %v1345_v62 = vmax.f32 %v8038_v37, %v1338_v43 }
 0x412   : > { %vm10185_vm9 = vmmov %vm10179_vm5 }
 0x413   : > { %vm10186_vm3 = vmmov %vm10179_vm5 }
 0x414   : > { %vm10187_vm1 = vmmov %vm10186_vm3 }
 0x415   : > { %vm10188_vm4 = vmmov %vm10187_vm1 }
 0x416   : > { %vm10190_vm2 = vmmov %vm10187_vm1 }
 0x417   : > { %vm10191_vm8 = vmmov %vm10187_vm1 }
 0x418   : > { %5779 = vset.pattern.permute.xlu1 %v6896_v28  ;;  %5983 = vset.pattern.permute.xlu0 %v10178_v9  ;;  %vm10192_vm10 = vmmov %vm10187_vm1 }
 0x419   : > { %947 = vperm.xlu1 %5779, %v6704_v32   ;;  %vm10193_vm14 = vmmov %vm10187_vm1 }
 0x41a   : > { %vm10194_vm12 = vmmov %vm10187_vm1 }
 0x41b   : > { %vm10195_vm0 = vmmov %vm10187_vm1 }
 0x41c   : > { %vm10196_vm5 = vmmov %vm10195_vm0 }
 0x41d   : > { %vm10197_vm13 = vmmov %vm10195_vm0 }
 0x421   : > { %935 = vperm.xlu1 %5779, %v6706_v42  }
 0x429   : > { %5984 = vset.pattern.permute.xlu1 %v10178_v9 }
 0x433   : > { %v5713_v39 = vpop.permute.xlu2 %5712 }
 0x434   : > { %v5715_v11 = vunpack.i.h.bf16 %v5713_v39  ;;  %v5714_v58 = vunpack.i.l.bf16 %v5713_v39 }
 0x436   : > { %v1323_v8 = vsel %vm10181_vm15, %v5714_v58, %v5715_v11  ;;  %v1339_v61 = vsel %vm10182_vm6, %v5715_v11, %v5714_v58  ;;  %vm10198_vm15 = vmmov %vm10195_vm0 }
 0x437   : > { %v1346_v20 = vmax.f32 %v8426_v0, %v1323_v8  ;;  %v1347_v17 = vmax.f32 %v8430_v50, %v1339_v61  ;;  %vm10199_vm6 = vmmov %vm10195_vm0 }
 0x439   : > { %v1350_v30 = vpack.c.bf16 %v1346_v20, %v1344_v36  ;;  %v1351_v25 = vpack.c.bf16 %v1347_v17, %v1345_v62 }
 0x43b   : > { %v5728_v57 = vpop.permute.xlu2 %5727  ;;  %1365 = vmatmul.bf16.gmra.mxu2 %v1350_v30  ;;  %1384 = vmatmul.bf16.gmra.mxu3 %v1351_v25 }
 0x43c   : > { %v5730_v50 = vunpack.i.h.bf16 %v5728_v57  ;;  %v5729_v0 = vunpack.i.l.bf16 %v5728_v57 }
 0x43e   : > { %v1768_v24 = vsel %vm10185_vm9, %v5729_v0, %v5730_v50  ;;  %v1784_v6 = vsel %vm10186_vm3, %v5730_v50, %v5729_v0  ;;  %vm10042_vm9 = vcmask 523520   ;;  %vm10047_vm3 = vcmask 1048320  }
 0x43f   : > { %v1789_v19 = vmax.f32 %v8474_v29, %v1784_v6 }
 0x443   : > { %v5743_v22 = vpop.permute.xlu2 %5742 }
 0x444   : > { %v5745_v46 = vunpack.i.h.bf16 %v5743_v22  ;;  %v5744_v5 = vunpack.i.l.bf16 %v5743_v22 }
 0x446   : > { %v2166_v56 = vsel %vm10183_vm7, %v5744_v5, %v5745_v46  ;;  %v2182_v3 = vsel %vm10184_vm11, %v5745_v46, %v5744_v5  ;;  %vm10200_vm7 = vmmov %vm10195_vm0 }
 0x447   : > { %v8656_v35 = vmax.f32 %v2137_v48, %v2166_v56  ;;  %v8660_v37 = vmax.f32 %v2138_v59, %v2182_v3  ;;  %v1788_v59 = vmax.f32 %v8470_v45, %v1768_v24  ;;  %vm10201_vm11 = vmmov %vm10195_vm0 }
 0x449   : > { %v5771_v33 = vpack.i.bf16 %v8660_v37, %v8656_v35 }
 0x44a   : > { %v5733_v38 = vpop.permute.xlu0 %5732 }
 0x44b   : > { %5772 = vrot.lane.b32.xlu2 %v5771_v33, %s6889_s20  ;;  %v5735_v41 = vunpack.i.h.bf16 %v5733_v38  ;;  %v5734_v21 = vunpack.i.l.bf16 %v5733_v38  ;;  %s6908_s20 = smov 66  }
 0x44d   : > { %v1769_v48 = vsel %vm10187_vm1, %v5734_v21, %v5735_v41  ;;  %v1785_v23 = vsel %vm10188_vm4, %v5735_v41, %v5734_v21  ;;  %vm10048_vm1 = vcmask 785664   ;;  %vm10203_vm4 = vcmask 261120  }
 0x44e   : > { %v1790_v26 = vmax.f32 %v8418_v12, %v1769_v48  ;;  %v1791_v47 = vmax.f32 %v10189_v27, %v1785_v23 }
 0x450   : > { %v1796_v15 = vpack.c.bf16 %v1790_v26, %v1788_v59  ;;  %v1797_v44 = vpack.c.bf16 %v1791_v47, %v1789_v19 }
 0x452   : > { %1808 = vmatmul.bf16.vlgmr.msra.gmra.mxu2 %v1796_v15  ;;  %1827 = vmatmul.bf16.vlgmr.msra.gmra.mxu3 %v1797_v44  ;;  %v5748_v55 = vpop.permute.xlu0 %5747 }
 0x453   : > { %943 = vperm.xlu2 %5778, %v6703_v49   ;;  %v5750_v52 = vunpack.i.h.bf16 %v5748_v55  ;;  %v5749_v16 = vunpack.i.l.bf16 %v5748_v55 }
 0x454   : > { %v885_v5 = vpop.f32.mrf.mxu2  ;;  %v904_v56 = vpop.f32.mrf.mxu3 }
 0x455   : > { %v1770_v45 = vsel %vm10190_vm2, %v5749_v16, %v5750_v52  ;;  %v1786_v12 = vsel %vm10191_vm8, %v5750_v52, %v5749_v16  ;;  %vm10041_vm2 = vcmask 785920   ;;  %vm10204_vm8 = vmmov %vm10203_vm4 }
 0x456   : > { %v1792_v11 = vmax.f32 %v8462_v1, %v1770_v45  ;;  %v1793_v58 = vmax.f32 %v8466_v10, %v1786_v12 }
 0x45b   : > { %v5753_v32 = vpop.permute.xlu1 %5752  ;;  %5780 = vset.pattern.permute.xlu2 %v6895_v54 }
 0x45c   : > { %v5755_v53 = vunpack.i.h.bf16 %v5753_v32  ;;  %v5754_v40 = vunpack.i.l.bf16 %v5753_v32  ;;  %915 = vperm.xlu2 %5780, %v6706_v42   ;;  %v5758_v42 = vpop.permute.xlu2 %5757  ;;  %v887_v3 = vpop.f32.mrf.mxu2 }
 0x45d   : > { %v5760_v61 = vunpack.i.h.bf16 %v5758_v42  ;;  %v5759_v36 = vunpack.i.l.bf16 %v5758_v42  ;;  %v906_v50 = vpop.f32.mrf.mxu3 }
 0x45e   : > { %v1771_v29 = vsel %vm10192_vm10, %v5754_v40, %v5755_v53  ;;  %v1787_v39 = vsel %vm10193_vm14, %v5755_v53, %v5754_v40  ;;  %v907_v42 = vadd.f32 %v906_v50, %v887_v3  ;;  %vm10205_vm10 = vmmov %vm10203_vm4 }
 0x45f   : > { %v1794_v49 = vmax.f32 %v8508_v60, %v1771_v29  ;;  %v1795_v51 = vmax.f32 %v8512_v34, %v1787_v39  ;;  %v2215_v60 = vsel %vm10194_vm12, %v5759_v36, %v5760_v61  ;;  %v2231_v10 = vsel %vm10195_vm0, %v5760_v61, %v5759_v36  ;;  %vm10206_vm14 = vmmov %vm10203_vm4 }
 0x460   : > { %v2235_v30 = vmax.f32 %v8548_v14, %v2215_v60  ;;  %vm10207_vm12 = vmmov %vm10203_vm4 }
 0x461   : > { %v1798_v43 = vpack.c.bf16 %v1794_v49, %v1792_v11  ;;  %v1799_v8 = vpack.c.bf16 %v1795_v51, %v1793_v58  ;;  %vm10208_vm0 = vmmov %vm10203_vm4 }
 0x463   : > { %1813 = vmatmul.bf16.gmra.mxu2 %v1798_v43  ;;  %1832 = vmatmul.bf16.gmra.mxu3 %v1799_v8 }
 0x464   : > { %5781 = vset.pattern.permute.xlu2 %v6896_v28  ;;  %v890_v0 = vpop.f32.mrf.mxu2 }
 0x465   : > { %939 = vperm.xlu2 %5781, %v8638_v63   ;;  %v2236_v63 = vmax.f32 %v8552_v4, %v2231_v10  ;;  %v909_v33 = vpop.f32.mrf.mxu3 }
 0x466   : > { %v910_v55 = vadd.f32 %v909_v33, %v890_v0 }
 0x46c   : > { %v892_v24 = vpop.f32.mrf.mxu2 }
 0x46d   : > { %5982 = vset.pattern.permute.xlu2 %v10178_v9  ;;  %v911_v6 = vpop.f32.mrf.mxu3 }
 0x46e   : > { %v912_v61 = vadd.f32 %v911_v6, %v892_v24 }
 0x472   : > { %v5763_v1 = vpop.permute.xlu0 %5762 }
 0x473   : > { %v5765_v20 = vunpack.i.h.bf16 %v5763_v1  ;;  %v5764_v34 = vunpack.i.l.bf16 %v5763_v1 }
 0x474   : > { %v1361_v32 = vpop.f32.mrf.mxu2 }
 0x475   : > { %v2216_v62 = vsel %vm10196_vm5, %v5764_v34, %v5765_v20  ;;  %v2232_v17 = vsel %vm10197_vm13, %v5765_v20, %v5764_v34  ;;  %v1380_v53 = vpop.f32.mrf.mxu3  ;;  %vm10209_vm5 = vmmov %vm10208_vm0 }
 0x476   : > { %v2237_v25 = vmax.f32 %v8586_v18, %v2216_v62  ;;  %v2238_v57 = vmax.f32 %v8590_v31, %v2232_v17  ;;  %vm10210_vm13 = vmmov %vm10208_vm0 }
 0x478   : > { %v2243_v22 = vpack.c.bf16 %v2237_v25, %v2235_v30  ;;  %v2244_v46 = vpack.c.bf16 %v2238_v57, %v2236_v63 }
 0x47a   : > { %2255 = vmatmul.bf16.vlgmr.msrb.gmra.mxu2 %v2243_v22  ;;  %2274 = vmatmul.bf16.vlgmr.msrb.gmra.mxu3 %v2244_v46  ;;  %v5768_v38 = vpop.permute.xlu1 %5767  ;;  %v8703_v44 = vpop.permute.xlu0 %923 }
 0x47b   : > { %v5770_v14 = vunpack.i.h.bf16 %v5768_v38  ;;  %v5769_v41 = vunpack.i.l.bf16 %v5768_v38  ;;  %v932_v40 = vmul.f32 %v8703_v44, %v910_v55 }
 0x47c   : > { %v1363_v12 = vpop.f32.mrf.mxu2 }
 0x47d   : > { %v2217_v48 = vsel %vm10198_vm15, %v5769_v41, %v5770_v14  ;;  %v2233_v23 = vsel %vm10199_vm6, %v5770_v14, %v5769_v41  ;;  %v1382_v29 = vpop.f32.mrf.mxu3  ;;  %vm10211_vm15 = vmmov %vm10208_vm0 }
 0x47e   : > { %v2239_v26 = vmax.f32 %v8611_v13, %v2217_v48  ;;  %v2240_v47 = vmax.f32 %v8615_v7, %v2233_v23  ;;  %v905_v7 = vadd.f32 %v904_v56, %v885_v5  ;;  %v1383_v63 = vadd.f32 %v1382_v29, %v1363_v12  ;;  %vm10212_vm6 = vmmov %vm10208_vm0 }
 0x482   : > { %v8693_v4 = vpop.permute.xlu1 %927  ;;  %v8720_v8 = vpop.permute.xlu0 %919 }
 0x483   : > { %v931_v60 = vmul.f32 %v8720_v8, %v907_v42  ;;  %v933_v10 = vmul.f32 %v8693_v4, %v912_v61  ;;  %v1391_v46 = vmul.f32 %v1383_v63, %v8720_v8 }
 0x48b   : > { %v8708_v13 = vpop.permute.xlu1 %947 }
 0x48c   : > { %v953_v17 = vadd.f32 %v8708_v13, %v933_v10 }
 0x493   : > { %v8714_v11 = vpop.permute.xlu1 %935 }
 0x4a5   : > { %v5773_v18 = vpop.permute.xlu2 %5772 }
 0x4a6   : > { %v5775_v21 = vunpack.i.h.bf16 %v5773_v18  ;;  %v5774_v31 = vunpack.i.l.bf16 %v5773_v18 }
 0x4a8   : > { %v2218_v59 = vsel %vm10200_vm7, %v5774_v31, %v5775_v21  ;;  %v2234_v19 = vsel %vm10201_vm11, %v5775_v21, %v5774_v31  ;;  %vm10213_vm7 = vmmov %vm10208_vm0 }
 0x4a9   : > { %v2241_v27 = vmax.f32 %v8656_v35, %v2218_v59  ;;  %v2242_v15 = vmax.f32 %v8660_v37, %v2234_v19  ;;  %v1381_v37 = vadd.f32 %v1380_v53, %v1361_v32  ;;  %vm10214_vm11 = vmmov %vm10208_vm0 }
 0x4ab   : > { %v2245_v52 = vpack.c.bf16 %v2241_v27, %v2239_v26  ;;  %v2246_v16 = vpack.c.bf16 %v2242_v15, %v2240_v47  ;;  %v10202_v27 = vmov 0.0  }
 0x4ac   : > { %321 = vst.msk [vmem:[#allocation3 + $0x8] sm:$0xff] %vm10042_vm9, %v10202_v27 }
 0x4ad   : > { %2260 = vmatmul.bf16.gmra.mxu2 %v2245_v52  ;;  %2279 = vmatmul.bf16.gmra.mxu3 %v2246_v16  ;;  %v8706_v45 = vpop.permute.xlu2 %943  ;;  %322 = vst.msk [vmem:[#allocation3 + $0x50] sm:$0xff] %vm10042_vm9, %v10202_v27 }
 0x4ae   : > { %v952_v35 = vadd.f32 %v8706_v45, %v932_v40  ;;  %323 = vst.msk [vmem:[#allocation3 + $0x98] sm:$0xff] %vm10042_vm9, %v10202_v27 }
 0x4af   : > { %324 = vst.msk [vmem:[#allocation3 + $0xe0] sm:$0xff] %vm10042_vm9, %v10202_v27 }
 0x4b0   : > { %962 = vrot.lane.b32.xlu2 %v952_v35, %s6878_s18  ;;  %2333 = vst.msk [vmem:[#allocation2 + $0x28] sm:$0xff] %vm10042_vm9, %v10202_v27 }
 0x4b1   : > { %2334 = vst.msk [vmem:[#allocation2 + $0x70] sm:$0xff] %vm10042_vm9, %v10202_v27 }
 0x4b2   : > { %2335 = vst.msk [vmem:[#allocation2 + $0xb8] sm:$0xff] %vm10042_vm9, %v10202_v27 }
 0x4b3   : > { %2336 = vst.msk [vmem:[#allocation2 + $0x100] sm:$0xff] %vm10042_vm9, %v10202_v27 }
 0x4b4   : > { %331 = vst.msk [vmem:[#allocation3 + $0x28] sm:$0xff] %vm10047_vm3, %v10202_v27 }
 0x4b5   : > { %332 = vst.msk [vmem:[#allocation3 + $0x70] sm:$0xff] %vm10047_vm3, %v10202_v27 }
 0x4b6   : > { %v8712_v39 = vpop.permute.xlu2 %915  ;;  %333 = vst.msk [vmem:[#allocation3 + $0xb8] sm:$0xff] %vm10047_vm3, %v10202_v27 }
 0x4b7   : > { %v930_v49 = vmul.f32 %v8712_v39, %v905_v7  ;;  %v1390_v58 = vmul.f32 %v1381_v37, %v8712_v39  ;;  %334 = vst.msk [vmem:[#allocation3 + $0x100] sm:$0xff] %vm10047_vm3, %v10202_v27 }
 0x4b8   : > { %2325 = vst.msk [vmem:[#allocation2] sm:$0xff] %vm10047_vm3, %v10202_v27 }
 0x4b9   : > { %v950_v51 = vadd.f32 %v8714_v11, %v930_v49  ;;  %v1394_v43 = vadd.f32 %v1390_v58, %v8714_v11  ;;  %2326 = vst.msk [vmem:[#allocation2 + $0x48] sm:$0xff] %vm10047_vm3, %v10202_v27 }
 0x4ba   : > { %2327 = vst.msk [vmem:[#allocation2 + $0x90] sm:$0xff] %vm10047_vm3, %v10202_v27 }
 0x4bb   : > { %958 = vrot.lane.b32.xlu0 %v950_v51, %s6878_s18  ;;  %1402 = vrot.lane.b32.xlu2 %v1394_v43, %s6879_s23  ;;  %2328 = vst.msk [vmem:[#allocation2 + $0xd8] sm:$0xff] %vm10047_vm3, %v10202_v27 }
 0x4bc   : > { %327 = vst.msk [vmem:[#allocation3 + $0x68] sm:$0xff] %vm10041_vm2, %v10202_v27 }
 0x4bd   : > { %326 = vst.msk [vmem:[#allocation3 + $0x20] sm:$0xff] %vm10041_vm2, %v10202_v27 }
 0x4be   : > { %v1366_v36 = vpop.f32.mrf.mxu2  ;;  %v1385_v1 = vpop.f32.mrf.mxu3  ;;  %328 = vst.msk [vmem:[#allocation3 + $0xb0] sm:$0xff] %vm10041_vm2, %v10202_v27 }
 0x4bf   : > { %v8726_v20 = vpop.permute.xlu2 %939  ;;  %v1386_v34 = vadd.f32 %v1385_v1, %v1366_v36  ;;  %329 = vst.msk [vmem:[#allocation3 + $0xf8] sm:$0xff] %vm10041_vm2, %v10202_v27 }
 0x4c0   : > { %v951_v62 = vadd.f32 %v8726_v20, %v931_v60  ;;  %v1395_v3 = vadd.f32 %v1391_v46, %v8726_v20  ;;  %2329 = vst.msk [vmem:[#allocation2 + $0x20] sm:$0xff] %vm10041_vm2, %v10202_v27 }
 0x4c1   : > { %v1392_v30 = vmul.f32 %v1386_v34, %v8703_v44  ;;  %2330 = vst.msk [vmem:[#allocation2 + $0x68] sm:$0xff] %vm10041_vm2, %v10202_v27 }
 0x4c2   : > { %960 = vrot.lane.b32.xlu1 %v951_v62, %s6878_s18  ;;  %2331 = vst.msk [vmem:[#allocation2 + $0xb0] sm:$0xff] %vm10041_vm2, %v10202_v27 }
 0x4c3   : > { %964 = vrot.lane.b32.xlu0 %v953_v17, %s6878_s18  ;;  %v1396_v5 = vadd.f32 %v1392_v30, %v8706_v45  ;;  %2332 = vst.msk [vmem:[#allocation2 + $0xf8] sm:$0xff] %vm10041_vm2, %v10202_v27 }
 0x4c4   : > { %3963 = vst.msk [vmem:[#allocation3 + $0x120] sm:$0xff] %vm10041_vm2, %v10202_v27 }
 0x4c5   : > { %3964 = vst.msk [vmem:[#allocation3 + $0x168] sm:$0xff] %vm10041_vm2, %v10202_v27 }
 0x4c6   : > { %v1368_v25 = vpop.f32.mrf.mxu2  ;;  %v1387_v57 = vpop.f32.mrf.mxu3  ;;  %3965 = vst.msk [vmem:[#allocation3 + $0x140] sm:$0xff] %vm10041_vm2, %v10202_v27 }
 0x4c7   : > { %v1388_v22 = vadd.f32 %v1387_v57, %v1368_v25  ;;  %3966 = vst.msk [vmem:[#allocation3 + $0x188] sm:$0xff] %vm10041_vm2, %v10202_v27 }
 0x4c8   : > { %4264 = vst.msk [vmem:[#allocation3 + $0x1b0] sm:$0xff] %vm10041_vm2, %v10202_v27 }
 0x4c9   : > { %v1393_v56 = vmul.f32 %v1388_v22, %v8693_v4  ;;  %4265 = vst.msk [vmem:[#allocation3 + $0x1f8] sm:$0xff] %vm10041_vm2, %v10202_v27 }
 0x4ca   : > { %1406 = vrot.lane.b32.xlu1 %v1396_v5, %s6879_s23  ;;  %4266 = vst.msk [vmem:[#allocation3 + $0x1d0] sm:$0xff] %vm10041_vm2, %v10202_v27 }
 0x4cb   : > { %v1397_v50 = vadd.f32 %v1393_v56, %v8708_v13  ;;  %1404 = vrot.lane.b32.xlu0 %v1395_v3, %s6879_s23  ;;  %4267 = vst.msk [vmem:[#allocation3 + $0x218] sm:$0xff] %vm10041_vm2, %v10202_v27 }
 0x4cd   : > { %1408 = vrot.lane.b32.xlu2 %v1397_v50, %s6879_s23 }
 0x4d5   : > { %v1809_v0 = vpop.f32.mrf.mxu2  ;;  %v1828_v33 = vpop.f32.mrf.mxu3 }
 0x4d6   : > { %v1829_v38 = vadd.f32 %v1828_v33, %v1809_v0 }
 0x4d8   : > { %v1838_v24 = vmul.f32 %v1829_v38, %v8712_v39 }
 0x4da   : > { %v1842_v6 = vadd.f32 %v1838_v24, %v8714_v11 }
 0x4dc   : > { %1850 = vrot.lane.b32.xlu1 %v1842_v6, %s6879_s23 }
 0x4dd   : > { %v1811_v14 = vpop.f32.mrf.mxu2  ;;  %v1830_v41 = vpop.f32.mrf.mxu3 }
 0x4de   : > { %v1831_v18 = vadd.f32 %v1830_v41, %v1811_v14 }
 0x4e0   : > { %v1839_v21 = vmul.f32 %v1831_v18, %v8720_v8 }
 0x4e2   : > { %v1843_v31 = vadd.f32 %v1839_v21, %v8726_v20 }
 0x4e4   : > { %1852 = vrot.lane.b32.xlu2 %v1843_v31, %s6879_s23 }
 0x4e6   : > { %v1814_v48 = vpop.f32.mrf.mxu2  ;;  %v1833_v23 = vpop.f32.mrf.mxu3 }
 0x4e7   : > { %v1834_v59 = vadd.f32 %v1833_v23, %v1814_v48 }
 0x4e9   : > { %v1840_v19 = vmul.f32 %v1834_v59, %v8703_v44 }
 0x4eb   : > { %v1844_v26 = vadd.f32 %v1840_v19, %v8706_v45 }
 0x4ed   : > { %1854 = vrot.lane.b32.xlu0 %v1844_v26, %s6879_s23 }
 0x4ee   : > { %v1816_v47 = vpop.f32.mrf.mxu2  ;;  %v1835_v15 = vpop.f32.mrf.mxu3 }
 0x4ef   : > { %v1836_v55 = vadd.f32 %v1835_v15, %v1816_v47 }
 0x4f1   : > { %v1841_v52 = vmul.f32 %v1836_v55, %v8693_v4 }
 0x4f3   : > { %v1845_v16 = vadd.f32 %v1841_v52, %v8708_v13 }
 0x4f5   : > { %1856 = vrot.lane.b32.xlu1 %v1845_v16, %s6879_s23 }
 0x4fd   : > { %v2256_v32 = vpop.f32.mrf.mxu2  ;;  %v2275_v53 = vpop.f32.mrf.mxu3 }
 0x4fe   : > { %v2276_v40 = vadd.f32 %v2275_v53, %v2256_v32 }
 0x500   : > { %v2285_v35 = vmul.f32 %v2276_v40, %v8712_v39 }
 0x502   : > { %v2289_v7 = vadd.f32 %v2285_v35, %v8714_v11 }
 0x504   : > { %2297 = vrot.lane.b32.xlu0 %v2289_v7, %s6878_s18 }
 0x505   : > { %v2258_v37 = vpop.f32.mrf.mxu2  ;;  %v2277_v12 = vpop.f32.mrf.mxu3 }
 0x506   : > { %v2278_v29 = vadd.f32 %v2277_v12, %v2258_v37 }
 0x508   : > { %v2286_v49 = vmul.f32 %v2278_v29, %v8720_v8 }
 0x50a   : > { %v2290_v58 = vadd.f32 %v2286_v49, %v8726_v20  ;;  %v963_v39 = vpop.permute.xlu2 %962 }
 0x50b   : > { %973 = vst.msk [vmem:[#allocation3 + $0x90] sm:$0xff] %vm10048_vm1, %v963_v39 }
 0x50c   : > { %2299 = vrot.lane.b32.xlu1 %v2290_v58, %s6878_s18 }
 0x515   : > { %v1403_v11 = vpop.permute.xlu2 %1402 }
 0x516   : > { %1415 = vst.msk [vmem:[#allocation3 + $0x8] sm:$0xff] %vm10203_vm4, %v1403_v11  ;;  %vm10215_vm4 = vmmov %vm10208_vm0 }
 0x51d   : > { %v2338_v34 = vld [vmem:[#allocation3 + $0x8] sm:$0xff] }
 0x527   : > { %v1409_v51 = vpop.permute.xlu2 %1408 }
 0x528   : > { %1421 = vst.msk [vmem:[#allocation3 + $0xe0] sm:$0xff] %vm10204_vm8, %v1409_v51  ;;  %vm10216_vm8 = vmmov %vm10208_vm0 }
 0x52d   : > { %v959_v43 = vpop.permute.xlu0 %958 }
 0x52e   : > { %971 = vst.msk [vmem:[#allocation3] sm:$0xff] %vm10048_vm1, %v959_v43 }
 0x52f   : > { %1414 = vst.msk [vmem:[#allocation3] sm:$0xff] %vm10047_vm3, %v1403_v11  ;;  %v2344_v5 = vld [vmem:[#allocation3 + $0xe0] sm:$0xff] }
 0x530   : > { %v2261_v8 = vpop.f32.mrf.mxu2  ;;  %v2280_v42 = vpop.f32.mrf.mxu3 }
 0x531   : > { %v2281_v61 = vadd.f32 %v2280_v42, %v2261_v8 }
 0x533   : > { %v2287_v36 = vmul.f32 %v2281_v61, %v8703_v44 }
 0x534   : > { %v961_v60 = vpop.permute.xlu1 %960 }
 0x535   : > { %v2291_v1 = vadd.f32 %v2287_v36, %v8706_v45  ;;  %972 = vst.msk [vmem:[#allocation3 + $0x48] sm:$0xff] %vm10048_vm1, %v961_v60  ;;  %v965_v10 = vpop.permute.xlu0 %964 }
 0x536   : > { %974 = vst.msk [vmem:[#allocation3 + $0xd8] sm:$0xff] %vm10048_vm1, %v965_v10  ;;  %v2337_v20 = vld [vmem:[#allocation3] sm:$0xff] }
 0x537   : > { %2301 = vrot.lane.b32.xlu2 %v2291_v1, %s6878_s18  ;;  %1420 = vst.msk [vmem:[#allocation3 + $0xd8] sm:$0xff] %vm10047_vm3, %v1409_v51  ;;  %v8834_v44 = vpack.i.bf16 %v2338_v34, %v2337_v20 }
 0x538   : > { %v2263_v62 = vpop.f32.mrf.mxu2  ;;  %v2282_v17 = vpop.f32.mrf.mxu3  ;;  %3016 = vst.msk [vmem:[#allocation3] sm:$0xff] %vm10205_vm10, %v10202_v27  ;;  %vm10217_vm10 = vmmov %vm10208_vm0 }
 0x539   : > { %v2283_v30 = vadd.f32 %v2282_v17, %v2263_v62  ;;  %5793 = vrot.lane.b32.xlu1 %v8834_v44, %s6897_s25  ;;  %3020 = vst.msk [vmem:[#allocation3] sm:$0xff] %vm10041_vm2, %v10202_v27 }
 0x53b   : > { %v2288_v45 = vmul.f32 %v2283_v30, %v8693_v4 }
 0x53c   : > { %v1407_v25 = vpop.permute.xlu1 %1406 }
 0x53d   : > { %v2292_v63 = vadd.f32 %v2288_v45, %v8708_v13  ;;  %1418 = vst.msk [vmem:[#allocation3 + $0x90] sm:$0xff] %vm10047_vm3, %v1407_v25  ;;  %v1405_v57 = vpop.permute.xlu0 %1404 }
 0x53e   : > { %1419 = vst.msk [vmem:[#allocation3 + $0x98] sm:$0xff] %vm10206_vm14, %v1407_v25  ;;  %v1853_v22 = vpop.permute.xlu2 %1852  ;;  %v2343_v46 = vld [vmem:[#allocation3 + $0xd8] sm:$0xff]  ;;  %vm10218_vm14 = vmmov %vm10208_vm0 }
 0x53f   : > { %5788 = vrot.lane.b32.xlu2 %v8834_v44, %s6879_s23  ;;  %2303 = vrot.lane.b32.xlu0 %v2292_v63, %s6878_s18  ;;  %1416 = vst.msk [vmem:[#allocation3 + $0x48] sm:$0xff] %vm10047_vm3, %v1405_v57  ;;  %v8850_v56 = vpack.i.bf16 %v2344_v5, %v2343_v46 }
 0x540   : > { %1417 = vst.msk [vmem:[#allocation3 + $0x50] sm:$0xff] %vm10207_vm12, %v1405_v57  ;;  %vm10219_vm12 = vmmov %vm10208_vm0 }
 0x541   : > { %1864 = vst.msk [vmem:[#allocation3 + $0x68] sm:$0xff] %vm10047_vm3, %v1853_v22 }
 0x542   : > { %1865 = vst.msk [vmem:[#allocation3 + $0x70] sm:$0xff] %vm10208_vm0, %v1853_v22 }
 0x543   : > { %3019 = vst.msk [vmem:[#allocation3 + $0xd8] sm:$0xff] %vm10209_vm5, %v10202_v27  ;;  %vm10046_vm5 = vcmask 777216  }
 0x544   : > { %v2341_v4 = vld [vmem:[#allocation3 + $0x90] sm:$0xff]  ;;  %3023 = vst.msk [vmem:[#allocation3 + $0xd8] sm:$0xff] %vm10041_vm2, %v10202_v27 }
 0x545   : > { %3018 = vst.msk [vmem:[#allocation3 + $0x90] sm:$0xff] %vm10210_vm13, %v10202_v27  ;;  %v2342_v13 = vld [vmem:[#allocation3 + $0x98] sm:$0xff]  ;;  %vm10220_vm13 = vcmask 785408  }
 0x546   : > { %v2339_v3 = vld [vmem:[#allocation3 + $0x48] sm:$0xff]  ;;  %3022 = vst.msk [vmem:[#allocation3 + $0x90] sm:$0xff] %vm10041_vm2, %v10202_v27  ;;  %v8867_v0 = vpack.i.bf16 %v2342_v13, %v2341_v4 }
 0x547   : > { %5783 = vrot.lane.b32.xlu0 %v8834_v44, %s6898_s30  ;;  %3017 = vst.msk [vmem:[#allocation3 + $0x48] sm:$0xff] %vm10211_vm15, %v10202_v27  ;;  %v2340_v50 = vld [vmem:[#allocation3 + $0x50] sm:$0xff]  ;;  %vm10221_vm15 = vmmov %vm10220_vm13 }
 0x548   : > { %3021 = vst.msk [vmem:[#allocation3 + $0x48] sm:$0xff] %vm10041_vm2, %v10202_v27  ;;  %v8871_v33 = vpack.i.bf16 %v2340_v50, %v2339_v3  ;;  %v2347_v38 = vld [vmem:[#allocation3 + $0x68] sm:$0xff] }
 0x549   : > { %3025 = vst.msk [vmem:[#allocation3 + $0x68] sm:$0xff] %vm10041_vm2, %v10202_v27 }
 0x54a   : > { %5808 = vrot.lane.b32.xlu2 %v8871_v33, %s6897_s25  ;;  %5798 = vrot.lane.b32.xlu1 %v8871_v33, %s6898_s30 }
 0x54e   : > { %v1851_v24 = vpop.permute.xlu1 %1850 }
 0x54f   : > { %5803 = vrot.lane.b32.xlu0 %v8871_v33, %s6879_s23  ;;  %1862 = vst.msk [vmem:[#allocation3 + $0x20] sm:$0xff] %vm10047_vm3, %v1851_v24 }
 0x550   : > { %1863 = vst.msk [vmem:[#allocation3 + $0x28] sm:$0xff] %vm10212_vm6, %v1851_v24  ;;  %vm10222_vm6 = vmmov %vm10220_vm13 }
 0x552   : > { %5813 = vrot.lane.b32.xlu2 %v8867_v0, %s6898_s30  ;;  %5818 = vrot.lane.b32.xlu1 %v8867_v0, %s6879_s23 }
 0x556   : > { %v2345_v6 = vld [vmem:[#allocation3 + $0x20] sm:$0xff] }
 0x557   : > { %5823 = vrot.lane.b32.xlu0 %v8867_v0, %s6897_s25  ;;  %3024 = vst.msk [vmem:[#allocation3 + $0x20] sm:$0xff] %vm10041_vm2, %v10202_v27 }
 0x55a   : > { %5833 = vrot.lane.b32.xlu2 %v8850_v56, %s6879_s23  ;;  %5838 = vrot.lane.b32.xlu1 %v8850_v56, %s6897_s25 }
 0x55f   : > { %5828 = vrot.lane.b32.xlu0 %v8850_v56, %s6898_s30  ;;  %v1855_v14 = vpop.permute.xlu0 %1854 }
 0x560   : > { %1866 = vst.msk [vmem:[#allocation3 + $0xb0] sm:$0xff] %vm10047_vm3, %v1855_v14 }
 0x561   : > { %1867 = vst.msk [vmem:[#allocation3 + $0xb8] sm:$0xff] %vm10213_vm7, %v1855_v14  ;;  %vm10223_vm7 = vmmov %vm10222_vm6 }
 0x567   : > { %v1857_v41 = vpop.permute.xlu1 %1856  ;;  %v2349_v18 = vld [vmem:[#allocation3 + $0xb0] sm:$0xff] }
 0x568   : > { %1868 = vst.msk [vmem:[#allocation3 + $0xf8] sm:$0xff] %vm10047_vm3, %v1857_v41 }
 0x569   : > { %1869 = vst.msk [vmem:[#allocation3 + $0x100] sm:$0xff] %vm10214_vm11, %v1857_v41  ;;  %vm10045_vm11 = vcmask 793600  }
 0x56a   : > { %3026 = vst.msk [vmem:[#allocation3 + $0xb0] sm:$0xff] %vm10041_vm2, %v10202_v27 }
 0x56f   : > { %v2351_v21 = vld [vmem:[#allocation3 + $0xf8] sm:$0xff] }
 0x570   : > { %3027 = vst.msk [vmem:[#allocation3 + $0xf8] sm:$0xff] %vm10041_vm2, %v10202_v27 }
 0x576   : > { %v2298_v31 = vpop.permute.xlu0 %2297 }
 0x577   : > { %2309 = vst.msk [vmem:[#allocation3 + $0x28] sm:$0xff] %vm10048_vm1, %v2298_v31 }
 0x57e   : > { %v2346_v48 = vld [vmem:[#allocation3 + $0x28] sm:$0xff]  ;;  %v2300_v23 = vpop.permute.xlu1 %2299 }
 0x57f   : > { %3028 = vst.msk [vmem:[#allocation3 + $0x28] sm:$0xff] %vm10215_vm4, %v10202_v27  ;;  %v5852_v59 = vpack.i.bf16 %v2346_v48, %v2345_v6  ;;  %vm2558_vm4 = vcmask 252928  }
 0x580   : > { %3480 = vst.msk [vmem:[#allocation3 + $0x28] sm:$0xff] %vm10216_vm8, %v10202_v27  ;;  %vm10224_vm8 = vmmov %vm10208_vm0 }
 0x581   : > { %2310 = vst.msk [vmem:[#allocation3 + $0x70] sm:$0xff] %vm10048_vm1, %v2300_v23  ;;  %5853 = vrot.lane.b32.xlu1 %v5852_v59, %s6899_s26  ;;  %5848 = vrot.lane.b32.xlu2 %v5852_v59, %s6878_s18 }
 0x582   : > { %5843 = vrot.lane.b32.xlu0 %v5852_v59, %s6900_s27 }
 0x588   : > { %v2348_v19 = vld [vmem:[#allocation3 + $0x70] sm:$0xff] }
 0x589   : > { %3029 = vst.msk [vmem:[#allocation3 + $0x70] sm:$0xff] %vm10217_vm10, %v10202_v27  ;;  %v5857_v26 = vpack.i.bf16 %v2348_v19, %v2347_v38  ;;  %vm10225_vm10 = vmmov %vm10208_vm0 }
 0x58a   : > { %3481 = vst.msk [vmem:[#allocation3 + $0x70] sm:$0xff] %vm10218_vm14, %v10202_v27  ;;  %vm10226_vm14 = vmmov %vm10208_vm0 }
 0x58b   : > { %5858 = vrot.lane.b32.xlu1 %v5857_v26, %s6900_s27  ;;  %5868 = vrot.lane.b32.xlu2 %v5857_v26, %s6899_s26 }
 0x58c   : > { %5863 = vrot.lane.b32.xlu0 %v5857_v26, %s6878_s18 }
 0x591   : > { %v2302_v47 = vpop.permute.xlu2 %2301 }
 0x592   : > { %2311 = vst.msk [vmem:[#allocation3 + $0xb8] sm:$0xff] %vm10048_vm1, %v2302_v47 }
 0x599   : > { %v2350_v15 = vld [vmem:[#allocation3 + $0xb8] sm:$0xff]  ;;  %v8932_v16 = vpop.permute.xlu2 %5788 }
 0x59a   : > { %3030 = vst.msk [vmem:[#allocation3 + $0xb8] sm:$0xff] %vm10219_vm12, %v10202_v27  ;;  %v5872_v55 = vpack.i.bf16 %v2350_v15, %v2349_v18  ;;  %v5791_v4 = vunpack.i.h.bf16 %v8932_v16  ;;  %vm10227_vm12 = vmmov %vm10208_vm0 }
 0x59c   : > { %5873 = vrot.lane.b32.xlu1 %v5872_v55, %s6900_s27  ;;  %5888 = vrot.lane.b32.xlu2 %v5872_v55, %s6901_s28 }
 0x59d   : > { %5883 = vrot.lane.b32.xlu0 %v5872_v55, %s6899_s26 }
 0x5a4   : > { %5878 = vrot.lane.b32.xlu1 %v5872_v55, %s6878_s18  ;;  %v8941_v7 = vpop.permute.xlu2 %5808 }
 0x5a5   : > { %5893 = vrot.lane.b32.xlu0 %v5872_v55, %s6902_s29  ;;  %v5811_v23 = vunpack.i.h.bf16 %v8941_v7 }
 0x5ab   : > { %v8939_v35 = vpop.permute.xlu1 %5793 }
 0x5ac   : > { %5918 = vrot.lane.b32.xlu1 %v8867_v0, %s6903_s4  ;;  %v5814_v49 = vpop.permute.xlu2 %5813  ;;  %v5795_v31 = vunpack.i.l.bf16 %v8939_v35 }
 0x5ad   : > { %5913 = vrot.lane.b32.xlu0 %v5857_v26, %s6901_s28  ;;  %v5816_v58 = vunpack.i.h.bf16 %v5814_v49  ;;  %v5815_v39 = vunpack.i.l.bf16 %v5814_v49 }
 0x5af   : > { %v2536_v60 = vsel %vm10046_vm5, %v5815_v39, %v5816_v58 }
 0x5b1   : > { %v2304_v52 = vpop.permute.xlu0 %2303 }
 0x5b2   : > { %2312 = vst.msk [vmem:[#allocation3 + $0x100] sm:$0xff] %vm10048_vm1, %v2304_v52 }
 0x5b4   : > { %5933 = vrot.lane.b32.xlu1 %v5857_v26, %s6902_s29  ;;  %v5834_v20 = vpop.permute.xlu2 %5833 }
 0x5b5   : > { %5928 = vrot.lane.b32.xlu0 %v5852_v59, %s6902_s29  ;;  %v5836_v45 = vunpack.i.h.bf16 %v5834_v20  ;;  %v5835_v63 = vunpack.i.l.bf16 %v5834_v20 }
 0x5b7   : > { %v2488_v13 = vsel %vm10221_vm15, %v5835_v63, %v5836_v45  ;;  %vm2410_vm15 = vcmask 277504  }
 0x5b9   : > { %v2352_v32 = vld [vmem:[#allocation3 + $0x100] sm:$0xff]  ;;  %v5784_v53 = vpop.permute.xlu0 %5783 }
 0x5ba   : > { %3031 = vst.msk [vmem:[#allocation3 + $0x100] sm:$0xff] %vm10208_vm0, %v10202_v27  ;;  %v5947_v40 = vpack.i.bf16 %v2352_v32, %v2351_v21  ;;  %v5786_v11 = vunpack.i.h.bf16 %v5784_v53  ;;  %v5785_v51 = vunpack.i.l.bf16 %v5784_v53  ;;  %v5796_v21 = vunpack.i.h.bf16 %v8939_v35 }
 0x5bb   : > { %vm2460_vm0 = vcmask 269312  }
 0x5bc   : > { %5943 = vrot.lane.b32.xlu1 %v5947_v40, %s6899_s26  ;;  %5898 = vrot.lane.b32.xlu2 %v5947_v40, %s6900_s27  ;;  %v5799_v12 = vpop.permute.xlu1 %5798  ;;  %v2436_v26 = vsel %vm10045_vm11, %v5795_v31, %v5796_v21  ;;  %s6914_s26 = smov 104   ;;  %s6915_s27 = smov 72  }
 0x5bd   : > { %5948 = vrot.lane.b32.xlu0 %v5947_v40, %s6901_s28  ;;  %v5801_v42 = vunpack.i.h.bf16 %v5799_v12  ;;  %v5800_v61 = vunpack.i.l.bf16 %v5799_v12 }
 0x5bf   : > { %v2535_v30 = vsel %vm10046_vm5, %v5800_v61, %v5801_v42 }
 0x5c1   : > { %v5804_v37 = vpop.permute.xlu0 %5803 }
 0x5c2   : > { %v5806_v25 = vunpack.i.h.bf16 %v5804_v37  ;;  %v5805_v57 = vunpack.i.l.bf16 %v5804_v37 }
 0x5c4   : > { %5958 = vrot.lane.b32.xlu1 %v5947_v40, %s6902_s29  ;;  %5903 = vrot.lane.b32.xlu2 %v5947_v40, %s6878_s18  ;;  %v5819_v43 = vpop.permute.xlu1 %5818  ;;  %v2486_v50 = vsel %vm10222_vm6, %v5805_v57, %v5806_v25  ;;  %vm2608_vm6 = vcmask 244736   ;;  %s6917_s29 = smov 80  }
 0x5c5   : > { %5953 = vrot.lane.b32.xlu0 %v8850_v56, %s6904_s5  ;;  %v5821_v62 = vunpack.i.h.bf16 %v5819_v43  ;;  %v5820_v17 = vunpack.i.l.bf16 %v5819_v43 }
 0x5c7   : > { %v2487_v46 = vsel %vm10220_vm13, %v5820_v17, %v5821_v62  ;;  %vm10044_vm13 = vcmask 801792  }
 0x5c8   : > { %v2627_v3 = vpack.c.bf16 %v2488_v13, %v2487_v46 }
 0x5c9   : > { %v5824_v29 = vpop.permute.xlu0 %5823 }
 0x5ca   : > { %v5826_v38 = vunpack.i.h.bf16 %v5824_v29  ;;  %v5825_v24 = vunpack.i.l.bf16 %v5824_v29 }
 0x5cc   : > { %5963 = vrot.lane.b32.xlu1 %v8834_v44, %s6903_s4  ;;  %5908 = vrot.lane.b32.xlu2 %v5852_v59, %s6901_s28  ;;  %v5839_v5 = vpop.permute.xlu1 %5838  ;;  %v2438_v48 = vsel %vm10045_vm11, %v5825_v24, %v5826_v38  ;;  %v5810_v59 = vunpack.i.l.bf16 %v8941_v7  ;;  %s6916_s28 = smov 48  }
 0x5cd   : > { %5973 = vrot.lane.b32.xlu0 %v8834_v44, %s6904_s5  ;;  %v2534_v44 = vsel %vm10046_vm5, %v5785_v51, %v5786_v11  ;;  %v5841_v6 = vunpack.i.h.bf16 %v5839_v5  ;;  %v5840_v14 = vunpack.i.l.bf16 %v5839_v5 }
 0x5ce   : > { %v2629_v22 = vpack.c.bf16 %v2535_v30, %v2534_v44  ;;  %v2437_v47 = vsel %vm10045_vm11, %v5810_v59, %v5811_v23 }
 0x5cf   : > { %v2621_v15 = vpack.c.bf16 %v2437_v47, %v2436_v26 }
 0x5d1   : > { %v5829_v8 = vpop.permute.xlu0 %5828 }
 0x5d2   : > { %v5831_v36 = vunpack.i.h.bf16 %v5829_v8  ;;  %v5830_v1 = vunpack.i.l.bf16 %v5829_v8 }
 0x5d4   : > { %v2537_v10 = vsel %vm10046_vm5, %v5830_v1, %v5831_v36  ;;  %5978 = vrot.lane.b32.xlu1 %v8871_v33, %s6904_s5  ;;  %5923 = vrot.lane.b32.xlu2 %v8850_v56, %s6903_s4  ;;  %v5790_v56 = vunpack.i.l.bf16 %v8932_v16 }
 0x5d5   : > { %v2631_v34 = vpack.c.bf16 %v2537_v10, %v2536_v60 }
 0x5d6   : > { %v2485_v41 = vsel %vm10223_vm7, %v5790_v56, %v5791_v4  ;;  %vm10043_vm7 = vcmask 769024  }
 0x5d7   : > { %2681 = vmatpush.bf16.msra.mxu0 %v2631_v34  ;;  %v2625_v18 = vpack.c.bf16 %v2486_v50, %v2485_v41 }
 0x5db   : > { %2682 = vmatpush.bf16.msra.mxu0 %v2629_v22  ;;  %v5849_v52 = vpop.permute.xlu2 %5848 }
 0x5dc   : > { %5938 = vrot.lane.b32.xlu2 %v8867_v0, %s6904_s5  ;;  %v2439_v0 = vsel %vm10045_vm11, %v5840_v14, %v5841_v6  ;;  %v5851_v22 = vunpack.i.h.bf16 %v5849_v52  ;;  %v5850_v46 = vunpack.i.l.bf16 %v5849_v52 }
 0x5dd   : > { %v2623_v19 = vpack.c.bf16 %v2439_v0, %v2438_v48 }
 0x5de   : > { %v2509_v50 = vsel %vm10227_vm12, %v5850_v46, %v5851_v22  ;;  %v9023_v22 = vld [vmem:[#allocation9 + $0x28] sm:$0xff] }
 0x5df   : > { %2683 = vmatpush.bf16.msra.mxu0 %v2627_v3  ;;  %2644 = vperm.xlu0 %5983, %v9023_v22  }
 0x5e3   : > { %2684 = vmatpush.bf16.msra.mxu0 %v2625_v18 }
 0x5e4   : > { %5968 = vrot.lane.b32.xlu2 %v8871_v33, %s6903_s4 }
 0x5e5   : > { %v8979_v53 = vpop.permute.xlu2 %5868 }
 0x5e6   : > { %v5871_v31 = vunpack.i.h.bf16 %v8979_v53  ;;  %v5870_v59 = vunpack.i.l.bf16 %v8979_v53 }
 0x5e7   : > { %2685 = vmatpush.bf16.msra.mxu0 %v2623_v19  ;;  %6006 = vset.pattern.permute.xlu0 %v6895_v54 }
 0x5eb   : > { %2686 = vmatpush.bf16.msra.mxu0 %v2621_v15 }
 0x5f3   : > { %v8977_v55 = vpop.permute.xlu1 %5853 }
 0x5f4   : > { %v5844_v16 = vpop.permute.xlu0 %5843  ;;  %v5856_v14 = vunpack.i.h.bf16 %v8977_v55  ;;  %v5855_v41 = vunpack.i.l.bf16 %v8977_v55 }
 0x5f5   : > { %v5846_v8 = vunpack.i.h.bf16 %v5844_v16  ;;  %v5845_v42 = vunpack.i.l.bf16 %v5844_v16 }
 0x5f6   : > { %v8981_v7 = vpop.permute.xlu2 %5888 }
 0x5f7   : > { %v2559_v62 = vsel %vm2558_vm4, %v5845_v42, %v5846_v8  ;;  %v5891_v52 = vunpack.i.h.bf16 %v8981_v7  ;;  %v5890_v55 = vunpack.i.l.bf16 %v8981_v7 }
 0x5fd   : > { %v5859_v32 = vpop.permute.xlu1 %5858 }
 0x5fe   : > { %v5864_v40 = vpop.permute.xlu0 %5863  ;;  %v5861_v39 = vunpack.i.h.bf16 %v5859_v32  ;;  %v5860_v11 = vunpack.i.l.bf16 %v5859_v32 }
 0x5ff   : > { %v5866_v45 = vunpack.i.h.bf16 %v5864_v40  ;;  %v5865_v63 = vunpack.i.l.bf16 %v5864_v40 }
 0x600   : > { %v2560_v60 = vsel %vm2558_vm4, %v5860_v11, %v5861_v39  ;;  %v2462_v11 = vsel %vm2460_vm0, %v5870_v59, %v5871_v31  ;;  %v5027_v31 = vld [vmem:[#allocation7 + $0x28] sm:$0xf0] }
 0x601   : > { %v2630_v30 = vpack.c.bf16 %v2560_v60, %v2559_v62  ;;  %v2510_v13 = vsel %vm10226_vm14, %v5865_v63, %v5866_v45 }
 0x602   : > { %v2626_v6 = vpack.c.bf16 %v2510_v13, %v2509_v50 }
 0x60e   : > { %v5874_v35 = vpop.permute.xlu1 %5873 }
 0x60f   : > { %v8983_v33 = vpop.permute.xlu0 %5883  ;;  %v5876_v37 = vunpack.i.h.bf16 %v5874_v35  ;;  %v5875_v12 = vunpack.i.l.bf16 %v5874_v35 }
 0x610   : > { %v5886_v18 = vunpack.i.h.bf16 %v8983_v33  ;;  %v5885_v21 = vunpack.i.l.bf16 %v8983_v33  ;;  %v2461_v33 = vsel %vm2460_vm0, %v5855_v41, %v5856_v14 }
 0x611   : > { %v2561_v61 = vsel %vm2558_vm4, %v5875_v12, %v5876_v37  ;;  %v2622_v7 = vpack.c.bf16 %v2462_v11, %v2461_v33 }
 0x612   : > { %v2463_v40 = vsel %vm2460_vm0, %v5885_v21, %v5886_v18  ;;  %v5025_v18 = vld [vmem:[#allocation7 + $0x20] sm:$0xf]  ;;  %v5152_v21 = vld [vmem:[#allocation7 + $0x24] sm:$0xf] }
 0x616   : > { %v5879_v29 = vpop.permute.xlu1 %5878  ;;  %v5899_v49 = vpop.permute.xlu2 %5898 }
 0x617   : > { %v8985_v58 = vpop.permute.xlu0 %5893  ;;  %v5901_v51 = vunpack.i.h.bf16 %v5899_v49  ;;  %v5900_v43 = vunpack.i.l.bf16 %v5899_v49  ;;  %v5881_v10 = vunpack.i.h.bf16 %v5879_v29  ;;  %v5880_v20 = vunpack.i.l.bf16 %v5879_v29 }
 0x618   : > { %v5895_v8 = vunpack.i.l.bf16 %v8985_v58 }
 0x619   : > { %v2562_v36 = vsel %vm2558_vm4, %v5900_v43, %v5901_v51  ;;  %v2511_v5 = vsel %vm10224_vm8, %v5880_v20, %v5881_v10  ;;  %v2413_v51 = vsel %vm2410_vm15, %v5890_v55, %v5891_v52  ;;  %v5896_v43 = vunpack.i.h.bf16 %v8985_v58  ;;  %v9036_v55 = vld [vmem:[#allocation9 + $0x30] sm:$0xff]  ;;  %vm10228_vm4 = vmmov %vm10224_vm8 }
 0x61a   : > { %v2632_v1 = vpack.c.bf16 %v2562_v36, %v2561_v61  ;;  %v5030_v52 = vor.u32 %v5152_v21, %v5027_v31  ;;  %2649 = vperm.xlu1 %5984, %v9036_v55   ;;  %vm10229_vm8 = vmmov %vm10228_vm4  ;;  %v10241_v31 = vld [vmem:[#allocation22_spill] sm:$0xff] }
 0x61b   : > { %v2611_v46 = vsel %vm2608_vm6, %v5895_v8, %v5896_v43  ;;  %vm10231_vm14 = vmmov %vm10228_vm4 }
 0x61c   : > { %2719 = vmatpush.bf16.msra.mxu2 %v2632_v1 }
 0x61e   : > { %v5919_v34 = vpop.permute.xlu1 %5918  ;;  %v5904_v17 = vpop.permute.xlu2 %5903 }
 0x61f   : > { %v8987_v44 = vpop.permute.xlu0 %5913  ;;  %v5906_v25 = vunpack.i.h.bf16 %v5904_v17  ;;  %v5905_v57 = vunpack.i.l.bf16 %v5904_v17  ;;  %v5921_v48 = vunpack.i.h.bf16 %v5919_v34  ;;  %v5920_v0 = vunpack.i.l.bf16 %v5919_v34 }
 0x620   : > { %2720 = vmatpush.bf16.msra.mxu2 %v2630_v30 }
 0x621   : > { %v2512_v4 = vsel %vm10225_vm10, %v5905_v57, %v5906_v25  ;;  %v2380_v53 = vsel %vm10044_vm13, %v5920_v0, %v5921_v48  ;;  %vm10230_vm10 = vmmov %vm10228_vm4 }
 0x622   : > { %v2628_v56 = vpack.c.bf16 %v2512_v4, %v2511_v5  ;;  %v5916_v5 = vunpack.i.h.bf16 %v8987_v44  ;;  %v5915_v4 = vunpack.i.l.bf16 %v8987_v44  ;;  %v5153_v44 = vld [vmem:[#allocation7 + $0x24] sm:$0xf0]  ;;  %6007 = vset.pattern.permute.xlu1 %v6896_v28 }
 0x624   : > { %2721 = vmatpush.bf16.msra.mxu2 %v2628_v56  ;;  %v2412_v48 = vsel %vm2410_vm15, %v5915_v4, %v5916_v5 }
 0x626   : > { %v8992_v3 = vpop.permute.xlu1 %5933  ;;  %v8995_v38 = vpop.permute.xlu2 %5908 }
 0x627   : > { %v8997_v24 = vpop.permute.xlu0 %5928  ;;  %v5936_v42 = vunpack.i.h.bf16 %v8992_v3  ;;  %v5935_v61 = vunpack.i.l.bf16 %v8992_v3  ;;  %v5911_v36 = vunpack.i.h.bf16 %v8995_v38  ;;  %v5910_v1 = vunpack.i.l.bf16 %v8995_v38 }
 0x628   : > { %2722 = vmatpush.bf16.msra.mxu2 %v2626_v6  ;;  %v5931_v60 = vunpack.i.h.bf16 %v8997_v24  ;;  %v5930_v20 = vunpack.i.l.bf16 %v8997_v24 }
 0x629   : > { %v2411_v6 = vsel %vm2410_vm15, %v5910_v1, %v5911_v36  ;;  %v2610_v41 = vsel %vm2608_vm6, %v5935_v61, %v5936_v42  ;;  %v5033_v42 = vld [vmem:[#allocation7 + $0x30] sm:$0xf]  ;;  %v5155_v61 = vld [vmem:[#allocation7 + $0x34] sm:$0xf0]  ;;  %v5154_v36 = vld [vmem:[#allocation7 + $0x34] sm:$0xf] }
 0x62a   : > { %v2609_v14 = vsel %vm2608_vm6, %v5930_v20, %v5931_v60  ;;  %v5035_v1 = vld [vmem:[#allocation7 + $0x38] sm:$0xf0]  ;;  %v5034_v60 = vor.u32 %v5155_v61, %v5033_v42 }
 0x62b   : > { %v2634_v59 = vpack.c.bf16 %v2610_v41, %v2609_v14  ;;  %v10238_v14 = vld [vmem:[#allocation19_spill] sm:$0xff]  ;;  %v10239_v41 = vld [vmem:[#allocation20_spill] sm:$0xff] }
 0x62e   : > { %v5944_v23 = vpop.permute.xlu1 %5943  ;;  %v5924_v47 = vpop.permute.xlu2 %5923 }
 0x62f   : > { %v5946_v19 = vunpack.i.h.bf16 %v5944_v23  ;;  %v5945_v26 = vunpack.i.l.bf16 %v5944_v23  ;;  %v5949_v15 = vpop.permute.xlu0 %5948  ;;  %v5926_v16 = vunpack.i.h.bf16 %v5924_v47  ;;  %v5925_v32 = vunpack.i.l.bf16 %v5924_v47 }
 0x630   : > { %v5951_v29 = vunpack.i.h.bf16 %v5949_v15  ;;  %v5950_v49 = vunpack.i.l.bf16 %v5949_v15  ;;  %v2618_v23 = vpack.c.bf16 %v2412_v48, %v2411_v6  ;;  %v5026_v15 = vor.u32 %v5153_v44, %v5025_v18  ;;  %v10240_v18 = vld [vmem:[#allocation21_spill] sm:$0xff]  ;;  %v10242_v48 = vld [vmem:[#allocation23_spill] sm:$0xff] }
 0x631   : > { %v2464_v35 = vsel %vm2460_vm0, %v5945_v26, %v5946_v19  ;;  %v2381_v37 = vsel %vm10044_vm13, %v5925_v32, %v5926_v16  ;;  %v9038_v16 = vld [vmem:[#allocation9 + $0x20] sm:$0xff] }
 0x632   : > { %v2624_v12 = vpack.c.bf16 %v2464_v35, %v2463_v40  ;;  %v2619_v39 = vpack.c.bf16 %v2381_v37, %v2380_v53  ;;  %v2414_v58 = vsel %vm2410_vm15, %v5950_v49, %v5951_v29  ;;  %2639 = vperm.xlu2 %5982, %v9038_v16  }
 0x633   : > { %v2620_v50 = vpack.c.bf16 %v2414_v58, %v2413_v51 }
 0x634   : > { %2723 = vmatpush.bf16.msra.mxu2 %v2624_v12  ;;  %2687 = vmatpush.bf16.msra.mxu0 %v2619_v39  ;;  %v9046_v39 = vld [vmem:[#allocation9 + $0x38] sm:$0xff] }
 0x636   : > { %v5959_v10 = vpop.permute.xlu1 %5958  ;;  %v5939_v17 = vpop.permute.xlu2 %5938 }
 0x637   : > { %v5961_v34 = vunpack.i.h.bf16 %v5959_v10  ;;  %v5960_v62 = vunpack.i.l.bf16 %v5959_v10  ;;  %v5954_v30 = vpop.permute.xlu0 %5953  ;;  %v5941_v45 = vunpack.i.h.bf16 %v5939_v17  ;;  %v5940_v63 = vunpack.i.l.bf16 %v5939_v17 }
 0x638   : > { %v5956_v25 = vunpack.i.h.bf16 %v5954_v30  ;;  %v5955_v57 = vunpack.i.l.bf16 %v5954_v30  ;;  %2724 = vmatpush.bf16.msra.mxu2 %v2622_v7  ;;  %v5038_v10 = vor.u32 %v5154_v36, %v5035_v1 }
 0x639   : > { %v2612_v56 = vsel %vm2608_vm6, %v5960_v62, %v5961_v34  ;;  %v2586_v13 = vsel %vm10043_vm7, %v5940_v63, %v5941_v45  ;;  %v10232_v63 = vld [vmem:[#allocation15_spill] sm:$0xff] }
 0x63a   : > { %v2587_v3 = vsel %vm10043_vm7, %v5955_v57, %v5956_v25  ;;  %v2636_v38 = vpack.c.bf16 %v2612_v56, %v2611_v46  ;;  %2654 = vperm.xlu2 %5982, %v9046_v39   ;;  %v9059_v25 = vmul.u32 2, %v10232_v63 }
 0x63b   : > { %v2635_v24 = vpack.c.bf16 %v2587_v3, %v2586_v13  ;;  %v10233_v13 = vld [vmem:[#allocation16_spill] sm:$0xff]  ;;  %v10234_v3 = vld [vmem:[#allocation17_spill] sm:$0xff] }
 0x63c   : > { %2725 = vmatpush.bf16.msra.mxu2 %v2620_v50  ;;  %2744 = vmatpush.bf16.msra.mxu3 %v2636_v38  ;;  %vm2832_vm12 = vcmp.eq.s32.totalorder %v10233_v13, %v9059_v25  ;;  %vm2833_vm0 = vcmp.eq.s32.totalorder %v10234_v3, %v9059_v25  ;;  %v10235_v50 = vld [vmem:[#allocation18_spill] sm:$0xff]  ;;  %v10257_v3 = vld [vmem:[#allocation32_spill] sm:$0xff] }
 0x63d   : > { %2706 = vmatpush.bf16.msra.mxu1 %v2635_v24  ;;  %vm2848_vm15 = vcmp.eq.s32.totalorder %v10235_v50, %v9059_v25  ;;  %vm9070_vm6 = vmpackc.low %vm2833_vm0, %vm2832_vm12  ;;  %vm2846_vm12 = vcmp.eq.s32.totalorder %v10241_v31, %v9059_v25  ;;  %vm2847_vm0 = vcmp.eq.s32.totalorder %v10242_v48, %v9059_v25  ;;  %vm2824_vm11 = vcmp.eq.s32.totalorder %v10257_v3, %v9059_v25  ;;  %v10258_v50 = vld [vmem:[#allocation33_spill] sm:$0xff]  ;;  %v10266_v31 = vld [vmem:[#allocation39_spill] sm:$0xff] }
 0x63e   : > { %v5964_v0 = vpop.permute.xlu1 %5963  ;;  %v5969_v47 = vpop.permute.xlu2 %5968  ;;  %vm5061_vm9 = vmpackc.low %vm2847_vm0, %vm2846_vm12  ;;  %vm2825_vm5 = vcmp.eq.s32.totalorder %v10258_v50, %v9059_v25 }
 0x63f   : > { %v5966_v19 = vunpack.i.h.bf16 %v5964_v0  ;;  %v5965_v26 = vunpack.i.l.bf16 %v5964_v0  ;;  %v5971_v32 = vunpack.i.h.bf16 %v5969_v47  ;;  %v5970_v40 = vunpack.i.l.bf16 %v5969_v47  ;;  %v5974_v33 = vpop.permute.xlu0 %5973 }
 0x640   : > { %2726 = vmatpush.bf16.msra.mxu2 %v2618_v23  ;;  %2745 = vmatpush.bf16.msra.mxu3 %v2634_v59  ;;  %v5976_v12 = vunpack.i.h.bf16 %v5974_v33  ;;  %v5975_v29 = vunpack.i.l.bf16 %v5974_v33 }
 0x641   : > { %v2378_v35 = vsel %vm10044_vm13, %v5965_v26, %v5966_v19  ;;  %v2379_v53 = vsel %vm10044_vm13, %v5970_v40, %v5971_v32 }
 0x642   : > { %v2617_v37 = vpack.c.bf16 %v2379_v53, %v2378_v35  ;;  %v2584_v51 = vsel %vm10043_vm7, %v5975_v29, %v5976_v12  ;;  %6005 = vset.pattern.permute.xlu2 %v6895_v54 }
 0x643   : > { %2727 = vmatmul.bf16.vlgmr.msra.gmra.mxu2 %v5026_v15  ;;  %5041 = vmatmul.msk.bf16.vlgmr.msra.gmra.mxu3 %vm10228_vm4, %v5030_v52  ;;  %vm2849_vm4 = vcmp.eq.s32.totalorder %v10238_v14, %v9059_v25 }
 0x644   : > { %2688 = vmatpush.bf16.msra.mxu0 %v2617_v37 }
 0x646   : > { %v5979_v49 = vpop.permute.xlu1 %5978 }
 0x647   : > { %v5981_v11 = vunpack.i.h.bf16 %v5979_v49  ;;  %v5980_v7 = vunpack.i.l.bf16 %v5979_v49  ;;  %2689 = vmatmul.bf16.vlgmr.msra.gmra.mxu0 %v5026_v15 }
 0x648   : > { %5044 = vmatpush.bf16.msk.msrb.mxu0 %vm9070_vm6, %v10096_v2 }
 0x649   : > { %v2585_v43 = vsel %vm10043_vm7, %v5980_v7, %v5981_v11 }
 0x64a   : > { %v2633_v8 = vpack.c.bf16 %v2585_v43, %v2584_v51 }
 0x64c   : > { %2707 = vmatpush.bf16.msra.mxu1 %v2633_v8 }
 0x64f   : > { %5039 = vmatmul.msk.bf16.vlgmr.msra.gmra.mxu1 %vm10229_vm8, %v5030_v52  ;;  %vm2830_vm8 = vcmp.eq.s32.totalorder %v10239_v41, %v9059_v25  ;;  %v10263_v41 = vld [vmem:[#allocation36_spill] sm:$0xff] }
 0x651   : > { %v2645_v5 = vpop.permute.xlu0 %2644 }
 0x653   : > { %2732 = vmatmul.bf16.gmra.mxu2 %v5034_v60  ;;  %5042 = vmatmul.msk.bf16.gmra.mxu3 %vm10230_vm10, %v5038_v10  ;;  %vm2831_vm10 = vcmp.eq.s32.totalorder %v10240_v18, %v9059_v25  ;;  %v10264_v18 = vld [vmem:[#allocation37_spill] sm:$0xff] }
 0x654   : > { %vm9089_vm2 = vmpackc.low %vm2831_vm10, %vm2830_vm8 }
 0x655   : > { %5046 = vmatpush.bf16.msk.msrb.mxu0 %vm9089_vm2, %v10096_v2 }
 0x657   : > { %2694 = vmatmul.bf16.gmra.mxu0 %v5034_v60 }
 0x65f   : > { %5040 = vmatmul.msk.bf16.gmra.mxu1 %vm10231_vm14, %v5038_v10  ;;  %vm5059_vm14 = vmpackc.low %vm2849_vm4, %vm2848_vm15 }
 0x660   : > { %5060 = vmatpush.bf16.msk.msrb.mxu1 %vm5059_vm14, %v10096_v2 }
 0x664   : > { %5062 = vmatpush.bf16.msk.msrb.mxu1 %vm5061_vm9, %v10096_v2 }
 0x68c   : > { %v2640_v20 = vpop.permute.xlu2 %2639  ;;  %v2650_v47 = vpop.permute.xlu1 %2649 }
 0x694   : > { %v2655_v51 = vpop.permute.xlu2 %2654 }
 0x6c4   : > { %v2690_v34 = vpop.f32.mrf.mxu0 }
 0x6c5   : > { %v2691_v58 = vadd.f32 %v2690_v34, %v2640_v20 }
 0x6c6   : > { %v2728_v62 = vpop.f32.mrf.mxu2  ;;  %v2747_v17 = vpop.f32.mrf.mxu3 }
 0x6c7   : > { %v2729_v30 = vadd.f32 %v2728_v62, %v2640_v20 }
 0x6c9   : > { %v9056_v45 = vadd.f32 %v2747_v17, %v2729_v30 }
 0x6cb   : > { %v2758_v57 = vmax.f32 %v9056_v45, 0.0 }
 0x6cc   : > { %v2709_v46 = vpop.f32.mrf.mxu1  ;;  %v2692_v4 = vpop.f32.mrf.mxu0 }
 0x6cd   : > { %v9062_v56 = vadd.f32 %v2709_v46, %v2691_v58  ;;  %v2693_v59 = vadd.f32 %v2692_v4, %v2645_v5  ;;  %v10247_v58 = vld [vmem:[#allocation26_spill] sm:$0xff]  ;;  %v10252_v46 = vld [vmem:[#allocation29_spill] sm:$0xff]  ;;  %v10254_v4 = vld [vmem:[#allocation31_spill] sm:$0xff] }
 0x6ce   : > { %v2730_v38 = vpop.f32.mrf.mxu2  ;;  %v2749_v24 = vpop.f32.mrf.mxu3  ;;  %vm2844_vm4 = vcmp.eq.s32.totalorder %v10247_v58, %v9059_v25  ;;  %vm2827_vm12 = vcmp.eq.s32.totalorder %v10252_v46, %v9059_v25  ;;  %vm2843_vm7 = vcmp.eq.s32.totalorder %v10254_v4, %v9059_v25 }
 0x6cf   : > { %v2757_v44 = vmax.f32 %v9062_v56, 0.0  ;;  %v2731_v21 = vadd.f32 %v2730_v38, %v2645_v5  ;;  %v10253_v5 = vld [vmem:[#allocation30_spill] sm:$0xff] }
 0x6d0   : > { %vm2842_vm0 = vcmp.eq.s32.totalorder %v10253_v5, %v9059_v25  ;;  %v10259_v38 = vld [vmem:[#allocation34_spill] sm:$0xff] }
 0x6d1   : > { %v5985_v23 = vpack.i.bf16 %v2758_v57, %v2757_v44  ;;  %v9097_v19 = vadd.f32 %v2749_v24, %v2731_v21  ;;  %vm5065_vm13 = vmpackc.low %vm2843_vm7, %vm2842_vm0  ;;  %vm2840_vm3 = vcmp.eq.s32.totalorder %v10259_v38, %v9059_v25  ;;  %v10260_v24 = vld [vmem:[#allocation35_spill] sm:$0xff]  ;;  %v10265_v21 = vld [vmem:[#allocation38_spill] sm:$0xff]  ;;  %vm2839_vm0 = vcmp.eq.s32.totalorder %v10266_v31, %v9059_v25 }
 0x6d2   : > { %vm2841_vm1 = vcmp.eq.s32.totalorder %v10260_v24, %v9059_v25 }
 0x6d3   : > { %5986 = vrot.lane.b32.xlu1 %v5985_v23, %s6890_s11  ;;  %v2760_v35 = vmax.f32 %v9097_v19, 0.0  ;;  %vm5067_vm7 = vmpackc.low %vm2841_vm1, %vm2840_vm3  ;;  %v10269_v23 = vld [vmem:[#allocation40_spill] sm:$0xff] }
 0x6d4   : > { %v2711_v26 = vpop.f32.mrf.mxu1  ;;  %v2695_v15 = vpop.f32.mrf.mxu0  ;;  %vm2820_vm1 = vcmp.eq.s32.totalorder %v10269_v23, %v9059_v25 }
 0x6d5   : > { %v9104_v52 = vadd.f32 %v2711_v26, %v2693_v59  ;;  %v2696_v12 = vadd.f32 %v2695_v15, %v2650_v47  ;;  %v10270_v59 = vld [vmem:[#allocation41_spill] sm:$0xff]  ;;  %v10271_v26 = vld [vmem:[#allocation42_spill] sm:$0xff] }
 0x6d6   : > { %v2733_v32 = vpop.f32.mrf.mxu2  ;;  %v2752_v40 = vpop.f32.mrf.mxu3 }
 0x6d7   : > { %v2759_v33 = vmax.f32 %v9104_v52, 0.0  ;;  %v2734_v53 = vadd.f32 %v2733_v32, %v2650_v47  ;;  %v10272_v47 = vld [vmem:[#allocation43_spill] sm:$0xff]  ;;  %v10275_v32 = vld [vmem:[#allocation14_spill] sm:$0xff] }
 0x6d9   : > { %v5990_v37 = vpack.i.bf16 %v2760_v35, %v2759_v33  ;;  %v9112_v29 = vadd.f32 %v2752_v40, %v2734_v53  ;;  %v10276_v40 = vld [vmem:[#allocation44_spill] sm:$0xff]  ;;  %v10277_v53 = vld [vmem:[#allocation45_spill] sm:$0xff] }
 0x6db   : > { %5991 = vrot.lane.b32.xlu2 %v5990_v37, %s6890_s11  ;;  %v2762_v7 = vmax.f32 %v9112_v29, 0.0  ;;  %v10278_v37 = vld [vmem:[#allocation46_spill] sm:$0xff] }
 0x6dc   : > { %v2714_v49 = vpop.f32.mrf.mxu1  ;;  %v2697_v61 = vpop.f32.mrf.mxu0 }
 0x6dd   : > { %v9115_v11 = vadd.f32 %v2714_v49, %v2696_v12  ;;  %v2698_v60 = vadd.f32 %v2697_v61, %v2655_v51 }
 0x6de   : > { %v2735_v43 = vpop.f32.mrf.mxu2  ;;  %v2754_v36 = vpop.f32.mrf.mxu3 }
 0x6df   : > { %v2761_v8 = vmax.f32 %v9115_v11, 0.0  ;;  %v2736_v42 = vadd.f32 %v2735_v43, %v2655_v51 }
 0x6e1   : > { %v5995_v1 = vpack.i.bf16 %v2762_v7, %v2761_v8  ;;  %v9123_v10 = vadd.f32 %v2754_v36, %v2736_v42 }
 0x6e3   : > { %5996 = vrot.lane.b32.xlu0 %v5995_v1, %s6890_s11  ;;  %2949 = vperm.xlu2 %6005, %v9036_v55   ;;  %v2764_v62 = vmax.f32 %v9123_v10, 0.0 }
 0x6e4   : > { %v2716_v20 = vpop.f32.mrf.mxu1 }
 0x6e5   : > { %v9127_v34 = vadd.f32 %v2716_v20, %v2698_v60 }
 0x6e7   : > { %v2763_v17 = vmax.f32 %v9127_v34, 0.0 }
 0x6e9   : > { %v6000_v30 = vpack.i.bf16 %v2764_v62, %v2763_v17 }
 0x6eb   : > { %6001 = vrot.lane.b32.xlu1 %v6000_v30, %s6890_s11  ;;  %2953 = vperm.xlu0 %6006, %v9046_v39  }
 0x6ec   : > { %6008 = vset.pattern.permute.xlu2 %v6896_v28 }
 0x6ed   : > { %2973 = vperm.xlu2 %6008, %v9046_v39   ;;  %v10246_v39 = vld [vmem:[#allocation25_spill] sm:$0xff] }
 0x6ee   : > { %vm2829_vm15 = vcmp.eq.s32.totalorder %v10246_v39, %v9059_v25 }
 0x6f3   : > { %2969 = vperm.xlu1 %6007, %v9036_v55   ;;  %6011 = vset.pattern.permute.xlu0 %v6896_v28  ;;  %v10245_v55 = vld [vmem:[#allocation24_spill] sm:$0xff] }
 0x6f4   : > { %2961 = vperm.xlu0 %6011, %v9038_v16   ;;  %vm2828_vm9 = vcmp.eq.s32.totalorder %v10245_v55, %v9059_v25 }
 0x6f5   : > { %6010 = vset.pattern.permute.xlu2 %v6895_v54  ;;  %vm9159_vm10 = vmpackc.low %vm2829_vm15, %vm2828_vm9 }
 0x6f6   : > { %2945 = vperm.xlu2 %6010, %v9023_v22   ;;  %5048 = vmatpush.bf16.msk.msrb.mxu0 %vm9159_vm10, %v10096_v2 }
 0x6fb   : > { %6009 = vset.pattern.permute.xlu1 %v6895_v54 }
 0x6fc   : > { %2941 = vperm.xlu1 %6009, %v9038_v16   ;;  %6165 = vset.pattern.permute.xlu0 %v10178_v9  ;;  %v10248_v16 = vld [vmem:[#allocation27_spill] sm:$0xff] }
 0x6fd   : > { %vm2845_vm8 = vcmp.eq.s32.totalorder %v10248_v16, %v9059_v25 }
 0x6fe   : > { %6164 = vset.pattern.permute.xlu2 %v10178_v9  ;;  %vm5063_vm9 = vmpackc.low %vm2845_vm8, %vm2844_vm4  ;;  %vm2822_vm8 = vcmp.eq.s32.totalorder %v10263_v41, %v9059_v25 }
 0x6ff   : > { %5064 = vmatpush.bf16.msk.msrb.mxu1 %vm5063_vm9, %v10096_v2  ;;  %vm9191_vm4 = vmpackc.low %vm2825_vm5, %vm2824_vm11  ;;  %vm2821_vm11 = vcmp.eq.s32.totalorder %v10270_v59, %v9059_v25  ;;  %vm2837_vm9 = vcmp.eq.s32.totalorder %v10272_v47, %v9059_v25 }
 0x703   : > { %5066 = vmatpush.bf16.msk.msrb.mxu1 %vm5065_vm13, %v10096_v2  ;;  %vm2836_vm13 = vcmp.eq.s32.totalorder %v10271_v26, %v9059_v25 }
 0x704   : > { %6012 = vset.pattern.permute.xlu1 %v6896_v28 }
 0x705   : > { %2965 = vperm.xlu1 %6012, %v9023_v22   ;;  %v10251_v22 = vld [vmem:[#allocation28_spill] sm:$0xff] }
 0x706   : > { %vm2826_vm14 = vcmp.eq.s32.totalorder %v10251_v22, %v9059_v25 }
 0x707   : > { %vm9175_vm15 = vmpackc.low %vm2827_vm12, %vm2826_vm14  ;;  %vm2823_vm14 = vcmp.eq.s32.totalorder %v10264_v18, %v9059_v25  ;;  %vm2838_vm12 = vcmp.eq.s32.totalorder %v10265_v21, %v9059_v25  ;;  %5068 = vmatpush.bf16.msk.msrb.mxu1 %vm5067_vm7, %v10096_v2 }
 0x708   : > { %5050 = vmatpush.bf16.msk.msrb.mxu0 %vm9175_vm15, %v10096_v2  ;;  %vm9207_vm5 = vmpackc.low %vm2823_vm14, %vm2822_vm8  ;;  %vm2818_vm8 = vcmp.eq.s32.totalorder %v10275_v32, %v9059_v25  ;;  %vm2819_vm14 = vcmp.eq.s32.totalorder %v10276_v40, %v9059_v25 }
 0x709   : > { %vm5069_vm3 = vmpackc.low %vm2839_vm0, %vm2838_vm12  ;;  %vm2834_vm12 = vcmp.eq.s32.totalorder %v10277_v53, %v9059_v25  ;;  %vm2835_vm0 = vcmp.eq.s32.totalorder %v10278_v37, %v9059_v25 }
 0x70a   : > { %vm9223_vm7 = vmpackc.low %vm2821_vm11, %vm2820_vm1 }
 0x70b   : > { %5070 = vmatpush.bf16.msk.msrb.mxu1 %vm5069_vm3, %v10096_v2  ;;  %vm5071_vm3 = vmpackc.low %vm2837_vm9, %vm2836_vm13 }
 0x70c   : > { %5052 = vmatpush.bf16.msk.msrb.mxu0 %vm9191_vm4, %v10096_v2  ;;  %vm9239_vm1 = vmpackc.low %vm2819_vm14, %vm2818_vm8  ;;  %vm10290_vm8 = vcmask 1048320   ;;  %vm10291_vm14 = vcmask 261120  }
 0x70d   : > { %6163 = vset.pattern.permute.xlu1 %v10178_v9  ;;  %vm5073_vm11 = vmpackc.low %vm2835_vm0, %vm2834_vm12 }
 0x70e   : > { %vm10293_vm0 = vmmov %vm10290_vm8 }
 0x70f   : > { %5072 = vmatpush.bf16.msk.msrb.mxu1 %vm5071_vm3, %v10096_v2  ;;  %vm10294_vm3 = vmmov %vm10291_vm14 }
 0x710   : > { %5054 = vmatpush.bf16.msk.msrb.mxu0 %vm9207_vm5, %v10096_v2 }
 0x713   : > { %5074 = vmatpush.bf16.msk.msrb.mxu1 %vm5073_vm11, %v10096_v2  ;;  %vm10296_vm11 = vmmov %vm10293_vm0 }
 0x714   : > { %5056 = vmatpush.bf16.msk.msrb.mxu0 %vm9223_vm7, %v10096_v2 }
 0x718   : > { %5058 = vmatpush.bf16.msk.msrb.mxu0 %vm9239_vm1, %v10096_v2 }
 0x71c   : > { %5094 = vmatpush.bf16.msk.msra.mxu0 %vm9070_vm6, %v10096_v2 }
 0x720   : > { %5096 = vmatpush.bf16.msk.msra.mxu0 %vm9089_vm2, %v10096_v2  ;;  %vm10281_vm2 = vcmask 1039360  }
 0x721   : > { %vm10282_vm6 = vmmov %vm10281_vm2 }
 0x722   : > { %vm10287_vm13 = vmmov %vm10281_vm2 }
 0x723   : > { %vm10288_vm9 = vmmov %vm10281_vm2 }
 0x724   : > { %5098 = vmatpush.bf16.msk.msra.mxu0 %vm9159_vm10, %v10096_v2  ;;  %vm10283_vm10 = vmmov %vm10281_vm2 }
 0x728   : > { %5100 = vmatpush.bf16.msk.msra.mxu0 %vm9175_vm15, %v10096_v2  ;;  %vm10284_vm15 = vmmov %vm10281_vm2 }
 0x72c   : > { %5102 = vmatpush.bf16.msk.msra.mxu0 %vm9191_vm4, %v10096_v2  ;;  %vm10285_vm4 = vmmov %vm10281_vm2 }
 0x730   : > { %5104 = vmatpush.bf16.msk.msra.mxu0 %vm9207_vm5, %v10096_v2  ;;  %vm10286_vm5 = vmmov %vm10281_vm2 }
 0x734   : > { %5106 = vmatpush.bf16.msk.msra.mxu0 %vm9223_vm7, %v10096_v2  ;;  %vm10289_vm7 = vcmask 785664  }
 0x735   : > { %v5992_v25 = vpop.permute.xlu2 %5991  ;;  %vm10292_vm12 = vmmov %vm10289_vm7 }
 0x736   : > { %v5994_v49 = vunpack.i.h.bf16 %v5992_v25  ;;  %v5993_v6 = vunpack.i.l.bf16 %v5992_v25 }
 0x738   : > { %v2790_v51 = vsel %vm10281_vm2, %v5993_v6, %v5994_v49  ;;  %v2806_v43 = vsel %vm10282_vm6, %v5994_v49, %v5993_v6  ;;  %5108 = vmatpush.bf16.msk.msra.mxu0 %vm9239_vm1, %v10096_v2  ;;  %vm10295_vm1 = vmmov %vm10289_vm7 }
 0x739   : > { %v2811_v60 = vmax.f32 %v2759_v33, %v2790_v51  ;;  %v2812_v20 = vmax.f32 %v2760_v35, %v2806_v43  ;;  %vm10297_vm2 = vmmov %vm10294_vm3 }
 0x73a   : > { %vm10298_vm6 = vmmov %vm10295_vm1 }
 0x73d   : > { %v2950_v3 = vpop.permute.xlu2 %2949 }
 0x745   : > { %v5987_v0 = vpop.permute.xlu1 %5986 }
 0x746   : > { %v5989_v42 = vunpack.i.h.bf16 %v5987_v0  ;;  %v5988_v61 = vunpack.i.l.bf16 %v5987_v0 }
 0x747   : > { %v2974_v24 = vpop.permute.xlu2 %2973 }
 0x748   : > { %v2789_v36 = vsel %vm10283_vm10, %v5988_v61, %v5989_v42  ;;  %v2805_v1 = vsel %vm10284_vm15, %v5989_v42, %v5988_v61  ;;  %vm10299_vm10 = vmmov %vm10293_vm0 }
 0x749   : > { %v2809_v30 = vmax.f32 %v2757_v44, %v2789_v36  ;;  %v2810_v55 = vmax.f32 %v2758_v57, %v2805_v1  ;;  %vm10300_vm15 = vmmov %vm10297_vm2 }
 0x74b   : > { %v2898_v39 = vpack.c.bf16 %v2811_v60, %v2809_v30  ;;  %v2899_v58 = vpack.c.bf16 %v2812_v20, %v2810_v55 }
 0x74d   : > { %2910 = vmatmul.bf16.vlgmr.msrb.gmra.mxu0 %v2898_v39  ;;  %2929 = vmatmul.bf16.vlgmr.msrb.gmra.mxu1 %v2899_v58 }
 0x750   : > { %v2946_v29 = vpop.permute.xlu2 %2945 }
 0x755   : > { %v5997_v16 = vpop.permute.xlu0 %5996 }
 0x756   : > { %v5999_v52 = vunpack.i.h.bf16 %v5997_v16  ;;  %v5998_v33 = vunpack.i.l.bf16 %v5997_v16 }
 0x758   : > { %v2791_v56 = vsel %vm10285_vm4, %v5998_v33, %v5999_v52  ;;  %v2807_v44 = vsel %vm10286_vm5, %v5999_v52, %v5998_v33  ;;  %vm3092_vm4 = vcmask 523264   ;;  %vm10301_vm5 = vcmask 777216  }
 0x759   : > { %v2813_v22 = vmax.f32 %v2761_v8, %v2791_v56  ;;  %v2814_v46 = vmax.f32 %v2762_v7, %v2807_v44 }
 0x75d   : > { %v6002_v63 = vpop.permute.xlu1 %6001  ;;  %v2954_v38 = vpop.permute.xlu0 %2953 }
 0x75e   : > { %v6004_v19 = vunpack.i.h.bf16 %v6002_v63  ;;  %v6003_v35 = vunpack.i.l.bf16 %v6002_v63 }
 0x760   : > { %v2792_v45 = vsel %vm10287_vm13, %v6003_v35, %v6004_v19  ;;  %v2808_v57 = vsel %vm10288_vm9, %v6004_v19, %v6003_v35  ;;  %vm10302_vm13 = vmmov %vm10301_vm5 }
 0x761   : > { %v2815_v2 = vmax.f32 %v2763_v17, %v2792_v45  ;;  %v2816_v5 = vmax.f32 %v2764_v62, %v2808_v57  ;;  %vm10303_vm9 = vmmov %vm10301_vm5 }
 0x763   : > { %v2900_v4 = vpack.c.bf16 %v2815_v2, %v2813_v22  ;;  %v2901_v13 = vpack.c.bf16 %v2816_v5, %v2814_v46 }
 0x765   : > { %2915 = vmatmul.bf16.gmra.mxu0 %v2900_v4  ;;  %2934 = vmatmul.bf16.gmra.mxu1 %v2901_v13  ;;  %v2970_v50 = vpop.permute.xlu1 %2969 }
 0x766   : > { %v2962_v34 = vpop.permute.xlu0 %2961 }
 0x76e   : > { %v2942_v14 = vpop.permute.xlu1 %2941 }
 0x777   : > { %v2966_v21 = vpop.permute.xlu1 %2965 }
 0x7ca   : > { %v2911_v11 = vpop.f32.mrf.mxu0  ;;  %v2930_v8 = vpop.f32.mrf.mxu1 }
 0x7cb   : > { %v2931_v41 = vadd.f32 %v2930_v8, %v2911_v11 }
 0x7cd   : > { %v2956_v17 = vmul.f32 %v2942_v14, %v2931_v41 }
 0x7cf   : > { %v2976_v18 = vadd.f32 %v2962_v34, %v2956_v17 }
 0x7d1   : > { %2984 = vrot.lane.b32.xlu2 %v2976_v18, %s6878_s18 }
 0x7d2   : > { %v2913_v7 = vpop.f32.mrf.mxu0  ;;  %v2932_v10 = vpop.f32.mrf.mxu1 }
 0x7d3   : > { %v2933_v62 = vadd.f32 %v2932_v10, %v2913_v7 }
 0x7d5   : > { %v2957_v31 = vmul.f32 %v2946_v29, %v2933_v62 }
 0x7d7   : > { %v2977_v48 = vadd.f32 %v2966_v21, %v2957_v31 }
 0x7d9   : > { %2986 = vrot.lane.b32.xlu0 %v2977_v48, %s6878_s18 }
 0x7e2   : > { %v2916_v23 = vpop.f32.mrf.mxu0  ;;  %v2935_v59 = vpop.f32.mrf.mxu1 }
 0x7e3   : > { %v2936_v26 = vadd.f32 %v2935_v59, %v2916_v23 }
 0x7e5   : > { %v2958_v47 = vmul.f32 %v2950_v3, %v2936_v26 }
 0x7e7   : > { %v2978_v15 = vadd.f32 %v2970_v50, %v2958_v47 }
 0x7e9   : > { %2988 = vrot.lane.b32.xlu2 %v2978_v15, %s6878_s18 }
 0x7ea   : > { %v2918_v32 = vpop.f32.mrf.mxu0  ;;  %v2937_v40 = vpop.f32.mrf.mxu1 }
 0x7eb   : > { %v2938_v53 = vadd.f32 %v2937_v40, %v2918_v32 }
 0x7ed   : > { %v2959_v37 = vmul.f32 %v2954_v38, %v2938_v53 }
 0x7ef   : > { %v2979_v12 = vadd.f32 %v2974_v24, %v2959_v37 }
 0x7f1   : > { %2990 = vrot.lane.b32.xlu1 %v2979_v12, %s6878_s18 }
 0x82b   : > { %v2985_v25 = vpop.permute.xlu2 %2984 }
 0x82c   : > { %2996 = vst.msk [vmem:[#allocation2] sm:$0xff] %vm10289_vm7, %v2985_v25  ;;  %vm10304_vm7 = vmmov %vm10301_vm5 }
 0x82d   : > { %3000 = vst.msk [vmem:[#allocation2 + $0x20] sm:$0xff] %vm10290_vm8, %v2985_v25  ;;  %vm10305_vm8 = vcmask 785408  }
 0x82e   : > { %3001 = vst.msk [vmem:[#allocation2 + $0x28] sm:$0xff] %vm10291_vm14, %v2985_v25  ;;  %vm10306_vm14 = vmmov %vm10305_vm8 }
 0x833   : > { %v3032_v42 = vld [vmem:[#allocation2] sm:$0xff] }
 0x834   : > { %v3036_v49 = vld [vmem:[#allocation2 + $0x20] sm:$0xff] }
 0x835   : > { %v3037_v6 = vld [vmem:[#allocation2 + $0x28] sm:$0xff] }
 0x836   : > { %v6013_v0 = vpack.i.bf16 %v3037_v6, %v3036_v49 }
 0x838   : > { %6014 = vrot.lane.b32.xlu1 %v6013_v0, %s6898_s30 }
 0x840   : > { %6019 = vrot.lane.b32.xlu1 %v6013_v0, %s6879_s23 }
 0x843   : > { %v2989_v51 = vpop.permute.xlu2 %2988 }
 0x844   : > { %2998 = vst.msk [vmem:[#allocation2 + $0x90] sm:$0xff] %vm10292_vm12, %v2989_v51  ;;  %vm10307_vm12 = vmmov %vm10305_vm8 }
 0x845   : > { %3004 = vst.msk [vmem:[#allocation2 + $0xb0] sm:$0xff] %vm10293_vm0, %v2989_v51  ;;  %vm10308_vm0 = vmmov %vm10305_vm8 }
 0x846   : > { %3005 = vst.msk [vmem:[#allocation2 + $0xb8] sm:$0xff] %vm10294_vm3, %v2989_v51  ;;  %vm10309_vm3 = vcmask 793600  }
 0x848   : > { %6024 = vrot.lane.b32.xlu1 %v6013_v0, %s6897_s25 }
 0x84b   : > { %v2987_v43 = vpop.permute.xlu0 %2986  ;;  %v3034_v63 = vld [vmem:[#allocation2 + $0x90] sm:$0xff] }
 0x84c   : > { %2997 = vst.msk [vmem:[#allocation2 + $0x48] sm:$0xff] %vm10295_vm1, %v2987_v43  ;;  %v3040_v61 = vld [vmem:[#allocation2 + $0xb0] sm:$0xff]  ;;  %vm10310_vm1 = vmmov %vm10309_vm3 }
 0x84d   : > { %3002 = vst.msk [vmem:[#allocation2 + $0x68] sm:$0xff] %vm10296_vm11, %v2987_v43  ;;  %v3041_v36 = vld [vmem:[#allocation2 + $0xb8] sm:$0xff]  ;;  %vm10311_vm11 = vmmov %vm10310_vm1 }
 0x84e   : > { %3003 = vst.msk [vmem:[#allocation2 + $0x70] sm:$0xff] %vm10297_vm2, %v2987_v43  ;;  %v6073_v39 = vpack.i.bf16 %v3041_v36, %v3040_v61  ;;  %vm10312_vm2 = vmmov %vm10310_vm1 }
 0x850   : > { %6029 = vrot.lane.b32.xlu1 %v6013_v0, %s6903_s4 }
 0x853   : > { %v3033_v1 = vld [vmem:[#allocation2 + $0x48] sm:$0xff] }
 0x854   : > { %v3038_v60 = vld [vmem:[#allocation2 + $0x68] sm:$0xff]  ;;  %v6038_v20 = vpack.i.bf16 %v3033_v1, %v3032_v42 }
 0x855   : > { %v3039_v30 = vld [vmem:[#allocation2 + $0x70] sm:$0xff] }
 0x856   : > { %v6033_v55 = vpack.i.bf16 %v3039_v30, %v3038_v60  ;;  %6039 = vrot.lane.b32.xlu0 %v6038_v20, %s6898_s30 }
 0x858   : > { %6034 = vrot.lane.b32.xlu2 %v6033_v55, %s6898_s30  ;;  %6074 = vrot.lane.b32.xlu1 %v6073_v39, %s6898_s30 }
 0x85e   : > { %6049 = vrot.lane.b32.xlu0 %v6038_v20, %s6879_s23 }
 0x860   : > { %6044 = vrot.lane.b32.xlu2 %v6033_v55, %s6879_s23  ;;  %6079 = vrot.lane.b32.xlu1 %v6073_v39, %s6879_s23 }
 0x863   : > { %v2991_v58 = vpop.permute.xlu1 %2990 }
 0x864   : > { %2999 = vst.msk [vmem:[#allocation2 + $0xd8] sm:$0xff] %vm10298_vm6, %v2991_v58  ;;  %vm10313_vm6 = vcmask 801792  }
 0x865   : > { %3006 = vst.msk [vmem:[#allocation2 + $0xf8] sm:$0xff] %vm10299_vm10, %v2991_v58  ;;  %vm10314_vm10 = vmmov %vm10313_vm6 }
 0x866   : > { %3007 = vst.msk [vmem:[#allocation2 + $0x100] sm:$0xff] %vm10300_vm15, %v2991_v58  ;;  %6059 = vrot.lane.b32.xlu0 %v6038_v20, %s6897_s25  ;;  %vm10315_vm15 = vmmov %vm10313_vm6 }
 0x868   : > { %6054 = vrot.lane.b32.xlu2 %v6033_v55, %s6897_s25  ;;  %6084 = vrot.lane.b32.xlu1 %v6073_v39, %s6897_s25 }
 0x86b   : > { %v3035_v16 = vld [vmem:[#allocation2 + $0xd8] sm:$0xff] }
 0x86c   : > { %v3042_v52 = vld [vmem:[#allocation2 + $0xf8] sm:$0xff]  ;;  %v6108_v19 = vpack.i.bf16 %v3035_v16, %v3034_v63 }
 0x86d   : > { %v3043_v33 = vld [vmem:[#allocation2 + $0x100] sm:$0xff] }
 0x86e   : > { %6069 = vrot.lane.b32.xlu0 %v6038_v20, %s6903_s4  ;;  %v6103_v35 = vpack.i.bf16 %v3043_v33, %v3042_v52 }
 0x870   : > { %6064 = vrot.lane.b32.xlu2 %v6033_v55, %s6903_s4  ;;  %6089 = vrot.lane.b32.xlu1 %v6073_v39, %s6903_s4 }
 0x876   : > { %6109 = vrot.lane.b32.xlu0 %v6108_v19, %s6898_s30 }
 0x878   : > { %6094 = vrot.lane.b32.xlu1 %v6073_v39, %s6904_s5  ;;  %6104 = vrot.lane.b32.xlu2 %v6103_v35, %s6898_s30  ;;  %s6913_s30 = smov 88  }
 0x87e   : > { %6119 = vrot.lane.b32.xlu0 %v6108_v19, %s6879_s23 }
 0x880   : > { %6099 = vrot.lane.b32.xlu1 %v6013_v0, %s6904_s5  ;;  %6114 = vrot.lane.b32.xlu2 %v6103_v35, %s6879_s23 }
 0x886   : > { %6129 = vrot.lane.b32.xlu0 %v6108_v19, %s6897_s25 }
 0x888   : > { %6124 = vrot.lane.b32.xlu2 %v6103_v35, %s6897_s25  ;;  %s6912_s25 = smov 56  }
 0x88e   : > { %6139 = vrot.lane.b32.xlu0 %v6108_v19, %s6903_s4 }
 0x890   : > { %6134 = vrot.lane.b32.xlu2 %v6103_v35, %s6903_s4 }
 0x896   : > { %6154 = vrot.lane.b32.xlu0 %v6108_v19, %s6904_s5 }
 0x898   : > { %6144 = vrot.lane.b32.xlu2 %v6103_v35, %s6904_s5 }
 0x89e   : > { %6159 = vrot.lane.b32.xlu0 %v6038_v20, %s6904_s5 }
 0x8a0   : > { %6149 = vrot.lane.b32.xlu2 %v6033_v55, %s6904_s5 }
 0x8aa   : > { %v6015_v56 = vpop.permute.xlu1 %6014 }
 0x8ab   : > { %v6017_v18 = vunpack.i.h.bf16 %v6015_v56  ;;  %v6016_v29 = vunpack.i.l.bf16 %v6015_v56 }
 0x8ad   : > { %v3205_v32 = vsel %vm10303_vm9, %v6016_v29, %v6017_v18 }
 0x8b2   : > { %v6035_v44 = vpop.permute.xlu2 %6034  ;;  %v6020_v45 = vpop.permute.xlu1 %6019 }
 0x8b3   : > { %v6037_v7 = vunpack.i.h.bf16 %v6035_v44  ;;  %v6036_v10 = vunpack.i.l.bf16 %v6035_v44  ;;  %v6022_v6 = vunpack.i.h.bf16 %v6020_v45  ;;  %v6021_v61 = vunpack.i.l.bf16 %v6020_v45 }
 0x8b5   : > { %v3206_v40 = vsel %vm10304_vm7, %v6036_v10, %v6037_v7  ;;  %v3165_v19 = vsel %vm10307_vm12, %v6021_v61, %v6022_v6 }
 0x8ba   : > { %v6045_v57 = vpop.permute.xlu2 %6044  ;;  %v9341_v22 = vpop.permute.xlu1 %6024 }
 0x8bb   : > { %v6047_v36 = vunpack.i.h.bf16 %v6045_v57  ;;  %v6046_v1 = vunpack.i.l.bf16 %v6045_v57 }
 0x8bd   : > { %v3166_v35 = vsel %vm10308_vm0, %v6046_v1, %v6047_v36 }
 0x8c2   : > { %v9343_v2 = vpop.permute.xlu2 %6054  ;;  %v9345_v5 = vpop.permute.xlu1 %6029 }
 0x8c8   : > { %v6040_v46 = vpop.permute.xlu0 %6039 }
 0x8c9   : > { %v6042_v21 = vunpack.i.h.bf16 %v6040_v46  ;;  %v6041_v31 = vunpack.i.l.bf16 %v6040_v46 }
 0x8ca   : > { %v9347_v4 = vpop.permute.xlu2 %6064  ;;  %v6075_v50 = vpop.permute.xlu1 %6074 }
 0x8cb   : > { %v6077_v8 = vunpack.i.h.bf16 %v6075_v50  ;;  %v6076_v41 = vunpack.i.l.bf16 %v6075_v50  ;;  %v3213_v25 = vsel %vm3092_vm4, %v6041_v31, %v3205_v32  ;;  %v3214_v49 = vsel %vm3092_vm4, %v6042_v21, %v3206_v40 }
 0x8cc   : > { %v3263_v20 = vpack.c.bf16 %v3214_v49, %v3213_v25  ;;  %v6066_v25 = vunpack.i.l.bf16 %v9347_v4 }
 0x8cd   : > { %v3207_v59 = vsel %vm10301_vm5, %v6076_v41, %v6077_v8  ;;  %v6026_v8 = vunpack.i.l.bf16 %v9341_v22  ;;  %v6057_v41 = vunpack.i.h.bf16 %v9343_v2  ;;  %vm10316_vm5 = vmmov %vm10313_vm6 }
 0x8d0   : > { %v6050_v13 = vpop.permute.xlu0 %6049 }
 0x8d1   : > { %v6052_v30 = vunpack.i.h.bf16 %v6050_v13  ;;  %v6051_v55 = vunpack.i.l.bf16 %v6050_v13 }
 0x8d2   : > { %v6105_v38 = vpop.permute.xlu2 %6104  ;;  %v6080_v14 = vpop.permute.xlu1 %6079 }
 0x8d3   : > { %v6107_v34 = vunpack.i.h.bf16 %v6105_v38  ;;  %v6106_v17 = vunpack.i.l.bf16 %v6105_v38  ;;  %v6082_v0 = vunpack.i.h.bf16 %v6080_v14  ;;  %v6081_v51 = vunpack.i.l.bf16 %v6080_v14 }
 0x8d4   : > { %v3173_v44 = vsel %vm3092_vm4, %v6051_v55, %v3165_v19  ;;  %v3174_v45 = vsel %vm3092_vm4, %v6052_v30, %v3166_v35  ;;  %v6027_v38 = vunpack.i.h.bf16 %v9341_v22  ;;  %v5157_v19 = vld [vmem:[#allocation7 + $0x44] sm:$0xf0] }
 0x8d5   : > { %v3208_v26 = vsel %vm10302_vm13, %v6106_v17, %v6107_v34  ;;  %v3167_v16 = vsel %vm10305_vm8, %v6081_v51, %v6082_v0  ;;  %v6056_v34 = vunpack.i.l.bf16 %v9343_v2  ;;  %v3261_v18 = vpack.c.bf16 %v3174_v45, %v3173_v44 }
 0x8d6   : > { %v3125_v2 = vsel %vm10311_vm11, %v6026_v8, %v6027_v38  ;;  %vm10317_vm13 = vcmask 769024   ;;  %vm10326_vm11 = vcmask 785920  }
 0x8d7   : > { %vm10318_vm9 = vmmov %vm10317_vm13 }
 0x8d8   : > { %v9349_v3 = vpop.permute.xlu0 %6059  ;;  %vm10319_vm7 = vmmov %vm10318_vm9 }
 0x8d9   : > { %v6062_v29 = vunpack.i.h.bf16 %v9349_v3  ;;  %v6061_v7 = vunpack.i.l.bf16 %v9349_v3  ;;  %vm10320_vm8 = vmmov %vm10319_vm7 }
 0x8da   : > { %v6115_v11 = vpop.permute.xlu2 %6114  ;;  %v6085_v53 = vpop.permute.xlu1 %6084 }
 0x8db   : > { %v6117_v43 = vunpack.i.h.bf16 %v6115_v11  ;;  %v6116_v42 = vunpack.i.l.bf16 %v6115_v11  ;;  %v6087_v57 = vunpack.i.h.bf16 %v6085_v53  ;;  %v6086_v46 = vunpack.i.l.bf16 %v6085_v53 }
 0x8dc   : > { %v6032_v53 = vunpack.i.h.bf16 %v9345_v5 }
 0x8dd   : > { %v3168_v52 = vsel %vm10306_vm14, %v6116_v42, %v6117_v43  ;;  %v3127_v21 = vsel %vm10309_vm3, %v6086_v46, %v6087_v57  ;;  %v9397_v57 = vld [vmem:[#allocation9 + $0x40] sm:$0xff]  ;;  %v9399_v46 = vld [vmem:[#allocation9 + $0x50] sm:$0xff]  ;;  %vm10321_vm14 = vcmask 261120   ;;  %vm10324_vm3 = vcmask 523520  }
 0x8de   : > { %3269 = vperm.xlu1 %6163, %v9397_v57   ;;  %3279 = vperm.xlu0 %6165, %v9399_v46   ;;  %vm10322_vm12 = vmmov %vm10321_vm14 }
 0x8df   : > { %vm10323_vm0 = vmmov %vm10322_vm12 }
 0x8e0   : > { %v9351_v24 = vpop.permute.xlu0 %6069 }
 0x8e1   : > { %v6072_v0 = vunpack.i.h.bf16 %v9351_v24  ;;  %v6071_v51 = vunpack.i.l.bf16 %v9351_v24 }
 0x8e2   : > { %v6125_v37 = vpop.permute.xlu2 %6124  ;;  %v6090_v14 = vpop.permute.xlu1 %6089 }
 0x8e3   : > { %v6127_v13 = vunpack.i.h.bf16 %v6125_v37  ;;  %v6126_v50 = vunpack.i.l.bf16 %v6125_v37  ;;  %v6031_v37 = vunpack.i.l.bf16 %v9345_v5 }
 0x8e5   : > { %v3128_v31 = vsel %vm10310_vm1, %v6126_v50, %v6127_v13  ;;  %v3084_v30 = vsel %vm10315_vm15, %v6031_v37, %v6032_v53  ;;  %v5158_v37 = vld [vmem:[#allocation7 + $0x54] sm:$0xf]  ;;  %vm10325_vm1 = vmmov %vm10323_vm0 }
 0x8e6   : > { %v3093_v24 = vsel %vm3092_vm4, %v6071_v51, %v3084_v30  ;;  %6177 = vset.pattern.permute.xlu0 %v6895_v54  ;;  %vm10330_vm15 = vmmov %vm10323_vm0 }
 0x8e8   : > { %v6110_v62 = vpop.permute.xlu0 %6109 }
 0x8e9   : > { %v6112_v48 = vunpack.i.h.bf16 %v6110_v62  ;;  %v6111_v23 = vunpack.i.l.bf16 %v6110_v62 }
 0x8ea   : > { %v6135_v11 = vpop.permute.xlu2 %6134  ;;  %v6095_v43 = vpop.permute.xlu1 %6094 }
 0x8eb   : > { %v3216_v47 = vsel %vm3092_vm4, %v6112_v48, %v3208_v26  ;;  %v3215_v15 = vsel %vm3092_vm4, %v6111_v23, %v3207_v59  ;;  %v3126_v59 = vsel %vm10312_vm2, %v6056_v34, %v6057_v41  ;;  %v3133_v26 = vsel %vm3092_vm4, %v6061_v7, %v3125_v2  ;;  %v5156_v2 = vld [vmem:[#allocation7 + $0x44] sm:$0xf] }
 0x8ec   : > { %v3264_v12 = vpack.c.bf16 %v3216_v47, %v3215_v15  ;;  %v3134_v3 = vsel %vm3092_vm4, %v6062_v29, %v3126_v59  ;;  %v6092_v47 = vunpack.i.h.bf16 %v6090_v14  ;;  %v6091_v15 = vunpack.i.l.bf16 %v6090_v14  ;;  %v9405_v14 = vld [vmem:[#allocation9 + $0x48] sm:$0xff]  ;;  %v5079_v59 = vld [vmem:[#allocation7 + $0x48] sm:$0xf0] }
 0x8ed   : > { %v6137_v32 = vunpack.i.h.bf16 %v6135_v11  ;;  %v6136_v40 = vunpack.i.l.bf16 %v6135_v11  ;;  %v3259_v6 = vpack.c.bf16 %v3134_v3, %v3133_v26  ;;  %3274 = vperm.xlu2 %6164, %v9405_v14   ;;  %vm10327_vm2 = vcmask 1048320  }
 0x8ee   : > { %3311 = vmatpush.bf16.msrb.mxu2 %v3264_v12  ;;  %v6067_v12 = vunpack.i.h.bf16 %v9347_v4  ;;  %v3086_v1 = vsel %vm10313_vm6, %v6091_v15, %v6092_v47  ;;  %v5082_v15 = vor.u32 %v5156_v2, %v5079_v59  ;;  %vm10328_vm6 = vmmov %vm10324_vm3 }
 0x8f0   : > { %v6120_v60 = vpop.permute.xlu0 %6119  ;;  %v3085_v55 = vsel %vm10316_vm5, %v6066_v25, %v6067_v12  ;;  %v5087_v12 = vld [vmem:[#allocation7 + $0x58] sm:$0xf0]  ;;  %vm10331_vm5 = vmmov %vm10323_vm0 }
 0x8f1   : > { %v6122_v39 = vunpack.i.h.bf16 %v6120_v60  ;;  %v6121_v58 = vunpack.i.l.bf16 %v6120_v60  ;;  %v3087_v60 = vsel %vm10314_vm10, %v6136_v40, %v6137_v32  ;;  %v5085_v32 = vld [vmem:[#allocation7 + $0x50] sm:$0xf]  ;;  %v5159_v40 = vld [vmem:[#allocation7 + $0x54] sm:$0xf0]  ;;  %v5090_v25 = vor.u32 %v5158_v37, %v5087_v12  ;;  %vm10329_vm10 = vmmov %vm10326_vm11 }
 0x8f2   : > { %3312 = vmatpush.bf16.msrb.mxu2 %v3263_v20  ;;  %v6145_v42 = vpop.permute.xlu2 %6144  ;;  %v6100_v11 = vpop.permute.xlu1 %6099  ;;  %v5086_v53 = vor.u32 %v5159_v40, %v5085_v32  ;;  %v3491_v12 = vld [vmem:[#allocation3 + $0xb8] sm:$0xff] }
 0x8f3   : > { %v3175_v33 = vsel %vm3092_vm4, %v6121_v58, %v3167_v16  ;;  %v3176_v63 = vsel %vm3092_vm4, %v6122_v39, %v3168_v52  ;;  %v3094_v39 = vsel %vm3092_vm4, %v6072_v0, %v3085_v55  ;;  %v6097_v58 = vunpack.i.h.bf16 %v6095_v43  ;;  %3782 = vst.msk [vmem:[#allocation3 + $0xb8] sm:$0xff] %vm10323_vm0, %v10202_v27 }
 0x8f4   : > { %v3262_v56 = vpack.c.bf16 %v3176_v63, %v3175_v33  ;;  %v6096_v16 = vunpack.i.l.bf16 %v6095_v43  ;;  %v6147_v52 = vunpack.i.h.bf16 %v6145_v42  ;;  %v6146_v33 = vunpack.i.l.bf16 %v6145_v42  ;;  %v5077_v63 = vld [vmem:[#allocation7 + $0x40] sm:$0xf] }
 0x8f5   : > { %v3257_v45 = vpack.c.bf16 %v3094_v39, %v3093_v24  ;;  %v5078_v38 = vor.u32 %v5157_v19, %v5077_v63  ;;  %v6101_v29 = vunpack.i.l.bf16 %v6100_v11  ;;  %6176 = vset.pattern.permute.xlu2 %v6895_v54 }
 0x8f6   : > { %3313 = vmatpush.bf16.msrb.mxu2 %v3262_v56  ;;  %v3247_v13 = vsel %vm10317_vm13, %v6096_v16, %v6097_v58  ;;  %v3248_v50 = vsel %vm10318_vm9, %v6146_v33, %v6147_v52  ;;  %vm10332_vm13 = vmmov %vm10329_vm10 }
 0x8f7   : > { %vm10333_vm9 = vmmov %vm10324_vm3 }
 0x8f8   : > { %v6130_v17 = vpop.permute.xlu0 %6129 }
 0x8f9   : > { %v6132_v10 = vunpack.i.h.bf16 %v6130_v17  ;;  %v6131_v62 = vunpack.i.l.bf16 %v6130_v17 }
 0x8fa   : > { %3314 = vmatpush.bf16.msrb.mxu2 %v3261_v18  ;;  %v6150_v8 = vpop.permute.xlu2 %6149  ;;  %v6102_v18 = vunpack.i.h.bf16 %v6100_v11 }
 0x8fb   : > { %v3135_v48 = vsel %vm3092_vm4, %v6131_v62, %v3127_v21  ;;  %v3136_v22 = vsel %vm3092_vm4, %v6132_v10, %v3128_v31  ;;  %v6152_v7 = vunpack.i.h.bf16 %v6150_v8  ;;  %v6151_v10 = vunpack.i.l.bf16 %v6150_v8  ;;  %v3015_v62 = vld [vmem:[#allocation9 + $0x58] sm:$0xff] }
 0x8fc   : > { %v3260_v23 = vpack.c.bf16 %v3136_v22, %v3135_v48  ;;  %v3245_v22 = vsel %vm10319_vm7, %v6101_v29, %v6102_v18  ;;  %3284 = vperm.xlu1 %6163, %v3015_v62   ;;  %3407 = vperm.xlu0 %6177, %v3015_v62   ;;  %vm10334_vm7 = vmmov %vm10323_vm0 }
 0x8fe   : > { %3315 = vmatpush.bf16.msrb.mxu2 %v3260_v23  ;;  %v3246_v23 = vsel %vm10320_vm8, %v6151_v10, %v6152_v7  ;;  %vm10335_vm8 = vmmov %vm10329_vm10 }
 0x900   : > { %v6140_v49 = vpop.permute.xlu0 %6139 }
 0x901   : > { %v6142_v61 = vunpack.i.h.bf16 %v6140_v49  ;;  %v6141_v36 = vunpack.i.l.bf16 %v6140_v49 }
 0x902   : > { %3316 = vmatpush.bf16.msrb.mxu2 %v3259_v6 }
 0x903   : > { %v3095_v5 = vsel %vm3092_vm4, %v6141_v36, %v3086_v1  ;;  %v3096_v20 = vsel %vm3092_vm4, %v6142_v61, %v3087_v60 }
 0x904   : > { %v3258_v4 = vpack.c.bf16 %v3096_v20, %v3095_v5  ;;  %6178 = vset.pattern.permute.xlu1 %v6896_v28  ;;  %6182 = vset.pattern.permute.xlu0 %v6896_v28 }
 0x905   : > { %3415 = vperm.xlu0 %6182, %v9397_v57  }
 0x906   : > { %3317 = vmatpush.bf16.msrb.mxu2 %v3258_v4 }
 0x908   : > { %v6155_v35 = vpop.permute.xlu0 %6154 }
 0x909   : > { %v6157_v56 = vunpack.i.h.bf16 %v6155_v35  ;;  %v6156_v44 = vunpack.i.l.bf16 %v6155_v35 }
 0x90a   : > { %3318 = vmatpush.bf16.msrb.mxu2 %v3257_v45 }
 0x90b   : > { %v3256_v41 = vsel %vm3092_vm4, %v6157_v56, %v3248_v50  ;;  %v3255_v34 = vsel %vm3092_vm4, %v6156_v44, %v3247_v13 }
 0x90c   : > { %v3266_v17 = vpack.c.bf16 %v3256_v41, %v3255_v34 }
 0x90d   : > { %3319 = vmatmul.bf16.vlgmr.msrb.gmra.mxu2 %v5078_v38  ;;  %6305 = vset.pattern.permute.xlu0 %v10178_v9 }
 0x90e   : > { %3336 = vmatpush.bf16.msrb.mxu3 %v3266_v17 }
 0x910   : > { %v6160_v21 = vpop.permute.xlu0 %6159 }
 0x911   : > { %v6162_v31 = vunpack.i.h.bf16 %v6160_v21  ;;  %v6161_v48 = vunpack.i.l.bf16 %v6160_v21 }
 0x913   : > { %v3253_v26 = vsel %vm3092_vm4, %v6161_v48, %v3245_v22  ;;  %v3254_v3 = vsel %vm3092_vm4, %v6162_v31, %v3246_v23 }
 0x914   : > { %v3265_v47 = vpack.c.bf16 %v3254_v3, %v3253_v26 }
 0x916   : > { %3337 = vmatpush.bf16.msrb.mxu3 %v3265_v47 }
 0x919   : > { %5091 = vmatmul.msk.bf16.vlgmr.msrb.gmra.mxu3 %vm10321_vm14, %v5082_v15  ;;  %vm10336_vm14 = vmmov %vm10324_vm3 }
 0x91d   : > { %3324 = vmatmul.bf16.gmra.mxu2 %v5086_v53 }
 0x929   : > { %5092 = vmatmul.msk.bf16.gmra.mxu3 %vm10322_vm12, %v5090_v25  ;;  %vm10337_vm12 = vmmov %vm10327_vm2 }
 0x947   : > { %v3275_v42 = vpop.permute.xlu2 %3274 }
 0x950   : > { %v3270_v6 = vpop.permute.xlu1 %3269  ;;  %v3280_v24 = vpop.permute.xlu0 %3279 }
 0x96e   : > { %v3285_v58 = vpop.permute.xlu1 %3284  ;;  %v3408_v7 = vpop.permute.xlu0 %3407 }
 0x990   : > { %v3320_v49 = vpop.f32.mrf.mxu2 }
 0x991   : > { %v3321_v43 = vadd.f32 %v3320_v49, %v3270_v6 }
 0x998   : > { %v3322_v51 = vpop.f32.mrf.mxu2 }
 0x999   : > { %v3323_v36 = vadd.f32 %v3322_v51, %v3275_v42 }
 0x99c   : > { %v3339_v0 = vpop.f32.mrf.mxu3 }
 0x99d   : > { %v3340_v61 = vadd.f32 %v3339_v0, %v3321_v43  ;;  %v3493_v43 = vld [vmem:[#allocation3 + $0x100] sm:$0xff] }
 0x99e   : > { %3783 = vst.msk [vmem:[#allocation3 + $0x100] sm:$0xff] %vm10330_vm15, %v10202_v27  ;;  %vm3618_vm15 = vcmask 506880  }
 0x99f   : > { %v3349_v20 = vmax.f32 %v3340_v61, 0.0 }
 0x9a0   : > { %v3325_v5 = vpop.f32.mrf.mxu2 }
 0x9a1   : > { %v3326_v39 = vadd.f32 %v3325_v5, %v3280_v24 }
 0x9a4   : > { %v3341_v1 = vpop.f32.mrf.mxu3 }
 0x9a5   : > { %v3342_v60 = vadd.f32 %v3341_v1, %v3323_v36 }
 0x9a7   : > { %v3350_v4 = vmax.f32 %v3342_v60, 0.0 }
 0x9a8   : > { %v3327_v16 = vpop.f32.mrf.mxu2 }
 0x9a9   : > { %v6166_v30 = vpack.i.bf16 %v3350_v4, %v3349_v20  ;;  %v3328_v33 = vadd.f32 %v3327_v16, %v3285_v58  ;;  %v9484_v16 = vld [vmem:[#allocation3 + $0x70] sm:$0xff] }
 0x9ab   : > { %6167 = vrot.lane.b32.xlu2 %v6166_v30, %s6890_s11 }
 0x9ac   : > { %v3344_v55 = vpop.f32.mrf.mxu3 }
 0x9ad   : > { %v3345_v52 = vadd.f32 %v3344_v55, %v3326_v39  ;;  %v9482_v39 = vld [vmem:[#allocation3 + $0x28] sm:$0xff] }
 0x9af   : > { %v3351_v35 = vmax.f32 %v3345_v52, 0.0 }
 0x9b3   : > { %3403 = vperm.xlu2 %6176, %v9399_v46  }
 0x9b4   : > { %v3346_v63 = vpop.f32.mrf.mxu3 }
 0x9b5   : > { %v3347_v19 = vadd.f32 %v3346_v63, %v3328_v33 }
 0x9b7   : > { %v3352_v56 = vmax.f32 %v3347_v19, 0.0 }
 0x9b9   : > { %v6171_v44 = vpack.i.bf16 %v3352_v56, %v3351_v35 }
 0x9bb   : > { %6172 = vrot.lane.b32.xlu1 %v6171_v44, %s6890_s11  ;;  %6179 = vset.pattern.permute.xlu2 %v6896_v28  ;;  %s6909_s11 = smov 68  }
 0x9bc   : > { %3427 = vperm.xlu2 %6179, %v3015_v62   ;;  %v3416_v62 = vpop.permute.xlu0 %3415 }
 0x9c3   : > { %3423 = vperm.xlu1 %6178, %v9399_v46  }
 0x9c4   : > { %6181 = vset.pattern.permute.xlu2 %v6895_v54 }
 0x9c5   : > { %3399 = vperm.xlu2 %6181, %v9405_v14  }
 0x9cb   : > { %6180 = vset.pattern.permute.xlu1 %v6895_v54 }
 0x9cc   : > { %3395 = vperm.xlu1 %6180, %v9397_v57  }
 0x9cd   : > { %6304 = vset.pattern.permute.xlu2 %v10178_v9 }
 0x9d4   : > { %6183 = vset.pattern.permute.xlu1 %v6896_v28 }
 0x9d5   : > { %3419 = vperm.xlu1 %6183, %v9405_v14  }
 0x9dd   : > { %6306 = vset.pattern.permute.xlu1 %v6895_v54 }
 0xa05   : > { %v6168_v45 = vpop.permute.xlu2 %6167 }
 0xa06   : > { %v6170_v13 = vunpack.i.h.bf16 %v6168_v45  ;;  %v6169_v50 = vunpack.i.l.bf16 %v6168_v45 }
 0xa08   : > { %v3370_v46 = vmax.f32 %v3350_v4, %v6170_v13  ;;  %v3369_v38 = vmax.f32 %v3349_v20, %v6169_v50 }
 0xa0a   : > { %v3373_v11 = vpack.c.bf16 %v3370_v46, %v3369_v38 }
 0xa0c   : > { %3383 = vmatmul.bf16.vlgmr.msra.gmra.mxu0 %v3373_v11 }
 0xa0d   : > { %v3404_v48 = vpop.permute.xlu2 %3403 }
 0xa16   : > { %v3428_v59 = vpop.permute.xlu2 %3427 }
 0xa1f   : > { %v3400_v32 = vpop.permute.xlu2 %3399 }
 0xa2d   : > { %v6173_v8 = vpop.permute.xlu1 %6172 }
 0xa2e   : > { %v6175_v41 = vunpack.i.h.bf16 %v6173_v8  ;;  %v6174_v34 = vunpack.i.l.bf16 %v6173_v8 }
 0xa30   : > { %v3372_v17 = vmax.f32 %v3352_v56, %v6175_v41  ;;  %v3371_v57 = vmax.f32 %v3351_v35, %v6174_v34 }
 0xa32   : > { %v3374_v18 = vpack.c.bf16 %v3372_v17, %v3371_v57 }
 0xa34   : > { %3388 = vmatmul.bf16.gmra.mxu0 %v3374_v18 }
 0xa35   : > { %v3424_v29 = vpop.permute.xlu1 %3423 }
 0xa3e   : > { %v3396_v10 = vpop.permute.xlu1 %3395 }
 0xa47   : > { %v3420_v53 = vpop.permute.xlu1 %3419 }
 0xa89   : > { %v3384_v14 = vpop.f32.mrf.mxu0 }
 0xa8a   : > { %v3410_v21 = vmul.f32 %v3396_v10, %v3384_v14 }
 0xa8c   : > { %v3430_v31 = vadd.f32 %v3416_v62, %v3410_v21 }
 0xa8e   : > { %3438 = vrot.lane.b32.xlu1 %v3430_v31, %s6878_s18 }
 0xa91   : > { %v3386_v22 = vpop.f32.mrf.mxu0 }
 0xa92   : > { %v3411_v40 = vmul.f32 %v3400_v32, %v3386_v22 }
 0xa94   : > { %v3431_v37 = vadd.f32 %v3420_v53, %v3411_v40 }
 0xab1   : > { %v3389_v23 = vpop.f32.mrf.mxu0 }
 0xab2   : > { %v3412_v2 = vmul.f32 %v3404_v48, %v3389_v23 }
 0xab4   : > { %v3432_v26 = vadd.f32 %v3424_v29, %v3412_v2 }
 0xab6   : > { %3458 = vrot.lane.b32.xlu2 %v3432_v26, %s6905_s7 }
 0xab9   : > { %v3391_v3 = vpop.f32.mrf.mxu0 }
 0xaba   : > { %v3413_v47 = vmul.f32 %v3408_v7, %v3391_v3 }
 0xabc   : > { %v3433_v15 = vadd.f32 %v3428_v59, %v3413_v47 }
 0xabe   : > { %3442 = vrot.lane.b32.xlu2 %v3432_v26, %s6878_s18  ;;  %3444 = vrot.lane.b32.xlu0 %v3433_v15, %s6878_s18 }
 0xabf   : > { %3460 = vrot.lane.b32.xlu1 %v3433_v15, %s6905_s7 }
 0xac6   : > { %3440 = vrot.lane.b32.xlu2 %v3431_v37, %s6878_s18  ;;  %3454 = vrot.lane.b32.xlu0 %v3430_v31, %s6905_s7 }
 0xac7   : > { %3456 = vrot.lane.b32.xlu1 %v3431_v37, %s6905_s7 }
 0xb00   : > { %v3439_v25 = vpop.permute.xlu1 %3438 }
 0xb01   : > { %3450 = vst.msk [vmem:[#allocation3] sm:$0xff] %vm10324_vm3, %v3439_v25  ;;  %vm10338_vm3 = vmmov %vm10335_vm8 }
 0xb02   : > { %3474 = vst.msk [vmem:[#allocation3] sm:$0xff] %vm10325_vm1, %v10202_v27  ;;  %vm10339_vm1 = vmmov %vm10327_vm2 }
 0xb03   : > { %3476 = vst.msk [vmem:[#allocation3] sm:$0xff] %vm10326_vm11, %v10202_v27  ;;  %vm10340_vm11 = vmmov %vm10338_vm3 }
 0xb0a   : > { %v3482_v36 = vld [vmem:[#allocation3] sm:$0xff] }
 0xb10   : > { %v3459_v49 = vpop.permute.xlu2 %3458 }
 0xb11   : > { %3468 = vst.msk [vmem:[#allocation3 + $0xb0] sm:$0xff] %vm10327_vm2, %v3459_v49  ;;  %vm10341_vm2 = vmmov %vm10339_vm1 }
 0xb18   : > { %v3443_v6 = vpop.permute.xlu2 %3442  ;;  %v3490_v0 = vld [vmem:[#allocation3 + $0xb0] sm:$0xff] }
 0xb19   : > { %3452 = vst.msk [vmem:[#allocation3 + $0x90] sm:$0xff] %vm10328_vm6, %v3443_v6  ;;  %v6219_v51 = vpack.i.bf16 %v3491_v12, %v3490_v0  ;;  %vm10342_vm6 = vmmov %vm10338_vm3 }
 0xb1a   : > { %3780 = vst.msk [vmem:[#allocation3 + $0xb0] sm:$0xff] %vm10329_vm10, %v10202_v27  ;;  %vm10343_vm10 = vmmov %vm10338_vm3 }
 0xb20   : > { %v3484_v42 = vld [vmem:[#allocation3 + $0x90] sm:$0xff]  ;;  %v3441_v61 = vpop.permute.xlu2 %3440 }
 0xb21   : > { %3776 = vst.msk [vmem:[#allocation3 + $0x90] sm:$0xff] %vm10331_vm5, %v10202_v27  ;;  %vm10344_vm5 = vmmov %vm10323_vm0 }
 0xb22   : > { %3778 = vst.msk [vmem:[#allocation3 + $0x90] sm:$0xff] %vm10332_vm13, %v10202_v27  ;;  %vm10345_vm13 = vmmov %vm10323_vm0 }
 0xb23   : > { %3451 = vst.msk [vmem:[#allocation3 + $0x48] sm:$0xff] %vm10333_vm9, %v3441_v61  ;;  %vm10346_vm9 = vmmov %vm10323_vm0 }
 0xb24   : > { %3475 = vst.msk [vmem:[#allocation3 + $0x48] sm:$0xff] %vm10334_vm7, %v10202_v27  ;;  %vm10347_vm7 = vmmov %vm10323_vm0 }
 0xb25   : > { %3477 = vst.msk [vmem:[#allocation3 + $0x48] sm:$0xff] %vm10335_vm8, %v10202_v27  ;;  %vm10348_vm8 = vmmov %vm10323_vm0 }
 0xb2c   : > { %v3483_v1 = vld [vmem:[#allocation3 + $0x48] sm:$0xff] }
 0xb2d   : > { %v6204_v60 = vpack.i.bf16 %v3483_v1, %v3482_v36 }
 0xb2f   : > { %6205 = vrot.lane.b32.xlu1 %v6204_v60, %s6904_s5 }
 0xb30   : > { %v3445_v5 = vpop.permute.xlu0 %3444 }
 0xb31   : > { %3453 = vst.msk [vmem:[#allocation3 + $0xd8] sm:$0xff] %vm10336_vm14, %v3445_v5  ;;  %v3461_v20 = vpop.permute.xlu1 %3460  ;;  %vm10349_vm14 = vmmov %vm10323_vm0 }
 0xb32   : > { %3469 = vst.msk [vmem:[#allocation3 + $0xf8] sm:$0xff] %vm10337_vm12, %v3461_v20  ;;  %vm10350_vm12 = vmmov %vm10323_vm0 }
 0xb37   : > { %6210 = vrot.lane.b32.xlu1 %v6204_v60, %s6879_s23 }
 0xb38   : > { %v3485_v4 = vld [vmem:[#allocation3 + $0xd8] sm:$0xff]  ;;  %v3455_v30 = vpop.permute.xlu0 %3454 }
 0xb39   : > { %3777 = vst.msk [vmem:[#allocation3 + $0xd8] sm:$0xff] %vm10323_vm0, %v10202_v27  ;;  %v3457_v55 = vpop.permute.xlu1 %3456  ;;  %v3492_v24 = vld [vmem:[#allocation3 + $0xf8] sm:$0xff]  ;;  %v6234_v63 = vpack.i.bf16 %v3485_v4, %v3484_v42 }
 0xb3a   : > { %3779 = vst.msk [vmem:[#allocation3 + $0xd8] sm:$0xff] %vm10338_vm3, %v10202_v27  ;;  %v6269_v56 = vpack.i.bf16 %v3492_v24, %v3490_v0  ;;  %vm10351_vm3 = vmmov %vm10323_vm0 }
 0xb3b   : > { %3466 = vst.msk [vmem:[#allocation3 + $0x20] sm:$0xff] %vm10339_vm1, %v3455_v30  ;;  %vm10352_vm1 = vmmov %vm10323_vm0 }
 0xb3c   : > { %3478 = vst.msk [vmem:[#allocation3 + $0x20] sm:$0xff] %vm10340_vm11, %v10202_v27  ;;  %vm10353_vm11 = vmmov %vm10323_vm0 }
 0xb3d   : > { %3467 = vst.msk [vmem:[#allocation3 + $0x68] sm:$0xff] %vm10341_vm2, %v3457_v55  ;;  %vm10354_vm2 = vmmov %vm10323_vm0 }
 0xb3e   : > { %3479 = vst.msk [vmem:[#allocation3 + $0x68] sm:$0xff] %vm10342_vm6, %v10202_v27  ;;  %vm3659_vm6 = vcmask 490496  }
 0xb3f   : > { %6215 = vrot.lane.b32.xlu1 %v6204_v60, %s6903_s4  ;;  %3781 = vst.msk [vmem:[#allocation3 + $0xf8] sm:$0xff] %vm10343_vm10, %v10202_v27  ;;  %v6229_v27 = vpack.i.bf16 %v3493_v43, %v3492_v24  ;;  %vm10355_vm10 = vmmov %vm10323_vm0 }
 0xb43   : > { %v3486_v58 = vld [vmem:[#allocation3 + $0x20] sm:$0xff] }
 0xb44   : > { %v6184_v52 = vpack.i.bf16 %v9482_v39, %v3486_v58 }
 0xb45   : > { %v3488_v33 = vld [vmem:[#allocation3 + $0x68] sm:$0xff] }
 0xb46   : > { %6185 = vrot.lane.b32.xlu2 %v6184_v52, %s6906_s8  ;;  %v6189_v19 = vpack.i.bf16 %v9484_v16, %v3488_v33  ;;  %v6194_v35 = vpack.i.bf16 %v3488_v33, %v3486_v58 }
 0xb47   : > { %6235 = vrot.lane.b32.xlu1 %v6234_v63, %s6904_s5  ;;  %s4868_s5 = sshll.u32 %s7037_s22, 2 }
 0xb48   : > { %6190 = vrot.lane.b32.xlu0 %v6189_v19, %s6906_s8 }
 0xb4e   : > { %6195 = vrot.lane.b32.xlu2 %v6194_v35, %s6905_s7 }
 0xb4f   : > { %6240 = vrot.lane.b32.xlu1 %v6184_v52, %s6907_s17 }
 0xb50   : > { %6230 = vrot.lane.b32.xlu0 %v6229_v27, %s6906_s8 }
 0xb56   : > { %6200 = vrot.lane.b32.xlu2 %v6194_v35, %s6908_s20 }
 0xb57   : > { %6270 = vrot.lane.b32.xlu1 %v6269_v56, %s6908_s20 }
 0xb58   : > { %6260 = vrot.lane.b32.xlu0 %v6269_v56, %s6905_s7 }
 0xb5e   : > { %6220 = vrot.lane.b32.xlu2 %v6219_v51, %s6906_s8  ;;  %s5167_s8 = sshll.u32 %s6962_s16, 2 }
 0xb5f   : > { %6295 = vrot.lane.b32.xlu1 %v6269_v56, %s6909_s11 }
 0xb60   : > { %6265 = vrot.lane.b32.xlu0 %v6234_v63, %s6903_s4  ;;  %s6918_s4 = smov 112  }
 0xb66   : > { %6225 = vrot.lane.b32.xlu2 %v6219_v51, %s6907_s17 }
 0xb67   : > { %6300 = vrot.lane.b32.xlu1 %v6194_v35, %s6909_s11 }
 0xb68   : > { %6275 = vrot.lane.b32.xlu0 %v6229_v27, %s6907_s17 }
 0xb6e   : > { %6245 = vrot.lane.b32.xlu2 %v6234_v63, %s6879_s23 }
 0xb70   : > { %6280 = vrot.lane.b32.xlu0 %v6234_v63, %s6910_s21 }
 0xb76   : > { %6250 = vrot.lane.b32.xlu2 %v6189_v19, %s6907_s17 }
 0xb78   : > { %6285 = vrot.lane.b32.xlu0 %v6234_v63, %s6911_s24 }
 0xb7e   : > { %6255 = vrot.lane.b32.xlu2 %v6204_v60, %s6910_s21 }
 0xb80   : > { %6290 = vrot.lane.b32.xlu0 %v6204_v60, %s6911_s24 }
 0xba0   : > { %v6186_v44 = vpop.permute.xlu2 %6185 }
 0xba1   : > { %v6206_v45 = vpop.permute.xlu1 %6205  ;;  %v6188_v7 = vunpack.i.h.bf16 %v6186_v44  ;;  %v6187_v62 = vunpack.i.l.bf16 %v6186_v44 }
 0xba2   : > { %v6208_v22 = vunpack.i.h.bf16 %v6206_v45  ;;  %v6207_v26 = vunpack.i.l.bf16 %v6206_v45 }
 0xba3   : > { %v3619_v32 = vsel %vm3618_vm15, %v6187_v62, %v6188_v7 }
 0xba4   : > { %v3627_v43 = vsel %vm10347_vm7, %v6207_v26, %v3619_v32  ;;  %vm10360_vm7 = vmmov %vm10323_vm0 }
 0xba8   : > { %v6196_v13 = vpop.permute.xlu2 %6195 }
 0xba9   : > { %v6211_v50 = vpop.permute.xlu1 %6210  ;;  %v6198_v49 = vunpack.i.h.bf16 %v6196_v13  ;;  %v6197_v6 = vunpack.i.l.bf16 %v6196_v13 }
 0xbaa   : > { %v6213_v0 = vunpack.i.h.bf16 %v6211_v50  ;;  %v6212_v42 = vunpack.i.l.bf16 %v6211_v50 }
 0xbac   : > { %v3582_v4 = vsel %vm10350_vm12, %v6212_v42, %v6197_v6  ;;  %v3583_v30 = vsel %vm10323_vm0, %v6213_v0, %v6198_v49  ;;  %v5160_v49 = vld [vmem:[#allocation7 + $0x64] sm:$0xf]  ;;  %v5113_v6 = vld [vmem:[#allocation7 + $0x68] sm:$0xf0]  ;;  %vm10363_vm12 = vmmov %vm10323_vm0 }
 0xbad   : > { %v3676_v58 = vpack.c.bf16 %v3583_v30, %v3582_v4 }
 0xbb0   : > { %v9503_v46 = vpop.permute.xlu2 %6200 }
 0xbb1   : > { %v9505_v38 = vpop.permute.xlu1 %6215  ;;  %v6203_v35 = vunpack.i.h.bf16 %v9503_v46  ;;  %v6202_v27 = vunpack.i.l.bf16 %v9503_v46  ;;  %v3473_v46 = vld [vmem:[#allocation9 + $0x68] sm:$0xff] }
 0xbb2   : > { %v6218_v56 = vunpack.i.h.bf16 %v9505_v38  ;;  %v6217_v44 = vunpack.i.l.bf16 %v9505_v38  ;;  %3689 = vperm.xlu0 %6305, %v3473_v46  }
 0xbb8   : > { %v6221_v11 = vpop.permute.xlu2 %6220 }
 0xbb9   : > { %v6236_v41 = vpop.permute.xlu1 %6235  ;;  %v6223_v34 = vunpack.i.h.bf16 %v6221_v11  ;;  %v6222_v17 = vunpack.i.l.bf16 %v6221_v11 }
 0xbba   : > { %v6191_v8 = vpop.permute.xlu0 %6190  ;;  %v6237_v10 = vunpack.i.l.bf16 %v6236_v41  ;;  %v6238_v23 = vunpack.i.h.bf16 %v6236_v41  ;;  %v3555_v41 = vsel %vm10354_vm2, %v6218_v56, %v6203_v35  ;;  %6372 = vset.pattern.permute.xlu0 %v6895_v54  ;;  %vm3872_vm2 = vcmask 457728  }
 0xbbb   : > { %v6193_v18 = vunpack.i.h.bf16 %v6191_v8  ;;  %v6192_v29 = vunpack.i.l.bf16 %v6191_v8  ;;  %v3621_v21 = vsel %vm3618_vm15, %v6222_v17, %v6223_v34  ;;  %v3554_v8 = vsel %vm10353_vm11, %v6217_v44, %v6202_v27 }
 0xbbc   : > { %v3629_v3 = vsel %vm10344_vm5, %v6237_v10, %v3621_v21  ;;  %v3674_v17 = vpack.c.bf16 %v3555_v41, %v3554_v8  ;;  %vm10357_vm5 = vmmov %vm10323_vm0 }
 0xbbd   : > { %v3620_v2 = vsel %vm3618_vm15, %v6192_v29, %v6193_v18  ;;  %v3472_v18 = vld [vmem:[#allocation9 + $0x60] sm:$0xff] }
 0xbbe   : > { %v3628_v37 = vsel %vm10346_vm9, %v6208_v22, %v3620_v2  ;;  %3735 = vperm.xlu1 %6306, %v3472_v18   ;;  %3684 = vperm.xlu2 %6304, %v3472_v18   ;;  %vm10359_vm9 = vmmov %vm10323_vm0 }
 0xbbf   : > { %v3678_v1 = vpack.c.bf16 %v3628_v37, %v3627_v43  ;;  %v5116_v43 = vor.u32 %v5160_v49, %v5113_v6 }
 0xbc0   : > { %v9507_v57 = vpop.permute.xlu2 %6225 }
 0xbc1   : > { %v9513_v47 = vpop.permute.xlu1 %6240  ;;  %v6228_v38 = vunpack.i.h.bf16 %v9507_v57  ;;  %v6227_v29 = vunpack.i.l.bf16 %v9507_v57 }
 0xbc2   : > { %v6231_v14 = vpop.permute.xlu0 %6230  ;;  %v6243_v7 = vunpack.i.h.bf16 %v9513_v47  ;;  %v6242_v10 = vunpack.i.l.bf16 %v9513_v47 }
 0xbc3   : > { %v6233_v31 = vunpack.i.h.bf16 %v6231_v14  ;;  %v6232_v48 = vunpack.i.l.bf16 %v6231_v14  ;;  %v3662_v22 = vsel %vm3659_vm6, %v6227_v29, %v6228_v38 }
 0xbc5   : > { %v3622_v59 = vsel %vm3618_vm15, %v6232_v48, %v6233_v31  ;;  %vm10356_vm15 = vmmov %vm10323_vm0 }
 0xbc6   : > { %v3630_v15 = vsel %vm10345_vm13, %v6238_v23, %v3622_v59  ;;  %6308 = vset.pattern.permute.xlu1 %v6896_v28  ;;  %6307 = vset.pattern.permute.xlu2 %v6895_v54  ;;  %vm10358_vm13 = vmmov %vm10323_vm0 }
 0xbc7   : > { %v3679_v40 = vpack.c.bf16 %v3630_v15, %v3629_v3  ;;  %v3660_v15 = vsel %vm3659_vm6, %v6242_v10, %v6243_v7  ;;  %3745 = vperm.xlu1 %6308, %v3472_v18   ;;  %3739 = vperm.xlu2 %6307, %v3473_v46  }
 0xbc8   : > { %v6246_v53 = vpop.permute.xlu2 %6245 }
 0xbc9   : > { %3704 = vmatpush.bf16.msra.mxu1 %v3679_v40  ;;  %v6248_v12 = vunpack.i.h.bf16 %v6246_v53  ;;  %v6247_v25 = vunpack.i.l.bf16 %v6246_v53  ;;  %v6271_v55 = vpop.permute.xlu1 %6270 }
 0xbca   : > { %v6261_v51 = vpop.permute.xlu0 %6260  ;;  %v6273_v52 = vunpack.i.h.bf16 %v6271_v55  ;;  %v6272_v33 = vunpack.i.l.bf16 %v6271_v55 }
 0xbcb   : > { %v6263_v61 = vunpack.i.h.bf16 %v6261_v51  ;;  %v6262_v36 = vunpack.i.l.bf16 %v6261_v51 }
 0xbcd   : > { %3705 = vmatpush.bf16.msra.mxu1 %v3678_v1  ;;  %v3584_v60 = vsel %vm10348_vm8, %v6247_v25, %v6262_v36  ;;  %v3585_v5 = vsel %vm10349_vm14, %v6248_v12, %v6263_v61  ;;  %vm10361_vm8 = vmmov %vm10323_vm0 }
 0xbce   : > { %v3677_v20 = vpack.c.bf16 %v3585_v5, %v3584_v60  ;;  %vm10362_vm14 = vmmov %vm10323_vm0  ;;  %vm10364_vm0 = vcmask 523520  }
 0xbcf   : > { %6370 = vset.pattern.permute.xlu1 %v10178_v9  ;;  %6309 = vset.pattern.permute.xlu2 %v6896_v28  ;;  %vm10367_vm11 = vmmov %vm10364_vm0 }
 0xbd0   : > { %v6251_v11 = vpop.permute.xlu2 %6250  ;;  %3749 = vperm.xlu2 %6309, %v3473_v46  }
 0xbd1   : > { %3706 = vmatpush.bf16.msra.mxu1 %v3677_v20  ;;  %v6253_v21 = vunpack.i.h.bf16 %v6251_v11  ;;  %v6252_v31 = vunpack.i.l.bf16 %v6251_v11  ;;  %v6296_v53 = vpop.permute.xlu1 %6295 }
 0xbd2   : > { %v6266_v24 = vpop.permute.xlu0 %6265  ;;  %v6298_v42 = vunpack.i.h.bf16 %v6296_v53  ;;  %v6297_v61 = vunpack.i.l.bf16 %v6296_v53 }
 0xbd3   : > { %v6268_v63 = vunpack.i.h.bf16 %v6266_v24  ;;  %v6267_v19 = vunpack.i.l.bf16 %v6266_v24  ;;  %v3661_v32 = vsel %vm3659_vm6, %v6252_v31, %v6253_v21 }
 0xbd5   : > { %3707 = vmatpush.bf16.msra.mxu1 %v3676_v58  ;;  %v3556_v45 = vsel %vm10351_vm3, %v6267_v19, %v6272_v33  ;;  %v3557_v13 = vsel %vm10352_vm1, %v6268_v63, %v6273_v52  ;;  %v5111_v33 = vld [vmem:[#allocation7 + $0x60] sm:$0xf]  ;;  %v5161_v63 = vld [vmem:[#allocation7 + $0x64] sm:$0xf0]  ;;  %vm10365_vm3 = vcmask 1048320  }
 0xbd6   : > { %v3675_v50 = vpack.c.bf16 %v3557_v13, %v3556_v45  ;;  %v5112_v56 = vor.u32 %v5161_v63, %v5111_v33  ;;  %vm10366_vm1 = vmmov %vm10365_vm3 }
 0xbd8   : > { %v6256_v48 = vpop.permute.xlu2 %6255  ;;  %6371 = vset.pattern.permute.xlu2 %v10178_v9 }
 0xbd9   : > { %3708 = vmatpush.bf16.msra.mxu1 %v3675_v50  ;;  %v6258_v26 = vunpack.i.h.bf16 %v6256_v48  ;;  %v6257_v3 = vunpack.i.l.bf16 %v6256_v48  ;;  %v6301_v4 = vpop.permute.xlu1 %6300 }
 0xbda   : > { %v6276_v34 = vpop.permute.xlu0 %6275  ;;  %v6303_v30 = vunpack.i.h.bf16 %v6301_v4  ;;  %v6302_v55 = vunpack.i.l.bf16 %v6301_v4 }
 0xbdb   : > { %v6278_v14 = vunpack.i.h.bf16 %v6276_v34  ;;  %v6277_v62 = vunpack.i.l.bf16 %v6276_v34  ;;  %v3668_v12 = vsel %vm10357_vm5, %v6257_v3, %v3660_v15  ;;  %v3669_v25 = vsel %vm10358_vm13, %v6258_v26, %v3661_v32  ;;  %vm10370_vm13 = vmmov %vm10357_vm5 }
 0xbdc   : > { %v3680_v51 = vpack.c.bf16 %v3669_v25, %v3668_v12 }
 0xbdd   : > { %3709 = vmatpush.bf16.msra.mxu1 %v3674_v17  ;;  %v3663_v57 = vsel %vm3659_vm6, %v6277_v62, %v6278_v14 }
 0xbe2   : > { %v6281_v23 = vpop.permute.xlu0 %6280 }
 0xbe3   : > { %v6283_v2 = vunpack.i.h.bf16 %v6281_v23  ;;  %v6282_v59 = vunpack.i.l.bf16 %v6281_v23 }
 0xbe5   : > { %v3670_v47 = vsel %vm10355_vm10, %v6282_v59, %v3662_v22  ;;  %v3671_v40 = vsel %vm10356_vm15, %v6283_v2, %v3663_v57  ;;  %vm10368_vm10 = vmmov %vm10357_vm5 }
 0xbe6   : > { %v3681_v37 = vpack.c.bf16 %v3671_v40, %v3670_v47  ;;  %vm10369_vm15 = vmmov %vm10357_vm5 }
 0xbe8   : > { %3724 = vmatpush.bf16.msra.mxu2 %v3681_v37 }
 0xbea   : > { %v6286_v0 = vpop.permute.xlu0 %6285 }
 0xbeb   : > { %v6288_v36 = vunpack.i.h.bf16 %v6286_v0  ;;  %v6287_v1 = vunpack.i.l.bf16 %v6286_v0 }
 0xbec   : > { %3725 = vmatpush.bf16.msra.mxu2 %v3680_v51 }
 0xbed   : > { %v3528_v60 = vsel %vm10359_vm9, %v6287_v1, %v6297_v61  ;;  %v3529_v5 = vsel %vm10360_vm7, %v6288_v36, %v6298_v42  ;;  %v3774_v61 = vld [vmem:[#allocation9 + $0x70] sm:$0xff]  ;;  %vm10371_vm9 = vmmov %vm10357_vm5 }
 0xbee   : > { %v3673_v20 = vpack.c.bf16 %v3529_v5, %v3528_v60  ;;  %v3775_v60 = vld [vmem:[#allocation9 + $0x78] sm:$0xff]  ;;  %vm10372_vm7 = vmmov %vm10357_vm5 }
 0xbef   : > { %5117 = vmatmul.msk.bf16.vlgmr.msra.gmra.mxu2 %vm10361_vm8, %v5116_v43  ;;  %vm10374_vm8 = vmmov %vm10357_vm5 }
 0xbf0   : > { %3710 = vmatpush.bf16.msra.mxu1 %v3673_v20 }
 0xbf2   : > { %v6291_v24 = vpop.permute.xlu0 %6290 }
 0xbf3   : > { %v6293_v58 = vunpack.i.h.bf16 %v6291_v24  ;;  %v6292_v52 = vunpack.i.l.bf16 %v6291_v24 }
 0xbf5   : > { %v3526_v19 = vsel %vm10362_vm14, %v6292_v52, %v6302_v55  ;;  %v3527_v35 = vsel %vm10363_vm12, %v6293_v58, %v6303_v30  ;;  %vm10375_vm14 = vmmov %vm10357_vm5 }
 0xbf6   : > { %v3672_v27 = vpack.c.bf16 %v3527_v35, %v3526_v19  ;;  %vm10376_vm12 = vmmov %vm10357_vm5 }
 0xbf8   : > { %3711 = vmatpush.bf16.msra.mxu1 %v3672_v27 }
 0xbfb   : > { %3712 = vmatmul.bf16.vlgmr.msra.gmra.mxu1 %v5112_v56 }
 0xc18   : > { %v3685_v44 = vpop.permute.xlu2 %3684 }
 0xc21   : > { %v3740_v41 = vpop.permute.xlu2 %3739 }
 0xc24   : > { %v3690_v17 = vpop.permute.xlu0 %3689 }
 0xc2a   : > { %v3750_v21 = vpop.permute.xlu2 %3749 }
 0xc30   : > { %v3736_v45 = vpop.permute.xlu1 %3735 }
 0xc39   : > { %v3746_v18 = vpop.permute.xlu1 %3745 }
 0xc72   : > { %v3727_v50 = vpop.f32.mrf.mxu2 }
 0xc78   : > { %v3713_v13 = vpop.f32.mrf.mxu1 }
 0xc79   : > { %v3714_v11 = vadd.f32 %v3713_v13, %v3685_v44 }
 0xc7a   : > { %v3729_v10 = vpop.f32.mrf.mxu2 }
 0xc7b   : > { %v3728_v8 = vadd.f32 %v3727_v50, %v3714_v11 }
 0xc7d   : > { %v3732_v34 = vmax.f32 %v3728_v8, 0.0 }
 0xc7f   : > { %v3742_v46 = vmul.f32 %v3736_v45, %v3732_v34 }
 0xc80   : > { %v3715_v38 = vpop.f32.mrf.mxu1 }
 0xc81   : > { %v3752_v29 = vadd.f32 %v3746_v18, %v3742_v46  ;;  %v3716_v7 = vadd.f32 %v3715_v38, %v3690_v17 }
 0xc83   : > { %v3730_v14 = vadd.f32 %v3729_v10, %v3716_v7  ;;  %3764 = vrot.lane.b32.xlu0 %v3752_v29, %s6905_s7  ;;  %3756 = vrot.lane.b32.xlu2 %v3752_v29, %s6878_s18 }
 0xc85   : > { %v3733_v62 = vmax.f32 %v3730_v14, 0.0 }
 0xc87   : > { %v3743_v31 = vmul.f32 %v3740_v41, %v3733_v62 }
 0xc89   : > { %v3753_v48 = vadd.f32 %v3750_v21, %v3743_v31 }
 0xc8b   : > { %3766 = vrot.lane.b32.xlu1 %v3753_v48, %s6905_s7  ;;  %3758 = vrot.lane.b32.xlu0 %v3753_v48, %s6878_s18 }
 0xcdd   : > { %v3757_v22 = vpop.permute.xlu2 %3756 }
 0xcde   : > { %3762 = vst.msk [vmem:[#allocation3] sm:$0xff] %vm10364_vm0, %v3757_v22  ;;  %vm3899_vm0 = vcmask 654336  }
 0xce5   : > { %v3784_v32 = vld [vmem:[#allocation3] sm:$0xff] }
 0xcf5   : > { %v3765_v23 = vpop.permute.xlu0 %3764 }
 0xcf6   : > { %3770 = vst.msk [vmem:[#allocation3 + $0x20] sm:$0xff] %vm10365_vm3, %v3765_v23  ;;  %vm10377_vm3 = vmmov %vm10366_vm1 }
 0xcfd   : > { %v3767_v2 = vpop.permute.xlu1 %3766  ;;  %v3759_v59 = vpop.permute.xlu0 %3758  ;;  %v9560_v26 = vld [vmem:[#allocation3 + $0x20] sm:$0xff] }
 0xcfe   : > { %3771 = vst.msk [vmem:[#allocation3 + $0x68] sm:$0xff] %vm10366_vm1, %v3767_v2  ;;  %v9565_v3 = vpack.i.bf16 %v9482_v39, %v9560_v26  ;;  %vm10378_vm1 = vmmov %vm10367_vm11 }
 0xcff   : > { %3763 = vst.msk [vmem:[#allocation3 + $0x48] sm:$0xff] %vm10367_vm11, %v3759_v59  ;;  %vm10379_vm11 = vmmov %vm10378_vm1 }
 0xd00   : > { %6311 = vrot.lane.b32.xlu1 %v9565_v3, %s6912_s25 }
 0xd05   : > { %v9570_v15 = vld [vmem:[#allocation3 + $0x68] sm:$0xff] }
 0xd06   : > { %v9574_v57 = vpack.i.bf16 %v9484_v16, %v9570_v15  ;;  %v3785_v47 = vld [vmem:[#allocation3 + $0x48] sm:$0xff]  ;;  %v9592_v39 = vpack.i.bf16 %v9570_v15, %v9560_v26 }
 0xd07   : > { %v9576_v40 = vpack.i.bf16 %v3785_v47, %v3784_v32  ;;  %v5120_v47 = vld [vmem:[#allocation7 + $0x70] sm:$0xf] }
 0xd08   : > { %6321 = vrot.lane.b32.xlu2 %v9574_v57, %s6912_s25  ;;  %6316 = vrot.lane.b32.xlu1 %v9565_v3, %s6907_s17 }
 0xd09   : > { %6326 = vrot.lane.b32.xlu0 %v9576_v40, %s6913_s30 }
 0xd10   : > { %6331 = vrot.lane.b32.xlu2 %v9574_v57, %s6907_s17  ;;  %6341 = vrot.lane.b32.xlu1 %v9576_v40, %s6879_s23 }
 0xd11   : > { %6336 = vrot.lane.b32.xlu0 %v9576_v40, %s6910_s21 }
 0xd18   : > { %6346 = vrot.lane.b32.xlu2 %v9592_v39, %s6905_s7  ;;  %6356 = vrot.lane.b32.xlu1 %v9592_v39, %s6909_s11  ;;  %s4759_s11 = scalar_lea.hbm %s9965_s3, %s5167_s8 }
 0xd19   : > { %6351 = vrot.lane.b32.xlu0 %v9576_v40, %s6911_s24  ;;  %s4762_s24 = sshll.u32 %s4759_s11, 4  ;;  %s4763_s24 = int_to_ptr.hbm [resolvable:$true] %s4762_s24 }
 0xd20   : > { %6361 = vrot.lane.b32.xlu2 %v9576_v40, %s6914_s26  ;;  %3886 = vperm.xlu1 %6370, %v3774_v61  }
 0xd21   : > { %6366 = vrot.lane.b32.xlu0 %v9592_v39, %s6915_s27 }
 0xd28   : > { %3891 = vperm.xlu2 %6371, %v3775_v60   ;;  %6373 = vset.pattern.permute.xlu1 %v6895_v54 }
 0xd29   : > { %3920 = vperm.xlu0 %6372, %v3774_v61   ;;  %3924 = vperm.xlu1 %6373, %v3775_v60  }
 0xd30   : > { %6374 = vset.pattern.permute.xlu2 %v6896_v28 }
 0xd31   : > { %6496 = vset.pattern.permute.xlu0 %v10178_v9  ;;  %3930 = vperm.xlu2 %6374, %v3774_v61  }
 0xd32   : > { %6375 = vset.pattern.permute.xlu1 %v6896_v28 }
 0xd33   : > { %3934 = vperm.xlu1 %6375, %v3775_v60  }
 0xd39   : > { %6498 = vset.pattern.permute.xlu2 %v6895_v54 }
 0xd3b   : > { %6497 = vset.pattern.permute.xlu1 %v10178_v9 }
 0xd62   : > { %v6322_v16 = vpop.permute.xlu2 %6321 }
 0xd63   : > { %v6324_v37 = vunpack.i.h.bf16 %v6322_v16  ;;  %v6323_v12 = vunpack.i.l.bf16 %v6322_v16  ;;  %v5162_v16 = vld [vmem:[#allocation7 + $0x74] sm:$0xf0] }
 0xd65   : > { %v3874_v36 = vsel %vm3872_vm2, %v6323_v12, %v6324_v37 }
 0xd6a   : > { %v6332_v25 = vpop.permute.xlu2 %6331 }
 0xd6b   : > { %v6334_v30 = vunpack.i.h.bf16 %v6332_v25  ;;  %v6333_v55 = vunpack.i.l.bf16 %v6332_v25  ;;  %v5121_v25 = vor.u32 %v5162_v16, %v5120_v47 }
 0xd6d   : > { %v3853_v44 = vsel %vm3659_vm6, %v6333_v55, %v6334_v30 }
 0xd72   : > { %v6312_v53 = vpop.permute.xlu1 %6311  ;;  %v6347_v33 = vpop.permute.xlu2 %6346 }
 0xd73   : > { %v6314_v49 = vunpack.i.h.bf16 %v6312_v53  ;;  %v6313_v6 = vunpack.i.l.bf16 %v6312_v53  ;;  %v6349_v13 = vunpack.i.h.bf16 %v6347_v33  ;;  %v6348_v50 = vunpack.i.l.bf16 %v6347_v33 }
 0xd75   : > { %v3873_v1 = vsel %vm3872_vm2, %v6313_v6, %v6314_v49 }
 0xd7a   : > { %v6317_v0 = vpop.permute.xlu1 %6316  ;;  %v6362_v48 = vpop.permute.xlu2 %6361 }
 0xd7b   : > { %v6327_v51 = vpop.permute.xlu0 %6326  ;;  %v6319_v24 = vunpack.i.h.bf16 %v6317_v0  ;;  %v6318_v58 = vunpack.i.l.bf16 %v6317_v0  ;;  %v6364_v23 = vunpack.i.h.bf16 %v6362_v48  ;;  %v6363_v2 = vunpack.i.l.bf16 %v6362_v48 }
 0xd7c   : > { %v6329_v43 = vunpack.i.h.bf16 %v6327_v51  ;;  %v6328_v42 = vunpack.i.l.bf16 %v6327_v51 }
 0xd7d   : > { %v3852_v45 = vsel %vm3659_vm6, %v6318_v58, %v6319_v24  ;;  %vm10373_vm6 = vmmov %vm10357_vm5 }
 0xd7e   : > { %v3878_v5 = vsel %vm10368_vm10, %v6329_v43, %v3874_v36  ;;  %v3877_v20 = vsel %vm10369_vm15, %v6328_v42, %v3873_v1  ;;  %vm10380_vm10 = vmmov %vm10377_vm3 }
 0xd7f   : > { %v3883_v4 = vpack.c.bf16 %v3878_v5, %v3877_v20  ;;  %vm10381_vm15 = vmmov %vm10357_vm5 }
 0xd81   : > { %3906 = vmatpush.bf16.msra.mxu3 %v3883_v4 }
 0xd82   : > { %v6342_v52 = vpop.permute.xlu1 %6341  ;;  %v3892_v6 = vpop.permute.xlu2 %3891 }
 0xd83   : > { %v6337_v63 = vpop.permute.xlu0 %6336  ;;  %v6344_v19 = vunpack.i.h.bf16 %v6342_v52  ;;  %v6343_v35 = vunpack.i.l.bf16 %v6342_v52  ;;  %v3978_v52 = vld [vmem:[#allocation3 + $0xb8] sm:$0xff] }
 0xd84   : > { %v6339_v27 = vunpack.i.h.bf16 %v6337_v63  ;;  %v6338_v56 = vunpack.i.l.bf16 %v6337_v63 }
 0xd85   : > { %v3834_v34 = vsel %vm10371_vm9, %v6343_v35, %v6348_v50  ;;  %v3835_v17 = vsel %vm10372_vm7, %v6344_v19, %v6349_v13  ;;  %v3980_v13 = vld [vmem:[#allocation3 + $0x100] sm:$0xff]  ;;  %vm10383_vm9 = vmmov %vm10357_vm5  ;;  %vm4145_vm7 = vcmask 392192  }
 0xd86   : > { %v3856_v11 = vsel %vm10357_vm5, %v6338_v56, %v3852_v45  ;;  %v3857_v8 = vsel %vm10370_vm13, %v6339_v27, %v3853_v44  ;;  %v3881_v7 = vpack.c.bf16 %v3835_v17, %v3834_v34  ;;  %v3960_v34 = vld [vmem:[#allocation9 + $0x88] sm:$0xff]  ;;  %vm10382_vm13 = vmmov %vm10357_vm5 }
 0xd87   : > { %v3882_v41 = vpack.c.bf16 %v3857_v8, %v3856_v11 }
 0xd89   : > { %3907 = vmatpush.bf16.msra.mxu3 %v3882_v41  ;;  %v3959_v41 = vld [vmem:[#allocation9 + $0x80] sm:$0xff] }
 0xd8a   : > { %v6357_v18 = vpop.permute.xlu1 %6356 }
 0xd8b   : > { %v6359_v46 = vunpack.i.h.bf16 %v6357_v18  ;;  %v6358_v38 = vunpack.i.l.bf16 %v6357_v18  ;;  %v6352_v29 = vpop.permute.xlu0 %6351  ;;  %v3931_v36 = vpop.permute.xlu2 %3930 }
 0xd8c   : > { %v6354_v10 = vunpack.i.h.bf16 %v6352_v29  ;;  %v6353_v14 = vunpack.i.l.bf16 %v6352_v29 }
 0xd8d   : > { %3908 = vmatpush.bf16.msra.mxu3 %v3881_v7 }
 0xd8e   : > { %v3820_v62 = vsel %vm10373_vm6, %v6353_v14, %v6358_v38  ;;  %v3821_v21 = vsel %vm10374_vm8, %v6354_v10, %v6359_v46 }
 0xd8f   : > { %v3880_v31 = vpack.c.bf16 %v3821_v21, %v3820_v62 }
 0xd91   : > { %3909 = vmatpush.bf16.msra.mxu3 %v3880_v31 }
 0xd92   : > { %v3887_v49 = vpop.permute.xlu1 %3886 }
 0xd93   : > { %v6367_v22 = vpop.permute.xlu0 %6366 }
 0xd94   : > { %v6369_v59 = vunpack.i.h.bf16 %v6367_v22  ;;  %v6368_v32 = vunpack.i.l.bf16 %v6367_v22 }
 0xd96   : > { %v3806_v53 = vsel %vm10375_vm14, %v6363_v2, %v6368_v32  ;;  %v3807_v37 = vsel %vm10376_vm12, %v6364_v23, %v6369_v59 }
 0xd97   : > { %v3879_v12 = vpack.c.bf16 %v3807_v37, %v3806_v53 }
 0xd99   : > { %3910 = vmatpush.bf16.msra.mxu3 %v3879_v12 }
 0xd9b   : > { %v3921_v43 = vpop.permute.xlu0 %3920  ;;  %v3925_v42 = vpop.permute.xlu1 %3924 }
 0xd9c   : > { %5122 = vmatmul.msk.bf16.vlgmr.msra.gmra.mxu3 %vm3899_vm0, %v5121_v25 }
 0xda5   : > { %v3935_v30 = vpop.permute.xlu1 %3934 }
 0xe1f   : > { %v3912_v0 = vpop.f32.mrf.mxu3 }
 0xe20   : > { %v3913_v51 = vadd.f32 %v3912_v0, %v3887_v49 }
 0xe22   : > { %v3917_v61 = vmax.f32 %v3913_v51, 0.0 }
 0xe24   : > { %v3927_v1 = vmul.f32 %v3921_v43, %v3917_v61 }
 0xe26   : > { %v3937_v60 = vadd.f32 %v3931_v36, %v3927_v1 }
 0xe27   : > { %v3914_v5 = vpop.f32.mrf.mxu3 }
 0xe28   : > { %v3915_v20 = vadd.f32 %v3914_v5, %v3892_v6  ;;  %3941 = vrot.lane.b32.xlu1 %v3937_v60, %s6878_s18  ;;  %3949 = vrot.lane.b32.xlu2 %v3937_v60, %s6905_s7 }
 0xe2a   : > { %v3918_v4 = vmax.f32 %v3915_v20, 0.0 }
 0xe2c   : > { %v3928_v55 = vmul.f32 %v3925_v42, %v3918_v4 }
 0xe2e   : > { %v3938_v24 = vadd.f32 %v3935_v30, %v3928_v55 }
 0xe30   : > { %3951 = vrot.lane.b32.xlu0 %v3938_v24, %s6905_s7  ;;  %6382 = vrot.lane.b32.xlu1 %v9574_v57, %s6912_s25 }
 0xe31   : > { %3943 = vrot.lane.b32.xlu2 %v3938_v24, %s6878_s18 }
 0xe38   : > { %6377 = vrot.lane.b32.xlu0 %v9565_v3, %s6912_s25  ;;  %6407 = vrot.lane.b32.xlu1 %v9592_v39, %s6915_s27 }
 0xe39   : > { %6387 = vrot.lane.b32.xlu2 %v9576_v40, %s6913_s30 }
 0xe40   : > { %6397 = vrot.lane.b32.xlu0 %v9592_v39, %s6905_s7 }
 0xe41   : > { %6392 = vrot.lane.b32.xlu2 %v9576_v40, %s6879_s23 }
 0xe48   : > { %6402 = vrot.lane.b32.xlu0 %v9576_v40, %s6914_s26 }
 0xe82   : > { %v3950_v58 = vpop.permute.xlu2 %3949 }
 0xe83   : > { %3955 = vst.msk [vmem:[#allocation3 + $0xb0] sm:$0xff] %vm10377_vm3, %v3950_v58 }
 0xe8a   : > { %v3977_v33 = vld [vmem:[#allocation3 + $0xb0] sm:$0xff] }
 0xe8b   : > { %v3944_v63 = vpop.permute.xlu2 %3943  ;;  %v9643_v19 = vpack.i.bf16 %v3978_v52, %v3977_v33 }
 0xe8c   : > { %3948 = vst.msk [vmem:[#allocation3 + $0xd8] sm:$0xff] %vm10378_vm1, %v3944_v63 }
 0xe8d   : > { %6412 = vrot.lane.b32.xlu0 %v9643_v19, %s6912_s25  ;;  %6417 = vrot.lane.b32.xlu1 %v9643_v19, %s6916_s28 }
 0xe93   : > { %v9653_v44 = vld [vmem:[#allocation3 + $0xd8] sm:$0xff] }
 0xe9a   : > { %v3942_v35 = vpop.permute.xlu1 %3941 }
 0xe9b   : > { %3947 = vst.msk [vmem:[#allocation3 + $0x90] sm:$0xff] %vm10379_vm11, %v3942_v35 }
 0xea2   : > { %v3952_v27 = vpop.permute.xlu0 %3951  ;;  %v9651_v56 = vld [vmem:[#allocation3 + $0x90] sm:$0xff]  ;;  %v6383_v29 = vpop.permute.xlu1 %6382 }
 0xea3   : > { %3956 = vst.msk [vmem:[#allocation3 + $0xf8] sm:$0xff] %vm10380_vm10, %v3952_v27  ;;  %v9658_v45 = vpack.i.bf16 %v9653_v44, %v9651_v56  ;;  %v6385_v47 = vunpack.i.h.bf16 %v6383_v29  ;;  %v6384_v16 = vunpack.i.l.bf16 %v6383_v29 }
 0xea5   : > { %6432 = vrot.lane.b32.xlu0 %v9658_v45, %s6879_s23  ;;  %6427 = vrot.lane.b32.xlu2 %v9658_v45, %s6913_s30  ;;  %v4106_v43 = vsel %vm3872_vm2, %v6384_v16, %v6385_v47 }
 0xeaa   : > { %v3979_v50 = vld [vmem:[#allocation3 + $0xf8] sm:$0xff]  ;;  %v6378_v17 = vpop.permute.xlu0 %6377  ;;  %v9720_v21 = vpop.permute.xlu1 %6407 }
 0xeab   : > { %v6421_v11 = vpack.i.bf16 %v3980_v13, %v3979_v50  ;;  %v9664_v8 = vpack.i.bf16 %v3979_v50, %v3977_v33  ;;  %v6380_v23 = vunpack.i.h.bf16 %v6378_v17  ;;  %v6379_v2 = vunpack.i.l.bf16 %v6378_v17 }
 0xead   : > { %6452 = vrot.lane.b32.xlu2 %v9592_v39, %s6917_s29  ;;  %6422 = vrot.lane.b32.xlu1 %v6421_v11, %s6912_s25  ;;  %v4105_v25 = vsel %vm3872_vm2, %v6379_v2, %v6380_v23  ;;  %s4748_s25 = scalar_lea.sflag [#allocation6], %s7037_s22 }
 0xeae   : > { %6467 = vrot.lane.b32.xlu0 %v9664_v8, %s6917_s29 }
 0xeb2   : > { %v9711_v46 = vpop.permute.xlu0 %6397 }
 0xeb3   : > { %v6400_v63 = vunpack.i.h.bf16 %v9711_v46  ;;  %v6399_v35 = vunpack.i.l.bf16 %v9711_v46 }
 0xeb5   : > { %6457 = vrot.lane.b32.xlu2 %v9664_v8, %s6915_s27  ;;  %6437 = vrot.lane.b32.xlu1 %v9664_v8, %s6905_s7 }
 0xeb6   : > { %6477 = vrot.lane.b32.xlu0 %v9658_v45, %s6917_s29 }
 0xeba   : > { %v9714_v7 = vpop.permute.xlu0 %6402 }
 0xebd   : > { %6462 = vrot.lane.b32.xlu2 %v9658_v45, %s6918_s4  ;;  %6442 = vrot.lane.b32.xlu1 %v9658_v45, %s6914_s26 }
 0xebe   : > { %6482 = vrot.lane.b32.xlu0 %v9565_v3, %s6916_s28  ;;  %v6532_v3 = vpack.i.bf16 %v3980_v13, %v3978_v52 }
 0xec5   : > { %6472 = vrot.lane.b32.xlu2 %v6421_v11, %s6916_s28  ;;  %6447 = vrot.lane.b32.xlu1 %v9576_v40, %s6918_s4 }
 0xec6   : > { %4170 = vperm.xlu0 %6496, %v3959_v41  }
 0xecd   : > { %6492 = vrot.lane.b32.xlu2 %v9576_v40, %s6917_s29  ;;  %6487 = vrot.lane.b32.xlu1 %v9574_v57, %s6916_s28  ;;  %v6388_v57 = vpop.permute.xlu2 %6387 }
 0xece   : > { %6501 = vset.pattern.permute.xlu0 %v6896_v28  ;;  %v6389_v51 = vunpack.i.l.bf16 %v6388_v57  ;;  %v6390_v61 = vunpack.i.h.bf16 %v6388_v57 }
 0xecf   : > { %4235 = vperm.xlu0 %6501, %v3960_v34  }
 0xed0   : > { %v4113_v20 = vsel %vm10382_vm13, %v6389_v51, %v4105_v25  ;;  %v4114_v30 = vsel %vm10383_vm9, %v6390_v61, %v4106_v43  ;;  %v6404_v51 = vunpack.i.l.bf16 %v9714_v7  ;;  %v6410_v61 = vunpack.i.h.bf16 %v9720_v21 }
 0xed1   : > { %v4164_v33 = vpack.c.bf16 %v4114_v30, %v4113_v20 }
 0xed5   : > { %4221 = vperm.xlu2 %6498, %v3959_v41   ;;  %4175 = vperm.xlu1 %6497, %v3960_v34   ;;  %v9707_v18 = vpop.permute.xlu2 %6392 }
 0xed6   : > { %v6395_v17 = vunpack.i.h.bf16 %v9707_v18 }
 0xed7   : > { %6508 = vrot.lane.b32.xlu0 %v9592_v39, %s6905_s7 }
 0xed8   : > { %6652 = vset.pattern.permute.xlu0 %v10178_v9 }
 0xedd   : > { %6500 = vset.pattern.permute.xlu2 %v6896_v28  ;;  %6499 = vset.pattern.permute.xlu1 %v6895_v54 }
 0xede   : > { %4231 = vperm.xlu2 %6500, %v3959_v41   ;;  %4225 = vperm.xlu1 %6499, %v3960_v34  }
 0xedf   : > { %6513 = vrot.lane.b32.xlu0 %v9658_v45, %s6879_s23 }
 0xee6   : > { %6503 = vrot.lane.b32.xlu2 %v9576_v40, %s6879_s23  ;;  %6518 = vrot.lane.b32.xlu1 %v9664_v8, %s6905_s7 }
 0xee7   : > { %6533 = vrot.lane.b32.xlu0 %v6532_v3, %s6878_s18  ;;  %6653 = vset.pattern.permute.xlu1 %v10178_v9 }
 0xee8   : > { %6654 = vset.pattern.permute.xlu2 %v6895_v54 }
 0xeef   : > { %6548 = vrot.lane.b32.xlu0 %v9576_v40, %s6905_s7 }
 0xef7   : > { %6563 = vrot.lane.b32.xlu0 %v9592_v39, %s6917_s29 }
 0xeff   : > { %6573 = vrot.lane.b32.xlu0 %v6421_v11, %s6916_s28  ;;  %v6428_v38 = vpop.permute.xlu2 %6427  ;;  %v6413_v14 = vpop.permute.xlu0 %6412 }
 0xf00   : > { %v6418_v48 = vpop.permute.xlu1 %6417  ;;  %v6415_v59 = vunpack.i.h.bf16 %v6413_v14  ;;  %v6414_v32 = vunpack.i.l.bf16 %v6413_v14  ;;  %v6429_v53 = vunpack.i.l.bf16 %v6428_v38  ;;  %v6430_v42 = vunpack.i.h.bf16 %v6428_v38 }
 0xf01   : > { %v6420_v55 = vunpack.i.h.bf16 %v6418_v48  ;;  %v6419_v24 = vunpack.i.l.bf16 %v6418_v48  ;;  %v6394_v38 = vunpack.i.l.bf16 %v9707_v18 }
 0xf02   : > { %v4107_v49 = vsel %vm3872_vm2, %v6414_v32, %v6415_v59 }
 0xf03   : > { %v4115_v60 = vsel %vm10381_vm15, %v6429_v53, %v4107_v49  ;;  %v4148_v29 = vsel %vm4145_vm7, %v6419_v24, %v6420_v55 }
 0xf07   : > { %v9716_v10 = vpop.permute.xlu2 %6452 }
 0xf0f   : > { %v9718_v62 = vpop.permute.xlu2 %6457 }
 0xf10   : > { %v6459_v25 = vunpack.i.l.bf16 %v9718_v62 }
 0xf17   : > { %v6433_v31 = vpop.permute.xlu0 %6432  ;;  %v9722_v22 = vpop.permute.xlu2 %6462 }
 0xf18   : > { %v6435_v27 = vunpack.i.h.bf16 %v6433_v31  ;;  %v6434_v13 = vunpack.i.l.bf16 %v6433_v31 }
 0xf1f   : > { %v6423_v37 = vpop.permute.xlu1 %6422  ;;  %v6473_v1 = vpop.permute.xlu2 %6472 }
 0xf20   : > { %v9724_v12 = vpop.permute.xlu0 %6467  ;;  %v6425_v6 = vunpack.i.h.bf16 %v6423_v37  ;;  %v6424_v0 = vunpack.i.l.bf16 %v6423_v37  ;;  %v6475_v58 = vunpack.i.h.bf16 %v6473_v1  ;;  %v6474_v52 = vunpack.i.l.bf16 %v6473_v1 }
 0xf21   : > { %v6460_v37 = vunpack.i.h.bf16 %v9718_v62  ;;  %v6469_v62 = vunpack.i.l.bf16 %v9724_v12 }
 0xf22   : > { %v4108_v36 = vsel %vm3872_vm2, %v6424_v0, %v6425_v6  ;;  %v4149_v14 = vsel %vm4145_vm7, %v6474_v52, %v6475_v58  ;;  %vm10384_vm2 = vmmov %vm10357_vm5  ;;  %v6405_v0 = vunpack.i.h.bf16 %v9714_v7  ;;  %v6465_v7 = vunpack.i.h.bf16 %v9722_v22 }
 0xf23   : > { %v4116_v5 = vsel %vm10357_vm5, %v6430_v42, %v4108_v36  ;;  %vm10385_vm6 = vmmov %vm10384_vm2  ;;  %v6409_v36 = vunpack.i.l.bf16 %v9720_v21 }
 0xf24   : > { %v4165_v4 = vpack.c.bf16 %v4116_v5, %v4115_v60  ;;  %vm10386_vm8 = vmmov %vm10384_vm2  ;;  %v6470_v60 = vunpack.i.h.bf16 %v9724_v12 }
 0xf25   : > { %vm10387_vm14 = vmmov %vm10384_vm2 }
 0xf26   : > { %4190 = vmatpush.bf16.msrb.mxu0 %v4165_v4  ;;  %vm10388_vm12 = vmmov %vm10384_vm2  ;;  %v6464_v4 = vunpack.i.l.bf16 %v9722_v22 }
 0xf27   : > { %v6438_v50 = vpop.permute.xlu1 %6437  ;;  %v4069_v32 = vsel %vm10388_vm12, %v6394_v38, %v6399_v35  ;;  %vm10389_vm0 = vmmov %vm10384_vm2  ;;  %v6493_v12 = vpop.permute.xlu2 %6492  ;;  %v6454_v35 = vunpack.i.l.bf16 %v9716_v10 }
 0xf28   : > { %v6478_v11 = vpop.permute.xlu0 %6477  ;;  %v6440_v41 = vunpack.i.h.bf16 %v6438_v50  ;;  %v6439_v34 = vunpack.i.l.bf16 %v6438_v50  ;;  %v4070_v47 = vsel %vm10389_vm0, %v6395_v17, %v6400_v63  ;;  %vm10390_vm3 = vmmov %vm10389_vm0  ;;  %v6455_v63 = vunpack.i.h.bf16 %v9716_v10 }
 0xf29   : > { %v6480_v3 = vunpack.i.h.bf16 %v6478_v11  ;;  %v6479_v57 = vunpack.i.l.bf16 %v6478_v11  ;;  %v4162_v53 = vpack.c.bf16 %v4070_v47, %v4069_v32  ;;  %vm10391_vm1 = vmmov %vm10389_vm0 }
 0xf2a   : > { %4191 = vmatpush.bf16.msrb.mxu0 %v4164_v33  ;;  %v4071_v31 = vsel %vm10386_vm8, %v6434_v13, %v6439_v34  ;;  %v4072_v23 = vsel %vm10387_vm14, %v6435_v27, %v6440_v41  ;;  %vm10392_vm11 = vmmov %vm10389_vm0  ;;  %v5125_v41 = vld [vmem:[#allocation7 + $0x80] sm:$0xf]  ;;  %v5164_v34 = vld [vmem:[#allocation7 + $0x84] sm:$0xf0] }
 0xf2b   : > { %v4156_v48 = vsel %vm10384_vm2, %v6479_v57, %v4148_v29  ;;  %v4157_v46 = vsel %vm10385_vm6, %v6480_v3, %v4149_v14  ;;  %v4163_v59 = vpack.c.bf16 %v4072_v23, %v4071_v31  ;;  %v4041_v5 = vsel %vm10392_vm11, %v6404_v51, %v6409_v36  ;;  %vm10393_vm10 = vmmov %vm10389_vm0  ;;  %v5163_v23 = vld [vmem:[#allocation7 + $0x84] sm:$0xf] }
 0xf2c   : > { %v4167_v2 = vpack.c.bf16 %v4157_v46, %v4156_v48  ;;  %v4042_v20 = vsel %vm10393_vm10, %v6405_v0, %v6410_v61  ;;  %vm10394_vm15 = vmmov %vm10389_vm0  ;;  %v6495_v14 = vunpack.i.h.bf16 %v6493_v12  ;;  %v6494_v48 = vunpack.i.l.bf16 %v6493_v12 }
 0xf2d   : > { %v4160_v24 = vpack.c.bf16 %v4042_v20, %v4041_v5  ;;  %v4015_v52 = vsel %vm10394_vm15, %v6464_v4, %v6469_v62  ;;  %vm10395_vm5 = vmmov %vm10389_vm0  ;;  %v5126_v46 = vor.u32 %v5164_v34, %v5125_v41  ;;  %vm10405_vm11 = vcmask 1048320  }
 0xf2e   : > { %4210 = vmatpush.bf16.msrb.mxu1 %v4167_v2  ;;  %4192 = vmatpush.bf16.msrb.mxu0 %v4163_v59  ;;  %v4016_v33 = vsel %vm10395_vm5, %v6465_v7, %v6470_v60  ;;  %vm10396_vm13 = vmmov %vm10389_vm0  ;;  %v5127_v2 = vld [vmem:[#allocation7 + $0x88] sm:$0xf0] }
 0xf2f   : > { %v6443_v18 = vpop.permute.xlu1 %6442  ;;  %v4159_v50 = vpack.c.bf16 %v4016_v33, %v4015_v52  ;;  %vm10397_vm9 = vmmov %vm10389_vm0  ;;  %v4222_v47 = vpop.permute.xlu2 %4221 }
 0xf30   : > { %v6483_v16 = vpop.permute.xlu0 %6482  ;;  %v6445_v49 = vunpack.i.h.bf16 %v6443_v18  ;;  %v6444_v6 = vunpack.i.l.bf16 %v6443_v18  ;;  %vm10398_vm2 = vmmov %vm10389_vm0 }
 0xf31   : > { %v6485_v27 = vunpack.i.h.bf16 %v6483_v16  ;;  %v6484_v13 = vunpack.i.l.bf16 %v6483_v16  ;;  %vm10399_vm6 = vmmov %vm10389_vm0  ;;  %v5130_v16 = vor.u32 %v5163_v23, %v5127_v2 }
 0xf32   : > { %4193 = vmatpush.bf16.msrb.mxu0 %v4162_v53  ;;  %v4043_v43 = vsel %vm10390_vm3, %v6444_v6, %v6459_v25  ;;  %v4044_v42 = vsel %vm10391_vm1, %v6445_v49, %v6460_v37  ;;  %vm10400_vm8 = vmmov %vm10389_vm0  ;;  %vm10404_vm1 = vcmask 523520  }
 0xf33   : > { %v4161_v1 = vpack.c.bf16 %v4044_v42, %v4043_v43  ;;  %v4146_v57 = vsel %vm4145_vm7, %v6484_v13, %v6485_v27  ;;  %vm10401_vm14 = vmmov %vm10389_vm0 }
 0xf34   : > { %v4154_v59 = vsel %vm10398_vm2, %v6494_v48, %v4146_v57  ;;  %vm10402_vm12 = vmmov %vm10389_vm0  ;;  %v4287_v57 = vld [vmem:[#allocation3 + $0x190] sm:$0xff] }
 0xf35   : > { %vm10403_vm3 = vmmov %vm10389_vm0 }
 0xf36   : > { %4194 = vmatpush.bf16.msrb.mxu0 %v4161_v1  ;;  %vm10406_vm10 = vmmov %vm10404_vm1 }
 0xf37   : > { %v6448_v30 = vpop.permute.xlu1 %6447  ;;  %vm10407_vm15 = vmmov %vm10405_vm11 }
 0xf38   : > { %v9760_v55 = vpop.permute.xlu0 %4170  ;;  %v6450_v58 = vunpack.i.h.bf16 %v6448_v30  ;;  %v6449_v21 = vunpack.i.l.bf16 %v6448_v30  ;;  %v4232_v25 = vpop.permute.xlu2 %4231  ;;  %vm10408_vm5 = vmmov %vm10389_vm0 }
 0xf39   : > { %vm10411_vm2 = vmmov %vm10389_vm0 }
 0xf3a   : > { %4195 = vmatpush.bf16.msrb.mxu0 %v4160_v24  ;;  %v4013_v22 = vsel %vm10396_vm13, %v6449_v21, %v6454_v35  ;;  %v4014_v11 = vsel %vm10397_vm9, %v6450_v58, %v6455_v63  ;;  %vm10409_vm13 = vmmov %vm10389_vm0 }
 0xf3b   : > { %v4158_v29 = vpack.c.bf16 %v4014_v11, %v4013_v22  ;;  %vm10410_vm9 = vmmov %vm10389_vm0 }
 0xf3e   : > { %4196 = vmatpush.bf16.msrb.mxu0 %v4159_v50 }
 0xf3f   : > { %v6488_v3 = vpop.permute.xlu1 %6487 }
 0xf40   : > { %v6490_v17 = vunpack.i.h.bf16 %v6488_v3  ;;  %v6489_v38 = vunpack.i.l.bf16 %v6488_v3  ;;  %v6504_v0 = vpop.permute.xlu2 %6503 }
 0xf41   : > { %v4236_v31 = vpop.permute.xlu0 %4235  ;;  %v6506_v62 = vunpack.i.h.bf16 %v6504_v0  ;;  %v6505_v5 = vunpack.i.l.bf16 %v6504_v0 }
 0xf42   : > { %v4147_v10 = vsel %vm4145_vm7, %v6489_v38, %v6490_v17  ;;  %4197 = vmatpush.bf16.msrb.mxu0 %v4158_v29  ;;  %v4277_v17 = vld [vmem:[#allocation3 + $0x28] sm:$0xff]  ;;  %v4279_v38 = vld [vmem:[#allocation3 + $0x70] sm:$0xff] }
 0xf43   : > { %v4155_v32 = vsel %vm10399_vm6, %v6495_v14, %v4147_v10  ;;  %v6552_v14 = vpack.i.bf16 %v4279_v38, %v4277_v17  ;;  %vm10412_vm6 = vmmov %vm10389_vm0 }
 0xf44   : > { %v4166_v18 = vpack.c.bf16 %v4155_v32, %v4154_v59 }
 0xf45   : > { %4198 = vmatmul.bf16.vlgmr.msrb.gmra.mxu0 %v5126_v46 }
 0xf46   : > { %4211 = vmatpush.bf16.msrb.mxu1 %v4166_v18 }
 0xf47   : > { %v4176_v53 = vpop.permute.xlu1 %4175 }
 0xf49   : > { %5131 = vmatmul.msk.bf16.vlgmr.msrb.gmra.mxu1 %vm10400_vm8, %v5130_v16  ;;  %v6509_v37 = vpop.permute.xlu0 %6508  ;;  %v6617_v16 = vpack.i.bf16 %v4277_v17, %v9560_v26  ;;  %vm10413_vm8 = vmmov %vm10389_vm0 }
 0xf4a   : > { %v6511_v51 = vunpack.i.h.bf16 %v6509_v37  ;;  %v6510_v43 = vunpack.i.l.bf16 %v6509_v37 }
 0xf4c   : > { %v4402_v30 = vsel %vm10389_vm0, %v6505_v5, %v6510_v43  ;;  %v4403_v24 = vsel %vm10403_vm3, %v6506_v62, %v6511_v51  ;;  %vm10416_vm3 = vmmov %vm10389_vm0 }
 0xf4d   : > { %v4522_v58 = vpack.c.bf16 %v4403_v24, %v4402_v30 }
 0xf50   : > { %v4226_v49 = vpop.permute.xlu1 %4225 }
 0xf51   : > { %v6514_v6 = vpop.permute.xlu0 %6513 }
 0xf52   : > { %v6516_v61 = vunpack.i.h.bf16 %v6514_v6  ;;  %v6515_v36 = vunpack.i.l.bf16 %v6514_v6 }
 0xf58   : > { %v6519_v42 = vpop.permute.xlu1 %6518 }
 0xf59   : > { %v6521_v1 = vunpack.i.h.bf16 %v6519_v42  ;;  %v6520_v60 = vunpack.i.l.bf16 %v6519_v42 }
 0xf5b   : > { %v4404_v20 = vsel %vm10401_vm14, %v6515_v36, %v6520_v60  ;;  %v4405_v7 = vsel %vm10402_vm12, %v6516_v61, %v6521_v1  ;;  %vm10414_vm14 = vmmov %vm10389_vm0 }
 0xf5c   : > { %v4523_v4 = vpack.c.bf16 %v4405_v7, %v4404_v20  ;;  %vm10415_vm12 = vmmov %vm10389_vm0 }
 0xf5e   : > { %4554 = vmatpush.bf16.msrb.mxu2 %v4523_v4 }
 0xf62   : > { %4555 = vmatpush.bf16.msrb.mxu2 %v4522_v58 }
 0xfc2   : > { %v4199_v21 = vpop.f32.mrf.mxu0 }
 0xfc3   : > { %v4200_v52 = vadd.f32 %v4199_v21, %v9760_v55  ;;  %v4285_v55 = vld [vmem:[#allocation3 + $0x148] sm:$0xff] }
 0xfc4   : > { %v6522_v29 = vpack.i.bf16 %v4287_v57, %v4285_v55 }
 0xfc6   : > { %v4213_v33 = vpop.f32.mrf.mxu1 }
 0xfc7   : > { %v4214_v12 = vadd.f32 %v4213_v33, %v4200_v52 }
 0xfc9   : > { %v4218_v63 = vmax.f32 %v4214_v12, 0.0 }
 0xfca   : > { %v4201_v35 = vpop.f32.mrf.mxu0 }
 0xfcb   : > { %v4228_v27 = vmul.f32 %v4222_v47, %v4218_v63  ;;  %v4202_v50 = vadd.f32 %v4201_v35, %v4176_v53  ;;  %v6534_v53 = vpop.permute.xlu0 %6533 }
 0xfcc   : > { %v6536_v60 = vunpack.i.h.bf16 %v6534_v53  ;;  %v6535_v62 = vunpack.i.l.bf16 %v6534_v53 }
 0xfcd   : > { %v4238_v13 = vadd.f32 %v4232_v25, %v4228_v27 }
 0xfce   : > { %v4215_v22 = vpop.f32.mrf.mxu1 }
 0xfcf   : > { %v4216_v11 = vadd.f32 %v4215_v22, %v4202_v50  ;;  %4242 = vrot.lane.b32.xlu1 %v4238_v13, %s6878_s18 }
 0xfd1   : > { %v4219_v41 = vmax.f32 %v4216_v11, 0.0 }
 0xfd3   : > { %v4229_v34 = vmul.f32 %v4226_v49, %v4219_v41  ;;  %v6549_v25 = vpop.permute.xlu0 %6548 }
 0xfd4   : > { %v6550_v50 = vunpack.i.l.bf16 %v6549_v25 }
 0xfd5   : > { %v4239_v3 = vadd.f32 %v4236_v31, %v4229_v34 }
 0xfd7   : > { %4244 = vrot.lane.b32.xlu2 %v4239_v3, %s6878_s18  ;;  %4250 = vrot.lane.b32.xlu1 %v4238_v13, %s6905_s7  ;;  %v6551_v13 = vunpack.i.h.bf16 %v6549_v25  ;;  %v4260_v25 = vld [vmem:[#allocation9 + $0x90] sm:$0xff] }
 0xfdf   : > { %4252 = vrot.lane.b32.xlu2 %v4239_v3, %s6905_s7  ;;  %6538 = vrot.lane.b32.xlu1 %v9658_v45, %s6918_s4 }
 0xfe7   : > { %6523 = vrot.lane.b32.xlu2 %v6522_v29, %s6878_s18  ;;  %6553 = vrot.lane.b32.xlu1 %v6552_v14, %s6878_s18 }
 0xfef   : > { %6528 = vrot.lane.b32.xlu2 %v9658_v45, %s6905_s7  ;;  %6578 = vrot.lane.b32.xlu1 %v9658_v45, %s6917_s29 }
 0xff7   : > { %6543 = vrot.lane.b32.xlu2 %v9664_v8, %s6917_s29 }
 0xfff   : > { %6558 = vrot.lane.b32.xlu2 %v9576_v40, %s6918_s4 }
0x1007   : > { %6568 = vrot.lane.b32.xlu2 %v9643_v19, %s6916_s28 }
0x100f   : > { %6583 = vrot.lane.b32.xlu2 %v9664_v8, %s6879_s23 }
0x1031   : > { %v4245_v48 = vpop.permute.xlu2 %4244 }
0x1032   : > { %4249 = vst.msk [vmem:[#allocation3 + $0x168] sm:$0xff] %vm10404_vm1, %v4245_v48  ;;  %vm10417_vm1 = vmmov %vm10389_vm0 }
0x1039   : > { %v4253_v46 = vpop.permute.xlu2 %4252  ;;  %v9804_v19 = vld [vmem:[#allocation3 + $0x168] sm:$0xff] }
0x103a   : > { %4257 = vst.msk [vmem:[#allocation3 + $0x188] sm:$0xff] %vm10405_vm11, %v4253_v46  ;;  %vm10418_vm11 = vmmov %vm10389_vm0 }
0x1041   : > { %v4243_v10 = vpop.permute.xlu1 %4242  ;;  %v4286_v45 = vld [vmem:[#allocation3 + $0x188] sm:$0xff]  ;;  %v6524_v26 = vpop.permute.xlu2 %6523 }
0x1042   : > { %4248 = vst.msk [vmem:[#allocation3 + $0x120] sm:$0xff] %vm10406_vm10, %v4243_v10  ;;  %v6607_v31 = vpack.i.bf16 %v4287_v57, %v4286_v45  ;;  %v6526_v4 = vunpack.i.h.bf16 %v6524_v26  ;;  %v6525_v30 = vunpack.i.l.bf16 %v6524_v26  ;;  %vm10419_vm10 = vmmov %vm10389_vm0 }
0x1044   : > { %6608 = vrot.lane.b32.xlu2 %v6607_v31, %s6916_s28 }
0x1049   : > { %v4251_v23 = vpop.permute.xlu1 %4250  ;;  %v9802_v2 = vld [vmem:[#allocation3 + $0x120] sm:$0xff]  ;;  %v6529_v37 = vpop.permute.xlu2 %6528 }
0x104a   : > { %4256 = vst.msk [vmem:[#allocation3 + $0x140] sm:$0xff] %vm10407_vm15, %v4251_v23  ;;  %v9809_v59 = vpack.i.bf16 %v9804_v19, %v9802_v2  ;;  %v6531_v5 = vunpack.i.h.bf16 %v6529_v37  ;;  %v6530_v20 = vunpack.i.l.bf16 %v6529_v37  ;;  %vm10420_vm15 = vmmov %vm10389_vm0 }
0x104c   : > { %6633 = vrot.lane.b32.xlu2 %v9576_v40, %s6917_s29  ;;  %6598 = vrot.lane.b32.xlu0 %v9809_v59, %s6918_s4  ;;  %v6627_v40 = vpack.i.bf16 %v4279_v38, %v9570_v15  ;;  %v4512_v52 = vsel %vm10408_vm5, %v6530_v20, %v6535_v62  ;;  %v4513_v33 = vsel %vm10409_vm13, %v6531_v5, %v6536_v60  ;;  %vm10421_vm5 = vmmov %vm10389_vm0 }
0x104d   : > { %v4529_v57 = vpack.c.bf16 %v4513_v33, %v4512_v52  ;;  %vm10422_vm13 = vmmov %vm10389_vm0 }
0x1051   : > { %v4284_v32 = vld [vmem:[#allocation3 + $0x140] sm:$0xff]  ;;  %v6539_v49 = vpop.permute.xlu1 %6538  ;;  %v6544_v6 = vpop.permute.xlu2 %6543 }
0x1052   : > { %v9815_v47 = vpack.i.bf16 %v4286_v45, %v4284_v32  ;;  %v6587_v18 = vpack.i.bf16 %v4285_v55, %v4284_v32  ;;  %v6546_v34 = vunpack.i.h.bf16 %v6544_v6  ;;  %v6545_v3 = vunpack.i.l.bf16 %v6544_v6 }
0x1053   : > { %v6541_v17 = vunpack.i.h.bf16 %v6539_v49  ;;  %v6540_v38 = vunpack.i.l.bf16 %v6539_v49  ;;  %v4261_v49 = vld [vmem:[#allocation9 + $0x98] sm:$0xff] }
0x1054   : > { %6613 = vrot.lane.b32.xlu0 %v9809_v59, %s6917_s29  ;;  %6648 = vrot.lane.b32.xlu2 %v9815_v47, %s6905_s7 }
0x1055   : > { %6588 = vrot.lane.b32.xlu1 %v6587_v18, %s6916_s28 }
0x1059   : > { %v6554_v0 = vpop.permute.xlu1 %6553  ;;  %v9838_v51 = vpop.permute.xlu2 %6558 }
0x105a   : > { %v6556_v12 = vunpack.i.h.bf16 %v6554_v0  ;;  %v6555_v63 = vunpack.i.l.bf16 %v6554_v0  ;;  %v6561_v6 = vunpack.i.h.bf16 %v9838_v51 }
0x105c   : > { %6618 = vrot.lane.b32.xlu0 %v6617_v16, %s6916_s28  ;;  %v4510_v10 = vsel %vm10412_vm6, %v6550_v50, %v6555_v63  ;;  %v4511_v45 = vsel %vm10413_vm8, %v6551_v13, %v6556_v12  ;;  %4585 = vperm.xlu2 %6654, %v4260_v25   ;;  %vm10425_vm6 = vmmov %vm10389_vm0 }
0x105d   : > { %6593 = vrot.lane.b32.xlu1 %v9809_v59, %s6905_s7  ;;  %v4528_v62 = vpack.c.bf16 %v4511_v45, %v4510_v10  ;;  %vm10426_vm8 = vmmov %vm10389_vm0 }
0x1061   : > { %v9842_v42 = vpop.permute.xlu1 %6578  ;;  %v9844_v15 = vpop.permute.xlu2 %6568 }
0x1062   : > { %v6571_v48 = vunpack.i.h.bf16 %v9844_v15  ;;  %v6570_v46 = vunpack.i.l.bf16 %v9844_v15  ;;  %v4363_v15 = vsel %vm10415_vm12, %v6541_v17, %v6546_v34  ;;  %v6581_v5 = vunpack.i.h.bf16 %v9842_v42  ;;  %vm10428_vm12 = vmmov %vm10389_vm0 }
0x1063   : > { %v6580_v20 = vunpack.i.l.bf16 %v9842_v42 }
0x1064   : > { %6638 = vrot.lane.b32.xlu0 %v9592_v39, %s6879_s23  ;;  %v9836_v39 = vpop.permute.xlu0 %6563  ;;  %6656 = vset.pattern.permute.xlu2 %v6896_v28 }
0x1065   : > { %6603 = vrot.lane.b32.xlu1 %v9815_v47, %s6917_s29  ;;  %v6566_v52 = vunpack.i.h.bf16 %v9836_v39  ;;  %4595 = vperm.xlu2 %6656, %v4260_v25  }
0x1069   : > { %v9846_v1 = vpop.permute.xlu2 %6583 }
0x106c   : > { %v9840_v43 = vpop.permute.xlu0 %6573  ;;  %4533 = vperm.xlu0 %6652, %v4260_v25  }
0x106d   : > { %6623 = vrot.lane.b32.xlu1 %v9815_v47, %s6879_s23  ;;  %v6576_v22 = vunpack.i.h.bf16 %v9840_v43  ;;  %v6575_v41 = vunpack.i.l.bf16 %v9840_v43  ;;  %v4362_v43 = vsel %vm10414_vm14, %v6540_v38, %v6545_v3  ;;  %vm10427_vm14 = vmmov %vm10389_vm0  ;;  %6698 = vset.pattern.permute.xlu2 %v10178_v9 }
0x106e   : > { %v4520_v12 = vpack.c.bf16 %v4363_v15, %v4362_v43 }
0x106f   : > { %v4459_v33 = vsel %vm4145_vm7, %v6575_v41, %v6576_v22  ;;  %v6586_v22 = vunpack.i.h.bf16 %v9846_v1  ;;  %v6585_v41 = vunpack.i.l.bf16 %v9846_v1 }
0x1070   : > { %v4471_v50 = vsel %vm10422_vm13, %v6581_v5, %v4459_v33  ;;  %v5165_v5 = vld [vmem:[#allocation7 + $0x94] sm:$0xf] }
0x1071   : > { %v4315_v10 = vsel %vm10426_vm8, %v9653_v44, %v6586_v22 }
0x1074   : > { %6657 = vset.pattern.permute.xlu0 %v6896_v28 }
0x1075   : > { %6628 = vrot.lane.b32.xlu1 %v6627_v40, %s6916_s28  ;;  %4599 = vperm.xlu0 %6657, %v4261_v49   ;;  %s6819_s28 = scalar_lea.hbm %s9965_s3, 8 }
0x107d   : > { %6643 = vrot.lane.b32.xlu1 %v9809_v59, %s6879_s23  ;;  %6699 = vset.pattern.permute.xlu0 %v10178_v9  ;;  %s6919_s23 = smov 40  }
0x1085   : > { %4538 = vperm.xlu1 %6653, %v4261_v49  }
0x108d   : > { %6655 = vset.pattern.permute.xlu1 %v6895_v54 }
0x108e   : > { %4589 = vperm.xlu1 %6655, %v4261_v49   ;;  %v5134_v49 = vld [vmem:[#allocation7 + $0x90] sm:$0xf] }
0x109e   : > { %v6609_v55 = vpop.permute.xlu2 %6608 }
0x109f   : > { %v6611_v31 = vunpack.i.h.bf16 %v6609_v55  ;;  %v6610_v23 = vunpack.i.l.bf16 %v6609_v55 }
0x10be   : > { %v6599_v61 = vpop.permute.xlu0 %6598 }
0x10bf   : > { %v6601_v32 = vunpack.i.h.bf16 %v6599_v61  ;;  %v6600_v18 = vunpack.i.l.bf16 %v6599_v61 }
0x10c6   : > { %v6614_v21 = vpop.permute.xlu0 %6613 }
0x10c7   : > { %v6589_v36 = vpop.permute.xlu1 %6588  ;;  %v6616_v40 = vunpack.i.h.bf16 %v6614_v21  ;;  %v6615_v26 = vunpack.i.l.bf16 %v6614_v21 }
0x10c8   : > { %v6591_v29 = vunpack.i.h.bf16 %v6589_v36  ;;  %v6590_v14 = vunpack.i.l.bf16 %v6589_v36  ;;  %v6560_v36 = vunpack.i.l.bf16 %v9838_v51 }
0x10ca   : > { %v4460_v0 = vsel %vm4145_vm7, %v6590_v14, %v6591_v29 }
0x10cb   : > { %v4472_v51 = vsel %vm10417_vm1, %v6615_v26, %v4460_v0  ;;  %vm10431_vm1 = vmmov %vm10389_vm0 }
0x10cf   : > { %v6594_v7 = vpop.permute.xlu1 %6593 }
0x10d0   : > { %v6596_v24 = vunpack.i.h.bf16 %v6594_v7  ;;  %v6595_v58 = vunpack.i.l.bf16 %v6594_v7  ;;  %v4461_v7 = vsel %vm4145_vm7, %v6610_v23, %v6611_v31 }
0x10d1   : > { %v4473_v21 = vsel %vm10418_vm11, %v6616_v40, %v4461_v7  ;;  %vm4550_vm11 = vcmask 916480  }
0x10d2   : > { %v4515_v35 = vsel %vm10410_vm9, %v6596_v24, %v6526_v4  ;;  %v4514_v27 = vsel %vm10411_vm2, %v6595_v58, %v6525_v30  ;;  %v6619_v4 = vpop.permute.xlu0 %6618  ;;  %v6565_v24 = vunpack.i.l.bf16 %v9836_v39  ;;  %v4458_v58 = vsel %vm4145_vm7, %v6570_v46, %v6571_v48  ;;  %v6634_v39 = vpop.permute.xlu2 %6633  ;;  %vm10423_vm9 = vmmov %vm10389_vm0 }
0x10d3   : > { %v4530_v11 = vpack.c.bf16 %v4515_v35, %v4514_v27  ;;  %v4527_v35 = vpack.c.bf16 %v4473_v21, %v4472_v51  ;;  %v4361_v27 = vsel %vm10420_vm15, %v6561_v6, %v6566_v52  ;;  %v4470_v13 = vsel %vm10421_vm5, %v6580_v20, %v4458_v58  ;;  %vm10424_vm2 = vmmov %vm10389_vm0  ;;  %v5166_v6 = vld [vmem:[#allocation7 + $0x94] sm:$0xf0]  ;;  %v5136_v20 = vld [vmem:[#allocation7 + $0x98] sm:$0xf0] }
0x10d4   : > { %v4360_v42 = vsel %vm10419_vm10, %v6560_v36, %v6565_v24  ;;  %v4526_v55 = vpack.c.bf16 %v4471_v50, %v4470_v13  ;;  %v6620_v17 = vunpack.i.l.bf16 %v6619_v4  ;;  %v4314_v46 = vsel %vm10425_vm6, %v9651_v56, %v6585_v41 }
0x10d5   : > { %4569 = vmatpush.bf16.msrb.mxu3 %v4530_v11  ;;  %v4519_v3 = vpack.c.bf16 %v4361_v27, %v4360_v42  ;;  %v6636_v23 = vunpack.i.h.bf16 %v6634_v39  ;;  %v6635_v28 = vunpack.i.l.bf16 %v6634_v39  ;;  %v5139_v24 = vor.u32 %v5165_v5, %v5136_v20 }
0x10d6   : > { %vm10432_vm10 = vcmask 523520   ;;  %vm10433_vm15 = vcmask 1048320  }
0x10d7   : > { %v6604_v16 = vpop.permute.xlu1 %6603  ;;  %vm10434_vm5 = vmmov %vm10432_vm10 }
0x10d8   : > { %v6606_v53 = vunpack.i.h.bf16 %v6604_v16  ;;  %v6605_v37 = vunpack.i.l.bf16 %v6604_v16  ;;  %vm10435_vm13 = vmmov %vm10433_vm15 }
0x10d9   : > { %4570 = vmatpush.bf16.msrb.mxu3 %v4529_v57  ;;  %v6621_v57 = vunpack.i.h.bf16 %v6619_v4 }
0x10da   : > { %v4364_v61 = vsel %vm10389_vm0, %v6600_v18, %v6605_v37  ;;  %v4365_v60 = vsel %vm10416_vm3, %v6601_v32, %v6606_v53  ;;  %v6639_v14 = vpop.permute.xlu0 %6638  ;;  %v4517_v18 = vpack.c.bf16 %v4315_v10, %v4314_v46  ;;  %v6649_v56 = vpop.permute.xlu2 %6648  ;;  %v6707_v53 = vld [vmem:[#allocation3] sm:$0xff]  ;;  %v6708_v37 = vld [vmem:[#allocation3 + $0x48] sm:$0xff]  ;;  %vm10429_vm3 = vmmov %vm10389_vm0 }
0x10db   : > { %v4521_v30 = vpack.c.bf16 %v4365_v60, %v4364_v61  ;;  %v4456_v54 = vsel %vm4145_vm7, %v6620_v17, %v6621_v57  ;;  %v6640_v45 = vunpack.i.l.bf16 %v6639_v14  ;;  %v6651_v0 = vunpack.i.h.bf16 %v6649_v56  ;;  %v4625_v46 = vld [vmem:[#allocation3 + $0x48] sm:$0xff]  ;;  %v4626_v10 = vld [vmem:[#allocation3 + $0x90] sm:$0xff] }
0x10dc   : > { %v4468_v16 = vsel %vm10427_vm14, %v6635_v28, %v4456_v54  ;;  %v6650_v36 = vunpack.i.l.bf16 %v6649_v56  ;;  %v4632_v28 = vld [vmem:[#allocation3 + $0x20] sm:$0xff] }
0x10dd   : > { %4556 = vmatpush.bf16.msrb.mxu2 %v4521_v30  ;;  %4571 = vmatpush.bf16.msrb.mxu3 %v4528_v62  ;;  %v4312_v44 = vsel %vm10389_vm0, %v6707_v53, %v6640_v45  ;;  %v5135_v62 = vor.u32 %v5166_v6, %v5134_v49  ;;  %v4627_v45 = vld [vmem:[#allocation3 + $0xd8] sm:$0xff] }
0x10df   : > { %v6624_v63 = vpop.permute.xlu1 %6623 }
0x10e0   : > { %v6626_v11 = vunpack.i.h.bf16 %v6624_v63  ;;  %v6625_v34 = vunpack.i.l.bf16 %v6624_v63 }
0x10e1   : > { %4557 = vmatpush.bf16.msrb.mxu2 %v4520_v12  ;;  %4572 = vmatpush.bf16.msrb.mxu3 %v4527_v35 }
0x10e2   : > { %v4316_v38 = vsel %vm10423_vm9, %v9802_v2, %v6625_v34  ;;  %v4317_v29 = vsel %vm10424_vm2, %v9804_v19, %v6626_v11  ;;  %v6641_v2 = vunpack.i.h.bf16 %v6639_v14  ;;  %v4534_v9 = vpop.permute.xlu0 %4533  ;;  %v4586_v58 = vpop.permute.xlu2 %4585  ;;  %vm4704_vm9 = vcmask 130048  }
0x10e3   : > { %v4518_v1 = vpack.c.bf16 %v4317_v29, %v4316_v38  ;;  %vm4739_vm2 = vcmask 123904  }
0x10e4   : > { %v4313_v25 = vsel %vm10429_vm3, %v6708_v37, %v6641_v2  ;;  %v4624_v2 = vld [vmem:[#allocation3] sm:$0xff] }
0x10e5   : > { %4558 = vmatpush.bf16.msrb.mxu2 %v4519_v3  ;;  %4573 = vmatpush.bf16.msrb.mxu3 %v4526_v55  ;;  %v4516_v15 = vpack.c.bf16 %v4313_v25, %v4312_v44 }
0x10e7   : > { %v6629_v48 = vpop.permute.xlu1 %6628 }
0x10e8   : > { %v6631_v31 = vunpack.i.h.bf16 %v6629_v48  ;;  %v6630_v19 = vunpack.i.l.bf16 %v6629_v48 }
0x10e9   : > { %4559 = vmatpush.bf16.msrb.mxu2 %v4518_v1 }
0x10ea   : > { %v4457_v32 = vsel %vm4145_vm7, %v6630_v19, %v6631_v31  ;;  %vm10430_vm7 = vmmov %vm10389_vm0  ;;  %v4596_v63 = vpop.permute.xlu2 %4595  ;;  %v4600_v55 = vpop.permute.xlu0 %4599  ;;  %v6688_v31 = vpack.i.bf16 %v4625_v46, %v4624_v2  ;;  %v6678_v19 = vpack.i.bf16 %v4627_v45, %v4626_v10 }
0x10eb   : > { %v4469_v40 = vsel %vm10428_vm12, %v6636_v23, %v4457_v32  ;;  %v4633_v23 = vld [vmem:[#allocation3 + $0x68] sm:$0xff] }
0x10ec   : > { %v4525_v26 = vpack.c.bf16 %v4469_v40, %v4468_v16  ;;  %v6693_v32 = vpack.i.bf16 %v4633_v23, %v4632_v28  ;;  %v4623_v16 = vld [vmem:[#allocation9 + $0xa0] sm:$0x3] }
0x10ed   : > { %4560 = vmatpush.bf16.msrb.mxu2 %v4517_v18 }
0x10ee   : > { %4574 = vmatpush.bf16.msrb.mxu3 %v4525_v26 }
0x10ef   : > { %v6644_v43 = vpop.permute.xlu1 %6643 }
0x10f0   : > { %v6646_v61 = vunpack.i.h.bf16 %v6644_v43  ;;  %v6645_v60 = vunpack.i.l.bf16 %v6644_v43 }
0x10f1   : > { %4561 = vmatpush.bf16.msrb.mxu2 %v4516_v15 }
0x10f2   : > { %v4406_v7 = vsel %vm10430_vm7, %v6645_v60, %v6650_v36  ;;  %v4407_v4 = vsel %vm10431_vm1, %v6646_v61, %v6651_v0 }
0x10f3   : > { %v4524_v30 = vpack.c.bf16 %v4407_v4, %v4406_v7 }
0x10f4   : > { %4562 = vmatmul.bf16.vlgmr.msrb.gmra.mxu2 %v5135_v62 }
0x10f5   : > { %4575 = vmatpush.bf16.msrb.mxu3 %v4524_v30 }
0x10f7   : > { %v4539_v33 = vpop.permute.xlu1 %4538 }
0x10f8   : > { %5140 = vmatmul.msk.bf16.vlgmr.msrb.gmra.mxu3 %vm4550_vm11, %v5139_v24 }
0x1100   : > { %v4590_v39 = vpop.permute.xlu1 %4589 }
0x1177   : > { %v4563_v51 = vpop.f32.mrf.mxu2 }
0x1178   : > { %v4564_v21 = vadd.f32 %v4563_v51, %v4534_v9 }
0x117b   : > { %v4577_v52 = vpop.f32.mrf.mxu3 }
0x117c   : > { %v4578_v12 = vadd.f32 %v4577_v52, %v4564_v21 }
0x117e   : > { %v4582_v42 = vmax.f32 %v4578_v12, 0.0 }
0x117f   : > { %v4565_v35 = vpop.f32.mrf.mxu2 }
0x1180   : > { %v4592_v27 = vmul.f32 %v4586_v58, %v4582_v42  ;;  %v4566_v50 = vadd.f32 %v4565_v35, %v4539_v33 }
0x1182   : > { %v4602_v13 = vadd.f32 %v4596_v63, %v4592_v27 }
0x1183   : > { %v4579_v11 = vpop.f32.mrf.mxu3 }
0x1184   : > { %v4580_v34 = vadd.f32 %v4579_v11, %v4566_v50  ;;  %4606 = vrot.lane.b32.xlu1 %v4602_v13, %s6878_s18  ;;  %v4622_v50 = vld [vmem:[#allocation7 + $0xa0] sm:$0x1] }
0x1186   : > { %v4583_v3 = vmax.f32 %v4580_v34, 0.0 }
0x1188   : > { %v4593_v22 = vmul.f32 %v4590_v39, %v4583_v3 }
0x118a   : > { %v4603_v41 = vadd.f32 %v4600_v55, %v4593_v22 }
0x118c   : > { %4608 = vrot.lane.b32.xlu2 %v4603_v41, %s6878_s18  ;;  %4614 = vrot.lane.b32.xlu1 %v4602_v13, %s6905_s7 }
0x1194   : > { %4616 = vrot.lane.b32.xlu2 %v4603_v41, %s6905_s7  ;;  %s224_s7 = scalar_lea.vmem [#allocation10], %s4868_s5 }
0x1195   : > { %s4760_s21 = sshll.u32 %s224_s7, 4  ;;  %s4761_s21 = int_to_ptr.vmem [resolvable:$true] %s4760_s21 }
0x119c   : > { %6659 = vrot.lane.b32.xlu2 %v9809_v59, %s6913_s30 }
0x11a4   : > { %6684 = vrot.lane.b32.xlu2 %v9664_v8, %s6919_s23 }
0x11ac   : > { %4719 = vperm.xlu2 %6698, %v4623_v16  }
0x11e6   : > { %v4609_v57 = vpop.permute.xlu2 %4608 }
0x11e7   : > { %4613 = vst.msk [vmem:[#allocation3 + $0x1f8] sm:$0xff] %vm10432_vm10, %v4609_v57 }
0x11ee   : > { %v4617_v17 = vpop.permute.xlu2 %4616  ;;  %v4631_v54 = vld [vmem:[#allocation3 + $0x1f8] sm:$0xff] }
0x11ef   : > { %4621 = vst.msk [vmem:[#allocation3 + $0x218] sm:$0xff] %vm10433_vm15, %v4617_v17 }
0x11f6   : > { %v4607_v38 = vpop.permute.xlu1 %4606  ;;  %v4639_v1 = vld [vmem:[#allocation3 + $0x218] sm:$0xff]  ;;  %v6660_v40 = vpop.permute.xlu2 %6659 }
0x11f7   : > { %4612 = vst.msk [vmem:[#allocation3 + $0x1b0] sm:$0xff] %vm10434_vm5, %v4607_v38  ;;  %v6662_v6 = vunpack.i.h.bf16 %v6660_v40  ;;  %v6661_v0 = vunpack.i.l.bf16 %v6660_v40 }
0x11fe   : > { %v4615_v29 = vpop.permute.xlu1 %4614  ;;  %v4630_v14 = vld [vmem:[#allocation3 + $0x1b0] sm:$0xff]  ;;  %v6685_v62 = vpop.permute.xlu2 %6684 }
0x11ff   : > { %4620 = vst.msk [vmem:[#allocation3 + $0x1d0] sm:$0xff] %vm10435_vm13, %v4615_v29  ;;  %v6663_v48 = vpack.i.bf16 %v4631_v54, %v4630_v14  ;;  %v6687_v7 = vunpack.i.h.bf16 %v6685_v62  ;;  %v6686_v4 = vunpack.i.l.bf16 %v6685_v62 }
0x1201   : > { %6664 = vrot.lane.b32.xlu0 %v6663_v48, %s6913_s30 }
0x1206   : > { %v4638_v59 = vld [vmem:[#allocation3 + $0x1d0] sm:$0xff]  ;;  %v4720_v11 = vpop.permute.xlu2 %4719 }
0x1207   : > { %v6673_v8 = vpack.i.bf16 %v4639_v1, %v4638_v59 }
0x1209   : > { %6669 = vrot.lane.b32.xlu0 %v9815_v47, %s6919_s23  ;;  %6674 = vrot.lane.b32.xlu1 %v6673_v8, %s6919_s23 }
0x1211   : > { %6689 = vrot.lane.b32.xlu0 %v6688_v31, %s6913_s30  ;;  %6679 = vrot.lane.b32.xlu1 %v6678_v19, %s6913_s30  ;;  %s6813_s30 = sshra.s32 %s4763_s24, 4  ;;  %s6814_s30 = int_to_ptr.hbm [resolvable:$true] %s6813_s30 }
0x1212   : > { %s6815_s26 = scalar_lea.hbm %s6814_s30, 4  ;;  %p6820_p11 = scmp.lt.s32.totalorder %s6814_s30, %s9965_s3 }
0x1213   : > { %p6816_p1 = scmp.ne.s32.totalorder %s6814_s30, %s6815_s26  ;;  %p6821_p2 = scmp.lt.s32.totalorder %s6819_s28, %s6815_s26 }
0x1215   : > { %p6817_p4 = pnand %p6816_p1, %p7007_p3  ;;  %p6822_p9 = por %p6821_p2, %p6820_p11 }
0x1217   : > { %p6818_p8 = pneg %p6817_p4 }
0x1219   : > { %6694 = vrot.lane.b32.xlu1 %v6693_v32, %s6919_s23  ;;  %p6823_p10 = pnand %p6822_p9, %p6818_p8 }
0x1273   : > { %v6665_v18 = vpop.permute.xlu0 %6664 }
0x1274   : > { %v6667_v47 = vunpack.i.h.bf16 %v6665_v18  ;;  %v6666_v56 = vunpack.i.l.bf16 %v6665_v18 }
0x127b   : > { %v6670_v26 = vpop.permute.xlu0 %6669  ;;  %v6675_v53 = vpop.permute.xlu1 %6674 }
0x127c   : > { %v6672_v44 = vunpack.i.h.bf16 %v6670_v26  ;;  %v6671_v37 = vunpack.i.l.bf16 %v6670_v26  ;;  %v6677_v25 = vunpack.i.h.bf16 %v6675_v53  ;;  %v6676_v49 = vunpack.i.l.bf16 %v6675_v53 }
0x127e   : > { %v4712_v43 = vsel %vm4704_vm9, %v6667_v47, %v6677_v25  ;;  %v4711_v15 = vsel %vm4704_vm9, %v6666_v56, %v6676_v49  ;;  %v4709_v61 = vsel %vm4704_vm9, %v6661_v0, %v6671_v37  ;;  %v4710_v60 = vsel %vm4704_vm9, %v6662_v6, %v6672_v44 }
0x127f   : > { %v4716_v36 = vpack.c.bf16 %v4712_v43, %v4711_v15  ;;  %v4715_v20 = vpack.c.bf16 %v4710_v60, %v4709_v61 }
0x1281   : > { %4729 = vmatpush.bf16.msra.mxu1 %v4716_v36 }
0x1283   : > { %v6680_v5 = vpop.permute.xlu1 %6679  ;;  %v6690_v21 = vpop.permute.xlu0 %6689 }
0x1284   : > { %v6682_v30 = vunpack.i.h.bf16 %v6680_v5  ;;  %v6681_v24 = vunpack.i.l.bf16 %v6680_v5  ;;  %v6692_v33 = vunpack.i.h.bf16 %v6690_v21  ;;  %v6691_v12 = vunpack.i.l.bf16 %v6690_v21 }
0x1285   : > { %4730 = vmatpush.bf16.msra.mxu1 %v4715_v20 }
0x1286   : > { %v4707_v9 = vsel %vm4704_vm9, %v6681_v24, %v6686_v4  ;;  %v4708_v58 = vsel %vm4704_vm9, %v6682_v30, %v6687_v7 }
0x1287   : > { %v4714_v51 = vpack.c.bf16 %v4708_v58, %v4707_v9 }
0x1289   : > { %4731 = vmatpush.bf16.msra.mxu1 %v4714_v51 }
0x128b   : > { %v6695_v52 = vpop.permute.xlu1 %6694 }
0x128c   : > { %v6697_v42 = vunpack.i.h.bf16 %v6695_v52  ;;  %v6696_v63 = vunpack.i.l.bf16 %v6695_v52 }
0x128e   : > { %v4705_v35 = vsel %vm4704_vm9, %v6691_v12, %v6696_v63  ;;  %v4706_v27 = vsel %vm4704_vm9, %v6692_v33, %v6697_v42 }
0x128f   : > { %v4713_v13 = vpack.c.bf16 %v4706_v27, %v4705_v35 }
0x1291   : > { %4732 = vmatpush.bf16.msra.mxu1 %v4713_v13 }
0x1294   : > { %5141 = vmatmul.msk.bf16.vlgmr.msra.gmra.mxu1 %vm3092_vm4, %v4622_v50 }
0x1311   : > { %v4734_v34 = vpop.f32.mrf.mxu1 }
0x1312   : > { %v4735_v39 = vadd.f32 %v4734_v34, %v4720_v11 }
0x1314   : > { %v4738_v3 = vmax.f32 %v4735_v39, 0.0 }
0x1316   : > { %4742 = vrot.lane.b32.xlu0 %v4738_v3, %s6918_s4  ;;  %4740 = vst.msk [vmem:[%s224_s7] sm:$0x3] %vm4739_vm2, %v4738_v3 }
0x1319   : > { %v4736_v55 = vpop.f32.mrf.mxu1 }
0x1388   : > { %v4743_v22 = vpop.permute.xlu0 %4742 }
0x1389   : > { %5142 = vst.msk [vmem:[%s224_s7 + $0x2] sm:$0x3] %vm4739_vm2, %v4743_v22 }
0x138a   : > { %6826 = shalt.err (!%p6823_p10)
}
0x138b   : > { %s6920_s22 = smov 2  }
0x138c   : > { %5178 = dma.vmem_to_hbm [thread:$0]  (%p7007_p3), %s4761_s21, 64, %s4763_s24, %s4748_s25, %s6878_s18, %s6878_s18, %s6920_s22  }
0x138d PF: > { %s4777_s23 = sand.u32 1, %s6857_s12   ;;  %p10436_p12 = scmp.ge.s32.totalorder %s6869_s15, 2 }
0x138e   : > { %s4778_s5 = scalar_lea.sflag [#allocation6], %s4777_s23 }
0x138f   : > { %p5192_p13 = pnand %p10436_p12, %p6976_p6 }
0x1391   : > { %p5193_p0 = pneg %p5192_p13 }
0x1393   : > { %6852 = dma.done.wait (%p5193_p0), %s4778_s5, 64  }
0x1394   : > { %6854 = vsyncadd (%p5193_p0), %s4778_s5, 4294967232  ;;  %p17_p5 = scmp.ge.s32.totalorder %s6997_s6, 4   ;;  %s10437_s12 = smov %s6861_s13 }
0x1395   : > { %s10438_s13 = smov %s6865_s14  ;;  %s10439_s14 = smov %s7013_s10 }
0x1396   : > { %s10440_s15 = smov %s6997_s6  ;;  %19 = sbr.rel (!%p17_p5) target bundleno = 6 (0x6), region = 89 }
0x139b   :  { %4784 = vsyncpa [#allocation5], 1 }
0x139c   :  { %4786 = vsyncpa [#allocation5 + $0x1], 1 }
0x139d   :  { %4787 = vsyncpa [#allocation8], 1 }
0x139e   :  { %4788 = vsyncpa [#allocation6], 1 }
0x139f   :  { %4790 = vsyncpa [#allocation6 + $0x1], 1 }

</bundles_post_ra>
